<compile_context>
chip_gen: v7x
topology: tpu7x:2x2x1
jax: 0.10.0
libtpu: 0.0.40
codegen_flags: <defaults>
</compile_context>

<pallas_src>
import functools

import jax
import jax.numpy as jnp
from jax.experimental import pallas as pl
from jax.experimental.pallas import tpu as pltpu


# ----------------------------------------------------------------------------
# Kernel A: ConvTranspose2dUsingLinear core = Linear + ReLU + GroupNorm(1, 4*Cup)
# fused into a single per-sample kernel (one HBM read of x1, one HBM write of y).
# ----------------------------------------------------------------------------
def up_linear_gn_kernel(x_ref, w_ref, b_ref, g_ref, beta_ref, o_ref, *, eps):
    # x_ref: (1, H*W, C1); w: (C1, 4*Cup); b/g/beta: (1, 4*Cup); o: (1, H*W, 4*Cup)
    x = x_ref[0]
    y = jnp.dot(x, w_ref[...], preferred_element_type=jnp.float32) + b_ref[...]
    y = jnp.maximum(y, 0.0)
    # GroupNorm(num_groups=1): stats over the whole sample, single pass.
    n = y.size
    mean = jnp.sum(y) / n
    var = jnp.sum(y * y) / n - mean * mean
    y = (y - mean) * jax.lax.rsqrt(var + eps)
    o_ref[0] = (y * g_ref[...] + beta_ref[...]).astype(o_ref.dtype)


# ----------------------------------------------------------------------------
# Kernel B: pad + concat + DoubleConv fused into ONE kernel per sample.
#   - zero-padded VMEM scratch replaces HBM jnp.pad (both the diffY/diffX pad
#     and the conv 'SAME' halo are just zeros in the scratch)
#   - the channel concat is eliminated by splitting conv1's weight (w1_x2 | w1_up)
#   - conv -> GroupNorm(1) -> ReLU twice; all intermediates stay in VMEM
# ----------------------------------------------------------------------------
def doubleconv_kernel(x2_ref, up_ref, w1x2_ref, w1up_ref, g1_ref, b1_ref,
                      w2_ref, g2_ref, b2_ref, o_ref,
                      x2p_buf, up_buf, h_buf, *, eps, pad_t, pad_l):
    Ho, Wo, OUT = o_ref.shape[1], o_ref.shape[2], o_ref.shape[3]
    Hu, Wu = up_ref.shape[1], up_ref.shape[2]

    # Zero-padded staging buffers in VMEM (no HBM pad / concat).
    x2p_buf[...] = jnp.zeros_like(x2p_buf)
    up_buf[...] = jnp.zeros_like(up_buf)
    h_buf[...] = jnp.zeros_like(h_buf)
    x2p_buf[1:1 + Ho, 1:1 + Wo, :] = x2_ref[0]
    up_buf[1 + pad_t:1 + pad_t + Hu, 1 + pad_l:1 + pad_l + Wu, :] = up_ref[0]

    def conv3x3(sources):
        # TODO(synk): batch the 9 taps into one im2col (H*W, 9*Cin) MXU dot once
        # unaligned minor-dim concatenate is verified on the target Mosaic build;
        # at these channel counts the per-tap dots are not the bottleneck.
        acc = jnp.zeros((Ho, Wo, OUT), jnp.float32)
        for dy in range(3):
            for dx in range(3):
                t = dy * 3 + dx
                for src_buf, w_ref in sources:
                    patch = src_buf[dy:dy + Ho, dx:dx + Wo, :]
                    acc = acc + jnp.einsum(
                        "hwc,co->hwo", patch, w_ref[t],
                        preferred_element_type=jnp.float32)
        return acc

    def gn_relu(h, g_ref, b_ref):
        # GroupNorm(1) over the whole sample, one-pass stats, fused ReLU.
        n = h.size
        mean = jnp.sum(h) / n
        var = jnp.sum(h * h) / n - mean * mean
        y = (h - mean) * jax.lax.rsqrt(var + eps)
        return jnp.maximum(y * g_ref[...] + b_ref[...], 0.0)

    h1 = gn_relu(conv3x3([(x2p_buf, w1x2_ref), (up_buf, w1up_ref)]),
                 g1_ref, b1_ref)
    h_buf[1:1 + Ho, 1:1 + Wo, :] = h1
    h2 = gn_relu(conv3x3([(h_buf, w2_ref)]), g2_ref, b2_ref)
    o_ref[0] = h2.astype(o_ref.dtype)


# ----------------------------------------------------------------------------
# Up.forward (x1, x2 in NCHW like PyTorch)
# ----------------------------------------------------------------------------
def up_forward(x1_nchw, x2_nchw, p):
    B, C1, H, W = x1_nchw.shape
    _, C2, Ho, Wo = x2_nchw.shape
    Cup = C1 // 2
    C4 = 4 * Cup
    OUT = p["g1"].shape[0]
    eps = 1e-5

    # ---- Kernel A: linear + relu + groupnorm (fused, per sample) ----
    x1_flat = jnp.transpose(x1_nchw, (0, 2, 3, 1)).reshape(B, H * W, C1)
    y = pl.pallas_call(
        functools.partial(up_linear_gn_kernel, eps=eps),
        out_shape=jax.ShapeDtypeStruct((B, H * W, C4), jnp.float32),
        grid=(B,),
        in_specs=[
            pl.BlockSpec((1, H * W, C1), lambda b: (b, 0, 0)),
            pl.BlockSpec((C1, C4), lambda b: (0, 0)),
            pl.BlockSpec((1, C4), lambda b: (0, 0)),
            pl.BlockSpec((1, C4), lambda b: (0, 0)),
            pl.BlockSpec((1, C4), lambda b: (0, 0)),
        ],
        out_specs=pl.BlockSpec((1, H * W, C4), lambda b: (b, 0, 0)),
        compiler_params=pltpu.CompilerParams(dimension_semantics=("parallel",)),
    )(x1_flat,
      p["up_w"], p["up_b"].reshape(1, C4),
      p["up_gamma"].reshape(1, C4), p["up_beta"].reshape(1, C4))

    # ---- pixel shuffle: channel c*4 + r*2 + s -> spatial (2h+r, 2w+s) ----
    # TODO(synk): move this tiny interleave into kernel B via strided VMEM
    # scatter once multi-axis strided ref stores are verified on this toolchain;
    # kept as XLA layout glue here for lowering safety (tensor is a few KB).
    up = y.reshape(B, H, W, Cup, 2, 2)
    up = jnp.transpose(up, (0, 1, 4, 2, 5, 3)).reshape(B, 2 * H, 2 * W, Cup)

    x2 = jnp.transpose(x2_nchw, (0, 2, 3, 1))
    diffY = Ho - 2 * H
    diffX = Wo - 2 * W

    # ---- Kernel B: pad + concat + DoubleConv, fully fused ----
    out = pl.pallas_call(
        functools.partial(doubleconv_kernel, eps=eps,
                          pad_t=diffY // 2, pad_l=diffX // 2),
        out_shape=jax.ShapeDtypeStruct((B, Ho, Wo, OUT), jnp.float32),
        grid=(B,),
        in_specs=[
            pl.BlockSpec((1, Ho, Wo, C2), lambda b: (b, 0, 0, 0)),
            pl.BlockSpec((1, 2 * H, 2 * W, Cup), lambda b: (b, 0, 0, 0)),
            pl.BlockSpec((9, C2, OUT), lambda b: (0, 0, 0)),
            pl.BlockSpec((9, Cup, OUT), lambda b: (0, 0, 0)),
            pl.BlockSpec((1, OUT), lambda b: (0, 0)),
            pl.BlockSpec((1, OUT), lambda b: (0, 0)),
            pl.BlockSpec((9, OUT, OUT), lambda b: (0, 0, 0)),
            pl.BlockSpec((1, OUT), lambda b: (0, 0)),
            pl.BlockSpec((1, OUT), lambda b: (0, 0)),
        ],
        out_specs=pl.BlockSpec((1, Ho, Wo, OUT), lambda b: (b, 0, 0, 0)),
        scratch_shapes=[
            pltpu.VMEM((Ho + 2, Wo + 2, C2), jnp.float32),
            pltpu.VMEM((Ho + 2, Wo + 2, Cup), jnp.float32),
            pltpu.VMEM((Ho + 2, Wo + 2, OUT), jnp.float32),
        ],
        compiler_params=pltpu.CompilerParams(dimension_semantics=("parallel",)),
    )(x2, up,
      p["w1_x2"], p["w1_up"],
      p["g1"].reshape(1, OUT), p["b1"].reshape(1, OUT),
      p["w2"], p["g2"].reshape(1, OUT), p["b2"].reshape(1, OUT))

    return jnp.transpose(out, (0, 3, 1, 2))                        # NCHW


# ----------------------------------------------------------------------------
# Pure-JAX reference (mirrors the PyTorch code path, NCHW) for validation
# ----------------------------------------------------------------------------
def _gn_ref(x, g, b, eps=1e-5):
    B = x.shape[0]
    m = x.reshape(B, -1).mean(axis=1).reshape(B, 1, 1, 1)
    v = jnp.square(x - m).reshape(B, -1).mean(axis=1).reshape(B, 1, 1, 1)
    xn = (x - m) * jax.lax.rsqrt(v + eps)
    return xn * g.reshape(1, -1, 1, 1) + b.reshape(1, -1, 1, 1)


def ref_forward(x1, x2, p):
    B, C1, H, W = x1.shape
    Cup = C1 // 2
    x = jnp.transpose(x1, (0, 2, 3, 1)).reshape(B * H * W, C1)
    x = jnp.maximum(x @ p["up_w"] + p["up_b"], 0.0)
    x = jnp.transpose(x.reshape(B, H, W, 4 * Cup), (0, 3, 1, 2))
    x = _gn_ref(x, p["up_gamma"], p["up_beta"])
    x = x.reshape(B, Cup, 2, 2, H, W)
    x = jnp.transpose(x, (0, 1, 4, 2, 5, 3)).reshape(B, Cup, 2 * H, 2 * W)
    diffY = x2.shape[2] - x.shape[2]
    diffX = x2.shape[3] - x.shape[3]
    x = jnp.pad(x, ((0, 0), (0, 0),
                    (diffY // 2, diffY - diffY // 2),
                    (diffX // 2, diffX - diffX // 2)))
    xcat = jnp.concatenate([x2, x], axis=1)

    def conv(inp, w_taps):
        Cin, Cout = w_taps.shape[1], w_taps.shape[2]
        w_oihw = jnp.transpose(w_taps.reshape(3, 3, Cin, Cout), (3, 2, 0, 1))
        return jax.lax.conv_general_dilated(
            inp, w_oihw, (1, 1), "SAME",
            dimension_numbers=("NCHW", "OIHW", "NCHW"))

    w1_full = jnp.concatenate([p["w1_x2"], p["w1_up"]], axis=1)    # (9, C2+Cup, OUT)
    h = jnp.maximum(_gn_ref(conv(xcat, w1_full), p["g1"], p["b1"]), 0.0)
    h = jnp.maximum(_gn_ref(conv(h, p["w2"]), p["g2"], p["b2"]), 0.0)
    return h


# ----------------------------------------------------------------------------
if __name__ == "__main__":
    B = 2
    C1 = 8            # x1_in_channels
    C2 = 4            # x2_in_channels
    H = W = 8         # x1 spatial; x2 spatial = 2H x 2W
    OUT = 8           # out_channels
    Cup = C1 // 2

    key = jax.random.PRNGKey(0)
    ks = jax.random.split(key, 13)

    x1 = jax.random.normal(ks[0], (B, C1, H, W), jnp.float32)
    x2 = jax.random.normal(ks[1], (B, C2, 2 * H, 2 * W), jnp.float32)

    params = {
        # ConvTranspose2dUsingLinear: Linear(C1 -> 4*Cup) + ReLU, GroupNorm(1, 4*Cup)
        "up_w": 0.2 * jax.random.normal(ks[2], (C1, 4 * Cup), jnp.float32),
        "up_b": 0.1 * jax.random.normal(ks[3], (4 * Cup,), jnp.float32),
        "up_gamma": 1.0 + 0.1 * jax.random.normal(ks[4], (4 * Cup,), jnp.float32),
        "up_beta": 0.1 * jax.random.normal(ks[5], (4 * Cup,), jnp.float32),
        # DoubleConv: conv1 (split over [x2 | up] channels), conv2 (OUT -> OUT);
        # weights stored (9, Cin, Cout) with tap = 3*dy + dx.
        "w1_x2": 0.2 * jax.random.normal(ks[6], (9, C2, OUT), jnp.float32),
        "w1_up": 0.2 * jax.random.normal(ks[7], (9, Cup, OUT), jnp.float32),
        "g1": 1.0 + 0.1 * jax.random.normal(ks[8], (OUT,), jnp.float32),
        "b1": 0.1 * jax.random.normal(ks[9], (OUT,), jnp.float32),
        "w2": 0.2 * jax.random.normal(ks[10], (9, OUT, OUT), jnp.float32),
        "g2": 1.0 + 0.1 * jax.random.normal(ks[11], (OUT,), jnp.float32),
        "b2": 0.1 * jax.random.normal(ks[12], (OUT,), jnp.float32),
    }

    fwd = jax.jit(up_forward)
    out = jax.block_until_ready(fwd(x1, x2, params))
    ref = jax.block_until_ready(ref_forward(x1, x2, params))

    assert out.shape == (B, OUT, 2 * H, 2 * W), out.shape
    err = float(jnp.max(jnp.abs(out - ref)))
    assert err < 2e-4, err

    print("KERNEL_OK")
</pallas_src>

<mosaic_0001>
module attributes {stable_mosaic.version = 11 : i64} {
  func.func @up_linear_gn_kernel(%arg0: i32, %arg1: memref<1x64x8xf32, #tpu.memory_space<vmem>>, %arg2: memref<8x16xf32, #tpu.memory_space<vmem>>, %arg3: memref<1x16xf32, #tpu.memory_space<vmem>>, %arg4: memref<1x16xf32, #tpu.memory_space<vmem>>, %arg5: memref<1x16xf32, #tpu.memory_space<vmem>>, %arg6: memref<1x64x16xf32, #tpu.memory_space<vmem>>) attributes {dimension_semantics = [#tpu.dimension_semantics<parallel>], iteration_bounds = array<i64: 2>, scalar_prefetch = 0 : i64, scratch_operands = 0 : i64, tpu.core_type = #tpu.core_type<tc>, window_params = [{transform_indices = @transform_0, window_bounds = array<i64: 1, 64, 8>}, {pipeline_mode = #tpu.pipeline_mode<synchronous>, transform_indices = @transform_1, window_bounds = array<i64: 8, 16>}, {pipeline_mode = #tpu.pipeline_mode<synchronous>, transform_indices = @transform_2, window_bounds = array<i64: 1, 16>}, {pipeline_mode = #tpu.pipeline_mode<synchronous>, transform_indices = @transform_3, window_bounds = array<i64: 1, 16>}, {pipeline_mode = #tpu.pipeline_mode<synchronous>, transform_indices = @transform_4, window_bounds = array<i64: 1, 16>}, {transform_indices = @transform_5, window_bounds = array<i64: 1, 64, 16>}]} {
    %c0 = arith.constant 0 : index
    %c0_0 = arith.constant 0 : index
    %c0_1 = arith.constant 0 : index
    %0 = vector.load %arg1[%c0, %c0_0, %c0_1] : memref<1x64x8xf32, #tpu.memory_space<vmem>>, vector<1x64x8xf32>
    %1 = vector.shape_cast %0 : vector<1x64x8xf32> to vector<64x8xf32>
    %c0_2 = arith.constant 0 : index
    %c0_3 = arith.constant 0 : index
    %2 = vector.load %arg2[%c0_2, %c0_3] : memref<8x16xf32, #tpu.memory_space<vmem>>, vector<8x16xf32>
    %cst = arith.constant dense<0.000000e+00> : vector<64x16xf32>
    %3 = tpu.matmul %1, %2, %cst {dimension_numbers = #tpu.dot_dimension_numbers<[1], [0], [0], [1], [0, 0, 1, 1], [], []>} : vector<64x8xf32>, vector<8x16xf32>, vector<64x16xf32> -> vector<64x16xf32>
    %c0_4 = arith.constant 0 : index
    %c0_5 = arith.constant 0 : index
    %4 = vector.load %arg3[%c0_4, %c0_5] : memref<1x16xf32, #tpu.memory_space<vmem>>, vector<1x16xf32>
    %5 = vector.broadcast %4 : vector<1x16xf32> to vector<64x16xf32>
    %6 = arith.addf %3, %5 : vector<64x16xf32>
    %cst_6 = arith.constant 0.000000e+00 : f32
    %7 = vector.broadcast %cst_6 : f32 to vector<64x16xf32>
    %8 = arith.maximumf %6, %7 : vector<64x16xf32>
    %9 = vector.shape_cast %8 : vector<64x16xf32> to vector<1x64x16xf32>
    %cst_7 = arith.constant dense<0.000000e+00> : vector<1xf32>
    %10 = vector.multi_reduction <add>, %9, %cst_7 [1, 2] : vector<1x64x16xf32> to vector<1xf32>
    %11 = vector.shape_cast %10 : vector<1xf32> to vector<1x1x1xf32>
    %12 = vector.extract %11[0, 0, 0] : f32 from vector<1x1x1xf32>
    %cst_8 = arith.constant 1.024000e+03 : f32
    %13 = arith.divf %12, %cst_8 : f32
    %14 = arith.mulf %8, %8 : vector<64x16xf32>
    %15 = vector.shape_cast %14 : vector<64x16xf32> to vector<1x64x16xf32>
    %cst_9 = arith.constant dense<0.000000e+00> : vector<1xf32>
    %16 = vector.multi_reduction <add>, %15, %cst_9 [1, 2] : vector<1x64x16xf32> to vector<1xf32>
    %17 = vector.shape_cast %16 : vector<1xf32> to vector<1x1x1xf32>
    %18 = vector.extract %17[0, 0, 0] : f32 from vector<1x1x1xf32>
    %cst_10 = arith.constant 1.024000e+03 : f32
    %19 = arith.divf %18, %cst_10 : f32
    %20 = arith.mulf %13, %13 : f32
    %21 = arith.subf %19, %20 : f32
    %22 = vector.broadcast %13 : f32 to vector<64x16xf32>
    %23 = arith.subf %8, %22 : vector<64x16xf32>
    %cst_11 = arith.constant 9.99999974E-6 : f32
    %24 = arith.addf %21, %cst_11 : f32
    %25 = math.rsqrt %24 : f32
    %26 = vector.broadcast %25 : f32 to vector<64x16xf32>
    %27 = arith.mulf %23, %26 : vector<64x16xf32>
    %c0_12 = arith.constant 0 : index
    %c0_13 = arith.constant 0 : index
    %28 = vector.load %arg4[%c0_12, %c0_13] : memref<1x16xf32, #tpu.memory_space<vmem>>, vector<1x16xf32>
    %29 = vector.broadcast %28 : vector<1x16xf32> to vector<64x16xf32>
    %30 = arith.mulf %27, %29 : vector<64x16xf32>
    %c0_14 = arith.constant 0 : index
    %c0_15 = arith.constant 0 : index
    %31 = vector.load %arg5[%c0_14, %c0_15] : memref<1x16xf32, #tpu.memory_space<vmem>>, vector<1x16xf32>
    %32 = vector.broadcast %31 : vector<1x16xf32> to vector<64x16xf32>
    %33 = arith.addf %30, %32 : vector<64x16xf32>
    %c0_16 = arith.constant 0 : index
    %c0_17 = arith.constant 0 : index
    %c0_18 = arith.constant 0 : index
    %34 = vector.load %arg6[%c0_16, %c0_17, %c0_18] : memref<1x64x16xf32, #tpu.memory_space<vmem>>, vector<1x64x16xf32>
    %35 = vector.shape_cast %34 : vector<1x64x16xf32> to vector<64x16xf32>
    %36 = vector.shape_cast %33 : vector<64x16xf32> to vector<1x64x16xf32>
    tpu.vector_store %arg6[%c0_16, %c0_17, %c0_18], %36 {strides = array<i32>} : memref<1x64x16xf32, #tpu.memory_space<vmem>>, vector<1x64x16xf32>,
    return
  }
  func.func @transform_0(%arg0: i32) -> (i32, i32, i32) {
    %c0_i32 = arith.constant 0 : i32
    %c0_i32_0 = arith.constant 0 : i32
    %c0_i32_1 = arith.constant 0 : i32
    return %arg0, %c0_i32, %c0_i32_0 : i32, i32, i32
  }
  func.func @transform_1(%arg0: i32) -> (i32, i32) {
    %c0_i32 = arith.constant 0 : i32
    %c0_i32_0 = arith.constant 0 : i32
    %c0_i32_1 = arith.constant 0 : i32
    return %c0_i32, %c0_i32_0 : i32, i32
  }
  func.func @transform_2(%arg0: i32) -> (i32, i32) {
    %c0_i32 = arith.constant 0 : i32
    %c0_i32_0 = arith.constant 0 : i32
    %c0_i32_1 = arith.constant 0 : i32
    return %c0_i32, %c0_i32_0 : i32, i32
  }
  func.func @transform_3(%arg0: i32) -> (i32, i32) {
    %c0_i32 = arith.constant 0 : i32
    %c0_i32_0 = arith.constant 0 : i32
    %c0_i32_1 = arith.constant 0 : i32
    return %c0_i32, %c0_i32_0 : i32, i32
  }
  func.func @transform_4(%arg0: i32) -> (i32, i32) {
    %c0_i32 = arith.constant 0 : i32
    %c0_i32_0 = arith.constant 0 : i32
    %c0_i32_1 = arith.constant 0 : i32
    return %c0_i32, %c0_i32_0 : i32, i32
  }
  func.func @transform_5(%arg0: i32) -> (i32, i32, i32) {
    %c0_i32 = arith.constant 0 : i32
    %c0_i32_0 = arith.constant 0 : i32
    %c0_i32_1 = arith.constant 0 : i32
    return %arg0, %c0_i32, %c0_i32_0 : i32, i32, i32
  }
}

module attributes {stable_mosaic.version = 11 : i64} {
  func.func @doubleconv_kernel(%arg0: i32, %arg1: memref<1x16x16x4xf32, #tpu.memory_space<vmem>>, %arg2: memref<1x16x16x4xf32, #tpu.memory_space<vmem>>, %arg3: memref<9x4x8xf32, #tpu.memory_space<vmem>>, %arg4: memref<9x4x8xf32, #tpu.memory_space<vmem>>, %arg5: memref<1x8xf32, #tpu.memory_space<vmem>>, %arg6: memref<1x8xf32, #tpu.memory_space<vmem>>, %arg7: memref<9x8x8xf32, #tpu.memory_space<vmem>>, %arg8: memref<1x8xf32, #tpu.memory_space<vmem>>, %arg9: memref<1x8xf32, #tpu.memory_space<vmem>>, %arg10: memref<1x16x16x8xf32, #tpu.memory_space<vmem>>, %arg11: memref<18x18x4xf32, #tpu.memory_space<vmem>>, %arg12: memref<18x18x4xf32, #tpu.memory_space<vmem>>, %arg13: memref<18x18x8xf32, #tpu.memory_space<vmem>>) attributes {dimension_semantics = [#tpu.dimension_semantics<parallel>], iteration_bounds = array<i64: 2>, scalar_prefetch = 0 : i64, scratch_operands = 3 : i64, tpu.core_type = #tpu.core_type<tc>, window_params = [{transform_indices = @transform_0, window_bounds = array<i64: 1, 16, 16, 4>}, {transform_indices = @transform_1, window_bounds = array<i64: 1, 16, 16, 4>}, {pipeline_mode = #tpu.pipeline_mode<synchronous>, transform_indices = @transform_2, window_bounds = array<i64: 9, 4, 8>}, {pipeline_mode = #tpu.pipeline_mode<synchronous>, transform_indices = @transform_3, window_bounds = array<i64: 9, 4, 8>}, {pipeline_mode = #tpu.pipeline_mode<synchronous>, transform_indices = @transform_4, window_bounds = array<i64: 1, 8>}, {pipeline_mode = #tpu.pipeline_mode<synchronous>, transform_indices = @transform_5, window_bounds = array<i64: 1, 8>}, {pipeline_mode = #tpu.pipeline_mode<synchronous>, transform_indices = @transform_6, window_bounds = array<i64: 9, 8, 8>}, {pipeline_mode = #tpu.pipeline_mode<synchronous>, transform_indices = @transform_7, window_bounds = array<i64: 1, 8>}, {pipeline_mode = #tpu.pipeline_mode<synchronous>, transform_indices = @transform_8, window_bounds = array<i64: 1, 8>}, {transform_indices = @transform_9, window_bounds = array<i64: 1, 16, 16, 8>}]} {
    %cst = arith.constant 0.000000e+00 : f32
    %0 = vector.broadcast %cst : f32 to vector<18x18x4xf32>
    %c0 = arith.constant 0 : index
    %c0_0 = arith.constant 0 : index
    %c0_1 = arith.constant 0 : index
    %1 = vector.load %arg11[%c0, %c0_0, %c0_1] : memref<18x18x4xf32, #tpu.memory_space<vmem>>, vector<18x18x4xf32>
    tpu.vector_store %arg11[%c0, %c0_0, %c0_1], %0 {strides = array<i32>} : memref<18x18x4xf32, #tpu.memory_space<vmem>>, vector<18x18x4xf32>,
    %cst_2 = arith.constant 0.000000e+00 : f32
    %2 = vector.broadcast %cst_2 : f32 to vector<18x18x4xf32>
    %c0_3 = arith.constant 0 : index
    %c0_4 = arith.constant 0 : index
    %c0_5 = arith.constant 0 : index
    %3 = vector.load %arg12[%c0_3, %c0_4, %c0_5] : memref<18x18x4xf32, #tpu.memory_space<vmem>>, vector<18x18x4xf32>
    tpu.vector_store %arg12[%c0_3, %c0_4, %c0_5], %2 {strides = array<i32>} : memref<18x18x4xf32, #tpu.memory_space<vmem>>, vector<18x18x4xf32>,
    %cst_6 = arith.constant 0.000000e+00 : f32
    %4 = vector.broadcast %cst_6 : f32 to vector<18x18x8xf32>
    %c0_7 = arith.constant 0 : index
    %c0_8 = arith.constant 0 : index
    %c0_9 = arith.constant 0 : index
    %5 = vector.load %arg13[%c0_7, %c0_8, %c0_9] : memref<18x18x8xf32, #tpu.memory_space<vmem>>, vector<18x18x8xf32>
    tpu.vector_store %arg13[%c0_7, %c0_8, %c0_9], %4 {strides = array<i32>} : memref<18x18x8xf32, #tpu.memory_space<vmem>>, vector<18x18x8xf32>,
    %c0_10 = arith.constant 0 : index
    %c0_11 = arith.constant 0 : index
    %c0_12 = arith.constant 0 : index
    %c0_13 = arith.constant 0 : index
    %6 = vector.load %arg1[%c0_10, %c0_11, %c0_12, %c0_13] : memref<1x16x16x4xf32, #tpu.memory_space<vmem>>, vector<1x16x16x4xf32>
    %7 = vector.shape_cast %6 : vector<1x16x16x4xf32> to vector<16x16x4xf32>
    %c1 = arith.constant 1 : index
    %c1_14 = arith.constant 1 : index
    %c0_15 = arith.constant 0 : index
    %8 = vector.load %arg11[%c1, %c1_14, %c0_15] : memref<18x18x4xf32, #tpu.memory_space<vmem>>, vector<16x16x4xf32>
    tpu.vector_store %arg11[%c1, %c1_14, %c0_15], %7 {strides = array<i32>} : memref<18x18x4xf32, #tpu.memory_space<vmem>>, vector<16x16x4xf32>,
    %c0_16 = arith.constant 0 : index
    %c0_17 = arith.constant 0 : index
    %c0_18 = arith.constant 0 : index
    %c0_19 = arith.constant 0 : index
    %9 = vector.load %arg2[%c0_16, %c0_17, %c0_18, %c0_19] : memref<1x16x16x4xf32, #tpu.memory_space<vmem>>, vector<1x16x16x4xf32>
    %10 = vector.shape_cast %9 : vector<1x16x16x4xf32> to vector<16x16x4xf32>
    %c1_20 = arith.constant 1 : index
    %c1_21 = arith.constant 1 : index
    %c0_22 = arith.constant 0 : index
    %11 = vector.load %arg12[%c1_20, %c1_21, %c0_22] : memref<18x18x4xf32, #tpu.memory_space<vmem>>, vector<16x16x4xf32>
    tpu.vector_store %arg12[%c1_20, %c1_21, %c0_22], %10 {strides = array<i32>} : memref<18x18x4xf32, #tpu.memory_space<vmem>>, vector<16x16x4xf32>,
    %cst_23 = arith.constant 0.000000e+00 : f32
    %12 = vector.broadcast %cst_23 : f32 to vector<16x16x8xf32>
    %c0_24 = arith.constant 0 : index
    %c0_25 = arith.constant 0 : index
    %c0_26 = arith.constant 0 : index
    %13 = vector.load %arg11[%c0_24, %c0_25, %c0_26] : memref<18x18x4xf32, #tpu.memory_space<vmem>>, vector<16x16x4xf32>
    %c0_27 = arith.constant 0 : index
    %c0_28 = arith.constant 0 : index
    %c0_29 = arith.constant 0 : index
    %14 = vector.load %arg3[%c0_27, %c0_28, %c0_29] : memref<9x4x8xf32, #tpu.memory_space<vmem>>, vector<1x4x8xf32>
    %15 = vector.shape_cast %14 : vector<1x4x8xf32> to vector<4x8xf32>
    "tpu.trace_start"() <{level = 10 : i32, message = "hwc,co->hwo"}> : () -> ()
    %cst_30 = arith.constant dense<0.000000e+00> : vector<16x16x8xf32>
    %16 = tpu.matmul %13, %15, %cst_30 {dimension_numbers = #tpu.dot_dimension_numbers<[2], [0], [0, 1], [1], [0, 0, 0, 1, 1, 1], [], []>} : vector<16x16x4xf32>, vector<4x8xf32>, vector<16x16x8xf32> -> vector<16x16x8xf32>
    "tpu.trace_stop"() : () -> ()
    %17 = arith.addf %12, %16 : vector<16x16x8xf32>
    %c0_31 = arith.constant 0 : index
    %c0_32 = arith.constant 0 : index
    %c0_33 = arith.constant 0 : index
    %18 = vector.load %arg12[%c0_31, %c0_32, %c0_33] : memref<18x18x4xf32, #tpu.memory_space<vmem>>, vector<16x16x4xf32>
    %c0_34 = arith.constant 0 : index
    %c0_35 = arith.constant 0 : index
    %c0_36 = arith.constant 0 : index
    %19 = vector.load %arg4[%c0_34, %c0_35, %c0_36] : memref<9x4x8xf32, #tpu.memory_space<vmem>>, vector<1x4x8xf32>
    %20 = vector.shape_cast %19 : vector<1x4x8xf32> to vector<4x8xf32>
    "tpu.trace_start"() <{level = 10 : i32, message = "hwc,co->hwo"}> : () -> ()
    %cst_37 = arith.constant dense<0.000000e+00> : vector<16x16x8xf32>
    %21 = tpu.matmul %18, %20, %cst_37 {dimension_numbers = #tpu.dot_dimension_numbers<[2], [0], [0, 1], [1], [0, 0, 0, 1, 1, 1], [], []>} : vector<16x16x4xf32>, vector<4x8xf32>, vector<16x16x8xf32> -> vector<16x16x8xf32>
    "tpu.trace_stop"() : () -> ()
    %22 = arith.addf %17, %21 : vector<16x16x8xf32>
    %c0_38 = arith.constant 0 : index
    %c1_39 = arith.constant 1 : index
    %c0_40 = arith.constant 0 : index
    %23 = vector.load %arg11[%c0_38, %c1_39, %c0_40] : memref<18x18x4xf32, #tpu.memory_space<vmem>>, vector<16x16x4xf32>
    %c1_41 = arith.constant 1 : index
    %c0_42 = arith.constant 0 : index
    %c0_43 = arith.constant 0 : index
    %24 = vector.load %arg3[%c1_41, %c0_42, %c0_43] : memref<9x4x8xf32, #tpu.memory_space<vmem>>, vector<1x4x8xf32>
    %25 = vector.shape_cast %24 : vector<1x4x8xf32> to vector<4x8xf32>
    "tpu.trace_start"() <{level = 10 : i32, message = "hwc,co->hwo"}> : () -> ()
    %cst_44 = arith.constant dense<0.000000e+00> : vector<16x16x8xf32>
    %26 = tpu.matmul %23, %25, %cst_44 {dimension_numbers = #tpu.dot_dimension_numbers<[2], [0], [0, 1], [1], [0, 0, 0, 1, 1, 1], [], []>} : vector<16x16x4xf32>, vector<4x8xf32>, vector<16x16x8xf32> -> vector<16x16x8xf32>
    "tpu.trace_stop"() : () -> ()
    %27 = arith.addf %22, %26 : vector<16x16x8xf32>
    %c0_45 = arith.constant 0 : index
    %c1_46 = arith.constant 1 : index
    %c0_47 = arith.constant 0 : index
    %28 = vector.load %arg12[%c0_45, %c1_46, %c0_47] : memref<18x18x4xf32, #tpu.memory_space<vmem>>, vector<16x16x4xf32>
    %c1_48 = arith.constant 1 : index
    %c0_49 = arith.constant 0 : index
    %c0_50 = arith.constant 0 : index
    %29 = vector.load %arg4[%c1_48, %c0_49, %c0_50] : memref<9x4x8xf32, #tpu.memory_space<vmem>>, vector<1x4x8xf32>
    %30 = vector.shape_cast %29 : vector<1x4x8xf32> to vector<4x8xf32>
    "tpu.trace_start"() <{level = 10 : i32, message = "hwc,co->hwo"}> : () -> ()
    %cst_51 = arith.constant dense<0.000000e+00> : vector<16x16x8xf32>
    %31 = tpu.matmul %28, %30, %cst_51 {dimension_numbers = #tpu.dot_dimension_numbers<[2], [0], [0, 1], [1], [0, 0, 0, 1, 1, 1], [], []>} : vector<16x16x4xf32>, vector<4x8xf32>, vector<16x16x8xf32> -> vector<16x16x8xf32>
    "tpu.trace_stop"() : () -> ()
    %32 = arith.addf %27, %31 : vector<16x16x8xf32>
    %c0_52 = arith.constant 0 : index
    %c2 = arith.constant 2 : index
    %c0_53 = arith.constant 0 : index
    %33 = vector.load %arg11[%c0_52, %c2, %c0_53] : memref<18x18x4xf32, #tpu.memory_space<vmem>>, vector<16x16x4xf32>
    %c2_54 = arith.constant 2 : index
    %c0_55 = arith.constant 0 : index
    %c0_56 = arith.constant 0 : index
    %34 = vector.load %arg3[%c2_54, %c0_55, %c0_56] : memref<9x4x8xf32, #tpu.memory_space<vmem>>, vector<1x4x8xf32>
    %35 = vector.shape_cast %34 : vector<1x4x8xf32> to vector<4x8xf32>
    "tpu.trace_start"() <{level = 10 : i32, message = "hwc,co->hwo"}> : () -> ()
    %cst_57 = arith.constant dense<0.000000e+00> : vector<16x16x8xf32>
    %36 = tpu.matmul %33, %35, %cst_57 {dimension_numbers = #tpu.dot_dimension_numbers<[2], [0], [0, 1], [1], [0, 0, 0, 1, 1, 1], [], []>} : vector<16x16x4xf32>, vector<4x8xf32>, vector<16x16x8xf32> -> vector<16x16x8xf32>
    "tpu.trace_stop"() : () -> ()
    %37 = arith.addf %32, %36 : vector<16x16x8xf32>
    %c0_58 = arith.constant 0 : index
    %c2_59 = arith.constant 2 : index
    %c0_60 = arith.constant 0 : index
    %38 = vector.load %arg12[%c0_58, %c2_59, %c0_60] : memref<18x18x4xf32, #tpu.memory_space<vmem>>, vector<16x16x4xf32>
    %c2_61 = arith.constant 2 : index
    %c0_62 = arith.constant 0 : index
    %c0_63 = arith.constant 0 : index
    %39 = vector.load %arg4[%c2_61, %c0_62, %c0_63] : memref<9x4x8xf32, #tpu.memory_space<vmem>>, vector<1x4x8xf32>
    %40 = vector.shape_cast %39 : vector<1x4x8xf32> to vector<4x8xf32>
    "tpu.trace_start"() <{level = 10 : i32, message = "hwc,co->hwo"}> : () -> ()
    %cst_64 = arith.constant dense<0.000000e+00> : vector<16x16x8xf32>
    %41 = tpu.matmul %38, %40, %cst_64 {dimension_numbers = #tpu.dot_dimension_numbers<[2], [0], [0, 1], [1], [0, 0, 0, 1, 1, 1], [], []>} : vector<16x16x4xf32>, vector<4x8xf32>, vector<16x16x8xf32> -> vector<16x16x8xf32>
    "tpu.trace_stop"() : () -> ()
    %42 = arith.addf %37, %41 : vector<16x16x8xf32>
    %c1_65 = arith.constant 1 : index
    %c0_66 = arith.constant 0 : index
    %c0_67 = arith.constant 0 : index
    %43 = vector.load %arg11[%c1_65, %c0_66, %c0_67] : memref<18x18x4xf32, #tpu.memory_space<vmem>>, vector<16x16x4xf32>
    %c3 = arith.constant 3 : index
    %c0_68 = arith.constant 0 : index
    %c0_69 = arith.constant 0 : index
    %44 = vector.load %arg3[%c3, %c0_68, %c0_69] : memref<9x4x8xf32, #tpu.memory_space<vmem>>, vector<1x4x8xf32>
    %45 = vector.shape_cast %44 : vector<1x4x8xf32> to vector<4x8xf32>
    "tpu.trace_start"() <{level = 10 : i32, message = "hwc,co->hwo"}> : () -> ()
    %cst_70 = arith.constant dense<0.000000e+00> : vector<16x16x8xf32>
    %46 = tpu.matmul %43, %45, %cst_70 {dimension_numbers = #tpu.dot_dimension_numbers<[2], [0], [0, 1], [1], [0, 0, 0, 1, 1, 1], [], []>} : vector<16x16x4xf32>, vector<4x8xf32>, vector<16x16x8xf32> -> vector<16x16x8xf32>
    "tpu.trace_stop"() : () -> ()
    %47 = arith.addf %42, %46 : vector<16x16x8xf32>
    %c1_71 = arith.constant 1 : index
    %c0_72 = arith.constant 0 : index
    %c0_73 = arith.constant 0 : index
    %48 = vector.load %arg12[%c1_71, %c0_72, %c0_73] : memref<18x18x4xf32, #tpu.memory_space<vmem>>, vector<16x16x4xf32>
    %c3_74 = arith.constant 3 : index
    %c0_75 = arith.constant 0 : index
    %c0_76 = arith.constant 0 : index
    %49 = vector.load %arg4[%c3_74, %c0_75, %c0_76] : memref<9x4x8xf32, #tpu.memory_space<vmem>>, vector<1x4x8xf32>
    %50 = vector.shape_cast %49 : vector<1x4x8xf32> to vector<4x8xf32>
    "tpu.trace_start"() <{level = 10 : i32, message = "hwc,co->hwo"}> : () -> ()
    %cst_77 = arith.constant dense<0.000000e+00> : vector<16x16x8xf32>
    %51 = tpu.matmul %48, %50, %cst_77 {dimension_numbers = #tpu.dot_dimension_numbers<[2], [0], [0, 1], [1], [0, 0, 0, 1, 1, 1], [], []>} : vector<16x16x4xf32>, vector<4x8xf32>, vector<16x16x8xf32> -> vector<16x16x8xf32>
    "tpu.trace_stop"() : () -> ()
    %52 = arith.addf %47, %51 : vector<16x16x8xf32>
    %c1_78 = arith.constant 1 : index
    %c1_79 = arith.constant 1 : index
    %c0_80 = arith.constant 0 : index
    %53 = vector.load %arg11[%c1_78, %c1_79, %c0_80] : memref<18x18x4xf32, #tpu.memory_space<vmem>>, vector<16x16x4xf32>
    %c4 = arith.constant 4 : index
    %c0_81 = arith.constant 0 : index
    %c0_82 = arith.constant 0 : index
    %54 = vector.load %arg3[%c4, %c0_81, %c0_82] : memref<9x4x8xf32, #tpu.memory_space<vmem>>, vector<1x4x8xf32>
    %55 = vector.shape_cast %54 : vector<1x4x8xf32> to vector<4x8xf32>
    "tpu.trace_start"() <{level = 10 : i32, message = "hwc,co->hwo"}> : () -> ()
    %cst_83 = arith.constant dense<0.000000e+00> : vector<16x16x8xf32>
    %56 = tpu.matmul %53, %55, %cst_83 {dimension_numbers = #tpu.dot_dimension_numbers<[2], [0], [0, 1], [1], [0, 0, 0, 1, 1, 1], [], []>} : vector<16x16x4xf32>, vector<4x8xf32>, vector<16x16x8xf32> -> vector<16x16x8xf32>
    "tpu.trace_stop"() : () -> ()
    %57 = arith.addf %52, %56 : vector<16x16x8xf32>
    %c1_84 = arith.constant 1 : index
    %c1_85 = arith.constant 1 : index
    %c0_86 = arith.constant 0 : index
    %58 = vector.load %arg12[%c1_84, %c1_85, %c0_86] : memref<18x18x4xf32, #tpu.memory_space<vmem>>, vector<16x16x4xf32>
    %c4_87 = arith.constant 4 : index
    %c0_88 = arith.constant 0 : index
    %c0_89 = arith.constant 0 : index
    %59 = vector.load %arg4[%c4_87, %c0_88, %c0_89] : memref<9x4x8xf32, #tpu.memory_space<vmem>>, vector<1x4x8xf32>
    %60 = vector.shape_cast %59 : vector<1x4x8xf32> to vector<4x8xf32>
    "tpu.trace_start"() <{level = 10 : i32, message = "hwc,co->hwo"}> : () -> ()
    %cst_90 = arith.constant dense<0.000000e+00> : vector<16x16x8xf32>
    %61 = tpu.matmul %58, %60, %cst_90 {dimension_numbers = #tpu.dot_dimension_numbers<[2], [0], [0, 1], [1], [0, 0, 0, 1, 1, 1], [], []>} : vector<16x16x4xf32>, vector<4x8xf32>, vector<16x16x8xf32> -> vector<16x16x8xf32>
    "tpu.trace_stop"() : () -> ()
    %62 = arith.addf %57, %61 : vector<16x16x8xf32>
    %c1_91 = arith.constant 1 : index
    %c2_92 = arith.constant 2 : index
    %c0_93 = arith.constant 0 : index
    %63 = vector.load %arg11[%c1_91, %c2_92, %c0_93] : memref<18x18x4xf32, #tpu.memory_space<vmem>>, vector<16x16x4xf32>
    %c5 = arith.constant 5 : index
    %c0_94 = arith.constant 0 : index
    %c0_95 = arith.constant 0 : index
    %64 = vector.load %arg3[%c5, %c0_94, %c0_95] : memref<9x4x8xf32, #tpu.memory_space<vmem>>, vector<1x4x8xf32>
    %65 = vector.shape_cast %64 : vector<1x4x8xf32> to vector<4x8xf32>
    "tpu.trace_start"() <{level = 10 : i32, message = "hwc,co->hwo"}> : () -> ()
    %cst_96 = arith.constant dense<0.000000e+00> : vector<16x16x8xf32>
    %66 = tpu.matmul %63, %65, %cst_96 {dimension_numbers = #tpu.dot_dimension_numbers<[2], [0], [0, 1], [1], [0, 0, 0, 1, 1, 1], [], []>} : vector<16x16x4xf32>, vector<4x8xf32>, vector<16x16x8xf32> -> vector<16x16x8xf32>
    "tpu.trace_stop"() : () -> ()
    %67 = arith.addf %62, %66 : vector<16x16x8xf32>
    %c1_97 = arith.constant 1 : index
    %c2_98 = arith.constant 2 : index
    %c0_99 = arith.constant 0 : index
    %68 = vector.load %arg12[%c1_97, %c2_98, %c0_99] : memref<18x18x4xf32, #tpu.memory_space<vmem>>, vector<16x16x4xf32>
    %c5_100 = arith.constant 5 : index
    %c0_101 = arith.constant 0 : index
    %c0_102 = arith.constant 0 : index
    %69 = vector.load %arg4[%c5_100, %c0_101, %c0_102] : memref<9x4x8xf32, #tpu.memory_space<vmem>>, vector<1x4x8xf32>
    %70 = vector.shape_cast %69 : vector<1x4x8xf32> to vector<4x8xf32>
    "tpu.trace_start"() <{level = 10 : i32, message = "hwc,co->hwo"}> : () -> ()
    %cst_103 = arith.constant dense<0.000000e+00> : vector<16x16x8xf32>
    %71 = tpu.matmul %68, %70, %cst_103 {dimension_numbers = #tpu.dot_dimension_numbers<[2], [0], [0, 1], [1], [0, 0, 0, 1, 1, 1], [], []>} : vector<16x16x4xf32>, vector<4x8xf32>, vector<16x16x8xf32> -> vector<16x16x8xf32>
    "tpu.trace_stop"() : () -> ()
    %72 = arith.addf %67, %71 : vector<16x16x8xf32>
    %c2_104 = arith.constant 2 : index
    %c0_105 = arith.constant 0 : index
    %c0_106 = arith.constant 0 : index
    %73 = vector.load %arg11[%c2_104, %c0_105, %c0_106] : memref<18x18x4xf32, #tpu.memory_space<vmem>>, vector<16x16x4xf32>
    %c6 = arith.constant 6 : index
    %c0_107 = arith.constant 0 : index
    %c0_108 = arith.constant 0 : index
    %74 = vector.load %arg3[%c6, %c0_107, %c0_108] : memref<9x4x8xf32, #tpu.memory_space<vmem>>, vector<1x4x8xf32>
    %75 = vector.shape_cast %74 : vector<1x4x8xf32> to vector<4x8xf32>
    "tpu.trace_start"() <{level = 10 : i32, message = "hwc,co->hwo"}> : () -> ()
    %cst_109 = arith.constant dense<0.000000e+00> : vector<16x16x8xf32>
    %76 = tpu.matmul %73, %75, %cst_109 {dimension_numbers = #tpu.dot_dimension_numbers<[2], [0], [0, 1], [1], [0, 0, 0, 1, 1, 1], [], []>} : vector<16x16x4xf32>, vector<4x8xf32>, vector<16x16x8xf32> -> vector<16x16x8xf32>
    "tpu.trace_stop"() : () -> ()
    %77 = arith.addf %72, %76 : vector<16x16x8xf32>
    %c2_110 = arith.constant 2 : index
    %c0_111 = arith.constant 0 : index
    %c0_112 = arith.constant 0 : index
    %78 = vector.load %arg12[%c2_110, %c0_111, %c0_112] : memref<18x18x4xf32, #tpu.memory_space<vmem>>, vector<16x16x4xf32>
    %c6_113 = arith.constant 6 : index
    %c0_114 = arith.constant 0 : index
    %c0_115 = arith.constant 0 : index
    %79 = vector.load %arg4[%c6_113, %c0_114, %c0_115] : memref<9x4x8xf32, #tpu.memory_space<vmem>>, vector<1x4x8xf32>
    %80 = vector.shape_cast %79 : vector<1x4x8xf32> to vector<4x8xf32>
    "tpu.trace_start"() <{level = 10 : i32, message = "hwc,co->hwo"}> : () -> ()
    %cst_116 = arith.constant dense<0.000000e+00> : vector<16x16x8xf32>
    %81 = tpu.matmul %78, %80, %cst_116 {dimension_numbers = #tpu.dot_dimension_numbers<[2], [0], [0, 1], [1], [0, 0, 0, 1, 1, 1], [], []>} : vector<16x16x4xf32>, vector<4x8xf32>, vector<16x16x8xf32> -> vector<16x16x8xf32>
    "tpu.trace_stop"() : () -> ()
    %82 = arith.addf %77, %81 : vector<16x16x8xf32>
    %c2_117 = arith.constant 2 : index
    %c1_118 = arith.constant 1 : index
    %c0_119 = arith.constant 0 : index
    %83 = vector.load %arg11[%c2_117, %c1_118, %c0_119] : memref<18x18x4xf32, #tpu.memory_space<vmem>>, vector<16x16x4xf32>
    %c7 = arith.constant 7 : index
    %c0_120 = arith.constant 0 : index
    %c0_121 = arith.constant 0 : index
    %84 = vector.load %arg3[%c7, %c0_120, %c0_121] : memref<9x4x8xf32, #tpu.memory_space<vmem>>, vector<1x4x8xf32>
    %85 = vector.shape_cast %84 : vector<1x4x8xf32> to vector<4x8xf32>
    "tpu.trace_start"() <{level = 10 : i32, message = "hwc,co->hwo"}> : () -> ()
    %cst_122 = arith.constant dense<0.000000e+00> : vector<16x16x8xf32>
    %86 = tpu.matmul %83, %85, %cst_122 {dimension_numbers = #tpu.dot_dimension_numbers<[2], [0], [0, 1], [1], [0, 0, 0, 1, 1, 1], [], []>} : vector<16x16x4xf32>, vector<4x8xf32>, vector<16x16x8xf32> -> vector<16x16x8xf32>
    "tpu.trace_stop"() : () -> ()
    %87 = arith.addf %82, %86 : vector<16x16x8xf32>
    %c2_123 = arith.constant 2 : index
    %c1_124 = arith.constant 1 : index
    %c0_125 = arith.constant 0 : index
    %88 = vector.load %arg12[%c2_123, %c1_124, %c0_125] : memref<18x18x4xf32, #tpu.memory_space<vmem>>, vector<16x16x4xf32>
    %c7_126 = arith.constant 7 : index
    %c0_127 = arith.constant 0 : index
    %c0_128 = arith.constant 0 : index
    %89 = vector.load %arg4[%c7_126, %c0_127, %c0_128] : memref<9x4x8xf32, #tpu.memory_space<vmem>>, vector<1x4x8xf32>
    %90 = vector.shape_cast %89 : vector<1x4x8xf32> to vector<4x8xf32>
    "tpu.trace_start"() <{level = 10 : i32, message = "hwc,co->hwo"}> : () -> ()
    %cst_129 = arith.constant dense<0.000000e+00> : vector<16x16x8xf32>
    %91 = tpu.matmul %88, %90, %cst_129 {dimension_numbers = #tpu.dot_dimension_numbers<[2], [0], [0, 1], [1], [0, 0, 0, 1, 1, 1], [], []>} : vector<16x16x4xf32>, vector<4x8xf32>, vector<16x16x8xf32> -> vector<16x16x8xf32>
    "tpu.trace_stop"() : () -> ()
    %92 = arith.addf %87, %91 : vector<16x16x8xf32>
    %c2_130 = arith.constant 2 : index
    %c2_131 = arith.constant 2 : index
    %c0_132 = arith.constant 0 : index
    %93 = vector.load %arg11[%c2_130, %c2_131, %c0_132] : memref<18x18x4xf32, #tpu.memory_space<vmem>>, vector<16x16x4xf32>
    %c8 = arith.constant 8 : index
    %c0_133 = arith.constant 0 : index
    %c0_134 = arith.constant 0 : index
    %94 = vector.load %arg3[%c8, %c0_133, %c0_134] : memref<9x4x8xf32, #tpu.memory_space<vmem>>, vector<1x4x8xf32>
    %95 = vector.shape_cast %94 : vector<1x4x8xf32> to vector<4x8xf32>
    "tpu.trace_start"() <{level = 10 : i32, message = "hwc,co->hwo"}> : () -> ()
    %cst_135 = arith.constant dense<0.000000e+00> : vector<16x16x8xf32>
    %96 = tpu.matmul %93, %95, %cst_135 {dimension_numbers = #tpu.dot_dimension_numbers<[2], [0], [0, 1], [1], [0, 0, 0, 1, 1, 1], [], []>} : vector<16x16x4xf32>, vector<4x8xf32>, vector<16x16x8xf32> -> vector<16x16x8xf32>
    "tpu.trace_stop"() : () -> ()
    %97 = arith.addf %92, %96 : vector<16x16x8xf32>
    %c2_136 = arith.constant 2 : index
    %c2_137 = arith.constant 2 : index
    %c0_138 = arith.constant 0 : index
    %98 = vector.load %arg12[%c2_136, %c2_137, %c0_138] : memref<18x18x4xf32, #tpu.memory_space<vmem>>, vector<16x16x4xf32>
    %c8_139 = arith.constant 8 : index
    %c0_140 = arith.constant 0 : index
    %c0_141 = arith.constant 0 : index
    %99 = vector.load %arg4[%c8_139, %c0_140, %c0_141] : memref<9x4x8xf32, #tpu.memory_space<vmem>>, vector<1x4x8xf32>
    %100 = vector.shape_cast %99 : vector<1x4x8xf32> to vector<4x8xf32>
    "tpu.trace_start"() <{level = 10 : i32, message = "hwc,co->hwo"}> : () -> ()
    %cst_142 = arith.constant dense<0.000000e+00> : vector<16x16x8xf32>
    %101 = tpu.matmul %98, %100, %cst_142 {dimension_numbers = #tpu.dot_dimension_numbers<[2], [0], [0, 1], [1], [0, 0, 0, 1, 1, 1], [], []>} : vector<16x16x4xf32>, vector<4x8xf32>, vector<16x16x8xf32> -> vector<16x16x8xf32>
    "tpu.trace_stop"() : () -> ()
    %102 = arith.addf %97, %101 : vector<16x16x8xf32>
    %103 = vector.shape_cast %102 : vector<16x16x8xf32> to vector<1x16x16x8xf32>
    %cst_143 = arith.constant dense<0.000000e+00> : vector<1xf32>
    %104 = vector.multi_reduction <add>, %103, %cst_143 [1, 2, 3] : vector<1x16x16x8xf32> to vector<1xf32>
    %105 = vector.shape_cast %104 : vector<1xf32> to vector<1x1x1x1xf32>
    %106 = vector.extract %105[0, 0, 0, 0] : f32 from vector<1x1x1x1xf32>
    %cst_144 = arith.constant 2.048000e+03 : f32
    %107 = arith.divf %106, %cst_144 : f32
    %108 = arith.mulf %102, %102 : vector<16x16x8xf32>
    %109 = vector.shape_cast %108 : vector<16x16x8xf32> to vector<1x16x16x8xf32>
    %cst_145 = arith.constant dense<0.000000e+00> : vector<1xf32>
    %110 = vector.multi_reduction <add>, %109, %cst_145 [1, 2, 3] : vector<1x16x16x8xf32> to vector<1xf32>
    %111 = vector.shape_cast %110 : vector<1xf32> to vector<1x1x1x1xf32>
    %112 = vector.extract %111[0, 0, 0, 0] : f32 from vector<1x1x1x1xf32>
    %cst_146 = arith.constant 2.048000e+03 : f32
    %113 = arith.divf %112, %cst_146 : f32
    %114 = arith.mulf %107, %107 : f32
    %115 = arith.subf %113, %114 : f32
    %116 = vector.broadcast %107 : f32 to vector<16x16x8xf32>
    %117 = arith.subf %102, %116 : vector<16x16x8xf32>
    %cst_147 = arith.constant 9.99999974E-6 : f32
    %118 = arith.addf %115, %cst_147 : f32
    %119 = math.rsqrt %118 : f32
    %120 = vector.broadcast %119 : f32 to vector<16x16x8xf32>
    %121 = arith.mulf %117, %120 : vector<16x16x8xf32>
    %c0_148 = arith.constant 0 : index
    %c0_149 = arith.constant 0 : index
    %122 = vector.load %arg5[%c0_148, %c0_149] : memref<1x8xf32, #tpu.memory_space<vmem>>, vector<1x8xf32>
    %123 = vector.shape_cast %122 : vector<1x8xf32> to vector<1x1x8xf32>
    %124 = vector.broadcast %123 : vector<1x1x8xf32> to vector<16x16x8xf32>
    %125 = arith.mulf %121, %124 : vector<16x16x8xf32>
    %c0_150 = arith.constant 0 : index
    %c0_151 = arith.constant 0 : index
    %126 = vector.load %arg6[%c0_150, %c0_151] : memref<1x8xf32, #tpu.memory_space<vmem>>, vector<1x8xf32>
    %127 = vector.shape_cast %126 : vector<1x8xf32> to vector<1x1x8xf32>
    %128 = vector.broadcast %127 : vector<1x1x8xf32> to vector<16x16x8xf32>
    %129 = arith.addf %125, %128 : vector<16x16x8xf32>
    %cst_152 = arith.constant 0.000000e+00 : f32
    %130 = vector.broadcast %cst_152 : f32 to vector<16x16x8xf32>
    %131 = arith.maximumf %129, %130 : vector<16x16x8xf32>
    %c1_153 = arith.constant 1 : index
    %c1_154 = arith.constant 1 : index
    %c0_155 = arith.constant 0 : index
    %132 = vector.load %arg13[%c1_153, %c1_154, %c0_155] : memref<18x18x8xf32, #tpu.memory_space<vmem>>, vector<16x16x8xf32>
    tpu.vector_store %arg13[%c1_153, %c1_154, %c0_155], %131 {strides = array<i32>} : memref<18x18x8xf32, #tpu.memory_space<vmem>>, vector<16x16x8xf32>,
    %cst_156 = arith.constant 0.000000e+00 : f32
    %133 = vector.broadcast %cst_156 : f32 to vector<16x16x8xf32>
    %c0_157 = arith.constant 0 : index
    %c0_158 = arith.constant 0 : index
    %c0_159 = arith.constant 0 : index
    %134 = vector.load %arg13[%c0_157, %c0_158, %c0_159] : memref<18x18x8xf32, #tpu.memory_space<vmem>>, vector<16x16x8xf32>
    %c0_160 = arith.constant 0 : index
    %c0_161 = arith.constant 0 : index
    %c0_162 = arith.constant 0 : index
    %135 = vector.load %arg7[%c0_160, %c0_161, %c0_162] : memref<9x8x8xf32, #tpu.memory_space<vmem>>, vector<1x8x8xf32>
    %136 = vector.shape_cast %135 : vector<1x8x8xf32> to vector<8x8xf32>
    "tpu.trace_start"() <{level = 10 : i32, message = "hwc,co->hwo"}> : () -> ()
    %cst_163 = arith.constant dense<0.000000e+00> : vector<16x16x8xf32>
    %137 = tpu.matmul %134, %136, %cst_163 {dimension_numbers = #tpu.dot_dimension_numbers<[2], [0], [0, 1], [1], [0, 0, 0, 1, 1, 1], [], []>} : vector<16x16x8xf32>, vector<8x8xf32>, vector<16x16x8xf32> -> vector<16x16x8xf32>
    "tpu.trace_stop"() : () -> ()
    %138 = arith.addf %133, %137 : vector<16x16x8xf32>
    %c0_164 = arith.constant 0 : index
    %c1_165 = arith.constant 1 : index
    %c0_166 = arith.constant 0 : index
    %139 = vector.load %arg13[%c0_164, %c1_165, %c0_166] : memref<18x18x8xf32, #tpu.memory_space<vmem>>, vector<16x16x8xf32>
    %c1_167 = arith.constant 1 : index
    %c0_168 = arith.constant 0 : index
    %c0_169 = arith.constant 0 : index
    %140 = vector.load %arg7[%c1_167, %c0_168, %c0_169] : memref<9x8x8xf32, #tpu.memory_space<vmem>>, vector<1x8x8xf32>
    %141 = vector.shape_cast %140 : vector<1x8x8xf32> to vector<8x8xf32>
    "tpu.trace_start"() <{level = 10 : i32, message = "hwc,co->hwo"}> : () -> ()
    %cst_170 = arith.constant dense<0.000000e+00> : vector<16x16x8xf32>
    %142 = tpu.matmul %139, %141, %cst_170 {dimension_numbers = #tpu.dot_dimension_numbers<[2], [0], [0, 1], [1], [0, 0, 0, 1, 1, 1], [], []>} : vector<16x16x8xf32>, vector<8x8xf32>, vector<16x16x8xf32> -> vector<16x16x8xf32>
    "tpu.trace_stop"() : () -> ()
    %143 = arith.addf %138, %142 : vector<16x16x8xf32>
    %c0_171 = arith.constant 0 : index
    %c2_172 = arith.constant 2 : index
    %c0_173 = arith.constant 0 : index
    %144 = vector.load %arg13[%c0_171, %c2_172, %c0_173] : memref<18x18x8xf32, #tpu.memory_space<vmem>>, vector<16x16x8xf32>
    %c2_174 = arith.constant 2 : index
    %c0_175 = arith.constant 0 : index
    %c0_176 = arith.constant 0 : index
    %145 = vector.load %arg7[%c2_174, %c0_175, %c0_176] : memref<9x8x8xf32, #tpu.memory_space<vmem>>, vector<1x8x8xf32>
    %146 = vector.shape_cast %145 : vector<1x8x8xf32> to vector<8x8xf32>
    "tpu.trace_start"() <{level = 10 : i32, message = "hwc,co->hwo"}> : () -> ()
    %cst_177 = arith.constant dense<0.000000e+00> : vector<16x16x8xf32>
    %147 = tpu.matmul %144, %146, %cst_177 {dimension_numbers = #tpu.dot_dimension_numbers<[2], [0], [0, 1], [1], [0, 0, 0, 1, 1, 1], [], []>} : vector<16x16x8xf32>, vector<8x8xf32>, vector<16x16x8xf32> -> vector<16x16x8xf32>
    "tpu.trace_stop"() : () -> ()
    %148 = arith.addf %143, %147 : vector<16x16x8xf32>
    %c1_178 = arith.constant 1 : index
    %c0_179 = arith.constant 0 : index
    %c0_180 = arith.constant 0 : index
    %149 = vector.load %arg13[%c1_178, %c0_179, %c0_180] : memref<18x18x8xf32, #tpu.memory_space<vmem>>, vector<16x16x8xf32>
    %c3_181 = arith.constant 3 : index
    %c0_182 = arith.constant 0 : index
    %c0_183 = arith.constant 0 : index
    %150 = vector.load %arg7[%c3_181, %c0_182, %c0_183] : memref<9x8x8xf32, #tpu.memory_space<vmem>>, vector<1x8x8xf32>
    %151 = vector.shape_cast %150 : vector<1x8x8xf32> to vector<8x8xf32>
    "tpu.trace_start"() <{level = 10 : i32, message = "hwc,co->hwo"}> : () -> ()
    %cst_184 = arith.constant dense<0.000000e+00> : vector<16x16x8xf32>
    %152 = tpu.matmul %149, %151, %cst_184 {dimension_numbers = #tpu.dot_dimension_numbers<[2], [0], [0, 1], [1], [0, 0, 0, 1, 1, 1], [], []>} : vector<16x16x8xf32>, vector<8x8xf32>, vector<16x16x8xf32> -> vector<16x16x8xf32>
    "tpu.trace_stop"() : () -> ()
    %153 = arith.addf %148, %152 : vector<16x16x8xf32>
    %c1_185 = arith.constant 1 : index
    %c1_186 = arith.constant 1 : index
    %c0_187 = arith.constant 0 : index
    %154 = vector.load %arg13[%c1_185, %c1_186, %c0_187] : memref<18x18x8xf32, #tpu.memory_space<vmem>>, vector<16x16x8xf32>
    %c4_188 = arith.constant 4 : index
    %c0_189 = arith.constant 0 : index
    %c0_190 = arith.constant 0 : index
    %155 = vector.load %arg7[%c4_188, %c0_189, %c0_190] : memref<9x8x8xf32, #tpu.memory_space<vmem>>, vector<1x8x8xf32>
    %156 = vector.shape_cast %155 : vector<1x8x8xf32> to vector<8x8xf32>
    "tpu.trace_start"() <{level = 10 : i32, message = "hwc,co->hwo"}> : () -> ()
    %cst_191 = arith.constant dense<0.000000e+00> : vector<16x16x8xf32>
    %157 = tpu.matmul %154, %156, %cst_191 {dimension_numbers = #tpu.dot_dimension_numbers<[2], [0], [0, 1], [1], [0, 0, 0, 1, 1, 1], [], []>} : vector<16x16x8xf32>, vector<8x8xf32>, vector<16x16x8xf32> -> vector<16x16x8xf32>
    "tpu.trace_stop"() : () -> ()
    %158 = arith.addf %153, %157 : vector<16x16x8xf32>
    %c1_192 = arith.constant 1 : index
    %c2_193 = arith.constant 2 : index
    %c0_194 = arith.constant 0 : index
    %159 = vector.load %arg13[%c1_192, %c2_193, %c0_194] : memref<18x18x8xf32, #tpu.memory_space<vmem>>, vector<16x16x8xf32>
    %c5_195 = arith.constant 5 : index
    %c0_196 = arith.constant 0 : index
    %c0_197 = arith.constant 0 : index
    %160 = vector.load %arg7[%c5_195, %c0_196, %c0_197] : memref<9x8x8xf32, #tpu.memory_space<vmem>>, vector<1x8x8xf32>
    %161 = vector.shape_cast %160 : vector<1x8x8xf32> to vector<8x8xf32>
    "tpu.trace_start"() <{level = 10 : i32, message = "hwc,co->hwo"}> : () -> ()
    %cst_198 = arith.constant dense<0.000000e+00> : vector<16x16x8xf32>
    %162 = tpu.matmul %159, %161, %cst_198 {dimension_numbers = #tpu.dot_dimension_numbers<[2], [0], [0, 1], [1], [0, 0, 0, 1, 1, 1], [], []>} : vector<16x16x8xf32>, vector<8x8xf32>, vector<16x16x8xf32> -> vector<16x16x8xf32>
    "tpu.trace_stop"() : () -> ()
    %163 = arith.addf %158, %162 : vector<16x16x8xf32>
    %c2_199 = arith.constant 2 : index
    %c0_200 = arith.constant 0 : index
    %c0_201 = arith.constant 0 : index
    %164 = vector.load %arg13[%c2_199, %c0_200, %c0_201] : memref<18x18x8xf32, #tpu.memory_space<vmem>>, vector<16x16x8xf32>
    %c6_202 = arith.constant 6 : index
    %c0_203 = arith.constant 0 : index
    %c0_204 = arith.constant 0 : index
    %165 = vector.load %arg7[%c6_202, %c0_203, %c0_204] : memref<9x8x8xf32, #tpu.memory_space<vmem>>, vector<1x8x8xf32>
    %166 = vector.shape_cast %165 : vector<1x8x8xf32> to vector<8x8xf32>
    "tpu.trace_start"() <{level = 10 : i32, message = "hwc,co->hwo"}> : () -> ()
    %cst_205 = arith.constant dense<0.000000e+00> : vector<16x16x8xf32>
    %167 = tpu.matmul %164, %166, %cst_205 {dimension_numbers = #tpu.dot_dimension_numbers<[2], [0], [0, 1], [1], [0, 0, 0, 1, 1, 1], [], []>} : vector<16x16x8xf32>, vector<8x8xf32>, vector<16x16x8xf32> -> vector<16x16x8xf32>
    "tpu.trace_stop"() : () -> ()
    %168 = arith.addf %163, %167 : vector<16x16x8xf32>
    %c2_206 = arith.constant 2 : index
    %c1_207 = arith.constant 1 : index
    %c0_208 = arith.constant 0 : index
    %169 = vector.load %arg13[%c2_206, %c1_207, %c0_208] : memref<18x18x8xf32, #tpu.memory_space<vmem>>, vector<16x16x8xf32>
    %c7_209 = arith.constant 7 : index
    %c0_210 = arith.constant 0 : index
    %c0_211 = arith.constant 0 : index
    %170 = vector.load %arg7[%c7_209, %c0_210, %c0_211] : memref<9x8x8xf32, #tpu.memory_space<vmem>>, vector<1x8x8xf32>
    %171 = vector.shape_cast %170 : vector<1x8x8xf32> to vector<8x8xf32>
    "tpu.trace_start"() <{level = 10 : i32, message = "hwc,co->hwo"}> : () -> ()
    %cst_212 = arith.constant dense<0.000000e+00> : vector<16x16x8xf32>
    %172 = tpu.matmul %169, %171, %cst_212 {dimension_numbers = #tpu.dot_dimension_numbers<[2], [0], [0, 1], [1], [0, 0, 0, 1, 1, 1], [], []>} : vector<16x16x8xf32>, vector<8x8xf32>, vector<16x16x8xf32> -> vector<16x16x8xf32>
    "tpu.trace_stop"() : () -> ()
    %173 = arith.addf %168, %172 : vector<16x16x8xf32>
    %c2_213 = arith.constant 2 : index
    %c2_214 = arith.constant 2 : index
    %c0_215 = arith.constant 0 : index
    %174 = vector.load %arg13[%c2_213, %c2_214, %c0_215] : memref<18x18x8xf32, #tpu.memory_space<vmem>>, vector<16x16x8xf32>
    %c8_216 = arith.constant 8 : index
    %c0_217 = arith.constant 0 : index
    %c0_218 = arith.constant 0 : index
    %175 = vector.load %arg7[%c8_216, %c0_217, %c0_218] : memref<9x8x8xf32, #tpu.memory_space<vmem>>, vector<1x8x8xf32>
    %176 = vector.shape_cast %175 : vector<1x8x8xf32> to vector<8x8xf32>
    "tpu.trace_start"() <{level = 10 : i32, message = "hwc,co->hwo"}> : () -> ()
    %cst_219 = arith.constant dense<0.000000e+00> : vector<16x16x8xf32>
    %177 = tpu.matmul %174, %176, %cst_219 {dimension_numbers = #tpu.dot_dimension_numbers<[2], [0], [0, 1], [1], [0, 0, 0, 1, 1, 1], [], []>} : vector<16x16x8xf32>, vector<8x8xf32>, vector<16x16x8xf32> -> vector<16x16x8xf32>
    "tpu.trace_stop"() : () -> ()
    %178 = arith.addf %173, %177 : vector<16x16x8xf32>
    %179 = vector.shape_cast %178 : vector<16x16x8xf32> to vector<1x16x16x8xf32>
    %cst_220 = arith.constant dense<0.000000e+00> : vector<1xf32>
    %180 = vector.multi_reduction <add>, %179, %cst_220 [1, 2, 3] : vector<1x16x16x8xf32> to vector<1xf32>
    %181 = vector.shape_cast %180 : vector<1xf32> to vector<1x1x1x1xf32>
    %182 = vector.extract %181[0, 0, 0, 0] : f32 from vector<1x1x1x1xf32>
    %cst_221 = arith.constant 2.048000e+03 : f32
    %183 = arith.divf %182, %cst_221 : f32
    %184 = arith.mulf %178, %178 : vector<16x16x8xf32>
    %185 = vector.shape_cast %184 : vector<16x16x8xf32> to vector<1x16x16x8xf32>
    %cst_222 = arith.constant dense<0.000000e+00> : vector<1xf32>
    %186 = vector.multi_reduction <add>, %185, %cst_222 [1, 2, 3] : vector<1x16x16x8xf32> to vector<1xf32>
    %187 = vector.shape_cast %186 : vector<1xf32> to vector<1x1x1x1xf32>
    %188 = vector.extract %187[0, 0, 0, 0] : f32 from vector<1x1x1x1xf32>
    %cst_223 = arith.constant 2.048000e+03 : f32
    %189 = arith.divf %188, %cst_223 : f32
    %190 = arith.mulf %183, %183 : f32
    %191 = arith.subf %189, %190 : f32
    %192 = vector.broadcast %183 : f32 to vector<16x16x8xf32>
    %193 = arith.subf %178, %192 : vector<16x16x8xf32>
    %cst_224 = arith.constant 9.99999974E-6 : f32
    %194 = arith.addf %191, %cst_224 : f32
    %195 = math.rsqrt %194 : f32
    %196 = vector.broadcast %195 : f32 to vector<16x16x8xf32>
    %197 = arith.mulf %193, %196 : vector<16x16x8xf32>
    %c0_225 = arith.constant 0 : index
    %c0_226 = arith.constant 0 : index
    %198 = vector.load %arg8[%c0_225, %c0_226] : memref<1x8xf32, #tpu.memory_space<vmem>>, vector<1x8xf32>
    %199 = vector.shape_cast %198 : vector<1x8xf32> to vector<1x1x8xf32>
    %200 = vector.broadcast %199 : vector<1x1x8xf32> to vector<16x16x8xf32>
    %201 = arith.mulf %197, %200 : vector<16x16x8xf32>
    %c0_227 = arith.constant 0 : index
    %c0_228 = arith.constant 0 : index
    %202 = vector.load %arg9[%c0_227, %c0_228] : memref<1x8xf32, #tpu.memory_space<vmem>>, vector<1x8xf32>
    %203 = vector.shape_cast %202 : vector<1x8xf32> to vector<1x1x8xf32>
    %204 = vector.broadcast %203 : vector<1x1x8xf32> to vector<16x16x8xf32>
    %205 = arith.addf %201, %204 : vector<16x16x8xf32>
    %cst_229 = arith.constant 0.000000e+00 : f32
    %206 = vector.broadcast %cst_229 : f32 to vector<16x16x8xf32>
    %207 = arith.maximumf %205, %206 : vector<16x16x8xf32>
    %c0_230 = arith.constant 0 : index
    %c0_231 = arith.constant 0 : index
    %c0_232 = arith.constant 0 : index
    %c0_233 = arith.constant 0 : index
    %208 = vector.load %arg10[%c0_230, %c0_231, %c0_232, %c0_233] : memref<1x16x16x8xf32, #tpu.memory_space<vmem>>, vector<1x16x16x8xf32>
    %209 = vector.shape_cast %208 : vector<1x16x16x8xf32> to vector<16x16x8xf32>
    %210 = vector.shape_cast %207 : vector<16x16x8xf32> to vector<1x16x16x8xf32>
    tpu.vector_store %arg10[%c0_230, %c0_231, %c0_232, %c0_233], %210 {strides = array<i32>} : memref<1x16x16x8xf32, #tpu.memory_space<vmem>>, vector<1x16x16x8xf32>,
    return
  }
  func.func @transform_0(%arg0: i32) -> (i32, i32, i32, i32) {
    %c0_i32 = arith.constant 0 : i32
    %c0_i32_0 = arith.constant 0 : i32
    %c0_i32_1 = arith.constant 0 : i32
    %c0_i32_2 = arith.constant 0 : i32
    return %arg0, %c0_i32, %c0_i32_0, %c0_i32_1 : i32, i32, i32, i32
  }
  func.func @transform_1(%arg0: i32) -> (i32, i32, i32, i32) {
    %c0_i32 = arith.constant 0 : i32
    %c0_i32_0 = arith.constant 0 : i32
    %c0_i32_1 = arith.constant 0 : i32
    %c0_i32_2 = arith.constant 0 : i32
    return %arg0, %c0_i32, %c0_i32_0, %c0_i32_1 : i32, i32, i32, i32
  }
  func.func @transform_2(%arg0: i32) -> (i32, i32, i32) {
    %c0_i32 = arith.constant 0 : i32
    %c0_i32_0 = arith.constant 0 : i32
    %c0_i32_1 = arith.constant 0 : i32
    %c0_i32_2 = arith.constant 0 : i32
    return %c0_i32, %c0_i32_0, %c0_i32_1 : i32, i32, i32
  }
  func.func @transform_3(%arg0: i32) -> (i32, i32, i32) {
    %c0_i32 = arith.constant 0 : i32
    %c0_i32_0 = arith.constant 0 : i32
    %c0_i32_1 = arith.constant 0 : i32
    %c0_i32_2 = arith.constant 0 : i32
    return %c0_i32, %c0_i32_0, %c0_i32_1 : i32, i32, i32
  }
  func.func @transform_4(%arg0: i32) -> (i32, i32) {
    %c0_i32 = arith.constant 0 : i32
    %c0_i32_0 = arith.constant 0 : i32
    %c0_i32_1 = arith.constant 0 : i32
    return %c0_i32, %c0_i32_0 : i32, i32
  }
  func.func @transform_5(%arg0: i32) -> (i32, i32) {
    %c0_i32 = arith.constant 0 : i32
    %c0_i32_0 = arith.constant 0 : i32
    %c0_i32_1 = arith.constant 0 : i32
    return %c0_i32, %c0_i32_0 : i32, i32
  }
  func.func @transform_6(%arg0: i32) -> (i32, i32, i32) {
    %c0_i32 = arith.constant 0 : i32
    %c0_i32_0 = arith.constant 0 : i32
    %c0_i32_1 = arith.constant 0 : i32
    %c0_i32_2 = arith.constant 0 : i32
    return %c0_i32, %c0_i32_0, %c0_i32_1 : i32, i32, i32
  }
  func.func @transform_7(%arg0: i32) -> (i32, i32) {
    %c0_i32 = arith.constant 0 : i32
    %c0_i32_0 = arith.constant 0 : i32
    %c0_i32_1 = arith.constant 0 : i32
    return %c0_i32, %c0_i32_0 : i32, i32
  }
  func.func @transform_8(%arg0: i32) -> (i32, i32) {
    %c0_i32 = arith.constant 0 : i32
    %c0_i32_0 = arith.constant 0 : i32
    %c0_i32_1 = arith.constant 0 : i32
    return %c0_i32, %c0_i32_0 : i32, i32
  }
  func.func @transform_9(%arg0: i32) -> (i32, i32, i32, i32) {
    %c0_i32 = arith.constant 0 : i32
    %c0_i32_0 = arith.constant 0 : i32
    %c0_i32_1 = arith.constant 0 : i32
    %c0_i32_2 = arith.constant 0 : i32
    return %arg0, %c0_i32, %c0_i32_0, %c0_i32_1 : i32, i32, i32, i32
  }
}

</mosaic_0001>

<bundles_post_ra>
// kernel: up_forward.2
= control target key start
LH: loop header
LB: loop body
LE: loop exit
PB: predicated region body
PF: predicated region fallthrough
CT: control target
= control target key end

     0   :  { %s662_s18 = smov 0   ;;  %s778_s0 = inlined_call_operand.vmem [shape: f32[2,64,8], index: 0, kind: input, shape index: {}]   ;;  %s779_s1 = inlined_call_operand.vmem [shape: f32[8,16], index: 1, kind: input, shape index: {}]   ;;  %s780_s2 = inlined_call_operand.vmem [shape: f32[1,16], index: 2, kind: input, shape index: {}]   ;;  %s781_s3 = inlined_call_operand.vmem [shape: f32[1,16], index: 3, kind: input, shape index: {}]   ;;  %s782_s4 = inlined_call_operand.vmem [shape: f32[1,16], index: 4, kind: input, shape index: {}]   ;;  %s783_s5 = inlined_call_operand.vmem [shape: f32[2,64,16], index: 5, kind: output, shape index: {}]  }
   0x1 LB: > { %s559_s19 = sadd.s32 4294967295, %s630_s18   ;;  %p563_p0 = scmp.ge.s32.totalorder %s630_s18, 1  ;;  %s630_s18 = sphi %s662_s18, %s15_s18  }
   0x2   : > { %p187_p1 = scmp.lt.s32.totalorder %s630_s18, 3 }
   0x4   : > { %p188_p2 = pnand %p563_p0, %p187_p1 }
   0x5   : > { %v233_v0 = vld [vmem:[%s779_s1] sm:$0xff] (!%p188_p2)  ;;  %p215_p3 = scmp.lt.s32.totalorder (!%p188_p2), %s559_s19, 1  ;;  %vm241_vm0 = vcmask (!%p188_p2), 64512   ;;  %vm379_vm1 = vcmask (!%p188_p2), 130048  }
   0x6   : > { %191 = sbr.rel (%p188_p2) target bundleno = 539 (0x21b), region = 40  ;;  %592 = vmatprep.subr.mxu0 (!%p188_p2), %v233_v0  ;;  %606 = vmatprep.subr.mxu1 (!%p188_p2), %v233_v0  ;;  %v568_v9 = vld [vmem:[%s780_s2] ss:$0 sm:$0xff] (!%p188_p2) }
   0x7   : > { %593 = vmatpush3.msra.mxu0 (!%p188_p2), %v233_v0  ;;  %607 = vmatpush3.msra.mxu1 (!%p188_p2), %v233_v0 }
   0xd   : > { %s785_s19 = smov (!%p215_p3, %s559_s19), 1 }
   0xe   : > { %s581_s22 = sshll.u32 %s785_s19, 6 }
   0xf   : > { %s219_s25 = scalar_lea.vmem %s778_s0, %s581_s22  ;;  %s224_s17 = scalar_lea.vmem %s783_s5, %s581_s22 }
  0x10   : > { %v225_v1 = vld [vmem:[%s219_s25] sm:$0xff]  ;;  %v226_v2 = vld [vmem:[%s219_s25 + $0x8] sm:$0xff]  ;;  %v227_v3 = vld [vmem:[%s219_s25 + $0x10] sm:$0xff] }
  0x11   : > { %594 = vmatprep.mubr.msk.f32.mxu0 %vm241_vm0, %v225_v1  ;;  %v229_v4 = vld [vmem:[%s219_s25 + $0x20] sm:$0xff]  ;;  %v230_v5 = vld [vmem:[%s219_s25 + $0x28] sm:$0xff]  ;;  %v231_v6 = vld [vmem:[%s219_s25 + $0x30] sm:$0xff] }
  0x12   : > { %595 = vmatmul.mubr.msk.f32.vlgmr.msra.gmra.mrb[0].mxu0 %vm241_vm0, %v226_v2  ;;  %600 = vmatprep.mubr.msk.f32.mxu1 %vm241_vm0, %v229_v4  ;;  %v228_v7 = vld [vmem:[%s219_s25 + $0x18] sm:$0xff] }
  0x13   : > { %597 = vmatprep.mubr.msk.f32.mxu0 %vm241_vm0, %v227_v3  ;;  %601 = vmatmul.mubr.msk.f32.vlgmr.msra.gmra.mrb[0].mxu1 %vm241_vm0, %v230_v5  ;;  %v232_v8 = vld [vmem:[%s219_s25 + $0x38] sm:$0xff] }
  0x14   : > { %603 = vmatprep.mubr.msk.f32.mxu1 %vm241_vm0, %v231_v6 }
  0x16   : > { %598 = vmatmul.mubr.msk.f32.gmra.mrb[2].mxu0 %vm241_vm0, %v228_v7 }
  0x17   : > { %604 = vmatmul.mubr.msk.f32.gmra.mrb[2].mxu1 %vm241_vm0, %v232_v8 }
  0xe5   : > { %v596_v10 = vpop.f32.mrb[0].mxu0 }
  0xe6   : > { %v338_v11 = vadd.f32 %v596_v10, %v568_v9  ;;  %v332_v12 = vpop.f32.mrb[1].mxu0  ;;  %v602_v13 = vpop.f32.mrb[0].mxu1 }
  0xe7   : > { %v333_v14 = vadd.f32 %v568_v9, %v332_v12  ;;  %v352_v15 = vpop.f32.mrb[1].mxu1  ;;  %v358_v24 = vadd.f32 %v602_v13, %v568_v9 }
  0xe8   : > { %v692_v16 = vmax.f32 %v338_v11, 0.0  ;;  %v353_v17 = vadd.f32 %v568_v9, %v352_v15 }
  0xe9   : > { %v694_v18 = vmax.f32 %v333_v14, 0.0  ;;  %v599_v19 = vpop.f32.mrb[2].mxu0  ;;  %v712_v36 = vmax.f32 %v358_v24, 0.0 }
  0xea   : > { %v381_v20 = vsel %vm379_vm1, %v692_v16, 0.0  ;;  %v408_v21 = vmul.f32 %v692_v16, %v692_v16  ;;  %v348_v22 = vadd.f32 %v599_v19, %v568_v9  ;;  %v342_v23 = vpop.f32.mrb[3].mxu0  ;;  %v605_v25 = vpop.f32.mrb[2].mxu1  ;;  %v704_v29 = vmax.f32 %v353_v17, 0.0 }
  0xeb   : > { %v380_v26 = vsel %vm379_vm1, %v694_v18, 0.0  ;;  %v407_v27 = vmul.f32 %v694_v18, %v694_v18  ;;  %v343_v28 = vadd.f32 %v568_v9, %v342_v23  ;;  %v362_v30 = vpop.f32.mrb[3].mxu1  ;;  %v368_v48 = vadd.f32 %v605_v25, %v568_v9 }
  0xec   : > { %v706_v31 = vmax.f32 %v348_v22, 0.0  ;;  %v416_v32 = vsel %vm379_vm1, %v408_v21, 0.0  ;;  %v382_v35 = vadd.f32 %v381_v20, %v380_v26  ;;  %v363_v37 = vadd.f32 %v568_v9, %v362_v30 }
  0xed   : > { %v415_v33 = vsel %vm379_vm1, %v407_v27, 0.0  ;;  %v710_v34 = vmax.f32 %v343_v28, 0.0  ;;  %v411_v41 = vmul.f32 %v704_v29, %v704_v29  ;;  %v387_v47 = vsel %vm379_vm1, %v704_v29, 0.0 }
  0xee   : > { %v410_v38 = vmul.f32 %v706_v31, %v706_v31  ;;  %v417_v42 = vadd.f32 %v416_v32, %v415_v33  ;;  %v722_v44 = vmax.f32 %v363_v37, 0.0  ;;  %v385_v45 = vsel %vm379_vm1, %v706_v31, 0.0 }
  0xef   : > { %v383_v39 = vsel %vm379_vm1, %v710_v34, 0.0  ;;  %v409_v40 = vmul.f32 %v710_v34, %v710_v34  ;;  %v412_v52 = vmul.f32 %v712_v36, %v712_v36  ;;  %v422_v53 = vsel %vm379_vm1, %v411_v41, 0.0 }
  0xf0   : > { %v384_v43 = vadd.f32 %v383_v39, %v382_v35  ;;  %v420_v51 = vsel %vm379_vm1, %v410_v38, 0.0  ;;  %v413_v54 = vmul.f32 %v722_v44, %v722_v44  ;;  %v735_v57 = vmax.f32 %v368_v48, 0.0 }
  0xf1   : > { %v418_v46 = vsel %vm379_vm1, %v409_v40, 0.0  ;;  %v389_v58 = vsel %vm379_vm1, %v712_v36, 0.0  ;;  %v391_v59 = vsel %vm379_vm1, %v722_v44, 0.0  ;;  %v424_v62 = vsel %vm379_vm1, %v412_v52, 0.0 }
  0xf2   : > { %v419_v49 = vadd.f32 %v418_v46, %v417_v42  ;;  %v386_v50 = vadd.f32 %v385_v45, %v384_v43  ;;  %v426_v63 = vsel %vm379_vm1, %v413_v54, 0.0  ;;  %v393_v2 = vsel %vm379_vm1, %v735_v57, 0.0 }
  0xf3   : > { %v414_v3 = vmul.f32 %v735_v57, %v735_v57 }
  0xf4   : > { %v388_v55 = vadd.f32 %v387_v47, %v386_v50  ;;  %v421_v56 = vadd.f32 %v420_v51, %v419_v49 }
  0xf5   : > { %v428_v6 = vsel %vm379_vm1, %v414_v3, 0.0 }
  0xf6   : > { %v390_v60 = vadd.f32 %v389_v58, %v388_v55  ;;  %v423_v61 = vadd.f32 %v422_v53, %v421_v56 }
  0xf8   : > { %v392_v0 = vadd.f32 %v391_v59, %v390_v60  ;;  %v425_v1 = vadd.f32 %v424_v62, %v423_v61 }
  0xfa   : > { %v394_v4 = vadd.f32 %v393_v2, %v392_v0  ;;  %v427_v5 = vadd.f32 %v426_v63, %v425_v1 }
  0xfc   : > { %395 = vadd.xlane.f32.xlu0 %v394_v4  ;;  %v429_v7 = vadd.f32 %v428_v6, %v427_v5 }
 0x100   : > { %430 = vadd.xlane.f32.xlu0 %v429_v7 }
 0x189   : > { %v396_v8 = vpop.xlane.xlu0 %395 }
 0x18a   : > { %v397_v9 = vrot.slane %v396_v8, 4 }
 0x18c   : > { %v398_v10 = vadd.f32 %v397_v9, %v396_v8 }
 0x18d   : > { %v431_v11 = vpop.xlane.xlu0 %430 }
 0x18e   : > { %v399_v12 = vrot.slane %v398_v10, 2  ;;  %v432_v13 = vrot.slane %v431_v11, 4 }
 0x190   : > { %v433_v14 = vadd.f32 %v432_v13, %v431_v11  ;;  %v400_v15 = vadd.f32 %v399_v12, %v398_v10 }
 0x192   : > { %v434_v17 = vrot.slane %v433_v14, 2  ;;  %v401_v19 = vrot.slane %v400_v15, 1 }
 0x194   : > { %v435_v20 = vadd.f32 %v434_v17, %v433_v14  ;;  %v402_v21 = vadd.f32 %v401_v19, %v400_v15 }
 0x196   : > { %608 = vpush %v402_v21  ;;  %v436_v22 = vrot.slane %v435_v20, 1 }
 0x198   : > { %v437_v23 = vadd.f32 %v436_v22, %v435_v20 }
 0x19a   : > { %610 = vpush %v437_v23 }
 0x1c7   : > { %s609_s28 = spop %608 }
 0x1c8   : > { %s406_s29 = smul.f32 0.0009765625, %s609_s28 }
 0x1ca   : > { %s442_s30 = smul.f32 %s406_s29, %s406_s29  ;;  %v444_v26 = vstv %s406_s29 }
 0x1cb   : > { %s611_s6 = spop %610  ;;  %v445_v27 = vsub.f32 %v694_v18, %v444_v26  ;;  %v446_v28 = vsub.f32 %v692_v16, %v444_v26  ;;  %v447_v30 = vsub.f32 %v710_v34, %v444_v26  ;;  %v448_v32 = vsub.f32 %v706_v31, %v444_v26  ;;  %v577_v18 = vld [vmem:[%s781_s3] ss:$0 sm:$0xff] }
 0x1cc   : > { %s441_s7 = smul.f32 0.0009765625, %s611_s6  ;;  %v449_v33 = vsub.f32 %v704_v29, %v444_v26  ;;  %v450_v35 = vsub.f32 %v712_v36, %v444_v26  ;;  %v451_v37 = vsub.f32 %v722_v44, %v444_v26  ;;  %v452_v38 = vsub.f32 %v735_v57, %v444_v26  ;;  %v578_v36 = vld [vmem:[%s782_s4] ss:$0 sm:$0xff] }
 0x1ce   : > { %s443_s8 = ssub.f32 %s441_s7, %s442_s30 }
 0x1d0   : > { %s453_s9 = sadd.f32 1e-05, %s443_s8 }
 0x1d2   : > { %v454_v24 = vstv %s453_s9 }
 0x1d3   : > { %622 = vrsqrt.f32 %v454_v24 }
 0x1dd   : > { %v623_v25 = vpop.eup %622 }
 0x1de   : > { %612 = vpush %v623_v25 }
 0x20f   : > { %s613_s10 = spop %612 }
 0x210   : > { %v457_v39 = vstv %s613_s10 }
 0x211   : > { %v458_v16 = vmul.f32 %v457_v39, %v445_v27  ;;  %v459_v40 = vmul.f32 %v457_v39, %v446_v28  ;;  %v460_v34 = vmul.f32 %v457_v39, %v447_v30  ;;  %v461_v41 = vmul.f32 %v457_v39, %v448_v32 }
 0x212   : > { %v462_v31 = vmul.f32 %v457_v39, %v449_v33  ;;  %v463_v42 = vmul.f32 %v457_v39, %v450_v35  ;;  %v464_v29 = vmul.f32 %v457_v39, %v451_v37  ;;  %v465_v43 = vmul.f32 %v457_v39, %v452_v38 }
 0x213   : > { %v473_v44 = vmul.f32 %v577_v18, %v458_v16  ;;  %v474_v45 = vmul.f32 %v577_v18, %v459_v40  ;;  %v475_v46 = vmul.f32 %v577_v18, %v460_v34  ;;  %v476_v47 = vmul.f32 %v577_v18, %v461_v41 }
 0x214   : > { %v477_v48 = vmul.f32 %v577_v18, %v462_v31  ;;  %v478_v49 = vmul.f32 %v577_v18, %v463_v42  ;;  %v479_v50 = vmul.f32 %v577_v18, %v464_v29  ;;  %v480_v51 = vmul.f32 %v577_v18, %v465_v43 }
 0x215   : > { %v488_v52 = vadd.f32 %v578_v36, %v473_v44  ;;  %v489_v53 = vadd.f32 %v578_v36, %v474_v45  ;;  %v490_v54 = vadd.f32 %v578_v36, %v475_v46  ;;  %v491_v55 = vadd.f32 %v578_v36, %v476_v47 }
 0x216   : > { %v492_v56 = vadd.f32 %v578_v36, %v477_v48  ;;  %v493_v57 = vadd.f32 %v578_v36, %v478_v49  ;;  %v494_v58 = vadd.f32 %v578_v36, %v479_v50  ;;  %v495_v59 = vadd.f32 %v578_v36, %v480_v51 }
 0x217   : > { %496 = vst.msk [vmem:[%s224_s17] sm:$0xff] %vm379_vm1, %v488_v52  ;;  %497 = vst.msk [vmem:[%s224_s17 + $0x8] sm:$0xff] %vm379_vm1, %v489_v53 }
 0x218   : > { %498 = vst.msk [vmem:[%s224_s17 + $0x10] sm:$0xff] %vm379_vm1, %v490_v54  ;;  %499 = vst.msk [vmem:[%s224_s17 + $0x18] sm:$0xff] %vm379_vm1, %v491_v55 }
 0x219   : > { %500 = vst.msk [vmem:[%s224_s17 + $0x20] sm:$0xff] %vm379_vm1, %v492_v56  ;;  %501 = vst.msk [vmem:[%s224_s17 + $0x28] sm:$0xff] %vm379_vm1, %v493_v57 }
 0x21a   : > { %502 = vst.msk [vmem:[%s224_s17 + $0x30] sm:$0xff] %vm379_vm1, %v494_v58  ;;  %503 = vst.msk [vmem:[%s224_s17 + $0x38] sm:$0xff] %vm379_vm1, %v495_v59 }
 0x21b PF: > { %s15_s18 = sadd.s32 1, %s630_s18  }
 0x21c   : > { %p12_p4 = scmp.ge.s32.totalorder %s15_s18, 4  }
 0x21e   :  { %14 = sbr.rel (!%p12_p4) target bundleno = 1 (0x1), region = 70 }

// kernel: up_forward.3
= control target key start
LH: loop header
LB: loop body
LE: loop exit
PB: predicated region body
PF: predicated region fallthrough
CT: control target
= control target key end

     0   :  { %s15948_s30 = smov 0   ;;  %s19377_s0 = inlined_call_operand.vmem [shape: f32[2,16,16,4], index: 0, kind: input, shape index: {}]   ;;  %s19378_s1 = inlined_call_operand.vmem [shape: f32[2,16,16,4], index: 1, kind: input, shape index: {}]   ;;  %s19379_s2 = inlined_call_operand.vmem [shape: f32[9,4,8], index: 2, kind: input, shape index: {}]   ;;  %s19380_s3 = inlined_call_operand.vmem [shape: f32[9,4,8], index: 3, kind: input, shape index: {}]   ;;  %s19381_s4 = inlined_call_operand.vmem [shape: f32[1,8], index: 4, kind: input, shape index: {}]   ;;  %s19382_s5 = inlined_call_operand.vmem [shape: f32[1,8], index: 5, kind: input, shape index: {}]   ;;  %s19383_s6 = inlined_call_operand.vmem [shape: f32[9,8,8], index: 6, kind: input, shape index: {}]   ;;  %s19384_s7 = inlined_call_operand.vmem [shape: f32[1,8], index: 7, kind: input, shape index: {}]   ;;  %s19385_s8 = inlined_call_operand.vmem [shape: f32[1,8], index: 8, kind: input, shape index: {}]   ;;  %s19386_s9 = inlined_call_operand.vmem [shape: f32[2,16,16,8], index: 9, kind: output, shape index: {}]  }
   0x1 LB: > { %s11885_s10 = sadd.s32 4294967295, %s15895_s30   ;;  %p11889_p0 = scmp.ge.s32.totalorder %s15895_s30, 1  ;;  %s15895_s30 = sphi %s15948_s30, %s19_s30  }
   0x2   : > { %p297_p1 = scmp.lt.s32.totalorder %s15895_s30, 3 }
   0x4   : > { %p298_p2 = pnand %p11889_p0, %p297_p1 }
   0x6   : > { %301 = sbr.rel (%p298_p2) target bundleno = 2570 (0xa0a), region = 56 }
   0xd   : > { %vm811_vm0 = vcmask 1043456   ;;  %v15959_v0 = vld [vmem:[%s19379_s2 + $0x8] sm:$0xf]  ;;  %vm353_vm1 = vcmask 31744   ;;  %vm356_vm2 = vcmask 25600   ;;  %v19387_v1 = vmov 0.0  }
   0xe   : > { %13902 = vmatprep.subr.msk.mxu0 %vm811_vm0, %v15959_v0  ;;  %354 = vst.msk [vmem:[#allocation2] sm:$0xff] %vm353_vm1, %v19387_v1  ;;  %355 = vst.msk [vmem:[#allocation2 + $0x8] sm:$0xff] %vm353_vm1, %v19387_v1  ;;  %v16110_v2 = vld [vmem:[%s19380_s3 + $0x8] sm:$0xf]  ;;  %p338_p3 = scmp.lt.s32.totalorder %s11885_s10, 1  ;;  %vm463_vm3 = vcmask 64512  }
   0xf   : > { %358 = vst.msk [vmem:[#allocation2 + $0x18] sm:$0xff] %vm353_vm1, %v19387_v1  ;;  %359 = vst.msk [vmem:[#allocation2 + $0x20] sm:$0xff] %vm353_vm1, %v19387_v1  ;;  %13903 = vmatpush3.msk.msra.mxu0 %vm811_vm0, %v15959_v0  ;;  %v16206_v6 = vld [vmem:[%s19379_s2 + $0xc] sm:$0xf]  ;;  %vm466_vm4 = vcmask 58368  }
  0x10   : > { %361 = vst.msk [vmem:[#allocation2 + $0x30] sm:$0xff] %vm353_vm1, %v19387_v1  ;;  %362 = vst.msk [vmem:[#allocation2 + $0x38] sm:$0xff] %vm353_vm1, %v19387_v1  ;;  %13952 = vmatprep.subr.msk.mxu0 %vm811_vm0, %v16110_v2  ;;  %s19575_s10 = smov (!%p338_p3, %s11885_s10), 1 }
  0x11   : > { %364 = vst.msk [vmem:[#allocation2 + $0x48] sm:$0xff] %vm353_vm1, %v19387_v1  ;;  %365 = vst.msk [vmem:[#allocation2 + $0x50] sm:$0xff] %vm353_vm1, %v19387_v1  ;;  %s16192_s15 = sshll.u32 %s19575_s10, 8 }
  0x12   : > { %367 = vst.msk [vmem:[#allocation2 + $0x60] sm:$0xff] %vm353_vm1, %v19387_v1  ;;  %368 = vst.msk [vmem:[#allocation2 + $0x68] sm:$0xff] %vm353_vm1, %v19387_v1  ;;  %s16198_s18 = scalar_lea.vmem %s19377_s0, %s16192_s15  ;;  %s16228_s23 = scalar_lea.vmem %s19378_s1, %s16192_s15 }
  0x13   : > { %370 = vst.msk [vmem:[#allocation2 + $0x78] sm:$0xff] %vm353_vm1, %v19387_v1  ;;  %371 = vst.msk [vmem:[#allocation2 + $0x80] sm:$0xff] %vm353_vm1, %v19387_v1  ;;  %v519_v3 = vld [vmem:[%s16198_s18] sm:$0xff]  ;;  %v520_v4 = vld [vmem:[%s16198_s18 + $0x8] sm:$0xff] }
  0x14   : > { %373 = vst.msk [vmem:[#allocation2 + $0x90] sm:$0xff] %vm353_vm1, %v19387_v1  ;;  %374 = vst.msk [vmem:[#allocation2 + $0x98] sm:$0xff] %vm353_vm1, %v19387_v1  ;;  %v521_v5 = vld [vmem:[%s16198_s18 + $0x10] sm:$0xff]  ;;  %v522_v9 = vld [vmem:[%s16198_s18 + $0x18] sm:$0xff] }
  0x15   : > { %376 = vst.msk [vmem:[#allocation2 + $0xa8] sm:$0xff] %vm353_vm1, %v19387_v1  ;;  %377 = vst.msk [vmem:[#allocation2 + $0xb0] sm:$0xff] %vm353_vm1, %v19387_v1  ;;  %v2144_v7 = vld [vmem:[#allocation2 + $0x2] sm:$0xff]  ;;  %v525_v12 = vld [vmem:[%s16198_s18 + $0x30] sm:$0xff] }
  0x16   : > { %379 = vst.msk [vmem:[#allocation2 + $0xc0] sm:$0xff] %vm353_vm1, %v19387_v1  ;;  %380 = vst.msk [vmem:[#allocation2 + $0xc8] sm:$0xff] %vm353_vm1, %v19387_v1  ;;  %13904 = vmatprep.mubr.msk.f32.mxu0 %vm353_vm1, %v2144_v7  ;;  %v523_v10 = vld [vmem:[%s16198_s18 + $0x20] sm:$0xff]  ;;  %v524_v11 = vld [vmem:[%s16198_s18 + $0x28] sm:$0xff] }
  0x17   : > { %382 = vst.msk [vmem:[#allocation2 + $0xd8] sm:$0xff] %vm353_vm1, %v19387_v1  ;;  %383 = vst.msk [vmem:[#allocation2 + $0xe0] sm:$0xff] %vm353_vm1, %v19387_v1  ;;  %v526_v13 = vld [vmem:[%s16198_s18 + $0x38] sm:$0xff]  ;;  %v527_v14 = vld [vmem:[%s16198_s18 + $0x40] sm:$0xff] }
  0x18   : > { %385 = vst.msk [vmem:[#allocation2 + $0xf0] sm:$0xff] %vm353_vm1, %v19387_v1  ;;  %386 = vst.msk [vmem:[#allocation2 + $0xf8] sm:$0xff] %vm353_vm1, %v19387_v1  ;;  %v528_v15 = vld [vmem:[%s16198_s18 + $0x48] sm:$0xff]  ;;  %v529_v16 = vld [vmem:[%s16198_s18 + $0x50] sm:$0xff] }
  0x19   : > { %388 = vst.msk [vmem:[#allocation2 + $0x108] sm:$0xff] %vm353_vm1, %v19387_v1  ;;  %389 = vst.msk [vmem:[#allocation2 + $0x110] sm:$0xff] %vm353_vm1, %v19387_v1  ;;  %v530_v17 = vld [vmem:[%s16198_s18 + $0x58] sm:$0xff]  ;;  %v531_v18 = vld [vmem:[%s16198_s18 + $0x60] sm:$0xff] }
  0x1a   : > { %391 = vst.msk [vmem:[#allocation2 + $0x120] sm:$0xff] %vm353_vm1, %v19387_v1  ;;  %392 = vst.msk [vmem:[#allocation2 + $0x128] sm:$0xff] %vm353_vm1, %v19387_v1  ;;  %v532_v19 = vld [vmem:[%s16198_s18 + $0x68] sm:$0xff]  ;;  %v584_v20 = vld [vmem:[%s16228_s23] sm:$0xff] }
  0x1b   : > { %394 = vst.msk [vmem:[#allocation2 + $0x138] sm:$0xff] %vm353_vm1, %v19387_v1  ;;  %395 = vst.msk [vmem:[#allocation2 + $0x140] sm:$0xff] %vm353_vm1, %v19387_v1  ;;  %v585_v21 = vld [vmem:[%s16228_s23 + $0x8] sm:$0xff]  ;;  %v586_v22 = vld [vmem:[%s16228_s23 + $0x10] sm:$0xff] }
  0x1c   : > { %397 = vst.msk [vmem:[#allocation2 + $0x150] sm:$0xff] %vm353_vm1, %v19387_v1  ;;  %398 = vst.msk [vmem:[#allocation2 + $0x158] sm:$0xff] %vm353_vm1, %v19387_v1  ;;  %v587_v23 = vld [vmem:[%s16228_s23 + $0x18] sm:$0xff]  ;;  %v588_v24 = vld [vmem:[%s16228_s23 + $0x20] sm:$0xff] }
  0x1d   : > { %400 = vst.msk [vmem:[#allocation2 + $0x168] sm:$0xff] %vm353_vm1, %v19387_v1  ;;  %401 = vst.msk [vmem:[#allocation2 + $0x170] sm:$0xff] %vm353_vm1, %v19387_v1  ;;  %v589_v25 = vld [vmem:[%s16228_s23 + $0x28] sm:$0xff]  ;;  %v590_v28 = vld [vmem:[%s16228_s23 + $0x30] sm:$0xff] }
  0x1e   : > { %403 = vst.msk [vmem:[#allocation2 + $0x180] sm:$0xff] %vm353_vm1, %v19387_v1  ;;  %404 = vst.msk [vmem:[#allocation2 + $0x188] sm:$0xff] %vm353_vm1, %v19387_v1  ;;  %v591_v30 = vld [vmem:[%s16228_s23 + $0x38] sm:$0xff]  ;;  %v592_v31 = vld [vmem:[%s16228_s23 + $0x40] sm:$0xff] }
  0x1f   : > { %406 = vst.msk [vmem:[#allocation2 + $0x198] sm:$0xff] %vm353_vm1, %v19387_v1  ;;  %407 = vst.msk [vmem:[#allocation2 + $0x1a0] sm:$0xff] %vm353_vm1, %v19387_v1  ;;  %v593_v34 = vld [vmem:[%s16228_s23 + $0x48] sm:$0xff]  ;;  %v594_v35 = vld [vmem:[%s16228_s23 + $0x50] sm:$0xff] }
  0x20   : > { %409 = vst.msk [vmem:[#allocation3] sm:$0xff] %vm353_vm1, %v19387_v1  ;;  %410 = vst.msk [vmem:[#allocation3 + $0x8] sm:$0xff] %vm353_vm1, %v19387_v1  ;;  %v595_v38 = vld [vmem:[%s16228_s23 + $0x58] sm:$0xff]  ;;  %v596_v39 = vld [vmem:[%s16228_s23 + $0x60] sm:$0xff] }
  0x21   : > { %412 = vst.msk [vmem:[#allocation3 + $0x18] sm:$0xff] %vm353_vm1, %v19387_v1  ;;  %413 = vst.msk [vmem:[#allocation3 + $0x20] sm:$0xff] %vm353_vm1, %v19387_v1  ;;  %v597_v41 = vld [vmem:[%s16228_s23 + $0x68] sm:$0xff]  ;;  %v598_v43 = vld [vmem:[%s16228_s23 + $0x70] sm:$0xff] }
  0x22   : > { %415 = vst.msk [vmem:[#allocation3 + $0x30] sm:$0xff] %vm353_vm1, %v19387_v1  ;;  %416 = vst.msk [vmem:[#allocation3 + $0x38] sm:$0xff] %vm353_vm1, %v19387_v1  ;;  %v599_v44 = vld [vmem:[%s16228_s23 + $0x78] sm:$0xff]  ;;  %v600_v45 = vld [vmem:[%s16228_s23 + $0x80] sm:$0xff] }
  0x23   : > { %418 = vst.msk [vmem:[#allocation3 + $0x48] sm:$0xff] %vm353_vm1, %v19387_v1  ;;  %419 = vst.msk [vmem:[#allocation3 + $0x50] sm:$0xff] %vm353_vm1, %v19387_v1  ;;  %v601_v46 = vld [vmem:[%s16228_s23 + $0x88] sm:$0xff]  ;;  %v602_v47 = vld [vmem:[%s16228_s23 + $0x90] sm:$0xff] }
  0x24   : > { %421 = vst.msk [vmem:[#allocation3 + $0x60] sm:$0xff] %vm353_vm1, %v19387_v1  ;;  %422 = vst.msk [vmem:[#allocation3 + $0x68] sm:$0xff] %vm353_vm1, %v19387_v1  ;;  %v603_v48 = vld [vmem:[%s16228_s23 + $0x98] sm:$0xff]  ;;  %v604_v49 = vld [vmem:[%s16228_s23 + $0xa0] sm:$0xff] }
  0x25   : > { %424 = vst.msk [vmem:[#allocation3 + $0x78] sm:$0xff] %vm353_vm1, %v19387_v1  ;;  %425 = vst.msk [vmem:[#allocation3 + $0x80] sm:$0xff] %vm353_vm1, %v19387_v1  ;;  %v605_v50 = vld [vmem:[%s16228_s23 + $0xa8] sm:$0xff]  ;;  %v606_v51 = vld [vmem:[%s16228_s23 + $0xb0] sm:$0xff] }
  0x26   : > { %427 = vst.msk [vmem:[#allocation3 + $0x90] sm:$0xff] %vm353_vm1, %v19387_v1  ;;  %428 = vst.msk [vmem:[#allocation3 + $0x98] sm:$0xff] %vm353_vm1, %v19387_v1  ;;  %v607_v53 = vld [vmem:[%s16228_s23 + $0xb8] sm:$0xff]  ;;  %v608_v54 = vld [vmem:[%s16228_s23 + $0xc0] sm:$0xff] }
  0x27   : > { %430 = vst.msk [vmem:[#allocation3 + $0xa8] sm:$0xff] %vm353_vm1, %v19387_v1  ;;  %431 = vst.msk [vmem:[#allocation3 + $0xb0] sm:$0xff] %vm353_vm1, %v19387_v1  ;;  %v609_v55 = vld [vmem:[%s16228_s23 + $0xc8] sm:$0xff]  ;;  %v610_v56 = vld [vmem:[%s16228_s23 + $0xd0] sm:$0xff] }
  0x28   : > { %433 = vst.msk [vmem:[#allocation3 + $0xc0] sm:$0xff] %vm353_vm1, %v19387_v1  ;;  %434 = vst.msk [vmem:[#allocation3 + $0xc8] sm:$0xff] %vm353_vm1, %v19387_v1  ;;  %v611_v57 = vld [vmem:[%s16228_s23 + $0xd8] sm:$0xff]  ;;  %v612_v58 = vld [vmem:[%s16228_s23 + $0xe0] sm:$0xff] }
  0x29   : > { %436 = vst.msk [vmem:[#allocation3 + $0xd8] sm:$0xff] %vm353_vm1, %v19387_v1  ;;  %437 = vst.msk [vmem:[#allocation3 + $0xe0] sm:$0xff] %vm353_vm1, %v19387_v1  ;;  %v613_v59 = vld [vmem:[%s16228_s23 + $0xe8] sm:$0xff]  ;;  %v2534_v0 = vld [vmem:[#allocation3 + $0x2] sm:$0xff] }
  0x2a   : > { %439 = vst.msk [vmem:[#allocation3 + $0xf0] sm:$0xff] %vm353_vm1, %v19387_v1  ;;  %440 = vst.msk [vmem:[#allocation3 + $0xf8] sm:$0xff] %vm353_vm1, %v19387_v1  ;;  %v534_v7 = vld [vmem:[%s16198_s18 + $0x78] sm:$0xff] }
  0x2b   : > { %442 = vst.msk [vmem:[#allocation3 + $0x108] sm:$0xff] %vm353_vm1, %v19387_v1  ;;  %443 = vst.msk [vmem:[#allocation3 + $0x110] sm:$0xff] %vm353_vm1, %v19387_v1 }
  0x2c   : > { %445 = vst.msk [vmem:[#allocation3 + $0x120] sm:$0xff] %vm353_vm1, %v19387_v1  ;;  %446 = vst.msk [vmem:[#allocation3 + $0x128] sm:$0xff] %vm353_vm1, %v19387_v1 }
  0x2d   : > { %448 = vst.msk [vmem:[#allocation3 + $0x138] sm:$0xff] %vm353_vm1, %v19387_v1  ;;  %449 = vst.msk [vmem:[#allocation3 + $0x140] sm:$0xff] %vm353_vm1, %v19387_v1 }
  0x2e   : > { %451 = vst.msk [vmem:[#allocation3 + $0x150] sm:$0xff] %vm353_vm1, %v19387_v1  ;;  %452 = vst.msk [vmem:[#allocation3 + $0x158] sm:$0xff] %vm353_vm1, %v19387_v1 }
  0x2f   : > { %454 = vst.msk [vmem:[#allocation3 + $0x168] sm:$0xff] %vm353_vm1, %v19387_v1  ;;  %455 = vst.msk [vmem:[#allocation3 + $0x170] sm:$0xff] %vm353_vm1, %v19387_v1 }
  0x30   : > { %457 = vst.msk [vmem:[#allocation3 + $0x180] sm:$0xff] %vm353_vm1, %v19387_v1  ;;  %458 = vst.msk [vmem:[#allocation3 + $0x188] sm:$0xff] %vm353_vm1, %v19387_v1 }
  0x31   : > { %460 = vst.msk [vmem:[#allocation3 + $0x198] sm:$0xff] %vm353_vm1, %v19387_v1  ;;  %461 = vst.msk [vmem:[#allocation3 + $0x1a0] sm:$0xff] %vm353_vm1, %v19387_v1 }
  0x32   : > { %357 = vst.msk [vmem:[#allocation2 + $0x10] sm:$0x3] %vm356_vm2, %v19387_v1  ;;  %360 = vst.msk [vmem:[#allocation2 + $0x28] sm:$0x3] %vm356_vm2, %v19387_v1 }
  0x33   : > { %363 = vst.msk [vmem:[#allocation2 + $0x40] sm:$0x3] %vm356_vm2, %v19387_v1  ;;  %366 = vst.msk [vmem:[#allocation2 + $0x58] sm:$0x3] %vm356_vm2, %v19387_v1 }
  0x34   : > { %369 = vst.msk [vmem:[#allocation2 + $0x70] sm:$0x3] %vm356_vm2, %v19387_v1  ;;  %372 = vst.msk [vmem:[#allocation2 + $0x88] sm:$0x3] %vm356_vm2, %v19387_v1 }
  0x35   : > { %375 = vst.msk [vmem:[#allocation2 + $0xa0] sm:$0x3] %vm356_vm2, %v19387_v1  ;;  %378 = vst.msk [vmem:[#allocation2 + $0xb8] sm:$0x3] %vm356_vm2, %v19387_v1 }
  0x36   : > { %381 = vst.msk [vmem:[#allocation2 + $0xd0] sm:$0x3] %vm356_vm2, %v19387_v1  ;;  %384 = vst.msk [vmem:[#allocation2 + $0xe8] sm:$0x3] %vm356_vm2, %v19387_v1 }
  0x37   : > { %387 = vst.msk [vmem:[#allocation2 + $0x100] sm:$0x3] %vm356_vm2, %v19387_v1  ;;  %390 = vst.msk [vmem:[#allocation2 + $0x118] sm:$0x3] %vm356_vm2, %v19387_v1 }
  0x38   : > { %393 = vst.msk [vmem:[#allocation2 + $0x130] sm:$0x3] %vm356_vm2, %v19387_v1  ;;  %396 = vst.msk [vmem:[#allocation2 + $0x148] sm:$0x3] %vm356_vm2, %v19387_v1 }
  0x39   : > { %399 = vst.msk [vmem:[#allocation2 + $0x160] sm:$0x3] %vm356_vm2, %v19387_v1  ;;  %402 = vst.msk [vmem:[#allocation2 + $0x178] sm:$0x3] %vm356_vm2, %v19387_v1  ;;  %v2145_v8 = vld [vmem:[#allocation2 + $0xa] sm:$0xff] }
  0x3a   : > { %405 = vst.msk [vmem:[#allocation2 + $0x190] sm:$0x3] %vm356_vm2, %v19387_v1  ;;  %408 = vst.msk [vmem:[#allocation2 + $0x1a8] sm:$0x3] %vm356_vm2, %v19387_v1  ;;  %13905 = vmatmul.mubr.msk.f32.vlgmr.msra.gmra.mrb[0].mxu0 %vm353_vm1, %v2145_v8  ;;  %v535_v8 = vld [vmem:[%s16198_s18 + $0x80] sm:$0xff] }
  0x3b   : > { %411 = vst.msk [vmem:[#allocation3 + $0x10] sm:$0x3] %vm356_vm2, %v19387_v1  ;;  %414 = vst.msk [vmem:[#allocation3 + $0x28] sm:$0x3] %vm356_vm2, %v19387_v1  ;;  %13953 = vmatpush3.msk.msra.mxu0 %vm811_vm0, %v16110_v2 }
  0x3c   : > { %417 = vst.msk [vmem:[#allocation3 + $0x40] sm:$0x3] %vm356_vm2, %v19387_v1  ;;  %420 = vst.msk [vmem:[#allocation3 + $0x58] sm:$0x3] %vm356_vm2, %v19387_v1  ;;  %14002 = vmatprep.subr.msk.mxu0 %vm811_vm0, %v16206_v6 }
  0x3d   : > { %423 = vst.msk [vmem:[#allocation3 + $0x70] sm:$0x3] %vm356_vm2, %v19387_v1  ;;  %426 = vst.msk [vmem:[#allocation3 + $0x88] sm:$0x3] %vm356_vm2, %v19387_v1 }
  0x3e   : > { %429 = vst.msk [vmem:[#allocation3 + $0xa0] sm:$0x3] %vm356_vm2, %v19387_v1  ;;  %432 = vst.msk [vmem:[#allocation3 + $0xb8] sm:$0x3] %vm356_vm2, %v19387_v1 }
  0x3f   : > { %435 = vst.msk [vmem:[#allocation3 + $0xd0] sm:$0x3] %vm356_vm2, %v19387_v1  ;;  %438 = vst.msk [vmem:[#allocation3 + $0xe8] sm:$0x3] %vm356_vm2, %v19387_v1 }
  0x40   : > { %441 = vst.msk [vmem:[#allocation3 + $0x100] sm:$0x3] %vm356_vm2, %v19387_v1  ;;  %444 = vst.msk [vmem:[#allocation3 + $0x118] sm:$0x3] %vm356_vm2, %v19387_v1 }
  0x41   : > { %447 = vst.msk [vmem:[#allocation3 + $0x130] sm:$0x3] %vm356_vm2, %v19387_v1  ;;  %450 = vst.msk [vmem:[#allocation3 + $0x148] sm:$0x3] %vm356_vm2, %v19387_v1 }
  0x42   : > { %453 = vst.msk [vmem:[#allocation3 + $0x160] sm:$0x3] %vm356_vm2, %v19387_v1  ;;  %456 = vst.msk [vmem:[#allocation3 + $0x178] sm:$0x3] %vm356_vm2, %v19387_v1  ;;  %v2535_v2 = vld [vmem:[#allocation3 + $0xa] sm:$0xff] }
  0x43   : > { %459 = vst.msk [vmem:[#allocation3 + $0x190] sm:$0x3] %vm356_vm2, %v19387_v1  ;;  %462 = vst.msk [vmem:[#allocation3 + $0x1a8] sm:$0x3] %vm356_vm2, %v19387_v1 }
  0x44   : > { %552 = vst.msk [vmem:[#allocation2 + $0x19] sm:$0xff] %vm353_vm1, %v519_v3  ;;  %553 = vst.msk [vmem:[#allocation2 + $0x21] sm:$0xff] %vm353_vm1, %v520_v4  ;;  %v16338_v4 = vld [vmem:[%s19380_s3 + $0xc] sm:$0xf] }
  0x45   : > { %554 = vst.msk [vmem:[#allocation2 + $0x31] sm:$0xff] %vm353_vm1, %v521_v5  ;;  %555 = vst.msk [vmem:[#allocation2 + $0x39] sm:$0xff] %vm353_vm1, %v522_v9  ;;  %v533_v5 = vld [vmem:[%s16198_s18 + $0x70] sm:$0xff]  ;;  %v536_v9 = vld [vmem:[%s16198_s18 + $0x88] sm:$0xff] }
  0x46   : > { %556 = vst.msk [vmem:[#allocation2 + $0x49] sm:$0xff] %vm353_vm1, %v523_v10  ;;  %557 = vst.msk [vmem:[#allocation2 + $0x51] sm:$0xff] %vm353_vm1, %v524_v11  ;;  %v537_v10 = vld [vmem:[%s16198_s18 + $0x90] sm:$0xff] }
  0x47   : > { %558 = vst.msk [vmem:[#allocation2 + $0x61] sm:$0xff] %vm353_vm1, %v525_v12  ;;  %559 = vst.msk [vmem:[#allocation2 + $0x69] sm:$0xff] %vm353_vm1, %v526_v13  ;;  %v538_v12 = vld [vmem:[%s16198_s18 + $0x98] sm:$0xff]  ;;  %v539_v13 = vld [vmem:[%s16198_s18 + $0xa0] sm:$0xff] }
  0x48   : > { %560 = vst.msk [vmem:[#allocation2 + $0x79] sm:$0xff] %vm353_vm1, %v527_v14  ;;  %561 = vst.msk [vmem:[#allocation2 + $0x81] sm:$0xff] %vm353_vm1, %v528_v15  ;;  %v540_v14 = vld [vmem:[%s16198_s18 + $0xa8] sm:$0xff] }
  0x49   : > { %562 = vst.msk [vmem:[#allocation2 + $0x91] sm:$0xff] %vm353_vm1, %v529_v16  ;;  %563 = vst.msk [vmem:[#allocation2 + $0x99] sm:$0xff] %vm353_vm1, %v530_v17  ;;  %v541_v16 = vld [vmem:[%s16198_s18 + $0xb0] sm:$0xff]  ;;  %v542_v17 = vld [vmem:[%s16198_s18 + $0xb8] sm:$0xff] }
  0x4a   : > { %564 = vst.msk [vmem:[#allocation2 + $0xa9] sm:$0xff] %vm353_vm1, %v531_v18  ;;  %565 = vst.msk [vmem:[#allocation2 + $0xb1] sm:$0xff] %vm353_vm1, %v532_v19  ;;  %v543_v18 = vld [vmem:[%s16198_s18 + $0xc0] sm:$0xff]  ;;  %v544_v19 = vld [vmem:[%s16198_s18 + $0xc8] sm:$0xff] }
  0x4b   : > { %617 = vst.msk [vmem:[#allocation3 + $0x19] sm:$0xff] %vm353_vm1, %v584_v20  ;;  %618 = vst.msk [vmem:[#allocation3 + $0x21] sm:$0xff] %vm353_vm1, %v585_v21  ;;  %v2146_v26 = vld [vmem:[#allocation2 + $0x1a] sm:$0xff]  ;;  %v2147_v27 = vld [vmem:[#allocation2 + $0x22] sm:$0xff] }
  0x4c   : > { %619 = vst.msk [vmem:[#allocation3 + $0x31] sm:$0xff] %vm353_vm1, %v586_v22  ;;  %620 = vst.msk [vmem:[#allocation3 + $0x39] sm:$0xff] %vm353_vm1, %v587_v23  ;;  %13907 = vmatprep.mubr.msk.f32.mxu0 %vm353_vm1, %v2146_v26  ;;  %v2148_v29 = vld [vmem:[#allocation2 + $0x32] sm:$0xff]  ;;  %v2149_v32 = vld [vmem:[#allocation2 + $0x3a] sm:$0xff] }
  0x4d   : > { %621 = vst.msk [vmem:[#allocation3 + $0x49] sm:$0xff] %vm353_vm1, %v588_v24  ;;  %622 = vst.msk [vmem:[#allocation3 + $0x51] sm:$0xff] %vm353_vm1, %v589_v25  ;;  %13908 = vmatmul.mubr.msk.f32.gmra.mrb[2].mxu0 %vm353_vm1, %v2147_v27  ;;  %v2150_v33 = vld [vmem:[#allocation2 + $0x4a] sm:$0xff]  ;;  %v2151_v36 = vld [vmem:[#allocation2 + $0x52] sm:$0xff] }
  0x4e   : > { %623 = vst.msk [vmem:[#allocation3 + $0x61] sm:$0xff] %vm353_vm1, %v590_v28  ;;  %624 = vst.msk [vmem:[#allocation3 + $0x69] sm:$0xff] %vm353_vm1, %v591_v30  ;;  %13910 = vmatprep.mubr.msk.f32.mxu0 %vm353_vm1, %v2148_v29  ;;  %v2152_v37 = vld [vmem:[#allocation2 + $0x62] sm:$0xff]  ;;  %v2153_v40 = vld [vmem:[#allocation2 + $0x6a] sm:$0xff] }
  0x4f   : > { %625 = vst.msk [vmem:[#allocation3 + $0x79] sm:$0xff] %vm353_vm1, %v592_v31  ;;  %626 = vst.msk [vmem:[#allocation3 + $0x81] sm:$0xff] %vm353_vm1, %v593_v34  ;;  %v2154_v42 = vld [vmem:[#allocation2 + $0x7a] sm:$0xff]  ;;  %v16295_v52 = vld [vmem:[#allocation2 + $0x82] sm:$0xff] }
  0x50   : > { %627 = vst.msk [vmem:[#allocation3 + $0x91] sm:$0xff] %vm353_vm1, %v594_v35  ;;  %628 = vst.msk [vmem:[#allocation3 + $0x99] sm:$0xff] %vm353_vm1, %v595_v38  ;;  %v16313_v60 = vld [vmem:[#allocation2 + $0x92] sm:$0xff]  ;;  %v16322_v61 = vld [vmem:[#allocation2 + $0x9a] sm:$0xff] }
  0x51   : > { %13911 = vmatmul.mubr.msk.f32.gmra.mrb[4].mxu0 %vm353_vm1, %v2149_v32  ;;  %629 = vst.msk [vmem:[#allocation3 + $0xa9] sm:$0xff] %vm353_vm1, %v596_v39  ;;  %630 = vst.msk [vmem:[#allocation3 + $0xb1] sm:$0xff] %vm353_vm1, %v597_v41  ;;  %v16324_v62 = vld [vmem:[#allocation2 + $0xaa] sm:$0xff]  ;;  %v16330_v63 = vld [vmem:[#allocation2 + $0xb2] sm:$0xff] }
  0x52   : > { %13913 = vmatprep.mubr.msk.f32.mxu0 %vm353_vm1, %v2150_v33  ;;  %631 = vst.msk [vmem:[#allocation3 + $0xc1] sm:$0xff] %vm353_vm1, %v598_v43  ;;  %632 = vst.msk [vmem:[#allocation3 + $0xc9] sm:$0xff] %vm353_vm1, %v599_v44  ;;  %v2536_v3 = vld [vmem:[#allocation3 + $0x1a] sm:$0xff]  ;;  %v2537_v11 = vld [vmem:[#allocation3 + $0x22] sm:$0xff] }
  0x53   : > { %633 = vst.msk [vmem:[#allocation3 + $0xd9] sm:$0xff] %vm353_vm1, %v600_v45  ;;  %634 = vst.msk [vmem:[#allocation3 + $0xe1] sm:$0xff] %vm353_vm1, %v601_v46  ;;  %v2538_v15 = vld [vmem:[#allocation3 + $0x32] sm:$0xff]  ;;  %v545_v20 = vld [vmem:[%s16198_s18 + $0xd0] sm:$0xff] }
  0x54   : > { %635 = vst.msk [vmem:[#allocation3 + $0xf1] sm:$0xff] %vm353_vm1, %v602_v47  ;;  %636 = vst.msk [vmem:[#allocation3 + $0xf9] sm:$0xff] %vm353_vm1, %v603_v48  ;;  %v546_v21 = vld [vmem:[%s16198_s18 + $0xd8] sm:$0xff]  ;;  %v548_v22 = vld [vmem:[%s16198_s18 + $0xe8] sm:$0xff] }
  0x55   : > { %13914 = vmatmul.mubr.msk.f32.gmra.mrb[6].mxu0 %vm353_vm1, %v2151_v36  ;;  %19461 = vst [vmem:[#allocation5_spill] sm:$0xff] %v16295_v52  ;;  %637 = vst.msk [vmem:[#allocation3 + $0x109] sm:$0xff] %vm353_vm1, %v604_v49  ;;  %v549_v23 = vld [vmem:[%s16198_s18 + $0xf0] sm:$0xff]  ;;  %v550_v24 = vld [vmem:[%s16198_s18 + $0xf8] sm:$0xff] }
  0x56   : > { %13916 = vmatprep.mubr.msk.f32.mxu0 %vm353_vm1, %v2152_v37  ;;  %638 = vst.msk [vmem:[#allocation3 + $0x111] sm:$0xff] %vm353_vm1, %v605_v50  ;;  %639 = vst.msk [vmem:[#allocation3 + $0x121] sm:$0xff] %vm353_vm1, %v606_v51  ;;  %v2539_v25 = vld [vmem:[#allocation3 + $0x3a] sm:$0xff]  ;;  %v2540_v26 = vld [vmem:[#allocation3 + $0x4a] sm:$0xff] }
  0x57   : > { %640 = vst.msk [vmem:[#allocation3 + $0x129] sm:$0xff] %vm353_vm1, %v607_v53  ;;  %641 = vst.msk [vmem:[#allocation3 + $0x139] sm:$0xff] %vm353_vm1, %v608_v54  ;;  %v2541_v27 = vld [vmem:[#allocation3 + $0x52] sm:$0xff]  ;;  %v2542_v28 = vld [vmem:[#allocation3 + $0x62] sm:$0xff] }
  0x58   : > { %642 = vst.msk [vmem:[#allocation3 + $0x141] sm:$0xff] %vm353_vm1, %v609_v55  ;;  %643 = vst.msk [vmem:[#allocation3 + $0x151] sm:$0xff] %vm353_vm1, %v610_v56  ;;  %v2543_v29 = vld [vmem:[#allocation3 + $0x6a] sm:$0xff]  ;;  %v2544_v30 = vld [vmem:[#allocation3 + $0x7a] sm:$0xff] }
  0x59   : > { %13917 = vmatmul.mubr.msk.f32.gmra.mrb[8].mxu0 %vm353_vm1, %v2153_v40  ;;  %19462 = vst [vmem:[#allocation6_spill] sm:$0xff] %v16313_v60  ;;  %644 = vst.msk [vmem:[#allocation3 + $0x159] sm:$0xff] %vm353_vm1, %v611_v57  ;;  %v2545_v31 = vld [vmem:[#allocation3 + $0x82] sm:$0xff]  ;;  %v2546_v32 = vld [vmem:[#allocation3 + $0x92] sm:$0xff] }
  0x5a   : > { %13919 = vmatprep.mubr.msk.f32.mxu0 %vm353_vm1, %v2154_v42  ;;  %645 = vst.msk [vmem:[#allocation3 + $0x169] sm:$0xff] %vm353_vm1, %v612_v58  ;;  %646 = vst.msk [vmem:[#allocation3 + $0x171] sm:$0xff] %vm353_vm1, %v613_v59  ;;  %v2547_v33 = vld [vmem:[#allocation3 + $0x9a] sm:$0xff]  ;;  %v2548_v34 = vld [vmem:[#allocation3 + $0xaa] sm:$0xff] }
  0x5b   : > { %19463 = vst [vmem:[#allocation7_spill] sm:$0xff] %v16322_v61  ;;  %19464 = vst [vmem:[#allocation8_spill] sm:$0xff] %v16324_v62  ;;  %v2549_v35 = vld [vmem:[#allocation3 + $0xb2] sm:$0xff]  ;;  %v2550_v36 = vld [vmem:[#allocation3 + $0xc2] sm:$0xff] }
  0x5c   : > { %19465 = vst [vmem:[#allocation9_spill] sm:$0xff] %v16330_v63  ;;  %566 = vst.msk [vmem:[#allocation2 + $0xc1] sm:$0xff] %vm353_vm1, %v533_v5  ;;  %v2551_v37 = vld [vmem:[#allocation3 + $0xca] sm:$0xff]  ;;  %v2552_v38 = vld [vmem:[#allocation3 + $0xda] sm:$0xff] }
  0x5d   : > { %13920 = vmatmul.mubr.msk.f32.gmra.mrb[10].mxu0 %vm353_vm1, %v16295_v52  ;;  %567 = vst.msk [vmem:[#allocation2 + $0xc9] sm:$0xff] %vm353_vm1, %v534_v7  ;;  %568 = vst.msk [vmem:[#allocation2 + $0xd9] sm:$0xff] %vm353_vm1, %v535_v8  ;;  %v2553_v39 = vld [vmem:[#allocation3 + $0xe2] sm:$0xff]  ;;  %v2554_v40 = vld [vmem:[#allocation3 + $0xf2] sm:$0xff] }
  0x5e   : > { %13922 = vmatprep.mubr.msk.f32.mxu0 %vm353_vm1, %v16313_v60  ;;  %569 = vst.msk [vmem:[#allocation2 + $0xe1] sm:$0xff] %vm353_vm1, %v536_v9  ;;  %570 = vst.msk [vmem:[#allocation2 + $0xf1] sm:$0xff] %vm353_vm1, %v537_v10  ;;  %v2555_v41 = vld [vmem:[#allocation3 + $0xfa] sm:$0xff]  ;;  %v2556_v42 = vld [vmem:[#allocation3 + $0x10a] sm:$0xff] }
  0x5f   : > { %571 = vst.msk [vmem:[#allocation2 + $0xf9] sm:$0xff] %vm353_vm1, %v538_v12  ;;  %572 = vst.msk [vmem:[#allocation2 + $0x109] sm:$0xff] %vm353_vm1, %v539_v13  ;;  %v2557_v43 = vld [vmem:[#allocation3 + $0x112] sm:$0xff]  ;;  %v2558_v44 = vld [vmem:[#allocation3 + $0x122] sm:$0xff] }
  0x60   : > { %573 = vst.msk [vmem:[#allocation2 + $0x111] sm:$0xff] %vm353_vm1, %v540_v14  ;;  %574 = vst.msk [vmem:[#allocation2 + $0x121] sm:$0xff] %vm353_vm1, %v541_v16  ;;  %v2559_v45 = vld [vmem:[#allocation3 + $0x12a] sm:$0xff]  ;;  %v2560_v46 = vld [vmem:[#allocation3 + $0x13a] sm:$0xff] }
  0x61   : > { %13923 = vmatmul.mubr.msk.f32.gmra.mrb[12].mxu0 %vm353_vm1, %v16322_v61  ;;  %575 = vst.msk [vmem:[#allocation2 + $0x129] sm:$0xff] %vm353_vm1, %v542_v17  ;;  %576 = vst.msk [vmem:[#allocation2 + $0x139] sm:$0xff] %vm353_vm1, %v543_v18  ;;  %v2561_v47 = vld [vmem:[#allocation3 + $0x142] sm:$0xff]  ;;  %v2562_v48 = vld [vmem:[#allocation3 + $0x152] sm:$0xff] }
  0x62   : > { %13925 = vmatprep.mubr.msk.f32.mxu0 %vm353_vm1, %v16324_v62  ;;  %577 = vst.msk [vmem:[#allocation2 + $0x141] sm:$0xff] %vm353_vm1, %v544_v19  ;;  %578 = vst.msk [vmem:[#allocation2 + $0x151] sm:$0xff] %vm353_vm1, %v545_v20  ;;  %v614_v49 = vld [vmem:[%s16228_s23 + $0xf0] sm:$0xff]  ;;  %v615_v50 = vld [vmem:[%s16228_s23 + $0xf8] sm:$0xff] }
  0x63   : > { %579 = vst.msk [vmem:[#allocation2 + $0x159] sm:$0xff] %vm353_vm1, %v546_v21  ;;  %581 = vst.msk [vmem:[#allocation2 + $0x171] sm:$0xff] %vm353_vm1, %v548_v22  ;;  %v2563_v51 = vld [vmem:[#allocation3 + $0x15a] sm:$0xff]  ;;  %v2564_v53 = vld [vmem:[#allocation3 + $0x16a] sm:$0xff] }
  0x64   : > { %582 = vst.msk [vmem:[#allocation2 + $0x181] sm:$0xff] %vm353_vm1, %v549_v23  ;;  %583 = vst.msk [vmem:[#allocation2 + $0x189] sm:$0xff] %vm353_vm1, %v550_v24  ;;  %v2565_v54 = vld [vmem:[#allocation3 + $0x172] sm:$0xff]  ;;  %v16414_v55 = vld [vmem:[#allocation2 + $0x18] sm:$0xff] }
  0x65   : > { %13926 = vmatmul.mubr.msk.f32.gmra.mrb[14].mxu0 %vm353_vm1, %v16330_v63  ;;  %647 = vst.msk [vmem:[#allocation3 + $0x181] sm:$0xff] %vm353_vm1, %v614_v49  ;;  %648 = vst.msk [vmem:[#allocation3 + $0x189] sm:$0xff] %vm353_vm1, %v615_v50  ;;  %v16419_v56 = vld [vmem:[#allocation2 + $0x20] sm:$0xff]  ;;  %v16421_v57 = vld [vmem:[#allocation2 + $0x30] sm:$0xff] }
  0x66   : > { %13954 = vmatprep.mubr.msk.f32.mxu0 %vm353_vm1, %v2534_v0  ;;  %v16426_v58 = vld [vmem:[%s19379_s2 + $0x10] sm:$0xf]  ;;  %v16434_v59 = vld [vmem:[#allocation2 + $0x38] sm:$0xff]  ;;  %v16436_v0 = vld [vmem:[#allocation2 + $0x48] sm:$0xff] }
  0x67   : > { %v16454_v5 = vld [vmem:[#allocation2 + $0x78] sm:$0xff]  ;;  %v16460_v7 = vld [vmem:[#allocation2 + $0x80] sm:$0xff]  ;;  %v16462_v8 = vld [vmem:[#allocation2 + $0x90] sm:$0xff] }
  0x68   : > { %v16468_v9 = vld [vmem:[#allocation2 + $0x98] sm:$0xff]  ;;  %v16470_v10 = vld [vmem:[#allocation2 + $0xa8] sm:$0xff]  ;;  %v16478_v12 = vld [vmem:[#allocation2 + $0xc0] sm:$0xff] }
  0x69   : > { %13955 = vmatmul.mubr.msk.f32.vlgmr.msra.gmra.mrb[0].mxu0 %vm353_vm1, %v2535_v2  ;;  %v16444_v2 = vld [vmem:[#allocation2 + $0x50] sm:$0xff]  ;;  %v16484_v13 = vld [vmem:[#allocation2 + $0xc8] sm:$0xff]  ;;  %v16486_v14 = vld [vmem:[#allocation2 + $0xd8] sm:$0xff] }
  0x6a   : > { %14003 = vmatpush3.msk.msra.mxu0 %vm811_vm0, %v16206_v6  ;;  %13957 = vmatprep.mubr.msk.f32.mxu0 %vm353_vm1, %v2536_v3  ;;  %v547_v6 = vld [vmem:[%s16198_s18 + $0xe0] sm:$0xff]  ;;  %v16494_v16 = vld [vmem:[#allocation2 + $0xf0] sm:$0xff]  ;;  %v16500_v17 = vld [vmem:[#allocation2 + $0xf8] sm:$0xff] }
  0x6b   : > { %14052 = vmatprep.subr.msk.mxu0 %vm811_vm0, %v16338_v4  ;;  %580 = vst.msk [vmem:[#allocation2 + $0x169] sm:$0xff] %vm353_vm1, %v547_v6  ;;  %v16446_v3 = vld [vmem:[#allocation2 + $0x60] sm:$0xff]  ;;  %v16502_v18 = vld [vmem:[#allocation2 + $0x108] sm:$0xff]  ;;  %v16508_v19 = vld [vmem:[#allocation2 + $0x110] sm:$0xff] }
  0x6c   : > { %v16510_v20 = vld [vmem:[#allocation2 + $0x120] sm:$0xff]  ;;  %v16516_v21 = vld [vmem:[#allocation2 + $0x128] sm:$0xff]  ;;  %v16518_v6 = vld [vmem:[#allocation2 + $0x138] sm:$0xff] }
  0x6d   : > { %13958 = vmatmul.mubr.msk.f32.gmra.mrb[2].mxu0 %vm353_vm1, %v2537_v11  ;;  %v16476_v11 = vld [vmem:[#allocation2 + $0xb0] sm:$0xff]  ;;  %v16524_v22 = vld [vmem:[#allocation2 + $0x140] sm:$0xff]  ;;  %v16532_v24 = vld [vmem:[#allocation2 + $0x158] sm:$0xff] }
  0x6e   : > { %13960 = vmatprep.mubr.msk.f32.mxu0 %vm353_vm1, %v2538_v15  ;;  %v16492_v15 = vld [vmem:[#allocation2 + $0xe0] sm:$0xff]  ;;  %19466 = vst [vmem:[#allocation10_spill] sm:$0xff] %v16524_v22  ;;  %v16526_v23 = vld [vmem:[#allocation2 + $0x150] sm:$0xff]  ;;  %19468 = vst [vmem:[#allocation12_spill] sm:$0xff] %v16532_v24 }
  0x6f   : > { %19467 = vst [vmem:[#allocation11_spill] sm:$0xff] %v16526_v23  ;;  %v16631_v49 = vld [vmem:[#allocation3 + $0xf8] sm:$0xff]  ;;  %v16633_v50 = vld [vmem:[#allocation3 + $0x108] sm:$0xff]  ;;  %v16671_v62 = vld [vmem:[#allocation3 + $0x170] sm:$0xff] }
  0x70   : > { %v16663_v1 = vld [vmem:[#allocation3 + $0x158] sm:$0xff]  ;;  %v16665_v63 = vld [vmem:[#allocation3 + $0x168] sm:$0xff]  ;;  %v3344_v61 = vld [vmem:[#allocation3 + $0x180] sm:$0xff] }
  0x71   : > { %13961 = vmatmul.mubr.msk.f32.gmra.mrb[4].mxu0 %vm353_vm1, %v2539_v25  ;;  %v3345_v60 = vld [vmem:[#allocation3 + $0x188] sm:$0xff] }
  0x72   : > { %13963 = vmatprep.mubr.msk.f32.mxu0 %vm353_vm1, %v2540_v26  ;;  %v16534_v25 = vld [vmem:[#allocation2 + $0x168] sm:$0xff]  ;;  %v16540_v26 = vld [vmem:[#allocation2 + $0x170] sm:$0xff]  ;;  %v16676_v52 = vld [vmem:[#allocation2 + $0x19] sm:$0xff] }
  0x73   : > { %19469 = vst [vmem:[#allocation13_spill] sm:$0xff] %v16534_v25  ;;  %19470 = vst [vmem:[#allocation14_spill] sm:$0xff] %v16540_v26 }
  0x75   : > { %13964 = vmatmul.mubr.msk.f32.gmra.mrb[6].mxu0 %vm353_vm1, %v2541_v27  ;;  %v2954_v27 = vld [vmem:[#allocation2 + $0x180] sm:$0xff] }
  0x76   : > { %13966 = vmatprep.mubr.msk.f32.mxu0 %vm353_vm1, %v2542_v28  ;;  %v2955_v28 = vld [vmem:[#allocation2 + $0x188] sm:$0xff] }
  0x79   : > { %13967 = vmatmul.mubr.msk.f32.gmra.mrb[8].mxu0 %vm353_vm1, %v2543_v29  ;;  %v16545_v29 = vld [vmem:[#allocation3 + $0x18] sm:$0xff] }
  0x7a   : > { %13969 = vmatprep.mubr.msk.f32.mxu0 %vm353_vm1, %v2544_v30  ;;  %v16550_v30 = vld [vmem:[#allocation3 + $0x20] sm:$0xff] }
  0x7d   : > { %13970 = vmatmul.mubr.msk.f32.gmra.mrb[10].mxu0 %vm353_vm1, %v2545_v31  ;;  %v16552_v31 = vld [vmem:[#allocation3 + $0x30] sm:$0xff] }
  0x7e   : > { %13972 = vmatprep.mubr.msk.f32.mxu0 %vm353_vm1, %v2546_v32  ;;  %v16557_v32 = vld [vmem:[%s19380_s3 + $0x10] sm:$0xf] }
  0x81   : > { %13973 = vmatmul.mubr.msk.f32.gmra.mrb[12].mxu0 %vm353_vm1, %v2547_v33  ;;  %v16565_v33 = vld [vmem:[#allocation3 + $0x38] sm:$0xff] }
  0x82   : > { %13975 = vmatprep.mubr.msk.f32.mxu0 %vm353_vm1, %v2548_v34  ;;  %v16567_v34 = vld [vmem:[#allocation3 + $0x48] sm:$0xff] }
  0x85   : > { %13976 = vmatmul.mubr.msk.f32.gmra.mrb[14].mxu0 %vm353_vm1, %v2549_v35  ;;  %v16575_v35 = vld [vmem:[#allocation3 + $0x50] sm:$0xff] }
  0x86   : > { %13978 = vmatprep.mubr.msk.f32.mxu0 %vm353_vm1, %v2550_v36  ;;  %v16577_v36 = vld [vmem:[#allocation3 + $0x60] sm:$0xff] }
  0x89   : > { %13979 = vmatmul.mubr.msk.f32.gmra.mrb[16].mxu0 %vm353_vm1, %v2551_v37  ;;  %v16583_v37 = vld [vmem:[#allocation3 + $0x68] sm:$0xff] }
  0x8a   : > { %13981 = vmatprep.mubr.msk.f32.mxu0 %vm353_vm1, %v2552_v38  ;;  %v16585_v38 = vld [vmem:[#allocation3 + $0x78] sm:$0xff] }
  0x8d   : > { %13982 = vmatmul.mubr.msk.f32.gmra.mrb[18].mxu0 %vm353_vm1, %v2553_v39  ;;  %v16591_v39 = vld [vmem:[#allocation3 + $0x80] sm:$0xff] }
  0x8e   : > { %13984 = vmatprep.mubr.msk.f32.mxu0 %vm353_vm1, %v2554_v40  ;;  %v16593_v40 = vld [vmem:[#allocation3 + $0x90] sm:$0xff] }
  0x91   : > { %13985 = vmatmul.mubr.msk.f32.gmra.mrb[20].mxu0 %vm353_vm1, %v2555_v41  ;;  %v16599_v41 = vld [vmem:[#allocation3 + $0x98] sm:$0xff] }
  0x92   : > { %13987 = vmatprep.mubr.msk.f32.mxu0 %vm353_vm1, %v2556_v42  ;;  %v16601_v42 = vld [vmem:[#allocation3 + $0xa8] sm:$0xff] }
  0x95   : > { %13988 = vmatmul.mubr.msk.f32.gmra.mrb[22].mxu0 %vm353_vm1, %v2557_v43  ;;  %v16607_v43 = vld [vmem:[#allocation3 + $0xb0] sm:$0xff] }
  0x96   : > { %13990 = vmatprep.mubr.msk.f32.mxu0 %vm353_vm1, %v2558_v44  ;;  %v16609_v44 = vld [vmem:[#allocation3 + $0xc0] sm:$0xff] }
  0x99   : > { %13991 = vmatmul.mubr.msk.f32.gmra.mrb[24].mxu0 %vm353_vm1, %v2559_v45  ;;  %v16615_v45 = vld [vmem:[#allocation3 + $0xc8] sm:$0xff] }
  0x9a   : > { %13993 = vmatprep.mubr.msk.f32.mxu0 %vm353_vm1, %v2560_v46  ;;  %v16617_v46 = vld [vmem:[#allocation3 + $0xd8] sm:$0xff] }
  0x9d   : > { %13994 = vmatmul.mubr.msk.f32.gmra.mrb[26].mxu0 %vm353_vm1, %v2561_v47  ;;  %v16623_v47 = vld [vmem:[#allocation3 + $0xe0] sm:$0xff] }
  0x9e   : > { %13996 = vmatprep.mubr.msk.f32.mxu0 %vm353_vm1, %v2562_v48  ;;  %v16625_v48 = vld [vmem:[#allocation3 + $0xf0] sm:$0xff] }
  0xa1   : > { %13997 = vmatmul.mubr.msk.f32.gmra.mrb[28].mxu0 %vm353_vm1, %v2563_v51  ;;  %v16639_v51 = vld [vmem:[#allocation3 + $0x110] sm:$0xff] }
  0xa2   : > { %13999 = vmatprep.mubr.msk.f32.mxu0 %vm353_vm1, %v2564_v53  ;;  %v16641_v53 = vld [vmem:[#allocation3 + $0x120] sm:$0xff] }
  0xa5   : > { %14000 = vmatmul.mubr.msk.f32.gmra.mrb[30].mxu0 %vm353_vm1, %v2565_v54  ;;  %v16647_v54 = vld [vmem:[#allocation3 + $0x128] sm:$0xff] }
  0xa6   : > { %14004 = vmatprep.mubr.msk.f32.mxu0 %vm353_vm1, %v16414_v55 }
  0xa9   : > { %14005 = vmatmul.mubr.msk.f32.vlgmr.msra.gmra.mrb[0].mxu0 %vm353_vm1, %v16419_v56 }
  0xaa   : > { %14053 = vmatpush3.msk.msra.mxu0 %vm811_vm0, %v16338_v4  ;;  %14007 = vmatprep.mubr.msk.f32.mxu0 %vm353_vm1, %v16421_v57  ;;  %v16452_v4 = vld [vmem:[#allocation2 + $0x68] sm:$0xff] }
  0xab   : > { %14102 = vmatprep.subr.msk.mxu0 %vm811_vm0, %v16426_v58 }
  0xad   : > { %14008 = vmatmul.mubr.msk.f32.gmra.mrb[2].mxu0 %vm353_vm1, %v16434_v59 }
  0xae   : > { %14010 = vmatprep.mubr.msk.f32.mxu0 %vm353_vm1, %v16436_v0 }
  0xb1   : > { %14011 = vmatmul.mubr.msk.f32.gmra.mrb[4].mxu0 %vm353_vm1, %v16444_v2 }
  0xb2   : > { %14013 = vmatprep.mubr.msk.f32.mxu0 %vm353_vm1, %v16446_v3 }
  0xb5   : > { %14014 = vmatmul.mubr.msk.f32.gmra.mrb[6].mxu0 %vm353_vm1, %v16452_v4 }
  0xb6   : > { %14016 = vmatprep.mubr.msk.f32.mxu0 %vm353_vm1, %v16454_v5 }
  0xb9   : > { %14017 = vmatmul.mubr.msk.f32.gmra.mrb[8].mxu0 %vm353_vm1, %v16460_v7 }
  0xba   : > { %14019 = vmatprep.mubr.msk.f32.mxu0 %vm353_vm1, %v16462_v8 }
  0xbd   : > { %14020 = vmatmul.mubr.msk.f32.gmra.mrb[10].mxu0 %vm353_vm1, %v16468_v9 }
  0xbe   : > { %14022 = vmatprep.mubr.msk.f32.mxu0 %vm353_vm1, %v16470_v10 }
  0xc1   : > { %14023 = vmatmul.mubr.msk.f32.gmra.mrb[12].mxu0 %vm353_vm1, %v16476_v11 }
  0xc2   : > { %14025 = vmatprep.mubr.msk.f32.mxu0 %vm353_vm1, %v16478_v12 }
  0xc5   : > { %14026 = vmatmul.mubr.msk.f32.gmra.mrb[14].mxu0 %vm353_vm1, %v16484_v13 }
  0xc6   : > { %14028 = vmatprep.mubr.msk.f32.mxu0 %vm353_vm1, %v16486_v14 }
  0xc9   : > { %14029 = vmatmul.mubr.msk.f32.gmra.mrb[16].mxu0 %vm353_vm1, %v16492_v15 }
  0xca   : > { %14031 = vmatprep.mubr.msk.f32.mxu0 %vm353_vm1, %v16494_v16 }
  0xcd   : > { %14032 = vmatmul.mubr.msk.f32.gmra.mrb[18].mxu0 %vm353_vm1, %v16500_v17 }
  0xce   : > { %14034 = vmatprep.mubr.msk.f32.mxu0 %vm353_vm1, %v16502_v18 }
  0xd1   : > { %14035 = vmatmul.mubr.msk.f32.gmra.mrb[20].mxu0 %vm353_vm1, %v16508_v19 }
  0xd2   : > { %14037 = vmatprep.mubr.msk.f32.mxu0 %vm353_vm1, %v16510_v20 }
  0xd5   : > { %14038 = vmatmul.mubr.msk.f32.gmra.mrb[22].mxu0 %vm353_vm1, %v16516_v21 }
  0xd6   : > { %14040 = vmatprep.mubr.msk.f32.mxu0 %vm353_vm1, %v16518_v6 }
  0xd9   : > { %14041 = vmatmul.mubr.msk.f32.gmra.mrb[24].mxu0 %vm353_vm1, %v16524_v22  ;;  %v16687_v22 = vld [vmem:[#allocation2 + $0x31] sm:$0xff] }
  0xda   : > { %14043 = vmatprep.mubr.msk.f32.mxu0 %vm353_vm1, %v16526_v23  ;;  %v16684_v23 = vld [vmem:[#allocation2 + $0x21] sm:$0xff] }
  0xdd   : > { %14044 = vmatmul.mubr.msk.f32.gmra.mrb[26].mxu0 %vm353_vm1, %v16532_v24  ;;  %v683_v24 = vld [vmem:[#allocation3 + $0x8] sm:$0xff] }
  0xde   : > { %14046 = vmatprep.mubr.msk.f32.mxu0 %vm353_vm1, %v16534_v25  ;;  %v682_v25 = vld [vmem:[#allocation3] sm:$0xff] }
  0xdf   : > { %13704 = vmatprep.mubr.msk.f32.mxu1 %vm353_vm1, %v682_v25  ;;  %v16707_v25 = vld [vmem:[#allocation2 + $0x49] sm:$0xff] }
  0xe1   : > { %14047 = vmatmul.mubr.msk.f32.gmra.mrb[28].mxu0 %vm353_vm1, %v16540_v26  ;;  %v714_v26 = vld [vmem:[%s19380_s3] sm:$0xf] }
  0xe2   : > { %14049 = vmatprep.mubr.msk.f32.mxu0 %vm353_vm1, %v2954_v27  ;;  %v16655_v27 = vld [vmem:[#allocation3 + $0x140] sm:$0xff]  ;;  %13702 = vmatprep.subr.msk.mxu1 %vm811_vm0, %v714_v26 }
  0xe3   : > { %13703 = vmatpush3.msk.msra.mxu1 %vm811_vm0, %v714_v26  ;;  %v16721_v26 = vld [vmem:[#allocation2 + $0x61] sm:$0xff] }
  0xe4   : > { %13705 = vmatmul.mubr.msk.f32.vlgmr.msra.gmra.mrb[0].mxu1 %vm353_vm1, %v683_v24  ;;  %v16719_v24 = vld [vmem:[#allocation2 + $0x51] sm:$0xff] }
  0xe5   : > { %14050 = vmatmul.mubr.msk.f32.gmra.mrb[30].mxu0 %vm353_vm1, %v2955_v28  ;;  %v16657_v28 = vld [vmem:[#allocation3 + $0x150] sm:$0xff]  ;;  %13707 = vmatprep.mubr.msk.f32.mxu1 %vm353_vm1, %v16545_v29 }
  0xe6   : > { %14054 = vmatprep.mubr.msk.f32.mxu0 %vm353_vm1, %v16545_v29  ;;  %v16731_v29 = vld [vmem:[#allocation2 + $0x69] sm:$0xff] }
  0xe8   : > { %13708 = vmatmul.mubr.msk.f32.gmra.mrb[2].mxu1 %vm353_vm1, %v16550_v30 }
  0xe9   : > { %14055 = vmatmul.mubr.msk.f32.vlgmr.msra.gmra.mrb[0].mxu0 %vm353_vm1, %v16550_v30  ;;  %13710 = vmatprep.mubr.msk.f32.mxu1 %vm353_vm1, %v16552_v31  ;;  %v16733_v30 = vld [vmem:[#allocation2 + $0x79] sm:$0xff] }
  0xea   : > { %14103 = vmatpush3.msk.msra.mxu0 %vm811_vm0, %v16426_v58  ;;  %14057 = vmatprep.mubr.msk.f32.mxu0 %vm353_vm1, %v16552_v31  ;;  %v16649_v58 = vld [vmem:[#allocation3 + $0x138] sm:$0xff] }
  0xeb   : > { %14152 = vmatprep.subr.msk.mxu0 %vm811_vm0, %v16557_v32  ;;  %v16743_v31 = vld [vmem:[#allocation2 + $0x81] sm:$0xff] }
  0xec   : > { %13711 = vmatmul.mubr.msk.f32.gmra.mrb[4].mxu1 %vm353_vm1, %v16565_v33 }
  0xed   : > { %14058 = vmatmul.mubr.msk.f32.gmra.mrb[2].mxu0 %vm353_vm1, %v16565_v33  ;;  %13713 = vmatprep.mubr.msk.f32.mxu1 %vm353_vm1, %v16567_v34  ;;  %v16755_v33 = vld [vmem:[#allocation2 + $0x99] sm:$0xff] }
  0xee   : > { %14060 = vmatprep.mubr.msk.f32.mxu0 %vm353_vm1, %v16567_v34  ;;  %v16757_v34 = vld [vmem:[#allocation2 + $0xa9] sm:$0xff] }
  0xf0   : > { %13714 = vmatmul.mubr.msk.f32.gmra.mrb[6].mxu1 %vm353_vm1, %v16575_v35 }
  0xf1   : > { %14061 = vmatmul.mubr.msk.f32.gmra.mrb[4].mxu0 %vm353_vm1, %v16575_v35  ;;  %13716 = vmatprep.mubr.msk.f32.mxu1 %vm353_vm1, %v16577_v36  ;;  %v16767_v35 = vld [vmem:[#allocation2 + $0xb1] sm:$0xff] }
  0xf2   : > { %14063 = vmatprep.mubr.msk.f32.mxu0 %vm353_vm1, %v16577_v36  ;;  %v16769_v36 = vld [vmem:[#allocation2 + $0xc1] sm:$0xff] }
  0xf4   : > { %13717 = vmatmul.mubr.msk.f32.gmra.mrb[8].mxu1 %vm353_vm1, %v16583_v37 }
  0xf5   : > { %14064 = vmatmul.mubr.msk.f32.gmra.mrb[6].mxu0 %vm353_vm1, %v16583_v37  ;;  %13719 = vmatprep.mubr.msk.f32.mxu1 %vm353_vm1, %v16585_v38  ;;  %v16779_v37 = vld [vmem:[#allocation2 + $0xc9] sm:$0xff] }
  0xf6   : > { %14066 = vmatprep.mubr.msk.f32.mxu0 %vm353_vm1, %v16585_v38  ;;  %v16781_v38 = vld [vmem:[#allocation2 + $0xd9] sm:$0xff] }
  0xf8   : > { %13720 = vmatmul.mubr.msk.f32.gmra.mrb[10].mxu1 %vm353_vm1, %v16591_v39 }
  0xf9   : > { %14067 = vmatmul.mubr.msk.f32.gmra.mrb[8].mxu0 %vm353_vm1, %v16591_v39  ;;  %13722 = vmatprep.mubr.msk.f32.mxu1 %vm353_vm1, %v16593_v40  ;;  %v16791_v39 = vld [vmem:[#allocation2 + $0xe1] sm:$0xff] }
  0xfa   : > { %14069 = vmatprep.mubr.msk.f32.mxu0 %vm353_vm1, %v16593_v40  ;;  %v16793_v40 = vld [vmem:[#allocation2 + $0xf1] sm:$0xff] }
  0xfc   : > { %13723 = vmatmul.mubr.msk.f32.gmra.mrb[12].mxu1 %vm353_vm1, %v16599_v41 }
  0xfd   : > { %14070 = vmatmul.mubr.msk.f32.gmra.mrb[10].mxu0 %vm353_vm1, %v16599_v41  ;;  %13725 = vmatprep.mubr.msk.f32.mxu1 %vm353_vm1, %v16601_v42  ;;  %v16803_v41 = vld [vmem:[#allocation2 + $0xf9] sm:$0xff] }
  0xfe   : > { %14072 = vmatprep.mubr.msk.f32.mxu0 %vm353_vm1, %v16601_v42  ;;  %v16805_v42 = vld [vmem:[#allocation2 + $0x109] sm:$0xff] }
 0x100   : > { %13726 = vmatmul.mubr.msk.f32.gmra.mrb[14].mxu1 %vm353_vm1, %v16607_v43 }
 0x101   : > { %14073 = vmatmul.mubr.msk.f32.gmra.mrb[12].mxu0 %vm353_vm1, %v16607_v43  ;;  %13728 = vmatprep.mubr.msk.f32.mxu1 %vm353_vm1, %v16609_v44  ;;  %v16815_v43 = vld [vmem:[#allocation2 + $0x111] sm:$0xff] }
 0x102   : > { %14075 = vmatprep.mubr.msk.f32.mxu0 %vm353_vm1, %v16609_v44  ;;  %v16817_v44 = vld [vmem:[#allocation2 + $0x121] sm:$0xff] }
 0x104   : > { %13729 = vmatmul.mubr.msk.f32.gmra.mrb[16].mxu1 %vm353_vm1, %v16615_v45 }
 0x105   : > { %14076 = vmatmul.mubr.msk.f32.gmra.mrb[14].mxu0 %vm353_vm1, %v16615_v45  ;;  %13731 = vmatprep.mubr.msk.f32.mxu1 %vm353_vm1, %v16617_v46  ;;  %v16827_v45 = vld [vmem:[#allocation2 + $0x129] sm:$0xff] }
 0x106   : > { %14078 = vmatprep.mubr.msk.f32.mxu0 %vm353_vm1, %v16617_v46  ;;  %v16829_v46 = vld [vmem:[#allocation2 + $0x139] sm:$0xff] }
 0x108   : > { %13732 = vmatmul.mubr.msk.f32.gmra.mrb[18].mxu1 %vm353_vm1, %v16623_v47 }
 0x109   : > { %14079 = vmatmul.mubr.msk.f32.gmra.mrb[16].mxu0 %vm353_vm1, %v16623_v47  ;;  %13734 = vmatprep.mubr.msk.f32.mxu1 %vm353_vm1, %v16625_v48  ;;  %v16839_v47 = vld [vmem:[#allocation2 + $0x141] sm:$0xff] }
 0x10a   : > { %14081 = vmatprep.mubr.msk.f32.mxu0 %vm353_vm1, %v16625_v48  ;;  %v16841_v48 = vld [vmem:[#allocation2 + $0x151] sm:$0xff] }
 0x10c   : > { %13735 = vmatmul.mubr.msk.f32.gmra.mrb[20].mxu1 %vm353_vm1, %v16631_v49 }
 0x10d   : > { %14082 = vmatmul.mubr.msk.f32.gmra.mrb[18].mxu0 %vm353_vm1, %v16631_v49  ;;  %13737 = vmatprep.mubr.msk.f32.mxu1 %vm353_vm1, %v16633_v50  ;;  %v16851_v49 = vld [vmem:[#allocation2 + $0x159] sm:$0xff] }
 0x10e   : > { %14084 = vmatprep.mubr.msk.f32.mxu0 %vm353_vm1, %v16633_v50  ;;  %v16853_v50 = vld [vmem:[#allocation2 + $0x169] sm:$0xff] }
 0x110   : > { %13738 = vmatmul.mubr.msk.f32.gmra.mrb[22].mxu1 %vm353_vm1, %v16639_v51 }
 0x111   : > { %14085 = vmatmul.mubr.msk.f32.gmra.mrb[20].mxu0 %vm353_vm1, %v16639_v51  ;;  %13740 = vmatprep.mubr.msk.f32.mxu1 %vm353_vm1, %v16641_v53  ;;  %v16863_v51 = vld [vmem:[#allocation2 + $0x171] sm:$0xff] }
 0x112   : > { %14087 = vmatprep.mubr.msk.f32.mxu0 %vm353_vm1, %v16641_v53  ;;  %v3734_v53 = vld [vmem:[#allocation2 + $0x181] sm:$0xff] }
 0x114   : > { %13741 = vmatmul.mubr.msk.f32.gmra.mrb[24].mxu1 %vm353_vm1, %v16647_v54 }
 0x115   : > { %14088 = vmatmul.mubr.msk.f32.gmra.mrb[22].mxu0 %vm353_vm1, %v16647_v54  ;;  %13743 = vmatprep.mubr.msk.f32.mxu1 %vm353_vm1, %v16649_v58  ;;  %v3735_v54 = vld [vmem:[#allocation2 + $0x189] sm:$0xff] }
 0x116   : > { %14090 = vmatprep.mubr.msk.f32.mxu0 %vm353_vm1, %v16649_v58  ;;  %v16872_v58 = vld [vmem:[#allocation3 + $0x19] sm:$0xff] }
 0x118   : > { %13744 = vmatmul.mubr.msk.f32.gmra.mrb[26].mxu1 %vm353_vm1, %v16655_v27 }
 0x119   : > { %14091 = vmatmul.mubr.msk.f32.gmra.mrb[24].mxu0 %vm353_vm1, %v16655_v27  ;;  %13746 = vmatprep.mubr.msk.f32.mxu1 %vm353_vm1, %v16657_v28  ;;  %v649_v27 = vld [vmem:[#allocation2] sm:$0xff] }
 0x11a   : > { %14093 = vmatprep.mubr.msk.f32.mxu0 %vm353_vm1, %v16657_v28  ;;  %v650_v28 = vld [vmem:[#allocation2 + $0x8] sm:$0xff] }
 0x11c   : > { %13747 = vmatmul.mubr.msk.f32.gmra.mrb[28].mxu1 %vm353_vm1, %v16663_v1 }
 0x11d   : > { %14094 = vmatmul.mubr.msk.f32.gmra.mrb[26].mxu0 %vm353_vm1, %v16663_v1  ;;  %13749 = vmatprep.mubr.msk.f32.mxu1 %vm353_vm1, %v16665_v63  ;;  %v681_v1 = vld [vmem:[%s19379_s2] sm:$0xf] }
 0x11e   : > { %14096 = vmatprep.mubr.msk.f32.mxu0 %vm353_vm1, %v16665_v63  ;;  %v16882_v63 = vld [vmem:[#allocation3 + $0x21] sm:$0xff]  ;;  %13752 = vmatprep.subr.msk.mxu1 %vm811_vm0, %v681_v1 }
 0x11f   : > { %13753 = vmatpush3.msk.msra.mxu1 %vm811_vm0, %v681_v1  ;;  %v16905_v1 = vld [vmem:[#allocation3 + $0x49] sm:$0xff] }
 0x120   : > { %13750 = vmatmul.mubr.msk.f32.gmra.mrb[30].mxu1 %vm353_vm1, %v16671_v62 }
 0x121   : > { %14097 = vmatmul.mubr.msk.f32.gmra.mrb[28].mxu0 %vm353_vm1, %v16671_v62  ;;  %13754 = vmatprep.mubr.msk.f32.mxu1 %vm353_vm1, %v649_v27  ;;  %v16892_v62 = vld [vmem:[%s19380_s3 + $0x14] sm:$0xf]  ;;  %v4114_v27 = vld [vmem:[#allocation3 + $0x109] sm:$0xff] }
 0x122   : > { %14099 = vmatprep.mubr.msk.f32.mxu0 %vm353_vm1, %v3344_v61  ;;  %v16705_v61 = vld [vmem:[#allocation2 + $0x39] sm:$0xff] }
 0x124   : > { %13755 = vmatmul.mubr.msk.f32.vlgmr.msra.gmra.mrb[0].mxu1 %vm353_vm1, %v650_v28  ;;  %v19471_v28 = vld [vmem:[#allocation10_spill] sm:$0xff] }
 0x125   : > { %14100 = vmatmul.mubr.msk.f32.gmra.mrb[30].mxu0 %vm353_vm1, %v3345_v60  ;;  %v16694_v60 = vld [vmem:[%s19379_s2 + $0x14] sm:$0xf]  ;;  %13757 = vmatprep.mubr.msk.f32.mxu1 %vm353_vm1, %v16414_v55  ;;  %v16917_v55 = vld [vmem:[#allocation3 + $0x51] sm:$0xff] }
 0x126   : > { %14104 = vmatprep.mubr.msk.f32.mxu0 %vm353_vm1, %v16676_v52 }
 0x128   : > { %13758 = vmatmul.mubr.msk.f32.gmra.mrb[2].mxu1 %vm353_vm1, %v16419_v56  ;;  %v16929_v56 = vld [vmem:[#allocation3 + $0x69] sm:$0xff] }
 0x129   : > { %14105 = vmatmul.mubr.msk.f32.vlgmr.msra.gmra.mrb[0].mxu0 %vm353_vm1, %v16684_v23  ;;  %13760 = vmatprep.mubr.msk.f32.mxu1 %vm353_vm1, %v16421_v57  ;;  %v16931_v57 = vld [vmem:[#allocation3 + $0x79] sm:$0xff] }
 0x12a   : > { %14153 = vmatpush3.msk.msra.mxu0 %vm811_vm0, %v16557_v32  ;;  %14107 = vmatprep.mubr.msk.f32.mxu0 %vm353_vm1, %v16687_v22  ;;  %v16745_v32 = vld [vmem:[#allocation2 + $0x91] sm:$0xff] }
 0x12b   : > { %14202 = vmatprep.subr.msk.mxu0 %vm811_vm0, %v16694_v60 }
 0x12c   : > { %13761 = vmatmul.mubr.msk.f32.gmra.mrb[4].mxu1 %vm353_vm1, %v16434_v59  ;;  %v16941_v59 = vld [vmem:[#allocation3 + $0x81] sm:$0xff] }
 0x12d   : > { %14108 = vmatmul.mubr.msk.f32.gmra.mrb[2].mxu0 %vm353_vm1, %v16705_v61  ;;  %13763 = vmatprep.mubr.msk.f32.mxu1 %vm353_vm1, %v16436_v0  ;;  %v16943_v0 = vld [vmem:[#allocation3 + $0x91] sm:$0xff] }
 0x12e   : > { %14110 = vmatprep.mubr.msk.f32.mxu0 %vm353_vm1, %v16707_v25 }
 0x130   : > { %13764 = vmatmul.mubr.msk.f32.gmra.mrb[6].mxu1 %vm353_vm1, %v16444_v2  ;;  %v16953_v2 = vld [vmem:[#allocation3 + $0x99] sm:$0xff] }
 0x131   : > { %14111 = vmatmul.mubr.msk.f32.gmra.mrb[4].mxu0 %vm353_vm1, %v16719_v24  ;;  %13766 = vmatprep.mubr.msk.f32.mxu1 %vm353_vm1, %v16446_v3  ;;  %v16955_v3 = vld [vmem:[#allocation3 + $0xa9] sm:$0xff] }
 0x132   : > { %14113 = vmatprep.mubr.msk.f32.mxu0 %vm353_vm1, %v16721_v26 }
 0x134   : > { %13767 = vmatmul.mubr.msk.f32.gmra.mrb[8].mxu1 %vm353_vm1, %v16452_v4  ;;  %v16965_v4 = vld [vmem:[#allocation3 + $0xb1] sm:$0xff] }
 0x135   : > { %14114 = vmatmul.mubr.msk.f32.gmra.mrb[6].mxu0 %vm353_vm1, %v16731_v29  ;;  %13769 = vmatprep.mubr.msk.f32.mxu1 %vm353_vm1, %v16454_v5  ;;  %v16967_v5 = vld [vmem:[#allocation3 + $0xc1] sm:$0xff] }
 0x136   : > { %14116 = vmatprep.mubr.msk.f32.mxu0 %vm353_vm1, %v16733_v30 }
 0x138   : > { %13770 = vmatmul.mubr.msk.f32.gmra.mrb[10].mxu1 %vm353_vm1, %v16460_v7  ;;  %v16977_v7 = vld [vmem:[#allocation3 + $0xc9] sm:$0xff] }
 0x139   : > { %14117 = vmatmul.mubr.msk.f32.gmra.mrb[8].mxu0 %vm353_vm1, %v16743_v31  ;;  %13772 = vmatprep.mubr.msk.f32.mxu1 %vm353_vm1, %v16462_v8  ;;  %v16979_v8 = vld [vmem:[#allocation3 + $0xd9] sm:$0xff] }
 0x13a   : > { %14119 = vmatprep.mubr.msk.f32.mxu0 %vm353_vm1, %v16745_v32 }
 0x13c   : > { %13773 = vmatmul.mubr.msk.f32.gmra.mrb[12].mxu1 %vm353_vm1, %v16468_v9  ;;  %v16989_v9 = vld [vmem:[#allocation3 + $0xe1] sm:$0xff] }
 0x13d   : > { %14120 = vmatmul.mubr.msk.f32.gmra.mrb[10].mxu0 %vm353_vm1, %v16755_v33  ;;  %13775 = vmatprep.mubr.msk.f32.mxu1 %vm353_vm1, %v16470_v10  ;;  %v4112_v10 = vld [vmem:[#allocation3 + $0xf1] sm:$0xff] }
 0x13e   : > { %14122 = vmatprep.mubr.msk.f32.mxu0 %vm353_vm1, %v16757_v34 }
 0x140   : > { %13776 = vmatmul.mubr.msk.f32.gmra.mrb[14].mxu1 %vm353_vm1, %v16476_v11  ;;  %v4113_v11 = vld [vmem:[#allocation3 + $0xf9] sm:$0xff] }
 0x141   : > { %14123 = vmatmul.mubr.msk.f32.gmra.mrb[12].mxu0 %vm353_vm1, %v16767_v35  ;;  %13778 = vmatprep.mubr.msk.f32.mxu1 %vm353_vm1, %v16478_v12  ;;  %v4115_v12 = vld [vmem:[#allocation3 + $0x111] sm:$0xff] }
 0x142   : > { %14125 = vmatprep.mubr.msk.f32.mxu0 %vm353_vm1, %v16769_v36 }
 0x144   : > { %13779 = vmatmul.mubr.msk.f32.gmra.mrb[16].mxu1 %vm353_vm1, %v16484_v13  ;;  %v4116_v13 = vld [vmem:[#allocation3 + $0x121] sm:$0xff] }
 0x145   : > { %14126 = vmatmul.mubr.msk.f32.gmra.mrb[14].mxu0 %vm353_vm1, %v16779_v37  ;;  %13781 = vmatprep.mubr.msk.f32.mxu1 %vm353_vm1, %v16486_v14  ;;  %v4117_v14 = vld [vmem:[#allocation3 + $0x129] sm:$0xff] }
 0x146   : > { %14128 = vmatprep.mubr.msk.f32.mxu0 %vm353_vm1, %v16781_v38 }
 0x148   : > { %13782 = vmatmul.mubr.msk.f32.gmra.mrb[18].mxu1 %vm353_vm1, %v16492_v15  ;;  %v4118_v15 = vld [vmem:[#allocation3 + $0x139] sm:$0xff] }
 0x149   : > { %14129 = vmatmul.mubr.msk.f32.gmra.mrb[16].mxu0 %vm353_vm1, %v16791_v39  ;;  %13784 = vmatprep.mubr.msk.f32.mxu1 %vm353_vm1, %v16494_v16  ;;  %v4119_v16 = vld [vmem:[#allocation3 + $0x141] sm:$0xff] }
 0x14a   : > { %14131 = vmatprep.mubr.msk.f32.mxu0 %vm353_vm1, %v16793_v40 }
 0x14c   : > { %13785 = vmatmul.mubr.msk.f32.gmra.mrb[20].mxu1 %vm353_vm1, %v16500_v17  ;;  %v4120_v17 = vld [vmem:[#allocation3 + $0x151] sm:$0xff] }
 0x14d   : > { %14132 = vmatmul.mubr.msk.f32.gmra.mrb[18].mxu0 %vm353_vm1, %v16803_v41  ;;  %13787 = vmatprep.mubr.msk.f32.mxu1 %vm353_vm1, %v16502_v18  ;;  %v4121_v18 = vld [vmem:[#allocation3 + $0x159] sm:$0xff] }
 0x14e   : > { %14134 = vmatprep.mubr.msk.f32.mxu0 %vm353_vm1, %v16805_v42 }
 0x150   : > { %13788 = vmatmul.mubr.msk.f32.gmra.mrb[22].mxu1 %vm353_vm1, %v16508_v19  ;;  %v4122_v19 = vld [vmem:[#allocation3 + $0x169] sm:$0xff] }
 0x151   : > { %14135 = vmatmul.mubr.msk.f32.gmra.mrb[20].mxu0 %vm353_vm1, %v16815_v43  ;;  %13790 = vmatprep.mubr.msk.f32.mxu1 %vm353_vm1, %v16510_v20  ;;  %v19472_v20 = vld [vmem:[#allocation11_spill] sm:$0xff] }
 0x152   : > { %14137 = vmatprep.mubr.msk.f32.mxu0 %vm353_vm1, %v16817_v44 }
 0x154   : > { %13791 = vmatmul.mubr.msk.f32.gmra.mrb[24].mxu1 %vm353_vm1, %v16516_v21  ;;  %v4123_v21 = vld [vmem:[#allocation3 + $0x171] sm:$0xff] }
 0x155   : > { %14138 = vmatmul.mubr.msk.f32.gmra.mrb[22].mxu0 %vm353_vm1, %v16827_v45  ;;  %13793 = vmatprep.mubr.msk.f32.mxu1 %vm353_vm1, %v16518_v6  ;;  %v19474_v6 = vld [vmem:[#allocation13_spill] sm:$0xff] }
 0x156   : > { %14140 = vmatprep.mubr.msk.f32.mxu0 %vm353_vm1, %v16829_v46 }
 0x158   : > { %13794 = vmatmul.mubr.msk.f32.gmra.mrb[26].mxu1 %vm353_vm1, %v19471_v28  ;;  %v15882_v28 = vld [vmem:[#allocation2 + $0x3a] sm:$0xff] }
 0x159   : > { %14141 = vmatmul.mubr.msk.f32.gmra.mrb[24].mxu0 %vm353_vm1, %v16839_v47  ;;  %13796 = vmatprep.mubr.msk.f32.mxu1 %vm353_vm1, %v19472_v20  ;;  %v15883_v20 = vld [vmem:[#allocation2 + $0x4a] sm:$0xff] }
 0x15a   : > { %14143 = vmatprep.mubr.msk.f32.mxu0 %vm353_vm1, %v16841_v48 }
 0x15d   : > { %14144 = vmatmul.mubr.msk.f32.gmra.mrb[26].mxu0 %vm353_vm1, %v16851_v49 }
 0x15e   : > { %14146 = vmatprep.mubr.msk.f32.mxu0 %vm353_vm1, %v16853_v50 }
 0x161   : > { %14147 = vmatmul.mubr.msk.f32.gmra.mrb[28].mxu0 %vm353_vm1, %v16863_v51 }
 0x162   : > { %14149 = vmatprep.mubr.msk.f32.mxu0 %vm353_vm1, %v3734_v53  ;;  %v16885_v53 = vld [vmem:[#allocation3 + $0x31] sm:$0xff] }
 0x165   : > { %14150 = vmatmul.mubr.msk.f32.gmra.mrb[30].mxu0 %vm353_vm1, %v3735_v54  ;;  %v16903_v54 = vld [vmem:[#allocation3 + $0x39] sm:$0xff] }
 0x166   : > { %14154 = vmatprep.mubr.msk.f32.mxu0 %vm353_vm1, %v16872_v58 }
 0x169   : > { %14155 = vmatmul.mubr.msk.f32.vlgmr.msra.gmra.mrb[0].mxu0 %vm353_vm1, %v16882_v63 }
 0x16a   : > { %14203 = vmatpush3.msk.msra.mxu0 %vm811_vm0, %v16694_v60  ;;  %14157 = vmatprep.mubr.msk.f32.mxu0 %vm353_vm1, %v16885_v53  ;;  %v16919_v60 = vld [vmem:[#allocation3 + $0x61] sm:$0xff] }
 0x16b   : > { %14252 = vmatprep.subr.msk.mxu0 %vm811_vm0, %v16892_v62 }
 0x16d   : > { %14158 = vmatmul.mubr.msk.f32.gmra.mrb[2].mxu0 %vm353_vm1, %v16903_v54 }
 0x16e   : > { %14160 = vmatprep.mubr.msk.f32.mxu0 %vm353_vm1, %v16905_v1 }
 0x171   : > { %14161 = vmatmul.mubr.msk.f32.gmra.mrb[4].mxu0 %vm353_vm1, %v16917_v55 }
 0x172   : > { %14163 = vmatprep.mubr.msk.f32.mxu0 %vm353_vm1, %v16919_v60 }
 0x175   : > { %14164 = vmatmul.mubr.msk.f32.gmra.mrb[6].mxu0 %vm353_vm1, %v16929_v56 }
 0x176   : > { %14166 = vmatprep.mubr.msk.f32.mxu0 %vm353_vm1, %v16931_v57 }
 0x179   : > { %14167 = vmatmul.mubr.msk.f32.gmra.mrb[8].mxu0 %vm353_vm1, %v16941_v59 }
 0x17a   : > { %14169 = vmatprep.mubr.msk.f32.mxu0 %vm353_vm1, %v16943_v0 }
 0x17d   : > { %14170 = vmatmul.mubr.msk.f32.gmra.mrb[10].mxu0 %vm353_vm1, %v16953_v2 }
 0x17e   : > { %14172 = vmatprep.mubr.msk.f32.mxu0 %vm353_vm1, %v16955_v3 }
 0x181   : > { %14173 = vmatmul.mubr.msk.f32.gmra.mrb[12].mxu0 %vm353_vm1, %v16965_v4 }
 0x182   : > { %14175 = vmatprep.mubr.msk.f32.mxu0 %vm353_vm1, %v16967_v5 }
 0x185   : > { %14176 = vmatmul.mubr.msk.f32.gmra.mrb[14].mxu0 %vm353_vm1, %v16977_v7 }
 0x186   : > { %14178 = vmatprep.mubr.msk.f32.mxu0 %vm353_vm1, %v16979_v8 }
 0x189   : > { %14179 = vmatmul.mubr.msk.f32.gmra.mrb[16].mxu0 %vm353_vm1, %v16989_v9 }
 0x18a   : > { %14181 = vmatprep.mubr.msk.f32.mxu0 %vm353_vm1, %v4112_v10  ;;  %v4124_v10 = vld [vmem:[#allocation3 + $0x181] sm:$0xff] }
 0x18d   : > { %14182 = vmatmul.mubr.msk.f32.gmra.mrb[18].mxu0 %vm353_vm1, %v4113_v11  ;;  %v19473_v11 = vld [vmem:[#allocation12_spill] sm:$0xff] }
 0x18e   : > { %14184 = vmatprep.mubr.msk.f32.mxu0 %vm353_vm1, %v4114_v27  ;;  %13797 = vmatmul.mubr.msk.f32.gmra.mrb[28].mxu1 %vm353_vm1, %v19473_v11  ;;  %v4125_v27 = vld [vmem:[#allocation3 + $0x189] sm:$0xff] }
 0x18f   : > { %13799 = vmatprep.mubr.msk.f32.mxu1 %vm353_vm1, %v19474_v6  ;;  %v4875_v11 = vld [vmem:[#allocation3 + $0x22] sm:$0xff]  ;;  %v15888_v6 = vld [vmem:[%s19379_s2 + $0x8] sm:$0xf] }
 0x191   : > { %14185 = vmatmul.mubr.msk.f32.gmra.mrb[20].mxu0 %vm353_vm1, %v4115_v12  ;;  %v19475_v12 = vld [vmem:[#allocation14_spill] sm:$0xff] }
 0x192   : > { %14187 = vmatprep.mubr.msk.f32.mxu0 %vm353_vm1, %v4116_v13  ;;  %13800 = vmatmul.mubr.msk.f32.gmra.mrb[30].mxu1 %vm353_vm1, %v19475_v12  ;;  %v11962_v13 = vld [vmem:[%s19379_s2 + $0x4] sm:$0xf]  ;;  %v4878_v12 = vld [vmem:[#allocation3 + $0x4a] sm:$0xff] }
 0x193   : > { %13802 = vmatprep.subr.msk.mxu1 %vm811_vm0, %v11962_v13 }
 0x194   : > { %13803 = vmatpush3.msk.msra.mxu1 %vm811_vm0, %v11962_v13  ;;  %v4880_v13 = vld [vmem:[#allocation3 + $0x62] sm:$0xff] }
 0x195   : > { %14188 = vmatmul.mubr.msk.f32.gmra.mrb[22].mxu0 %vm353_vm1, %v4117_v14  ;;  %v1364_v14 = vld [vmem:[#allocation2 + $0x1] sm:$0xff] }
 0x196   : > { %14190 = vmatprep.mubr.msk.f32.mxu0 %vm353_vm1, %v4118_v15  ;;  %v1365_v15 = vld [vmem:[#allocation2 + $0x9] sm:$0xff]  ;;  %13804 = vmatprep.mubr.msk.f32.mxu1 %vm353_vm1, %v1364_v14 }
 0x197   : > { %13805 = vmatmul.mubr.msk.f32.vlgmr.msra.gmra.mrb[0].mxu1 %vm353_vm1, %v1365_v15  ;;  %v4882_v14 = vld [vmem:[#allocation3 + $0x7a] sm:$0xff] }
 0x198   : > { %13807 = vmatprep.mubr.msk.f32.mxu1 %vm353_vm1, %v16676_v52  ;;  %v15884_v52 = vld [vmem:[#allocation2 + $0x52] sm:$0xff]  ;;  %v17277_v15 = vld [vmem:[#allocation3 + $0xf9] sm:$0xff] }
 0x199   : > { %14191 = vmatmul.mubr.msk.f32.gmra.mrb[24].mxu0 %vm353_vm1, %v4119_v16  ;;  %v15879_v16 = vld [vmem:[#allocation2 + $0x1a] sm:$0xff] }
 0x19a   : > { %14193 = vmatprep.mubr.msk.f32.mxu0 %vm353_vm1, %v4120_v17  ;;  %v17047_v17 = vld [vmem:[%s19379_s2 + $0x18] sm:$0xf] }
 0x19b   : > { %13808 = vmatmul.mubr.msk.f32.gmra.mrb[2].mxu1 %vm353_vm1, %v16684_v23  ;;  %v15886_v23 = vld [vmem:[#allocation2 + $0x6a] sm:$0xff] }
 0x19c   : > { %13810 = vmatprep.mubr.msk.f32.mxu1 %vm353_vm1, %v16687_v22  ;;  %v15887_v22 = vld [vmem:[#allocation2 + $0x7a] sm:$0xff] }
 0x19d   : > { %14194 = vmatmul.mubr.msk.f32.gmra.mrb[26].mxu0 %vm353_vm1, %v4121_v18  ;;  %v15880_v18 = vld [vmem:[#allocation2 + $0x22] sm:$0xff] }
 0x19e   : > { %14196 = vmatprep.mubr.msk.f32.mxu0 %vm353_vm1, %v4122_v19  ;;  %v15881_v19 = vld [vmem:[#allocation2 + $0x32] sm:$0xff] }
 0x19f   : > { %13811 = vmatmul.mubr.msk.f32.gmra.mrb[4].mxu1 %vm353_vm1, %v16705_v61  ;;  %v19476_v61 = vld [vmem:[#allocation5_spill] sm:$0xff] }
 0x1a0   : > { %13813 = vmatprep.mubr.msk.f32.mxu1 %vm353_vm1, %v16707_v25  ;;  %v19477_v25 = vld [vmem:[#allocation6_spill] sm:$0xff] }
 0x1a1   : > { %14197 = vmatmul.mubr.msk.f32.gmra.mrb[28].mxu0 %vm353_vm1, %v4123_v21  ;;  %v4874_v21 = vld [vmem:[#allocation3 + $0x1a] sm:$0xff] }
 0x1a2   : > { %14199 = vmatprep.mubr.msk.f32.mxu0 %vm353_vm1, %v4124_v10  ;;  %v1755_v10 = vld [vmem:[#allocation3 + $0x9] sm:$0xff] }
 0x1a3   : > { %13814 = vmatmul.mubr.msk.f32.gmra.mrb[6].mxu1 %vm353_vm1, %v16719_v24  ;;  %v19478_v24 = vld [vmem:[#allocation7_spill] sm:$0xff] }
 0x1a4   : > { %13816 = vmatprep.mubr.msk.f32.mxu1 %vm353_vm1, %v16721_v26  ;;  %v19479_v26 = vld [vmem:[#allocation8_spill] sm:$0xff] }
 0x1a5   : > { %14200 = vmatmul.mubr.msk.f32.gmra.mrb[30].mxu0 %vm353_vm1, %v4125_v27  ;;  %v4877_v27 = vld [vmem:[#allocation3 + $0x3a] sm:$0xff] }
 0x1a6   : > { %14204 = vmatprep.mubr.msk.f32.mxu0 %vm353_vm1, %v15879_v16  ;;  %v17285_v16 = vld [vmem:[#allocation3 + $0x109] sm:$0xff] }
 0x1a7   : > { %13817 = vmatmul.mubr.msk.f32.gmra.mrb[8].mxu1 %vm353_vm1, %v16731_v29  ;;  %v17092_v29 = vld [vmem:[#allocation2 + $0xc2] sm:$0xff] }
 0x1a8   : > { %13819 = vmatprep.mubr.msk.f32.mxu1 %vm353_vm1, %v16733_v30  ;;  %v19480_v30 = vld [vmem:[#allocation9_spill] sm:$0xff] }
 0x1a9   : > { %14205 = vmatmul.mubr.msk.f32.vlgmr.msra.gmra.mrb[0].mxu0 %vm353_vm1, %v15880_v18  ;;  %v4898_v18 = vld [vmem:[#allocation3 + $0x13a] sm:$0xff] }
 0x1aa   : > { %14253 = vmatpush3.msk.msra.mxu0 %vm811_vm0, %v16892_v62  ;;  %14207 = vmatprep.mubr.msk.f32.mxu0 %vm353_vm1, %v15881_v19  ;;  %v15885_v62 = vld [vmem:[#allocation2 + $0x62] sm:$0xff]  ;;  %v17295_v19 = vld [vmem:[#allocation3 + $0x121] sm:$0xff] }
 0x1ab   : > { %14302 = vmatprep.subr.msk.mxu0 %vm811_vm0, %v17047_v17  ;;  %13820 = vmatmul.mubr.msk.f32.gmra.mrb[10].mxu1 %vm353_vm1, %v16743_v31  ;;  %v17102_v31 = vld [vmem:[#allocation2 + $0xca] sm:$0xff] }
 0x1ac   : > { %13822 = vmatprep.mubr.msk.f32.mxu1 %vm353_vm1, %v16745_v32  ;;  %v17104_v32 = vld [vmem:[#allocation2 + $0xda] sm:$0xff] }
 0x1ad   : > { %14208 = vmatmul.mubr.msk.f32.gmra.mrb[2].mxu0 %vm353_vm1, %v15882_v28  ;;  %v17297_v28 = vld [vmem:[#allocation3 + $0x129] sm:$0xff] }
 0x1ae   : > { %14210 = vmatprep.mubr.msk.f32.mxu0 %vm353_vm1, %v15883_v20  ;;  %v4899_v20 = vld [vmem:[#allocation3 + $0x142] sm:$0xff] }
 0x1af   : > { %13823 = vmatmul.mubr.msk.f32.gmra.mrb[12].mxu1 %vm353_vm1, %v16755_v33  ;;  %v17114_v33 = vld [vmem:[#allocation2 + $0xe2] sm:$0xff] }
 0x1b0   : > { %13825 = vmatprep.mubr.msk.f32.mxu1 %vm353_vm1, %v16757_v34  ;;  %v17116_v34 = vld [vmem:[#allocation2 + $0xf2] sm:$0xff] }
 0x1b1   : > { %14211 = vmatmul.mubr.msk.f32.gmra.mrb[4].mxu0 %vm353_vm1, %v15884_v52  ;;  %v4900_v52 = vld [vmem:[#allocation3 + $0x152] sm:$0xff] }
 0x1b2   : > { %14213 = vmatprep.mubr.msk.f32.mxu0 %vm353_vm1, %v15885_v62  ;;  %v17305_v62 = vld [vmem:[#allocation3 + $0x139] sm:$0xff] }
 0x1b3   : > { %13826 = vmatmul.mubr.msk.f32.gmra.mrb[14].mxu1 %vm353_vm1, %v16767_v35  ;;  %v17126_v35 = vld [vmem:[#allocation2 + $0xfa] sm:$0xff] }
 0x1b4   : > { %13828 = vmatprep.mubr.msk.f32.mxu1 %vm353_vm1, %v16769_v36  ;;  %v17128_v36 = vld [vmem:[#allocation2 + $0x10a] sm:$0xff] }
 0x1b5   : > { %14214 = vmatmul.mubr.msk.f32.gmra.mrb[6].mxu0 %vm353_vm1, %v15886_v23  ;;  %v17307_v23 = vld [vmem:[#allocation3 + $0x141] sm:$0xff] }
 0x1b6   : > { %14216 = vmatprep.mubr.msk.f32.mxu0 %vm353_vm1, %v15887_v22  ;;  %v4901_v22 = vld [vmem:[#allocation3 + $0x15a] sm:$0xff] }
 0x1b7   : > { %13829 = vmatmul.mubr.msk.f32.gmra.mrb[16].mxu1 %vm353_vm1, %v16779_v37  ;;  %v17138_v37 = vld [vmem:[#allocation2 + $0x112] sm:$0xff] }
 0x1b8   : > { %13831 = vmatprep.mubr.msk.f32.mxu1 %vm353_vm1, %v16781_v38  ;;  %v17140_v38 = vld [vmem:[#allocation2 + $0x122] sm:$0xff] }
 0x1b9   : > { %14217 = vmatmul.mubr.msk.f32.gmra.mrb[8].mxu0 %vm353_vm1, %v19476_v61  ;;  %v4902_v61 = vld [vmem:[#allocation3 + $0x16a] sm:$0xff] }
 0x1ba   : > { %14219 = vmatprep.mubr.msk.f32.mxu0 %vm353_vm1, %v19477_v25  ;;  %v17315_v25 = vld [vmem:[#allocation3 + $0x151] sm:$0xff] }
 0x1bb   : > { %13832 = vmatmul.mubr.msk.f32.gmra.mrb[18].mxu1 %vm353_vm1, %v16791_v39  ;;  %v17150_v39 = vld [vmem:[#allocation2 + $0x12a] sm:$0xff] }
 0x1bc   : > { %13834 = vmatprep.mubr.msk.f32.mxu1 %vm353_vm1, %v16793_v40  ;;  %v17152_v40 = vld [vmem:[#allocation2 + $0x13a] sm:$0xff] }
 0x1bd   : > { %14220 = vmatmul.mubr.msk.f32.gmra.mrb[10].mxu0 %vm353_vm1, %v19478_v24  ;;  %v17317_v24 = vld [vmem:[#allocation3 + $0x159] sm:$0xff] }
 0x1be   : > { %14222 = vmatprep.mubr.msk.f32.mxu0 %vm353_vm1, %v19479_v26  ;;  %v4903_v26 = vld [vmem:[#allocation3 + $0x172] sm:$0xff] }
 0x1bf   : > { %13835 = vmatmul.mubr.msk.f32.gmra.mrb[20].mxu1 %vm353_vm1, %v16803_v41  ;;  %v17162_v41 = vld [vmem:[#allocation2 + $0x142] sm:$0xff] }
 0x1c0   : > { %13837 = vmatprep.mubr.msk.f32.mxu1 %vm353_vm1, %v16805_v42  ;;  %v17164_v42 = vld [vmem:[#allocation2 + $0x152] sm:$0xff] }
 0x1c1   : > { %14223 = vmatmul.mubr.msk.f32.gmra.mrb[12].mxu0 %vm353_vm1, %v19480_v30  ;;  %v4904_v30 = vld [vmem:[#allocation3 + $0x182] sm:$0xff] }
 0x1c2   : > { %14225 = vmatprep.mubr.msk.f32.mxu0 %vm353_vm1, %v17092_v29 }
 0x1c3   : > { %13838 = vmatmul.mubr.msk.f32.gmra.mrb[22].mxu1 %vm353_vm1, %v16815_v43  ;;  %v17174_v43 = vld [vmem:[#allocation2 + $0x15a] sm:$0xff] }
 0x1c4   : > { %13840 = vmatprep.mubr.msk.f32.mxu1 %vm353_vm1, %v16817_v44  ;;  %v17176_v44 = vld [vmem:[#allocation2 + $0x16a] sm:$0xff] }
 0x1c5   : > { %14226 = vmatmul.mubr.msk.f32.gmra.mrb[14].mxu0 %vm353_vm1, %v17102_v31 }
 0x1c6   : > { %14228 = vmatprep.mubr.msk.f32.mxu0 %vm353_vm1, %v17104_v32 }
 0x1c7   : > { %13841 = vmatmul.mubr.msk.f32.gmra.mrb[24].mxu1 %vm353_vm1, %v16827_v45  ;;  %v17186_v45 = vld [vmem:[#allocation2 + $0x172] sm:$0xff] }
 0x1c8   : > { %13843 = vmatprep.mubr.msk.f32.mxu1 %vm353_vm1, %v16829_v46  ;;  %v4514_v46 = vld [vmem:[#allocation2 + $0x182] sm:$0xff] }
 0x1c9   : > { %14229 = vmatmul.mubr.msk.f32.gmra.mrb[16].mxu0 %vm353_vm1, %v17114_v33 }
 0x1ca   : > { %14231 = vmatprep.mubr.msk.f32.mxu0 %vm353_vm1, %v17116_v34 }
 0x1cb   : > { %13844 = vmatmul.mubr.msk.f32.gmra.mrb[26].mxu1 %vm353_vm1, %v16839_v47  ;;  %v4515_v47 = vld [vmem:[#allocation2 + $0x18a] sm:$0xff] }
 0x1cc   : > { %13846 = vmatprep.mubr.msk.f32.mxu1 %vm353_vm1, %v16841_v48  ;;  %v11996_v48 = vld [vmem:[%s19380_s3 + $0x4] sm:$0xf] }
 0x1cd   : > { %14232 = vmatmul.mubr.msk.f32.gmra.mrb[18].mxu0 %vm353_vm1, %v17126_v35  ;;  %13852 = vmatprep.subr.msk.mxu1 %vm811_vm0, %v11996_v48 }
 0x1ce   : > { %14234 = vmatprep.mubr.msk.f32.mxu0 %vm353_vm1, %v17128_v36  ;;  %13853 = vmatpush3.msk.msra.mxu1 %vm811_vm0, %v11996_v48  ;;  %v5265_v48 = vld [vmem:[#allocation2 + $0x30] sm:$0xff] }
 0x1cf   : > { %13847 = vmatmul.mubr.msk.f32.gmra.mrb[28].mxu1 %vm353_vm1, %v16851_v49  ;;  %v1754_v49 = vld [vmem:[#allocation3 + $0x1] sm:$0xff]  ;;  %15052 = vmatprep.subr.msk.mxu1 %vm811_vm0, %v15888_v6 }
 0x1d0   : > { %13849 = vmatprep.mubr.msk.f32.mxu1 %vm353_vm1, %v16853_v50  ;;  %v4876_v50 = vld [vmem:[#allocation3 + $0x32] sm:$0xff] }
 0x1d1   : > { %14235 = vmatmul.mubr.msk.f32.gmra.mrb[20].mxu0 %vm353_vm1, %v17138_v37 }
 0x1d2   : > { %14237 = vmatprep.mubr.msk.f32.mxu0 %vm353_vm1, %v17140_v38 }
 0x1d3   : > { %13850 = vmatmul.mubr.msk.f32.gmra.mrb[30].mxu1 %vm353_vm1, %v16863_v51  ;;  %v17208_v51 = vld [vmem:[%s19380_s3 + $0x18] sm:$0xf] }
 0x1d4   : > { %13854 = vmatprep.mubr.msk.f32.mxu1 %vm353_vm1, %v1754_v49  ;;  %v5266_v49 = vld [vmem:[#allocation2 + $0x38] sm:$0xff] }
 0x1d5   : > { %14238 = vmatmul.mubr.msk.f32.gmra.mrb[22].mxu0 %vm353_vm1, %v17150_v39 }
 0x1d6   : > { %14240 = vmatprep.mubr.msk.f32.mxu0 %vm353_vm1, %v17152_v40 }
 0x1d7   : > { %13855 = vmatmul.mubr.msk.f32.vlgmr.msra.gmra.mrb[0].mxu1 %vm353_vm1, %v1755_v10  ;;  %v5267_v10 = vld [vmem:[#allocation2 + $0x48] sm:$0xff] }
 0x1d8   : > { %13857 = vmatprep.mubr.msk.f32.mxu1 %vm353_vm1, %v16872_v58  ;;  %15053 = vmatpush3.msk.msra.mxu1 %vm811_vm0, %v15888_v6  ;;  %v4879_v58 = vld [vmem:[#allocation3 + $0x52] sm:$0xff] }
 0x1d9   : > { %14241 = vmatmul.mubr.msk.f32.gmra.mrb[24].mxu0 %vm353_vm1, %v17162_v41  ;;  %v5283_v6 = vld [vmem:[#allocation2 + $0x108] sm:$0xff] }
 0x1da   : > { %14243 = vmatprep.mubr.msk.f32.mxu0 %vm353_vm1, %v17164_v42 }
 0x1db   : > { %13858 = vmatmul.mubr.msk.f32.gmra.mrb[2].mxu1 %vm353_vm1, %v16882_v63  ;;  %v4881_v63 = vld [vmem:[#allocation3 + $0x6a] sm:$0xff] }
 0x1dc   : > { %13860 = vmatprep.mubr.msk.f32.mxu1 %vm353_vm1, %v16885_v53  ;;  %v4883_v53 = vld [vmem:[#allocation3 + $0x82] sm:$0xff] }
 0x1dd   : > { %14244 = vmatmul.mubr.msk.f32.gmra.mrb[26].mxu0 %vm353_vm1, %v17174_v43 }
 0x1de   : > { %14246 = vmatprep.mubr.msk.f32.mxu0 %vm353_vm1, %v17176_v44 }
 0x1df   : > { %13861 = vmatmul.mubr.msk.f32.gmra.mrb[4].mxu1 %vm353_vm1, %v16903_v54  ;;  %v4884_v54 = vld [vmem:[#allocation3 + $0x92] sm:$0xff] }
 0x1e0   : > { %13863 = vmatprep.mubr.msk.f32.mxu1 %vm353_vm1, %v16905_v1  ;;  %v4885_v1 = vld [vmem:[#allocation3 + $0x9a] sm:$0xff] }
 0x1e1   : > { %14247 = vmatmul.mubr.msk.f32.gmra.mrb[28].mxu0 %vm353_vm1, %v17186_v45 }
 0x1e2   : > { %14249 = vmatprep.mubr.msk.f32.mxu0 %vm353_vm1, %v4514_v46  ;;  %v17325_v46 = vld [vmem:[#allocation3 + $0x169] sm:$0xff] }
 0x1e3   : > { %13864 = vmatmul.mubr.msk.f32.gmra.mrb[6].mxu1 %vm353_vm1, %v16917_v55  ;;  %v4886_v55 = vld [vmem:[#allocation3 + $0xaa] sm:$0xff] }
 0x1e4   : > { %13866 = vmatprep.mubr.msk.f32.mxu1 %vm353_vm1, %v16919_v60  ;;  %v4887_v60 = vld [vmem:[#allocation3 + $0xb2] sm:$0xff] }
 0x1e5   : > { %14250 = vmatmul.mubr.msk.f32.gmra.mrb[30].mxu0 %vm353_vm1, %v4515_v47  ;;  %v17327_v47 = vld [vmem:[#allocation3 + $0x171] sm:$0xff] }
 0x1e6   : > { %14254 = vmatprep.mubr.msk.f32.mxu0 %vm353_vm1, %v4874_v21  ;;  %v4905_v21 = vld [vmem:[#allocation3 + $0x18a] sm:$0xff] }
 0x1e7   : > { %13867 = vmatmul.mubr.msk.f32.gmra.mrb[8].mxu1 %vm353_vm1, %v16929_v56  ;;  %v4888_v56 = vld [vmem:[#allocation3 + $0xc2] sm:$0xff] }
 0x1e8   : > { %13869 = vmatprep.mubr.msk.f32.mxu1 %vm353_vm1, %v16931_v57  ;;  %v4889_v57 = vld [vmem:[#allocation3 + $0xca] sm:$0xff] }
 0x1e9   : > { %14255 = vmatmul.mubr.msk.f32.vlgmr.msra.gmra.mrb[0].mxu0 %vm353_vm1, %v4875_v11  ;;  %v17341_v11 = vld [vmem:[%s19379_s2 + $0x1c] sm:$0xf] }
 0x1ea   : > { %14303 = vmatpush3.msk.msra.mxu0 %vm811_vm0, %v17047_v17  ;;  %14257 = vmatprep.mubr.msk.f32.mxu0 %vm353_vm1, %v4876_v50  ;;  %v4897_v17 = vld [vmem:[#allocation3 + $0x12a] sm:$0xff] }
 0x1eb   : > { %14352 = vmatprep.subr.msk.mxu0 %vm811_vm0, %v17208_v51  ;;  %13870 = vmatmul.mubr.msk.f32.gmra.mrb[10].mxu1 %vm353_vm1, %v16941_v59  ;;  %v4890_v59 = vld [vmem:[#allocation3 + $0xda] sm:$0xff]  ;;  %v5269_v50 = vld [vmem:[#allocation2 + $0x60] sm:$0xff] }
 0x1ec   : > { %13872 = vmatprep.mubr.msk.f32.mxu1 %vm353_vm1, %v16943_v0  ;;  %v4891_v0 = vld [vmem:[#allocation3 + $0xe2] sm:$0xff] }
 0x1ed   : > { %14258 = vmatmul.mubr.msk.f32.gmra.mrb[2].mxu0 %vm353_vm1, %v4877_v27  ;;  %v5285_v27 = vld [vmem:[#allocation2 + $0x120] sm:$0xff] }
 0x1ee   : > { %14260 = vmatprep.mubr.msk.f32.mxu0 %vm353_vm1, %v4878_v12  ;;  %v5287_v12 = vld [vmem:[#allocation2 + $0x138] sm:$0xff] }
 0x1ef   : > { %13873 = vmatmul.mubr.msk.f32.gmra.mrb[12].mxu1 %vm353_vm1, %v16953_v2  ;;  %v4892_v2 = vld [vmem:[#allocation3 + $0xf2] sm:$0xff] }
 0x1f0   : > { %13875 = vmatprep.mubr.msk.f32.mxu1 %vm353_vm1, %v16955_v3  ;;  %v4893_v3 = vld [vmem:[#allocation3 + $0xfa] sm:$0xff] }
 0x1f1   : > { %14261 = vmatmul.mubr.msk.f32.gmra.mrb[4].mxu0 %vm353_vm1, %v4879_v58  ;;  %v5289_v58 = vld [vmem:[#allocation2 + $0x150] sm:$0xff] }
 0x1f2   : > { %14263 = vmatprep.mubr.msk.f32.mxu0 %vm353_vm1, %v4880_v13  ;;  %v5290_v13 = vld [vmem:[#allocation2 + $0x158] sm:$0xff] }
 0x1f3   : > { %13876 = vmatmul.mubr.msk.f32.gmra.mrb[14].mxu1 %vm353_vm1, %v16965_v4  ;;  %v4894_v4 = vld [vmem:[#allocation3 + $0x10a] sm:$0xff] }
 0x1f4   : > { %13878 = vmatprep.mubr.msk.f32.mxu1 %vm353_vm1, %v16967_v5  ;;  %v17275_v5 = vld [vmem:[#allocation3 + $0xf1] sm:$0xff] }
 0x1f5   : > { %14264 = vmatmul.mubr.msk.f32.gmra.mrb[6].mxu0 %vm353_vm1, %v4881_v63  ;;  %v5291_v63 = vld [vmem:[#allocation2 + $0x168] sm:$0xff] }
 0x1f6   : > { %14266 = vmatprep.mubr.msk.f32.mxu0 %vm353_vm1, %v4882_v14  ;;  %v5292_v14 = vld [vmem:[#allocation2 + $0x170] sm:$0xff] }
 0x1f7   : > { %13879 = vmatmul.mubr.msk.f32.gmra.mrb[16].mxu1 %vm353_vm1, %v16977_v7  ;;  %v4895_v7 = vld [vmem:[#allocation3 + $0x112] sm:$0xff] }
 0x1f8   : > { %13881 = vmatprep.mubr.msk.f32.mxu1 %vm353_vm1, %v16979_v8  ;;  %v4896_v8 = vld [vmem:[#allocation3 + $0x122] sm:$0xff] }
 0x1f9   : > { %14267 = vmatmul.mubr.msk.f32.gmra.mrb[8].mxu0 %vm353_vm1, %v4883_v53  ;;  %v5293_v53 = vld [vmem:[#allocation2 + $0x180] sm:$0xff] }
 0x1fa   : > { %14269 = vmatprep.mubr.msk.f32.mxu0 %vm353_vm1, %v4884_v54  ;;  %v5294_v54 = vld [vmem:[#allocation2 + $0x188] sm:$0xff] }
 0x1fb   : > { %13882 = vmatmul.mubr.msk.f32.gmra.mrb[18].mxu1 %vm353_vm1, %v16989_v9  ;;  %v17287_v9 = vld [vmem:[#allocation3 + $0x111] sm:$0xff] }
 0x1fc   : > { %13884 = vmatprep.mubr.msk.f32.mxu1 %vm353_vm1, %v17275_v5 }
 0x1fd   : > { %14270 = vmatmul.mubr.msk.f32.gmra.mrb[10].mxu0 %vm353_vm1, %v4885_v1  ;;  %v5295_v1 = vld [vmem:[#allocation2 + $0x198] sm:$0xff] }
 0x1fe   : > { %14272 = vmatprep.mubr.msk.f32.mxu0 %vm353_vm1, %v4886_v55  ;;  %v5296_v55 = vld [vmem:[#allocation2 + $0x1a0] sm:$0xff] }
 0x1ff   : > { %13885 = vmatmul.mubr.msk.f32.gmra.mrb[20].mxu1 %vm353_vm1, %v17277_v15 }
 0x200   : > { %13887 = vmatprep.mubr.msk.f32.mxu1 %vm353_vm1, %v17285_v16 }
 0x201   : > { %14273 = vmatmul.mubr.msk.f32.gmra.mrb[12].mxu0 %vm353_vm1, %v4887_v60  ;;  %v5656_v60 = vld [vmem:[#allocation3 + $0x30] sm:$0xff] }
 0x202   : > { %14275 = vmatprep.mubr.msk.f32.mxu0 %vm353_vm1, %v4888_v56  ;;  %v5657_v56 = vld [vmem:[#allocation3 + $0x38] sm:$0xff] }
 0x203   : > { %13888 = vmatmul.mubr.msk.f32.gmra.mrb[22].mxu1 %vm353_vm1, %v17287_v9 }
 0x204   : > { %13890 = vmatprep.mubr.msk.f32.mxu1 %vm353_vm1, %v17295_v19 }
 0x205   : > { %14276 = vmatmul.mubr.msk.f32.gmra.mrb[14].mxu0 %vm353_vm1, %v4889_v57  ;;  %v5658_v57 = vld [vmem:[#allocation3 + $0x48] sm:$0xff] }
 0x206   : > { %14278 = vmatprep.mubr.msk.f32.mxu0 %vm353_vm1, %v4890_v59  ;;  %v17412_v59 = vld [vmem:[%s19380_s3 + $0x1c] sm:$0xf] }
 0x207   : > { %13891 = vmatmul.mubr.msk.f32.gmra.mrb[24].mxu1 %vm353_vm1, %v17297_v28 }
 0x208   : > { %13893 = vmatprep.mubr.msk.f32.mxu1 %vm353_vm1, %v17305_v62 }
 0x209   : > { %14279 = vmatmul.mubr.msk.f32.gmra.mrb[16].mxu0 %vm353_vm1, %v4891_v0  ;;  %v5659_v0 = vld [vmem:[#allocation3 + $0x50] sm:$0xff] }
 0x20a   : > { %14281 = vmatprep.mubr.msk.f32.mxu0 %vm353_vm1, %v4892_v2  ;;  %v5660_v2 = vld [vmem:[#allocation3 + $0x60] sm:$0xff] }
 0x20b   : > { %13894 = vmatmul.mubr.msk.f32.gmra.mrb[26].mxu1 %vm353_vm1, %v17307_v23 }
 0x20c   : > { %13896 = vmatprep.mubr.msk.f32.mxu1 %vm353_vm1, %v17315_v25 }
 0x20d   : > { %14282 = vmatmul.mubr.msk.f32.gmra.mrb[18].mxu0 %vm353_vm1, %v4893_v3  ;;  %v5661_v3 = vld [vmem:[#allocation3 + $0x68] sm:$0xff] }
 0x20e   : > { %14284 = vmatprep.mubr.msk.f32.mxu0 %vm353_vm1, %v4894_v4  ;;  %v5662_v4 = vld [vmem:[#allocation3 + $0x78] sm:$0xff] }
 0x20f   : > { %13897 = vmatmul.mubr.msk.f32.gmra.mrb[28].mxu1 %vm353_vm1, %v17317_v24 }
 0x210   : > { %13899 = vmatprep.mubr.msk.f32.mxu1 %vm353_vm1, %v17325_v46 }
 0x211   : > { %14285 = vmatmul.mubr.msk.f32.gmra.mrb[20].mxu0 %vm353_vm1, %v4895_v7  ;;  %v5663_v7 = vld [vmem:[#allocation3 + $0x80] sm:$0xff] }
 0x212   : > { %14287 = vmatprep.mubr.msk.f32.mxu0 %vm353_vm1, %v4896_v8  ;;  %v5664_v8 = vld [vmem:[#allocation3 + $0x90] sm:$0xff] }
 0x213   : > { %13900 = vmatmul.mubr.msk.f32.gmra.mrb[30].mxu1 %vm353_vm1, %v17327_v47 }
 0x214   : > { %13928 = vmatprep.mubr.msk.f32.mxu1 %vm353_vm1, %v17092_v29  ;;  %v5268_v29 = vld [vmem:[#allocation2 + $0x50] sm:$0xff] }
 0x215   : > { %14288 = vmatmul.mubr.msk.f32.gmra.mrb[22].mxu0 %vm353_vm1, %v4897_v17  ;;  %v5665_v17 = vld [vmem:[#allocation3 + $0x98] sm:$0xff] }
 0x216   : > { %14290 = vmatprep.mubr.msk.f32.mxu0 %vm353_vm1, %v4898_v18  ;;  %v5666_v18 = vld [vmem:[#allocation3 + $0xa8] sm:$0xff] }
 0x217   : > { %13929 = vmatmul.mubr.msk.f32.vlgmr.msra.gmra.mrb[16].mxu1 %vm353_vm1, %v17102_v31  ;;  %v5270_v31 = vld [vmem:[#allocation2 + $0x68] sm:$0xff] }
 0x218   : > { %13931 = vmatprep.mubr.msk.f32.mxu1 %vm353_vm1, %v17104_v32  ;;  %v5271_v32 = vld [vmem:[#allocation2 + $0x78] sm:$0xff] }
 0x219   : > { %14291 = vmatmul.mubr.msk.f32.gmra.mrb[24].mxu0 %vm353_vm1, %v4899_v20  ;;  %v5667_v20 = vld [vmem:[#allocation3 + $0xb0] sm:$0xff] }
 0x21a   : > { %14293 = vmatprep.mubr.msk.f32.mxu0 %vm353_vm1, %v4900_v52  ;;  %v5668_v52 = vld [vmem:[#allocation3 + $0xc0] sm:$0xff] }
 0x21b   : > { %13932 = vmatmul.mubr.msk.f32.gmra.mrb[18].mxu1 %vm353_vm1, %v17114_v33  ;;  %v5272_v33 = vld [vmem:[#allocation2 + $0x80] sm:$0xff] }
 0x21c   : > { %13934 = vmatprep.mubr.msk.f32.mxu1 %vm353_vm1, %v17116_v34  ;;  %v5274_v34 = vld [vmem:[#allocation2 + $0x98] sm:$0xff] }
 0x21d   : > { %14294 = vmatmul.mubr.msk.f32.gmra.mrb[26].mxu0 %vm353_vm1, %v4901_v22  ;;  %v5669_v22 = vld [vmem:[#allocation3 + $0xc8] sm:$0xff] }
 0x21e   : > { %14296 = vmatprep.mubr.msk.f32.mxu0 %vm353_vm1, %v4902_v61  ;;  %v5670_v61 = vld [vmem:[#allocation3 + $0xd8] sm:$0xff] }
 0x21f   : > { %13935 = vmatmul.mubr.msk.f32.gmra.mrb[20].mxu1 %vm353_vm1, %v17126_v35  ;;  %v5275_v35 = vld [vmem:[#allocation2 + $0xa8] sm:$0xff] }
 0x220   : > { %13937 = vmatprep.mubr.msk.f32.mxu1 %vm353_vm1, %v17128_v36  ;;  %v5276_v36 = vld [vmem:[#allocation2 + $0xb0] sm:$0xff] }
 0x221   : > { %14297 = vmatmul.mubr.msk.f32.gmra.mrb[28].mxu0 %vm353_vm1, %v4903_v26  ;;  %v5671_v26 = vld [vmem:[#allocation3 + $0xe0] sm:$0xff] }
 0x222   : > { %14299 = vmatprep.mubr.msk.f32.mxu0 %vm353_vm1, %v4904_v30  ;;  %v5672_v30 = vld [vmem:[#allocation3 + $0xf0] sm:$0xff] }
 0x223   : > { %13938 = vmatmul.mubr.msk.f32.gmra.mrb[22].mxu1 %vm353_vm1, %v17138_v37  ;;  %v5277_v37 = vld [vmem:[#allocation2 + $0xc0] sm:$0xff] }
 0x224   : > { %13940 = vmatprep.mubr.msk.f32.mxu1 %vm353_vm1, %v17140_v38  ;;  %v5278_v38 = vld [vmem:[#allocation2 + $0xc8] sm:$0xff] }
 0x225   : > { %14300 = vmatmul.mubr.msk.f32.gmra.mrb[30].mxu0 %vm353_vm1, %v4905_v21  ;;  %v5673_v21 = vld [vmem:[#allocation3 + $0xf8] sm:$0xff] }
 0x226   : > { %14304 = vmatprep.mubr.msk.f32.mxu0 %vm353_vm1, %v5265_v48  ;;  %v5674_v48 = vld [vmem:[#allocation3 + $0x108] sm:$0xff] }
 0x227   : > { %13941 = vmatmul.mubr.msk.f32.gmra.mrb[24].mxu1 %vm353_vm1, %v17150_v39  ;;  %v5279_v39 = vld [vmem:[#allocation2 + $0xd8] sm:$0xff] }
 0x228   : > { %13943 = vmatprep.mubr.msk.f32.mxu1 %vm353_vm1, %v17152_v40  ;;  %v5280_v40 = vld [vmem:[#allocation2 + $0xe0] sm:$0xff] }
 0x229   : > { %14305 = vmatmul.mubr.msk.f32.vlgmr.msra.gmra.mrb[0].mxu0 %vm353_vm1, %v5266_v49  ;;  %v5675_v49 = vld [vmem:[#allocation3 + $0x110] sm:$0xff] }
 0x22a   : > { %14353 = vmatpush3.msk.msra.mxu0 %vm811_vm0, %v17208_v51  ;;  %14307 = vmatprep.mubr.msk.f32.mxu0 %vm353_vm1, %v5267_v10  ;;  %v5273_v51 = vld [vmem:[#allocation2 + $0x90] sm:$0xff] }
 0x22b   : > { %14402 = vmatprep.subr.msk.mxu0 %vm811_vm0, %v17341_v11  ;;  %13944 = vmatmul.mubr.msk.f32.gmra.mrb[26].mxu1 %vm353_vm1, %v17162_v41  ;;  %v5281_v41 = vld [vmem:[#allocation2 + $0xf0] sm:$0xff] }
 0x22c   : > { %13946 = vmatprep.mubr.msk.f32.mxu1 %vm353_vm1, %v17164_v42  ;;  %v5282_v42 = vld [vmem:[#allocation2 + $0xf8] sm:$0xff]  ;;  %v5676_v10 = vld [vmem:[#allocation3 + $0x120] sm:$0xff] }
 0x22d   : > { %14308 = vmatmul.mubr.msk.f32.gmra.mrb[2].mxu0 %vm353_vm1, %v5268_v29  ;;  %v5678_v29 = vld [vmem:[#allocation3 + $0x138] sm:$0xff] }
 0x22e   : > { %14310 = vmatprep.mubr.msk.f32.mxu0 %vm353_vm1, %v5269_v50  ;;  %v5679_v50 = vld [vmem:[#allocation3 + $0x140] sm:$0xff] }
 0x22f   : > { %13947 = vmatmul.mubr.msk.f32.gmra.mrb[28].mxu1 %vm353_vm1, %v17174_v43  ;;  %v5284_v43 = vld [vmem:[#allocation2 + $0x110] sm:$0xff] }
 0x230   : > { %13949 = vmatprep.mubr.msk.f32.mxu1 %vm353_vm1, %v17176_v44  ;;  %v5286_v44 = vld [vmem:[#allocation2 + $0x128] sm:$0xff] }
 0x231   : > { %14311 = vmatmul.mubr.msk.f32.gmra.mrb[4].mxu0 %vm353_vm1, %v5270_v31  ;;  %v5680_v31 = vld [vmem:[#allocation3 + $0x150] sm:$0xff] }
 0x232   : > { %14313 = vmatprep.mubr.msk.f32.mxu0 %vm353_vm1, %v5271_v32  ;;  %v5681_v32 = vld [vmem:[#allocation3 + $0x158] sm:$0xff] }
 0x233   : > { %13950 = vmatmul.mubr.msk.f32.gmra.mrb[30].mxu1 %vm353_vm1, %v17186_v45  ;;  %v5288_v45 = vld [vmem:[#allocation2 + $0x140] sm:$0xff] }
 0x235   : > { %14314 = vmatmul.mubr.msk.f32.gmra.mrb[6].mxu0 %vm353_vm1, %v5272_v33  ;;  %v5682_v33 = vld [vmem:[#allocation3 + $0x168] sm:$0xff] }
 0x236   : > { %14316 = vmatprep.mubr.msk.f32.mxu0 %vm353_vm1, %v5273_v51  ;;  %v5683_v51 = vld [vmem:[#allocation3 + $0x170] sm:$0xff] }
 0x239   : > { %14317 = vmatmul.mubr.msk.f32.gmra.mrb[8].mxu0 %vm353_vm1, %v5274_v34  ;;  %v5684_v34 = vld [vmem:[#allocation3 + $0x180] sm:$0xff] }
 0x23a   : > { %14319 = vmatprep.mubr.msk.f32.mxu0 %vm353_vm1, %v5275_v35  ;;  %v5685_v35 = vld [vmem:[#allocation3 + $0x188] sm:$0xff] }
 0x23d   : > { %14320 = vmatmul.mubr.msk.f32.gmra.mrb[10].mxu0 %vm353_vm1, %v5276_v36  ;;  %v5686_v36 = vld [vmem:[#allocation3 + $0x198] sm:$0xff] }
 0x23e   : > { %14322 = vmatprep.mubr.msk.f32.mxu0 %vm353_vm1, %v5277_v37  ;;  %v5687_v37 = vld [vmem:[#allocation3 + $0x1a0] sm:$0xff] }
 0x241   : > { %14323 = vmatmul.mubr.msk.f32.gmra.mrb[12].mxu0 %vm353_vm1, %v5278_v38  ;;  %v6046_v38 = vld [vmem:[#allocation2 + $0x31] sm:$0xff] }
 0x242   : > { %14325 = vmatprep.mubr.msk.f32.mxu0 %vm353_vm1, %v5279_v39  ;;  %v6047_v39 = vld [vmem:[#allocation2 + $0x39] sm:$0xff] }
 0x245   : > { %14326 = vmatmul.mubr.msk.f32.gmra.mrb[14].mxu0 %vm353_vm1, %v5280_v40  ;;  %v6048_v40 = vld [vmem:[#allocation2 + $0x49] sm:$0xff] }
 0x246   : > { %14328 = vmatprep.mubr.msk.f32.mxu0 %vm353_vm1, %v5281_v41  ;;  %v17453_v41 = vld [vmem:[%s19379_s2 + $0x20] sm:$0xf] }
 0x249   : > { %14329 = vmatmul.mubr.msk.f32.gmra.mrb[16].mxu0 %vm353_vm1, %v5282_v42  ;;  %v6049_v42 = vld [vmem:[#allocation2 + $0x51] sm:$0xff] }
 0x24a   : > { %14331 = vmatprep.mubr.msk.f32.mxu0 %vm353_vm1, %v5283_v6  ;;  %v6050_v6 = vld [vmem:[#allocation2 + $0x61] sm:$0xff] }
 0x24d   : > { %14332 = vmatmul.mubr.msk.f32.gmra.mrb[18].mxu0 %vm353_vm1, %v5284_v43  ;;  %v6051_v43 = vld [vmem:[#allocation2 + $0x69] sm:$0xff] }
 0x24e   : > { %14334 = vmatprep.mubr.msk.f32.mxu0 %vm353_vm1, %v5285_v27  ;;  %v6052_v27 = vld [vmem:[#allocation2 + $0x79] sm:$0xff] }
 0x251   : > { %14335 = vmatmul.mubr.msk.f32.gmra.mrb[20].mxu0 %vm353_vm1, %v5286_v44  ;;  %v6053_v44 = vld [vmem:[#allocation2 + $0x81] sm:$0xff] }
 0x252   : > { %14337 = vmatprep.mubr.msk.f32.mxu0 %vm353_vm1, %v5287_v12  ;;  %v6054_v12 = vld [vmem:[#allocation2 + $0x91] sm:$0xff] }
 0x255   : > { %14338 = vmatmul.mubr.msk.f32.gmra.mrb[22].mxu0 %vm353_vm1, %v5288_v45  ;;  %v6055_v45 = vld [vmem:[#allocation2 + $0x99] sm:$0xff] }
 0x256   : > { %14340 = vmatprep.mubr.msk.f32.mxu0 %vm353_vm1, %v5289_v58  ;;  %v6056_v58 = vld [vmem:[#allocation2 + $0xa9] sm:$0xff] }
 0x259   : > { %14341 = vmatmul.mubr.msk.f32.gmra.mrb[24].mxu0 %vm353_vm1, %v5290_v13  ;;  %v6057_v13 = vld [vmem:[#allocation2 + $0xb1] sm:$0xff] }
 0x25a   : > { %14343 = vmatprep.mubr.msk.f32.mxu0 %vm353_vm1, %v5291_v63  ;;  %v6058_v63 = vld [vmem:[#allocation2 + $0xc1] sm:$0xff] }
 0x25d   : > { %14344 = vmatmul.mubr.msk.f32.gmra.mrb[26].mxu0 %vm353_vm1, %v5292_v14  ;;  %v6059_v14 = vld [vmem:[#allocation2 + $0xc9] sm:$0xff] }
 0x25e   : > { %14346 = vmatprep.mubr.msk.f32.mxu0 %vm353_vm1, %v5293_v53  ;;  %v6060_v53 = vld [vmem:[#allocation2 + $0xd9] sm:$0xff] }
 0x261   : > { %14347 = vmatmul.mubr.msk.f32.gmra.mrb[28].mxu0 %vm353_vm1, %v5294_v54  ;;  %v6061_v54 = vld [vmem:[#allocation2 + $0xe1] sm:$0xff] }
 0x262   : > { %14349 = vmatprep.mubr.msk.f32.mxu0 %vm353_vm1, %v5295_v1  ;;  %v6062_v1 = vld [vmem:[#allocation2 + $0xf1] sm:$0xff] }
 0x265   : > { %14350 = vmatmul.mubr.msk.f32.gmra.mrb[30].mxu0 %vm353_vm1, %v5296_v55  ;;  %v6063_v55 = vld [vmem:[#allocation2 + $0xf9] sm:$0xff] }
 0x266   : > { %14354 = vmatprep.mubr.msk.f32.mxu0 %vm353_vm1, %v5656_v60  ;;  %v6064_v60 = vld [vmem:[#allocation2 + $0x109] sm:$0xff] }
 0x269   : > { %14355 = vmatmul.mubr.msk.f32.vlgmr.msra.gmra.mrb[0].mxu0 %vm353_vm1, %v5657_v56  ;;  %v6065_v56 = vld [vmem:[#allocation2 + $0x111] sm:$0xff] }
 0x26a   : > { %14403 = vmatpush3.msk.msra.mxu0 %vm811_vm0, %v17341_v11  ;;  %14357 = vmatprep.mubr.msk.f32.mxu0 %vm353_vm1, %v5658_v57  ;;  %v5677_v11 = vld [vmem:[#allocation3 + $0x128] sm:$0xff]  ;;  %v6066_v57 = vld [vmem:[#allocation2 + $0x121] sm:$0xff] }
 0x26b   : > { %14452 = vmatprep.subr.msk.mxu0 %vm811_vm0, %v17412_v59 }
 0x26d   : > { %14358 = vmatmul.mubr.msk.f32.gmra.mrb[2].mxu0 %vm353_vm1, %v5659_v0  ;;  %v6068_v0 = vld [vmem:[#allocation2 + $0x139] sm:$0xff] }
 0x26e   : > { %14360 = vmatprep.mubr.msk.f32.mxu0 %vm353_vm1, %v5660_v2  ;;  %v6069_v2 = vld [vmem:[#allocation2 + $0x141] sm:$0xff] }
 0x271   : > { %14361 = vmatmul.mubr.msk.f32.gmra.mrb[4].mxu0 %vm353_vm1, %v5661_v3  ;;  %v6070_v3 = vld [vmem:[#allocation2 + $0x151] sm:$0xff] }
 0x272   : > { %14363 = vmatprep.mubr.msk.f32.mxu0 %vm353_vm1, %v5662_v4  ;;  %v6071_v4 = vld [vmem:[#allocation2 + $0x159] sm:$0xff] }
 0x275   : > { %14364 = vmatmul.mubr.msk.f32.gmra.mrb[6].mxu0 %vm353_vm1, %v5663_v7  ;;  %v6072_v7 = vld [vmem:[#allocation2 + $0x169] sm:$0xff] }
 0x276   : > { %14366 = vmatprep.mubr.msk.f32.mxu0 %vm353_vm1, %v5664_v8 }
 0x279   : > { %14367 = vmatmul.mubr.msk.f32.gmra.mrb[8].mxu0 %vm353_vm1, %v5665_v17  ;;  %v6073_v17 = vld [vmem:[#allocation2 + $0x171] sm:$0xff] }
 0x27a   : > { %14369 = vmatprep.mubr.msk.f32.mxu0 %vm353_vm1, %v5666_v18 }
 0x27d   : > { %14370 = vmatmul.mubr.msk.f32.gmra.mrb[10].mxu0 %vm353_vm1, %v5667_v20  ;;  %v6074_v20 = vld [vmem:[#allocation2 + $0x181] sm:$0xff] }
 0x27e   : > { %14372 = vmatprep.mubr.msk.f32.mxu0 %vm353_vm1, %v5668_v52 }
 0x281   : > { %14373 = vmatmul.mubr.msk.f32.gmra.mrb[12].mxu0 %vm353_vm1, %v5669_v22  ;;  %v6075_v22 = vld [vmem:[#allocation2 + $0x189] sm:$0xff] }
 0x282   : > { %14375 = vmatprep.mubr.msk.f32.mxu0 %vm353_vm1, %v5670_v61 }
 0x285   : > { %14376 = vmatmul.mubr.msk.f32.gmra.mrb[14].mxu0 %vm353_vm1, %v5671_v26  ;;  %v6076_v26 = vld [vmem:[#allocation2 + $0x199] sm:$0xff] }
 0x286   : > { %14378 = vmatprep.mubr.msk.f32.mxu0 %vm353_vm1, %v5672_v30 }
 0x289   : > { %14379 = vmatmul.mubr.msk.f32.gmra.mrb[16].mxu0 %vm353_vm1, %v5673_v21  ;;  %v6077_v21 = vld [vmem:[#allocation2 + $0x1a1] sm:$0xff] }
 0x28a   : > { %14381 = vmatprep.mubr.msk.f32.mxu0 %vm353_vm1, %v5674_v48 }
 0x28d   : > { %14382 = vmatmul.mubr.msk.f32.gmra.mrb[18].mxu0 %vm353_vm1, %v5675_v49  ;;  %v6436_v49 = vld [vmem:[#allocation3 + $0x31] sm:$0xff] }
 0x28e   : > { %14384 = vmatprep.mubr.msk.f32.mxu0 %vm353_vm1, %v5676_v10 }
 0x291   : > { %14385 = vmatmul.mubr.msk.f32.gmra.mrb[20].mxu0 %vm353_vm1, %v5677_v11  ;;  %v6437_v11 = vld [vmem:[#allocation3 + $0x39] sm:$0xff] }
 0x292   : > { %14387 = vmatprep.mubr.msk.f32.mxu0 %vm353_vm1, %v5678_v29 }
 0x295   : > { %14388 = vmatmul.mubr.msk.f32.gmra.mrb[22].mxu0 %vm353_vm1, %v5679_v50  ;;  %v6438_v50 = vld [vmem:[#allocation3 + $0x49] sm:$0xff] }
 0x296   : > { %14390 = vmatprep.mubr.msk.f32.mxu0 %vm353_vm1, %v5680_v31  ;;  %v17510_v31 = vld [vmem:[%s19380_s3 + $0x20] sm:$0xf] }
 0x299   : > { %14391 = vmatmul.mubr.msk.f32.gmra.mrb[24].mxu0 %vm353_vm1, %v5681_v32 }
 0x29a   : > { %14393 = vmatprep.mubr.msk.f32.mxu0 %vm353_vm1, %v5682_v33  ;;  %v6439_v33 = vld [vmem:[#allocation3 + $0x51] sm:$0xff] }
 0x29d   : > { %14394 = vmatmul.mubr.msk.f32.gmra.mrb[26].mxu0 %vm353_vm1, %v5683_v51 }
 0x29e   : > { %14396 = vmatprep.mubr.msk.f32.mxu0 %vm353_vm1, %v5684_v34  ;;  %v6440_v34 = vld [vmem:[#allocation3 + $0x61] sm:$0xff] }
 0x2a1   : > { %14397 = vmatmul.mubr.msk.f32.gmra.mrb[28].mxu0 %vm353_vm1, %v5685_v35 }
 0x2a2   : > { %14399 = vmatprep.mubr.msk.f32.mxu0 %vm353_vm1, %v5686_v36  ;;  %v6441_v36 = vld [vmem:[#allocation3 + $0x69] sm:$0xff] }
 0x2a5   : > { %14400 = vmatmul.mubr.msk.f32.gmra.mrb[30].mxu0 %vm353_vm1, %v5687_v37 }
 0x2a6   : > { %14404 = vmatprep.mubr.msk.f32.mxu0 %vm353_vm1, %v6046_v38  ;;  %v6442_v38 = vld [vmem:[#allocation3 + $0x79] sm:$0xff] }
 0x2a9   : > { %14405 = vmatmul.mubr.msk.f32.vlgmr.msra.gmra.mrb[0].mxu0 %vm353_vm1, %v6047_v39 }
 0x2aa   : > { %14453 = vmatpush3.msk.msra.mxu0 %vm811_vm0, %v17412_v59  ;;  %14407 = vmatprep.mubr.msk.f32.mxu0 %vm353_vm1, %v6048_v40  ;;  %v6067_v59 = vld [vmem:[#allocation2 + $0x129] sm:$0xff]  ;;  %v17484_v8 = vpop.f32.mrb[0].mxu1  ;;  %v6443_v40 = vld [vmem:[#allocation3 + $0x81] sm:$0xff] }
 0x2ab   : > { %14502 = vmatprep.subr.msk.mxu0 %vm811_vm0, %v17453_v41  ;;  %v17487_v18 = vpop.f32.mrb[1].mxu1 }
 0x2ad   : > { %14408 = vmatmul.mubr.msk.f32.gmra.mrb[2].mxu0 %vm353_vm1, %v6049_v42  ;;  %v6444_v42 = vld [vmem:[#allocation3 + $0x91] sm:$0xff] }
 0x2ae   : > { %14410 = vmatprep.mubr.msk.f32.mxu0 %vm353_vm1, %v6050_v6  ;;  %v17490_v52 = vpop.f32.mrb[2].mxu1 }
 0x2af   : > { %v17493_v61 = vpop.f32.mrb[3].mxu1 }
 0x2b1   : > { %14411 = vmatmul.mubr.msk.f32.gmra.mrb[4].mxu0 %vm353_vm1, %v6051_v43  ;;  %v6445_v43 = vld [vmem:[#allocation3 + $0x99] sm:$0xff] }
 0x2b2   : > { %14413 = vmatprep.mubr.msk.f32.mxu0 %vm353_vm1, %v6052_v27  ;;  %v17496_v30 = vpop.f32.mrb[4].mxu1 }
 0x2b3   : > { %v17499_v48 = vpop.f32.mrb[5].mxu1 }
 0x2b5   : > { %14414 = vmatmul.mubr.msk.f32.gmra.mrb[6].mxu0 %vm353_vm1, %v6053_v44  ;;  %v6446_v44 = vld [vmem:[#allocation3 + $0xa9] sm:$0xff] }
 0x2b6   : > { %14416 = vmatprep.mubr.msk.f32.mxu0 %vm353_vm1, %v6054_v12  ;;  %v17502_v10 = vpop.f32.mrb[6].mxu1  ;;  %v6447_v12 = vld [vmem:[#allocation3 + $0xb1] sm:$0xff] }
 0x2b7   : > { %v17505_v29 = vpop.f32.mrb[7].mxu1 }
 0x2b9   : > { %14417 = vmatmul.mubr.msk.f32.gmra.mrb[8].mxu0 %vm353_vm1, %v6055_v45  ;;  %v6448_v45 = vld [vmem:[#allocation3 + $0xc1] sm:$0xff] }
 0x2ba   : > { %14419 = vmatprep.mubr.msk.f32.mxu0 %vm353_vm1, %v6056_v58  ;;  %v17513_v32 = vpop.f32.mrb[8].mxu1 }
 0x2bb   : > { %v17518_v51 = vpop.f32.mrb[9].mxu1 }
 0x2bd   : > { %14420 = vmatmul.mubr.msk.f32.gmra.mrb[10].mxu0 %vm353_vm1, %v6057_v13 }
 0x2be   : > { %14422 = vmatprep.mubr.msk.f32.mxu0 %vm353_vm1, %v6058_v63  ;;  %v17523_v35 = vpop.f32.mrb[10].mxu1  ;;  %v6449_v63 = vld [vmem:[#allocation3 + $0xc9] sm:$0xff] }
 0x2bf   : > { %v17526_v37 = vpop.f32.mrb[11].mxu1 }
 0x2c1   : > { %14423 = vmatmul.mubr.msk.f32.gmra.mrb[12].mxu0 %vm353_vm1, %v6059_v14  ;;  %v6450_v14 = vld [vmem:[#allocation3 + $0xd9] sm:$0xff] }
 0x2c2   : > { %14425 = vmatprep.mubr.msk.f32.mxu0 %vm353_vm1, %v6060_v53  ;;  %v17529_v39 = vpop.f32.mrb[12].mxu1 }
 0x2c5   : > { %14426 = vmatmul.mubr.msk.f32.gmra.mrb[14].mxu0 %vm353_vm1, %v6061_v54 }
 0x2c6   : > { %14428 = vmatprep.mubr.msk.f32.mxu0 %vm353_vm1, %v6062_v1  ;;  %v6451_v1 = vld [vmem:[#allocation3 + $0xe1] sm:$0xff] }
 0x2c9   : > { %14429 = vmatmul.mubr.msk.f32.gmra.mrb[16].mxu0 %vm353_vm1, %v6063_v55 }
 0x2ca   : > { %14431 = vmatprep.mubr.msk.f32.mxu0 %vm353_vm1, %v6064_v60 }
 0x2cd   : > { %14432 = vmatmul.mubr.msk.f32.gmra.mrb[18].mxu0 %vm353_vm1, %v6065_v56 }
 0x2ce   : > { %14434 = vmatprep.mubr.msk.f32.mxu0 %vm353_vm1, %v6066_v57 }
 0x2d1   : > { %14435 = vmatmul.mubr.msk.f32.gmra.mrb[20].mxu0 %vm353_vm1, %v6067_v59 }
 0x2d2   : > { %14437 = vmatprep.mubr.msk.f32.mxu0 %vm353_vm1, %v6068_v0 }
 0x2d5   : > { %14438 = vmatmul.mubr.msk.f32.gmra.mrb[22].mxu0 %vm353_vm1, %v6069_v2 }
 0x2d6   : > { %14440 = vmatprep.mubr.msk.f32.mxu0 %vm353_vm1, %v6070_v3  ;;  %v6826_v3 = vld [vmem:[#allocation2 + $0x32] sm:$0xff] }
 0x2d9   : > { %14441 = vmatmul.mubr.msk.f32.gmra.mrb[24].mxu0 %vm353_vm1, %v6071_v4  ;;  %v6829_v4 = vld [vmem:[#allocation2 + $0x52] sm:$0xff] }
 0x2da   : > { %14443 = vmatprep.mubr.msk.f32.mxu0 %vm353_vm1, %v6072_v7  ;;  %v6830_v7 = vld [vmem:[#allocation2 + $0x62] sm:$0xff] }
 0x2dd   : > { %14444 = vmatmul.mubr.msk.f32.gmra.mrb[26].mxu0 %vm353_vm1, %v6073_v17  ;;  %v6831_v17 = vld [vmem:[#allocation2 + $0x6a] sm:$0xff] }
 0x2de   : > { %14446 = vmatprep.mubr.msk.f32.mxu0 %vm353_vm1, %v6074_v20  ;;  %v6832_v20 = vld [vmem:[#allocation2 + $0x7a] sm:$0xff] }
 0x2e1   : > { %14447 = vmatmul.mubr.msk.f32.gmra.mrb[28].mxu0 %vm353_vm1, %v6075_v22  ;;  %v6833_v22 = vld [vmem:[#allocation2 + $0x82] sm:$0xff] }
 0x2e2   : > { %14449 = vmatprep.mubr.msk.f32.mxu0 %vm353_vm1, %v6076_v26  ;;  %v6834_v26 = vld [vmem:[#allocation2 + $0x92] sm:$0xff] }
 0x2e5   : > { %14450 = vmatmul.mubr.msk.f32.gmra.mrb[30].mxu0 %vm353_vm1, %v6077_v21  ;;  %v6835_v21 = vld [vmem:[#allocation2 + $0x9a] sm:$0xff] }
 0x2e6   : > { %14454 = vmatprep.mubr.msk.f32.mxu0 %vm353_vm1, %v6436_v49  ;;  %v6836_v49 = vld [vmem:[#allocation2 + $0xaa] sm:$0xff] }
 0x2e9   : > { %14455 = vmatmul.mubr.msk.f32.vlgmr.msra.gmra.mrb[0].mxu0 %vm353_vm1, %v6437_v11  ;;  %v6837_v11 = vld [vmem:[#allocation2 + $0xb2] sm:$0xff] }
 0x2ea   : > { %14503 = vmatpush3.msk.msra.mxu0 %vm811_vm0, %v17453_v41  ;;  %14457 = vmatprep.mubr.msk.f32.mxu0 %vm353_vm1, %v6438_v50  ;;  %v17532_v41 = vpop.f32.mrb[13].mxu1  ;;  %v6838_v50 = vld [vmem:[#allocation2 + $0xc2] sm:$0xff] }
 0x2eb   : > { %14552 = vmatprep.subr.msk.mxu0 %vm811_vm0, %v17510_v31  ;;  %v17535_v6 = vpop.f32.mrb[14].mxu1 }
 0x2ec   : > { %v17538_v27 = vpop.f32.mrb[15].mxu1 }
 0x2ed   : > { %14458 = vmatmul.mubr.msk.f32.gmra.mrb[2].mxu0 %vm353_vm1, %v6439_v33  ;;  %v17542_v58 = vpop.f32.mrb[16].mxu1  ;;  %v6840_v33 = vld [vmem:[#allocation2 + $0xda] sm:$0xff] }
 0x2ee   : > { %14460 = vmatprep.mubr.msk.f32.mxu0 %vm353_vm1, %v6440_v34  ;;  %v17544_v13 = vpop.f32.mrb[17].mxu1  ;;  %v6841_v34 = vld [vmem:[#allocation2 + $0xe2] sm:$0xff] }
 0x2ef   : > { %v17548_v53 = vpop.f32.mrb[18].mxu1 }
 0x2f0   : > { %v17550_v54 = vpop.f32.mrb[19].mxu1 }
 0x2f1   : > { %14461 = vmatmul.mubr.msk.f32.gmra.mrb[4].mxu0 %vm353_vm1, %v6441_v36  ;;  %v6842_v36 = vld [vmem:[#allocation2 + $0xf2] sm:$0xff] }
 0x2f2   : > { %14463 = vmatprep.mubr.msk.f32.mxu0 %vm353_vm1, %v6442_v38  ;;  %v17554_v55 = vpop.f32.mrb[20].mxu1  ;;  %v6843_v38 = vld [vmem:[#allocation2 + $0xfa] sm:$0xff] }
 0x2f3   : > { %v17556_v60 = vpop.f32.mrb[21].mxu1 }
 0x2f5   : > { %14464 = vmatmul.mubr.msk.f32.gmra.mrb[6].mxu0 %vm353_vm1, %v6443_v40  ;;  %v6844_v40 = vld [vmem:[#allocation2 + $0x10a] sm:$0xff] }
 0x2f6   : > { %14466 = vmatprep.mubr.msk.f32.mxu0 %vm353_vm1, %v6444_v42  ;;  %v17561_v56 = vpop.f32.mrb[22].mxu1  ;;  %v6845_v42 = vld [vmem:[#allocation2 + $0x112] sm:$0xff] }
 0x2f7   : > { %v17563_v57 = vpop.f32.mrb[23].mxu1 }
 0x2f9   : > { %14467 = vmatmul.mubr.msk.f32.gmra.mrb[8].mxu0 %vm353_vm1, %v6445_v43  ;;  %v6846_v43 = vld [vmem:[#allocation2 + $0x122] sm:$0xff] }
 0x2fa   : > { %14469 = vmatprep.mubr.msk.f32.mxu0 %vm353_vm1, %v6446_v44  ;;  %v17569_v59 = vpop.f32.mrb[24].mxu1  ;;  %v6847_v44 = vld [vmem:[#allocation2 + $0x12a] sm:$0xff] }
 0x2fb   : > { %v17571_v0 = vpop.f32.mrb[25].mxu1 }
 0x2fd   : > { %14470 = vmatmul.mubr.msk.f32.gmra.mrb[10].mxu0 %vm353_vm1, %v6447_v12  ;;  %v6848_v12 = vld [vmem:[#allocation2 + $0x13a] sm:$0xff] }
 0x2fe   : > { %14472 = vmatprep.mubr.msk.f32.mxu0 %vm353_vm1, %v6448_v45  ;;  %v6849_v45 = vld [vmem:[#allocation2 + $0x142] sm:$0xff] }
 0x301   : > { %14473 = vmatmul.mubr.msk.f32.gmra.mrb[12].mxu0 %vm353_vm1, %v6449_v63  ;;  %v6850_v63 = vld [vmem:[#allocation2 + $0x152] sm:$0xff] }
 0x302   : > { %14475 = vmatprep.mubr.msk.f32.mxu0 %vm353_vm1, %v6450_v14  ;;  %v6851_v14 = vld [vmem:[#allocation2 + $0x15a] sm:$0xff] }
 0x305   : > { %14476 = vmatmul.mubr.msk.f32.gmra.mrb[14].mxu0 %vm353_vm1, %v6451_v1  ;;  %v6852_v1 = vld [vmem:[#allocation2 + $0x16a] sm:$0xff] }
 0x306   : > { %14478 = vmatprep.mubr.msk.f32.mxu0 %vm353_vm1, %v17275_v5  ;;  %v17577_v5 = vpop.f32.mrb[26].mxu1 }
 0x307   : > { %v17579_v2 = vpop.f32.mrb[27].mxu1 }
 0x309   : > { %14479 = vmatmul.mubr.msk.f32.gmra.mrb[16].mxu0 %vm353_vm1, %v17277_v15  ;;  %v17585_v15 = vpop.f32.mrb[28].mxu1 }
 0x30a   : > { %14481 = vmatprep.mubr.msk.f32.mxu0 %vm353_vm1, %v17285_v16  ;;  %v17587_v16 = vpop.f32.mrb[29].mxu1 }
 0x30d   : > { %14482 = vmatmul.mubr.msk.f32.gmra.mrb[18].mxu0 %vm353_vm1, %v17287_v9  ;;  %v17593_v9 = vpop.f32.mrb[30].mxu1 }
 0x30e   : > { %14484 = vmatprep.mubr.msk.f32.mxu0 %vm353_vm1, %v17295_v19  ;;  %v17595_v19 = vpop.f32.mrb[31].mxu1 }
 0x311   : > { %14485 = vmatmul.mubr.msk.f32.gmra.mrb[20].mxu0 %vm353_vm1, %v17297_v28  ;;  %v6464_v28 = vld [vmem:[#allocation3 + $0x181] sm:$0xff] }
 0x312   : > { %14487 = vmatprep.mubr.msk.f32.mxu0 %vm353_vm1, %v17305_v62  ;;  %v6465_v62 = vld [vmem:[#allocation3 + $0x189] sm:$0xff] }
 0x315   : > { %14488 = vmatmul.mubr.msk.f32.gmra.mrb[22].mxu0 %vm353_vm1, %v17307_v23  ;;  %v6466_v23 = vld [vmem:[#allocation3 + $0x199] sm:$0xff] }
 0x316   : > { %14490 = vmatprep.mubr.msk.f32.mxu0 %vm353_vm1, %v17315_v25  ;;  %v6467_v25 = vld [vmem:[#allocation3 + $0x1a1] sm:$0xff] }
 0x319   : > { %14491 = vmatmul.mubr.msk.f32.gmra.mrb[24].mxu0 %vm353_vm1, %v17317_v24  ;;  %v6827_v24 = vld [vmem:[#allocation2 + $0x3a] sm:$0xff] }
 0x31a   : > { %14493 = vmatprep.mubr.msk.f32.mxu0 %vm353_vm1, %v17325_v46  ;;  %v19481_v46 = vmov 0.0  }
 0x31b   : > { %469 = vst.msk [vmem:[#allocation4 + $0x20] sm:$0xff] %vm463_vm3, %v19481_v46  ;;  %464 = vst.msk [vmem:[#allocation4] sm:$0xff] %vm463_vm3, %v19481_v46 }
 0x31c   : > { %470 = vst.msk [vmem:[#allocation4 + $0x28] sm:$0x3] %vm466_vm4, %v19481_v46  ;;  %467 = vst.msk [vmem:[#allocation4 + $0x10] sm:$0x3] %vm466_vm4, %v19481_v46 }
 0x31d   : > { %14494 = vmatmul.mubr.msk.f32.gmra.mrb[26].mxu0 %vm353_vm1, %v17327_v47  ;;  %465 = vst.msk [vmem:[#allocation4 + $0x8] sm:$0xff] %vm463_vm3, %v19481_v46  ;;  %468 = vst.msk [vmem:[#allocation4 + $0x18] sm:$0xff] %vm463_vm3, %v19481_v46  ;;  %v6828_v47 = vld [vmem:[#allocation2 + $0x4a] sm:$0xff] }
 0x31e   : > { %14496 = vmatprep.mubr.msk.f32.mxu0 %vm353_vm1, %v6464_v28  ;;  %471 = vst.msk [vmem:[#allocation4 + $0x30] sm:$0xff] %vm463_vm3, %v19481_v46  ;;  %472 = vst.msk [vmem:[#allocation4 + $0x38] sm:$0xff] %vm463_vm3, %v19481_v46  ;;  %v6853_v28 = vld [vmem:[#allocation2 + $0x172] sm:$0xff] }
 0x31f   : > { %473 = vst.msk [vmem:[#allocation4 + $0x40] sm:$0x3] %vm466_vm4, %v19481_v46  ;;  %476 = vst.msk [vmem:[#allocation4 + $0x58] sm:$0x3] %vm466_vm4, %v19481_v46 }
 0x320   : > { %474 = vst.msk [vmem:[#allocation4 + $0x48] sm:$0xff] %vm463_vm3, %v19481_v46  ;;  %475 = vst.msk [vmem:[#allocation4 + $0x50] sm:$0xff] %vm463_vm3, %v19481_v46 }
 0x321   : > { %14497 = vmatmul.mubr.msk.f32.gmra.mrb[28].mxu0 %vm353_vm1, %v6465_v62  ;;  %477 = vst.msk [vmem:[#allocation4 + $0x60] sm:$0xff] %vm463_vm3, %v19481_v46  ;;  %478 = vst.msk [vmem:[#allocation4 + $0x68] sm:$0xff] %vm463_vm3, %v19481_v46  ;;  %v6854_v62 = vld [vmem:[#allocation2 + $0x182] sm:$0xff] }
 0x322   : > { %14499 = vmatprep.mubr.msk.f32.mxu0 %vm353_vm1, %v6466_v23  ;;  %479 = vst.msk [vmem:[#allocation4 + $0x70] sm:$0x3] %vm466_vm4, %v19481_v46  ;;  %482 = vst.msk [vmem:[#allocation4 + $0x88] sm:$0x3] %vm466_vm4, %v19481_v46  ;;  %v6855_v23 = vld [vmem:[#allocation2 + $0x18a] sm:$0xff] }
 0x323   : > { %480 = vst.msk [vmem:[#allocation4 + $0x78] sm:$0xff] %vm463_vm3, %v19481_v46  ;;  %481 = vst.msk [vmem:[#allocation4 + $0x80] sm:$0xff] %vm463_vm3, %v19481_v46 }
 0x324   : > { %483 = vst.msk [vmem:[#allocation4 + $0x90] sm:$0xff] %vm463_vm3, %v19481_v46  ;;  %484 = vst.msk [vmem:[#allocation4 + $0x98] sm:$0xff] %vm463_vm3, %v19481_v46 }
 0x325   : > { %14500 = vmatmul.mubr.msk.f32.gmra.mrb[30].mxu0 %vm353_vm1, %v6467_v25  ;;  %485 = vst.msk [vmem:[#allocation4 + $0xa0] sm:$0x3] %vm466_vm4, %v19481_v46  ;;  %488 = vst.msk [vmem:[#allocation4 + $0xb8] sm:$0x3] %vm466_vm4, %v19481_v46  ;;  %v6856_v25 = vld [vmem:[#allocation2 + $0x19a] sm:$0xff] }
 0x326   : > { %14504 = vmatprep.mubr.msk.f32.mxu0 %vm353_vm1, %v6826_v3  ;;  %486 = vst.msk [vmem:[#allocation4 + $0xa8] sm:$0xff] %vm463_vm3, %v19481_v46  ;;  %487 = vst.msk [vmem:[#allocation4 + $0xb0] sm:$0xff] %vm463_vm3, %v19481_v46  ;;  %v6857_v3 = vld [vmem:[#allocation2 + $0x1a2] sm:$0xff] }
 0x327   : > { %489 = vst.msk [vmem:[#allocation4 + $0xc0] sm:$0xff] %vm463_vm3, %v19481_v46  ;;  %490 = vst.msk [vmem:[#allocation4 + $0xc8] sm:$0xff] %vm463_vm3, %v19481_v46 }
 0x328   : > { %491 = vst.msk [vmem:[#allocation4 + $0xd0] sm:$0x3] %vm466_vm4, %v19481_v46  ;;  %494 = vst.msk [vmem:[#allocation4 + $0xe8] sm:$0x3] %vm466_vm4, %v19481_v46 }
 0x329   : > { %492 = vst.msk [vmem:[#allocation4 + $0xd8] sm:$0xff] %vm463_vm3, %v19481_v46  ;;  %493 = vst.msk [vmem:[#allocation4 + $0xe0] sm:$0xff] %vm463_vm3, %v19481_v46  ;;  %14505 = vmatmul.mubr.msk.f32.vlgmr.msra.gmra.mrb[0].mxu0 %vm353_vm1, %v6827_v24  ;;  %v7216_v24 = vld [vmem:[#allocation3 + $0x32] sm:$0xff] }
 0x32a   : > { %495 = vst.msk [vmem:[#allocation4 + $0xf0] sm:$0xff] %vm463_vm3, %v19481_v46  ;;  %496 = vst.msk [vmem:[#allocation4 + $0xf8] sm:$0xff] %vm463_vm3, %v19481_v46  ;;  %14553 = vmatpush3.msk.msra.mxu0 %vm811_vm0, %v17510_v31  ;;  %14507 = vmatprep.mubr.msk.f32.mxu0 %vm353_vm1, %v6828_v47  ;;  %v6839_v31 = vld [vmem:[#allocation2 + $0xca] sm:$0xff]  ;;  %v7218_v47 = vld [vmem:[#allocation3 + $0x4a] sm:$0xff] }
 0x32b   : > { %497 = vst.msk [vmem:[#allocation4 + $0x100] sm:$0x3] %vm466_vm4, %v19481_v46  ;;  %500 = vst.msk [vmem:[#allocation4 + $0x118] sm:$0x3] %vm466_vm4, %v19481_v46 }
 0x32c   : > { %498 = vst.msk [vmem:[#allocation4 + $0x108] sm:$0xff] %vm463_vm3, %v19481_v46  ;;  %499 = vst.msk [vmem:[#allocation4 + $0x110] sm:$0xff] %vm463_vm3, %v19481_v46 }
 0x32d   : > { %501 = vst.msk [vmem:[#allocation4 + $0x120] sm:$0xff] %vm463_vm3, %v19481_v46  ;;  %502 = vst.msk [vmem:[#allocation4 + $0x128] sm:$0xff] %vm463_vm3, %v19481_v46  ;;  %14508 = vmatmul.mubr.msk.f32.gmra.mrb[2].mxu0 %vm353_vm1, %v6829_v4  ;;  %v7219_v4 = vld [vmem:[#allocation3 + $0x52] sm:$0xff] }
 0x32e   : > { %503 = vst.msk [vmem:[#allocation4 + $0x130] sm:$0x3] %vm466_vm4, %v19481_v46  ;;  %506 = vst.msk [vmem:[#allocation4 + $0x148] sm:$0x3] %vm466_vm4, %v19481_v46  ;;  %14510 = vmatprep.mubr.msk.f32.mxu0 %vm353_vm1, %v6830_v7  ;;  %v7220_v7 = vld [vmem:[#allocation3 + $0x62] sm:$0xff] }
 0x32f   : > { %504 = vst.msk [vmem:[#allocation4 + $0x138] sm:$0xff] %vm463_vm3, %v19481_v46  ;;  %505 = vst.msk [vmem:[#allocation4 + $0x140] sm:$0xff] %vm463_vm3, %v19481_v46 }
 0x330   : > { %507 = vst.msk [vmem:[#allocation4 + $0x150] sm:$0xff] %vm463_vm3, %v19481_v46  ;;  %508 = vst.msk [vmem:[#allocation4 + $0x158] sm:$0xff] %vm463_vm3, %v19481_v46 }
 0x331   : > { %509 = vst.msk [vmem:[#allocation4 + $0x160] sm:$0x3] %vm466_vm4, %v19481_v46  ;;  %512 = vst.msk [vmem:[#allocation4 + $0x178] sm:$0x3] %vm466_vm4, %v19481_v46  ;;  %14511 = vmatmul.mubr.msk.f32.gmra.mrb[4].mxu0 %vm353_vm1, %v6831_v17  ;;  %v7221_v17 = vld [vmem:[#allocation3 + $0x6a] sm:$0xff] }
 0x332   : > { %510 = vst.msk [vmem:[#allocation4 + $0x168] sm:$0xff] %vm463_vm3, %v19481_v46  ;;  %511 = vst.msk [vmem:[#allocation4 + $0x170] sm:$0xff] %vm463_vm3, %v19481_v46  ;;  %14513 = vmatprep.mubr.msk.f32.mxu0 %vm353_vm1, %v6832_v20  ;;  %v7222_v20 = vld [vmem:[#allocation3 + $0x7a] sm:$0xff] }
 0x333   : > { %513 = vst.msk [vmem:[#allocation4 + $0x180] sm:$0xff] %vm463_vm3, %v19481_v46  ;;  %514 = vst.msk [vmem:[#allocation4 + $0x188] sm:$0xff] %vm463_vm3, %v19481_v46 }
 0x334   : > { %515 = vst.msk [vmem:[#allocation4 + $0x190] sm:$0x3] %vm466_vm4, %v19481_v46  ;;  %518 = vst.msk [vmem:[#allocation4 + $0x1a8] sm:$0x3] %vm466_vm4, %v19481_v46 }
 0x335   : > { %516 = vst.msk [vmem:[#allocation4 + $0x198] sm:$0xff] %vm463_vm3, %v19481_v46  ;;  %517 = vst.msk [vmem:[#allocation4 + $0x1a0] sm:$0xff] %vm463_vm3, %v19481_v46  ;;  %14514 = vmatmul.mubr.msk.f32.gmra.mrb[6].mxu0 %vm353_vm1, %v6833_v22  ;;  %v7217_v46 = vld [vmem:[#allocation3 + $0x3a] sm:$0xff]  ;;  %v7223_v22 = vld [vmem:[#allocation3 + $0x82] sm:$0xff] }
 0x336   : > { %14516 = vmatprep.mubr.msk.f32.mxu0 %vm353_vm1, %v6834_v26  ;;  %v7224_v26 = vld [vmem:[#allocation3 + $0x92] sm:$0xff] }
 0x339   : > { %14517 = vmatmul.mubr.msk.f32.gmra.mrb[8].mxu0 %vm353_vm1, %v6835_v21  ;;  %v7225_v21 = vld [vmem:[#allocation3 + $0x9a] sm:$0xff] }
 0x33a   : > { %14519 = vmatprep.mubr.msk.f32.mxu0 %vm353_vm1, %v6836_v49  ;;  %v7226_v49 = vld [vmem:[#allocation3 + $0xaa] sm:$0xff] }
 0x33d   : > { %14520 = vmatmul.mubr.msk.f32.gmra.mrb[10].mxu0 %vm353_vm1, %v6837_v11  ;;  %v7227_v11 = vld [vmem:[#allocation3 + $0xb2] sm:$0xff] }
 0x33e   : > { %14522 = vmatprep.mubr.msk.f32.mxu0 %vm353_vm1, %v6838_v50  ;;  %v7228_v50 = vld [vmem:[#allocation3 + $0xc2] sm:$0xff] }
 0x341   : > { %14523 = vmatmul.mubr.msk.f32.gmra.mrb[12].mxu0 %vm353_vm1, %v6839_v31  ;;  %v7229_v31 = vld [vmem:[#allocation3 + $0xca] sm:$0xff] }
 0x342   : > { %14525 = vmatprep.mubr.msk.f32.mxu0 %vm353_vm1, %v6840_v33  ;;  %v7230_v33 = vld [vmem:[#allocation3 + $0xda] sm:$0xff] }
 0x345   : > { %14526 = vmatmul.mubr.msk.f32.gmra.mrb[14].mxu0 %vm353_vm1, %v6841_v34  ;;  %v7231_v34 = vld [vmem:[#allocation3 + $0xe2] sm:$0xff] }
 0x346   : > { %14528 = vmatprep.mubr.msk.f32.mxu0 %vm353_vm1, %v6842_v36  ;;  %v7232_v36 = vld [vmem:[#allocation3 + $0xf2] sm:$0xff] }
 0x349   : > { %14529 = vmatmul.mubr.msk.f32.gmra.mrb[16].mxu0 %vm353_vm1, %v6843_v38  ;;  %v7233_v38 = vld [vmem:[#allocation3 + $0xfa] sm:$0xff] }
 0x34a   : > { %14531 = vmatprep.mubr.msk.f32.mxu0 %vm353_vm1, %v6844_v40  ;;  %v7234_v40 = vld [vmem:[#allocation3 + $0x10a] sm:$0xff] }
 0x34d   : > { %14532 = vmatmul.mubr.msk.f32.gmra.mrb[18].mxu0 %vm353_vm1, %v6845_v42  ;;  %v7235_v42 = vld [vmem:[#allocation3 + $0x112] sm:$0xff] }
 0x34e   : > { %14534 = vmatprep.mubr.msk.f32.mxu0 %vm353_vm1, %v6846_v43  ;;  %v7236_v43 = vld [vmem:[#allocation3 + $0x122] sm:$0xff] }
 0x351   : > { %14535 = vmatmul.mubr.msk.f32.gmra.mrb[20].mxu0 %vm353_vm1, %v6847_v44  ;;  %v7237_v44 = vld [vmem:[#allocation3 + $0x12a] sm:$0xff] }
 0x352   : > { %14537 = vmatprep.mubr.msk.f32.mxu0 %vm353_vm1, %v6848_v12  ;;  %v7238_v12 = vld [vmem:[#allocation3 + $0x13a] sm:$0xff] }
 0x355   : > { %14538 = vmatmul.mubr.msk.f32.gmra.mrb[22].mxu0 %vm353_vm1, %v6849_v45  ;;  %v7239_v45 = vld [vmem:[#allocation3 + $0x142] sm:$0xff] }
 0x356   : > { %14540 = vmatprep.mubr.msk.f32.mxu0 %vm353_vm1, %v6850_v63  ;;  %v7240_v63 = vld [vmem:[#allocation3 + $0x152] sm:$0xff] }
 0x359   : > { %14541 = vmatmul.mubr.msk.f32.gmra.mrb[24].mxu0 %vm353_vm1, %v6851_v14  ;;  %v7241_v14 = vld [vmem:[#allocation3 + $0x15a] sm:$0xff] }
 0x35a   : > { %14543 = vmatprep.mubr.msk.f32.mxu0 %vm353_vm1, %v6852_v1  ;;  %v7242_v1 = vld [vmem:[#allocation3 + $0x16a] sm:$0xff] }
 0x35d   : > { %14544 = vmatmul.mubr.msk.f32.gmra.mrb[26].mxu0 %vm353_vm1, %v6853_v28  ;;  %v7243_v28 = vld [vmem:[#allocation3 + $0x172] sm:$0xff] }
 0x35e   : > { %14546 = vmatprep.mubr.msk.f32.mxu0 %vm353_vm1, %v6854_v62  ;;  %v7244_v62 = vld [vmem:[#allocation3 + $0x182] sm:$0xff] }
 0x361   : > { %14547 = vmatmul.mubr.msk.f32.gmra.mrb[28].mxu0 %vm353_vm1, %v6855_v23  ;;  %v7245_v23 = vld [vmem:[#allocation3 + $0x18a] sm:$0xff] }
 0x362   : > { %14549 = vmatprep.mubr.msk.f32.mxu0 %vm353_vm1, %v6856_v25  ;;  %v7246_v25 = vld [vmem:[#allocation3 + $0x19a] sm:$0xff] }
 0x365   : > { %14550 = vmatmul.mubr.msk.f32.gmra.mrb[30].mxu0 %vm353_vm1, %v6857_v3  ;;  %v7247_v3 = vld [vmem:[#allocation3 + $0x1a2] sm:$0xff] }
 0x366   : > { %14554 = vmatprep.mubr.msk.f32.mxu0 %vm353_vm1, %v7216_v24 }
 0x369   : > { %14555 = vmatmul.mubr.msk.f32.vlgmr.msra.gmra.mrb[0].mxu0 %vm353_vm1, %v7217_v46 }
 0x36a   : > { %14557 = vmatprep.mubr.msk.f32.mxu0 %vm353_vm1, %v7218_v47 }
 0x36d   : > { %14558 = vmatmul.mubr.msk.f32.gmra.mrb[2].mxu0 %vm353_vm1, %v7219_v4 }
 0x36e   : > { %14560 = vmatprep.mubr.msk.f32.mxu0 %vm353_vm1, %v7220_v7 }
 0x371   : > { %14561 = vmatmul.mubr.msk.f32.gmra.mrb[4].mxu0 %vm353_vm1, %v7221_v17 }
 0x372   : > { %14563 = vmatprep.mubr.msk.f32.mxu0 %vm353_vm1, %v7222_v20 }
 0x375   : > { %14564 = vmatmul.mubr.msk.f32.gmra.mrb[6].mxu0 %vm353_vm1, %v7223_v22 }
 0x376   : > { %14566 = vmatprep.mubr.msk.f32.mxu0 %vm353_vm1, %v7224_v26 }
 0x379   : > { %14567 = vmatmul.mubr.msk.f32.gmra.mrb[8].mxu0 %vm353_vm1, %v7225_v21 }
 0x37a   : > { %14569 = vmatprep.mubr.msk.f32.mxu0 %vm353_vm1, %v7226_v49 }
 0x37d   : > { %14570 = vmatmul.mubr.msk.f32.gmra.mrb[10].mxu0 %vm353_vm1, %v7227_v11 }
 0x37e   : > { %14572 = vmatprep.mubr.msk.f32.mxu0 %vm353_vm1, %v7228_v50 }
 0x381   : > { %14573 = vmatmul.mubr.msk.f32.gmra.mrb[12].mxu0 %vm353_vm1, %v7229_v31 }
 0x382   : > { %14575 = vmatprep.mubr.msk.f32.mxu0 %vm353_vm1, %v7230_v33 }
 0x385   : > { %14576 = vmatmul.mubr.msk.f32.gmra.mrb[14].mxu0 %vm353_vm1, %v7231_v34 }
 0x386   : > { %14578 = vmatprep.mubr.msk.f32.mxu0 %vm353_vm1, %v7232_v36 }
 0x389   : > { %14579 = vmatmul.mubr.msk.f32.gmra.mrb[16].mxu0 %vm353_vm1, %v7233_v38 }
 0x38a   : > { %14581 = vmatprep.mubr.msk.f32.mxu0 %vm353_vm1, %v7234_v40 }
 0x38d   : > { %14582 = vmatmul.mubr.msk.f32.gmra.mrb[18].mxu0 %vm353_vm1, %v7235_v42 }
 0x38e   : > { %14584 = vmatprep.mubr.msk.f32.mxu0 %vm353_vm1, %v7236_v43 }
 0x391   : > { %14585 = vmatmul.mubr.msk.f32.gmra.mrb[20].mxu0 %vm353_vm1, %v7237_v44 }
 0x392   : > { %14587 = vmatprep.mubr.msk.f32.mxu0 %vm353_vm1, %v7238_v12 }
 0x395   : > { %14588 = vmatmul.mubr.msk.f32.gmra.mrb[22].mxu0 %vm353_vm1, %v7239_v45 }
 0x396   : > { %14590 = vmatprep.mubr.msk.f32.mxu0 %vm353_vm1, %v7240_v63 }
 0x399   : > { %14591 = vmatmul.mubr.msk.f32.gmra.mrb[24].mxu0 %vm353_vm1, %v7241_v14 }
 0x39a   : > { %14593 = vmatprep.mubr.msk.f32.mxu0 %vm353_vm1, %v7242_v1 }
 0x39d   : > { %14594 = vmatmul.mubr.msk.f32.gmra.mrb[26].mxu0 %vm353_vm1, %v7243_v28 }
 0x39e   : > { %14596 = vmatprep.mubr.msk.f32.mxu0 %vm353_vm1, %v7244_v62 }
 0x3a1   : > { %14597 = vmatmul.mubr.msk.f32.gmra.mrb[28].mxu0 %vm353_vm1, %v7245_v23 }
 0x3a2   : > { %14599 = vmatprep.mubr.msk.f32.mxu0 %vm353_vm1, %v7246_v25 }
 0x3a5   : > { %14600 = vmatmul.mubr.msk.f32.gmra.mrb[30].mxu0 %vm353_vm1, %v7247_v3 }
 0x43c   : > { %v14556_v24 = vpop.f32.mrb[0].mxu0 }
 0x43d   : > { %v17782_v46 = vadd.f32 %v14556_v24, %v17484_v8  ;;  %v7415_v47 = vpop.f32.mrb[1].mxu0 }
 0x43e   : > { %v17785_v4 = vadd.f32 %v7415_v47, %v17487_v18 }
 0x43f   : > { %v7682_v7 = vmul.f32 %v17782_v46, %v17782_v46  ;;  %v7607_v17 = vsel %vm463_vm3, %v17782_v46, 0.0 }
 0x440   : > { %v7606_v20 = vsel %vm463_vm3, %v17785_v4, 0.0  ;;  %v7681_v22 = vmul.f32 %v17785_v4, %v17785_v4  ;;  %v14559_v26 = vpop.f32.mrb[2].mxu0 }
 0x441   : > { %v17796_v8 = vadd.f32 %v14559_v26, %v17490_v52  ;;  %v7425_v21 = vpop.f32.mrb[3].mxu0  ;;  %v7714_v18 = vsel %vm463_vm3, %v7682_v7, 0.0  ;;  %v7608_v50 = vadd.f32 %v7607_v17, %v7606_v20 }
 0x442   : > { %v7713_v49 = vsel %vm463_vm3, %v7681_v22, 0.0  ;;  %v17801_v11 = vadd.f32 %v7425_v21, %v17493_v61 }
 0x443   : > { %v7684_v31 = vmul.f32 %v17796_v8, %v17796_v8  ;;  %v7715_v36 = vadd.f32 %v7714_v18, %v7713_v49  ;;  %v7611_v61 = vsel %vm463_vm3, %v17796_v8, 0.0 }
 0x444   : > { %v7609_v33 = vsel %vm463_vm3, %v17801_v11, 0.0  ;;  %v7683_v34 = vmul.f32 %v17801_v11, %v17801_v11  ;;  %v14562_v52 = vpop.f32.mrb[4].mxu0 }
 0x445   : > { %v7610_v38 = vadd.f32 %v7609_v33, %v7608_v50  ;;  %v17810_v40 = vadd.f32 %v14562_v52, %v17496_v30  ;;  %v7435_v42 = vpop.f32.mrb[5].mxu0  ;;  %v7718_v63 = vsel %vm463_vm3, %v7684_v31, 0.0 }
 0x446   : > { %v7716_v43 = vsel %vm463_vm3, %v7683_v34, 0.0  ;;  %v17816_v44 = vadd.f32 %v7435_v42, %v17499_v48 }
 0x447   : > { %v7717_v12 = vadd.f32 %v7716_v43, %v7715_v36  ;;  %v7612_v45 = vadd.f32 %v7611_v61, %v7610_v38  ;;  %v7686_v14 = vmul.f32 %v17810_v40, %v17810_v40  ;;  %v7615_v3 = vsel %vm463_vm3, %v17810_v40, 0.0 }
 0x448   : > { %v7613_v30 = vsel %vm463_vm3, %v17816_v44, 0.0  ;;  %v7685_v1 = vmul.f32 %v17816_v44, %v17816_v44  ;;  %v14565_v28 = vpop.f32.mrb[6].mxu0 }
 0x449   : > { %v7614_v62 = vadd.f32 %v7613_v30, %v7612_v45  ;;  %v7719_v23 = vadd.f32 %v7718_v63, %v7717_v12  ;;  %v17826_v25 = vadd.f32 %v14565_v28, %v17502_v10  ;;  %v7445_v48 = vpop.f32.mrb[7].mxu0  ;;  %v7722_v20 = vsel %vm463_vm3, %v7686_v14, 0.0 }
 0x44a   : > { %v7720_v24 = vsel %vm463_vm3, %v7685_v1, 0.0  ;;  %v17832_v47 = vadd.f32 %v7445_v48, %v17505_v29 }
 0x44b   : > { %v7721_v7 = vadd.f32 %v7720_v24, %v7719_v23  ;;  %v7616_v17 = vadd.f32 %v7615_v3, %v7614_v62  ;;  %v7688_v22 = vmul.f32 %v17826_v25, %v17826_v25  ;;  %v7619_v31 = vsel %vm463_vm3, %v17826_v25, 0.0 }
 0x44c   : > { %v7617_v10 = vsel %vm463_vm3, %v17832_v47, 0.0  ;;  %v7687_v26 = vmul.f32 %v17832_v47, %v17832_v47  ;;  %v14568_v21 = vpop.f32.mrb[8].mxu0 }
 0x44d   : > { %v7618_v18 = vadd.f32 %v7617_v10, %v7616_v17  ;;  %v7723_v49 = vadd.f32 %v7722_v20, %v7721_v7  ;;  %v17842_v50 = vadd.f32 %v14568_v21, %v17513_v32  ;;  %v7455_v29 = vpop.f32.mrb[9].mxu0  ;;  %v7726_v38 = vsel %vm463_vm3, %v7688_v22, 0.0 }
 0x44e   : > { %v7724_v33 = vsel %vm463_vm3, %v7687_v26, 0.0  ;;  %v17848_v34 = vadd.f32 %v7455_v29, %v17518_v51 }
 0x44f   : > { %v7725_v52 = vadd.f32 %v7724_v33, %v7723_v49  ;;  %v7620_v36 = vadd.f32 %v7619_v31, %v7618_v18  ;;  %v7690_v42 = vmul.f32 %v17842_v50, %v17842_v50  ;;  %v7623_v14 = vsel %vm463_vm3, %v17842_v50, 0.0 }
 0x450   : > { %v7621_v32 = vsel %vm463_vm3, %v17848_v34, 0.0  ;;  %v7689_v61 = vmul.f32 %v17848_v34, %v17848_v34  ;;  %v14571_v43 = vpop.f32.mrb[10].mxu0 }
 0x451   : > { %v7622_v12 = vadd.f32 %v7621_v32, %v7620_v36  ;;  %v7727_v45 = vadd.f32 %v7726_v38, %v7725_v52  ;;  %v17858_v63 = vadd.f32 %v14571_v43, %v17523_v35  ;;  %v7465_v51 = vpop.f32.mrb[11].mxu0  ;;  %v7730_v23 = vsel %vm463_vm3, %v7690_v42, 0.0 }
 0x452   : > { %v7728_v30 = vsel %vm463_vm3, %v7689_v61, 0.0  ;;  %v17864_v1 = vadd.f32 %v7465_v51, %v17526_v37 }
 0x453   : > { %v7729_v28 = vadd.f32 %v7728_v30, %v7727_v45  ;;  %v7624_v62 = vadd.f32 %v7623_v14, %v7622_v12  ;;  %v7692_v48 = vmul.f32 %v17858_v63, %v17858_v63  ;;  %v7627_v22 = vsel %vm463_vm3, %v17858_v63, 0.0 }
 0x454   : > { %v7625_v35 = vsel %vm463_vm3, %v17864_v1, 0.0  ;;  %v7691_v3 = vmul.f32 %v17864_v1, %v17864_v1  ;;  %v14574_v24 = vpop.f32.mrb[12].mxu0 }
 0x455   : > { %v7626_v7 = vadd.f32 %v7625_v35, %v7624_v62  ;;  %v7731_v17 = vadd.f32 %v7730_v23, %v7729_v28  ;;  %v17874_v20 = vadd.f32 %v14574_v24, %v17529_v39  ;;  %v7475_v37 = vpop.f32.mrb[13].mxu0  ;;  %v7734_v49 = vsel %vm463_vm3, %v7692_v48, 0.0 }
 0x456   : > { %v7732_v10 = vsel %vm463_vm3, %v7691_v3, 0.0  ;;  %v17880_v26 = vadd.f32 %v7475_v37, %v17532_v41 }
 0x457   : > { %v7733_v21 = vadd.f32 %v7732_v10, %v7731_v17  ;;  %v7628_v18 = vadd.f32 %v7627_v22, %v7626_v7  ;;  %v7694_v29 = vmul.f32 %v17874_v20, %v17874_v20  ;;  %v7631_v42 = vsel %vm463_vm3, %v17874_v20, 0.0 }
 0x458   : > { %v7629_v39 = vsel %vm463_vm3, %v17880_v26, 0.0  ;;  %v7693_v31 = vmul.f32 %v17880_v26, %v17880_v26  ;;  %v14577_v33 = vpop.f32.mrb[14].mxu0 }
 0x459   : > { %v7630_v52 = vadd.f32 %v7629_v39, %v7628_v18  ;;  %v7735_v36 = vadd.f32 %v7734_v49, %v7733_v21  ;;  %v17890_v38 = vadd.f32 %v14577_v33, %v17535_v6  ;;  %v7485_v41 = vpop.f32.mrb[15].mxu0  ;;  %v7738_v45 = vsel %vm463_vm3, %v7694_v29, 0.0 }
 0x45a   : > { %v7736_v32 = vsel %vm463_vm3, %v7693_v31, 0.0  ;;  %v17896_v61 = vadd.f32 %v7485_v41, %v17538_v27 }
 0x45b   : > { %v7737_v43 = vadd.f32 %v7736_v32, %v7735_v36  ;;  %v7632_v12 = vadd.f32 %v7631_v42, %v7630_v52  ;;  %v7696_v51 = vmul.f32 %v17890_v38, %v17890_v38  ;;  %v7635_v48 = vsel %vm463_vm3, %v17890_v38, 0.0 }
 0x45c   : > { %v7633_v6 = vsel %vm463_vm3, %v17896_v61, 0.0  ;;  %v7695_v14 = vmul.f32 %v17896_v61, %v17896_v61  ;;  %v14580_v30 = vpop.f32.mrb[16].mxu0 }
 0x45d   : > { %v7634_v28 = vadd.f32 %v7633_v6, %v7632_v12  ;;  %v7739_v62 = vadd.f32 %v7738_v45, %v7737_v43  ;;  %v17906_v23 = vadd.f32 %v14580_v30, %v17542_v58  ;;  %v7495_v27 = vpop.f32.mrb[17].mxu0  ;;  %v7742_v17 = vsel %vm463_vm3, %v7696_v51, 0.0 }
 0x45e   : > { %v7740_v35 = vsel %vm463_vm3, %v7695_v14, 0.0  ;;  %v17912_v3 = vadd.f32 %v7495_v27, %v17544_v13 }
 0x45f   : > { %v7741_v24 = vadd.f32 %v7740_v35, %v7739_v62  ;;  %v7636_v7 = vadd.f32 %v7635_v48, %v7634_v28  ;;  %v7698_v37 = vmul.f32 %v17906_v23, %v17906_v23  ;;  %v7639_v29 = vsel %vm463_vm3, %v17906_v23, 0.0 }
 0x460   : > { %v7637_v58 = vsel %vm463_vm3, %v17912_v3, 0.0  ;;  %v7697_v22 = vmul.f32 %v17912_v3, %v17912_v3  ;;  %v14583_v10 = vpop.f32.mrb[18].mxu0 }
 0x461   : > { %v7638_v21 = vadd.f32 %v7637_v58, %v7636_v7  ;;  %v7743_v18 = vadd.f32 %v7742_v17, %v7741_v24  ;;  %v17922_v49 = vadd.f32 %v14583_v10, %v17548_v53  ;;  %v7505_v13 = vpop.f32.mrb[19].mxu0  ;;  %v7746_v36 = vsel %vm463_vm3, %v7698_v37, 0.0 }
 0x462   : > { %v7744_v39 = vsel %vm463_vm3, %v7697_v22, 0.0  ;;  %v17928_v31 = vadd.f32 %v7505_v13, %v17550_v54 }
 0x463   : > { %v7745_v33 = vadd.f32 %v7744_v39, %v7743_v18  ;;  %v7640_v52 = vadd.f32 %v7639_v29, %v7638_v21  ;;  %v7700_v41 = vmul.f32 %v17922_v49, %v17922_v49  ;;  %v7643_v51 = vsel %vm463_vm3, %v17922_v49, 0.0 }
 0x464   : > { %v7641_v53 = vsel %vm463_vm3, %v17928_v31, 0.0  ;;  %v7699_v42 = vmul.f32 %v17928_v31, %v17928_v31  ;;  %v14586_v32 = vpop.f32.mrb[20].mxu0 }
 0x465   : > { %v7642_v43 = vadd.f32 %v7641_v53, %v7640_v52  ;;  %v7747_v12 = vadd.f32 %v7746_v36, %v7745_v33  ;;  %v17938_v45 = vadd.f32 %v14586_v32, %v17554_v55  ;;  %v7515_v54 = vpop.f32.mrb[21].mxu0  ;;  %v7750_v62 = vsel %vm463_vm3, %v7700_v41, 0.0 }
 0x466   : > { %v7748_v6 = vsel %vm463_vm3, %v7699_v42, 0.0  ;;  %v17944_v14 = vadd.f32 %v7515_v54, %v17556_v60 }
 0x467   : > { %v7749_v30 = vadd.f32 %v7748_v6, %v7747_v12  ;;  %v7644_v28 = vadd.f32 %v7643_v51, %v7642_v43  ;;  %v7702_v27 = vmul.f32 %v17938_v45, %v17938_v45  ;;  %v7647_v37 = vsel %vm463_vm3, %v17938_v45, 0.0 }
 0x468   : > { %v7645_v55 = vsel %vm463_vm3, %v17944_v14, 0.0  ;;  %v7701_v48 = vmul.f32 %v17944_v14, %v17944_v14  ;;  %v14589_v35 = vpop.f32.mrb[22].mxu0 }
 0x469   : > { %v7646_v24 = vadd.f32 %v7645_v55, %v7644_v28  ;;  %v7751_v7 = vadd.f32 %v7750_v62, %v7749_v30  ;;  %v17954_v17 = vadd.f32 %v14589_v35, %v17561_v56  ;;  %v7525_v60 = vpop.f32.mrb[23].mxu0  ;;  %v7754_v18 = vsel %vm463_vm3, %v7702_v27, 0.0 }
 0x46a   : > { %v7752_v58 = vsel %vm463_vm3, %v7701_v48, 0.0  ;;  %v17960_v22 = vadd.f32 %v7525_v60, %v17563_v57 }
 0x46b   : > { %v7753_v10 = vadd.f32 %v7752_v58, %v7751_v7  ;;  %v7648_v21 = vadd.f32 %v7647_v37, %v7646_v24  ;;  %v7704_v13 = vmul.f32 %v17954_v17, %v17954_v17  ;;  %v7651_v41 = vsel %vm463_vm3, %v17954_v17, 0.0 }
 0x46c   : > { %v7649_v56 = vsel %vm463_vm3, %v17960_v22, 0.0  ;;  %v7703_v29 = vmul.f32 %v17960_v22, %v17960_v22  ;;  %v14592_v39 = vpop.f32.mrb[24].mxu0 }
 0x46d   : > { %v7650_v33 = vadd.f32 %v7649_v56, %v7648_v21  ;;  %v7755_v52 = vadd.f32 %v7754_v18, %v7753_v10  ;;  %v17970_v36 = vadd.f32 %v14592_v39, %v17569_v59  ;;  %v7535_v57 = vpop.f32.mrb[25].mxu0  ;;  %v7758_v12 = vsel %vm463_vm3, %v7704_v13, 0.0 }
 0x46e   : > { %v7756_v53 = vsel %vm463_vm3, %v7703_v29, 0.0  ;;  %v17976_v42 = vadd.f32 %v7535_v57, %v17571_v0 }
 0x46f   : > { %v7757_v32 = vadd.f32 %v7756_v53, %v7755_v52  ;;  %v7652_v43 = vadd.f32 %v7651_v41, %v7650_v33  ;;  %v7706_v54 = vmul.f32 %v17970_v36, %v17970_v36  ;;  %v7655_v27 = vsel %vm463_vm3, %v17970_v36, 0.0 }
 0x470   : > { %v7653_v59 = vsel %vm463_vm3, %v17976_v42, 0.0  ;;  %v7705_v51 = vmul.f32 %v17976_v42, %v17976_v42  ;;  %v14595_v6 = vpop.f32.mrb[26].mxu0 }
 0x471   : > { %v7654_v30 = vadd.f32 %v7653_v59, %v7652_v43  ;;  %v7759_v28 = vadd.f32 %v7758_v12, %v7757_v32  ;;  %v17986_v62 = vadd.f32 %v14595_v6, %v17577_v5  ;;  %v7545_v0 = vpop.f32.mrb[27].mxu0  ;;  %v7762_v7 = vsel %vm463_vm3, %v7706_v54, 0.0 }
 0x472   : > { %v7760_v55 = vsel %vm463_vm3, %v7705_v51, 0.0  ;;  %v17992_v48 = vadd.f32 %v7545_v0, %v17579_v2 }
 0x473   : > { %v7761_v35 = vadd.f32 %v7760_v55, %v7759_v28  ;;  %v7656_v24 = vadd.f32 %v7655_v27, %v7654_v30  ;;  %v7708_v60 = vmul.f32 %v17986_v62, %v17986_v62  ;;  %v7659_v13 = vsel %vm463_vm3, %v17986_v62, 0.0 }
 0x474   : > { %v7657_v5 = vsel %vm463_vm3, %v17992_v48, 0.0  ;;  %v7707_v37 = vmul.f32 %v17992_v48, %v17992_v48  ;;  %v14598_v58 = vpop.f32.mrb[28].mxu0 }
 0x475   : > { %v7658_v10 = vadd.f32 %v7657_v5, %v7656_v24  ;;  %v7763_v21 = vadd.f32 %v7762_v7, %v7761_v35  ;;  %v18002_v18 = vadd.f32 %v14598_v58, %v17585_v15  ;;  %v7555_v2 = vpop.f32.mrb[29].mxu0  ;;  %v7766_v52 = vsel %vm463_vm3, %v7708_v60, 0.0  ;;  %v12508_v58 = vld [vmem:[%s19383_s6 + $0x8] sm:$0xff] }
 0x476   : > { %v7764_v56 = vsel %vm463_vm3, %v7707_v37, 0.0  ;;  %v18008_v29 = vadd.f32 %v7555_v2, %v17587_v16  ;;  %14602 = vmatprep.subr.mxu1 %v12508_v58 }
 0x477   : > { %v7765_v39 = vadd.f32 %v7764_v56, %v7763_v21  ;;  %v7660_v33 = vadd.f32 %v7659_v13, %v7658_v10  ;;  %v7710_v57 = vmul.f32 %v18002_v18, %v18002_v18  ;;  %v7663_v51 = vsel %vm463_vm3, %v18002_v18, 0.0  ;;  %14603 = vmatpush3.msra.mxu1 %v12508_v58 }
 0x478   : > { %v7661_v15 = vsel %vm463_vm3, %v18008_v29, 0.0  ;;  %v7709_v41 = vmul.f32 %v18008_v29, %v18008_v29  ;;  %v14601_v53 = vpop.f32.mrb[30].mxu0 }
 0x479   : > { %v18018_v32 = vadd.f32 %v14601_v53, %v17593_v9  ;;  %v7565_v43 = vpop.f32.mrb[31].mxu0  ;;  %v7662_v16 = vadd.f32 %v7661_v15, %v7660_v33  ;;  %v7767_v12 = vadd.f32 %v7766_v52, %v7765_v39  ;;  %v7770_v0 = vsel %vm463_vm3, %v7710_v57, 0.0 }
 0x47a   : > { %v7768_v54 = vsel %vm463_vm3, %v7709_v41, 0.0  ;;  %v18022_v59 = vadd.f32 %v7565_v43, %v17595_v19 }
 0x47b   : > { %v7664_v6 = vadd.f32 %v7663_v51, %v7662_v16  ;;  %v7769_v30 = vadd.f32 %v7768_v54, %v7767_v12  ;;  %v7667_v35 = vsel %vm463_vm3, %v18018_v32, 0.0  ;;  %v7712_v19 = vmul.f32 %v18018_v32, %v18018_v32  ;;  %v8036_v12 = vld [vmem:[#allocation4 + $0x1] sm:$0xff]  ;;  %v8037_v51 = vld [vmem:[#allocation4 + $0x9] sm:$0xff] }
 0x47c   : > { %v7711_v28 = vmul.f32 %v18022_v59, %v18022_v59  ;;  %v7665_v9 = vsel %vm463_vm3, %v18022_v59, 0.0  ;;  %v8035_v54 = vld [vmem:[%s19383_s6] sm:$0xff]  ;;  %14604 = vmatprep.mubr.msk.f32.mxu1 %vm463_vm3, %v8036_v12 }
 0x47d   : > { %v7666_v27 = vadd.f32 %v7665_v9, %v7664_v6  ;;  %v7771_v55 = vadd.f32 %v7770_v0, %v7769_v30  ;;  %v7774_v5 = vsel %vm463_vm3, %v7712_v19, 0.0  ;;  %14652 = vmatprep.subr.mxu1 %v8035_v54  ;;  %14605 = vmatmul.mubr.msk.f32.vlgmr.msra.gmra.mrb[32].mxu1 %vm463_vm3, %v8037_v51 }
 0x47e   : > { %v7772_v24 = vsel %vm463_vm3, %v7711_v28, 0.0  ;;  %14653 = vmatpush3.msra.mxu1 %v8035_v54  ;;  %v18048_v28 = vld [vmem:[%s19383_s6 + $0x10] sm:$0xff] }
 0x47f   : > { %v7668_v7 = vadd.f32 %v7667_v35, %v7666_v27  ;;  %v7773_v60 = vadd.f32 %v7772_v24, %v7771_v55  ;;  %14702 = vmatprep.subr.mxu1 %v18048_v28 }
 0x481   : > { %7669 = vadd.xlane.f32.xlu0 %v7668_v7  ;;  %v7775_v37 = vadd.f32 %v7774_v5, %v7773_v60 }
 0x485   : > { %7776 = vadd.xlane.f32.xlu0 %v7775_v37 }
 0x50e   : > { %v7670_v10 = vpop.xlane.xlu0 %7669 }
 0x50f   : > { %v7671_v21 = vrot.slane %v7670_v10, 4 }
 0x511   : > { %v7672_v2 = vadd.f32 %v7671_v21, %v7670_v10 }
 0x512   : > { %v7777_v13 = vpop.xlane.xlu0 %7776 }
 0x513   : > { %v7673_v56 = vrot.slane %v7672_v2, 2  ;;  %v7778_v39 = vrot.slane %v7777_v13, 4 }
 0x515   : > { %v7779_v33 = vadd.f32 %v7778_v39, %v7777_v13  ;;  %v7674_v52 = vadd.f32 %v7673_v56, %v7672_v2 }
 0x517   : > { %v7780_v57 = vrot.slane %v7779_v33, 2  ;;  %v7675_v15 = vrot.slane %v7674_v52, 1 }
 0x519   : > { %v7781_v41 = vadd.f32 %v7780_v57, %v7779_v33  ;;  %v7676_v53 = vadd.f32 %v7675_v15, %v7674_v52 }
 0x51b   : > { %15854 = vpush %v7676_v53  ;;  %v7782_v43 = vrot.slane %v7781_v41, 1 }
 0x51d   : > { %v7783_v16 = vadd.f32 %v7782_v43, %v7781_v41  ;;  %v12506_v41 = vld [vmem:[%s19381_s4] ss:$0 sm:$0xff] }
 0x51f   : > { %15856 = vpush %v7783_v16 }
 0x54c   : > { %s15855_s22 = spop %15854 }
 0x54d   : > { %s7680_s23 = smul.f32 0.00048828125, %s15855_s22 }
 0x54f   : > { %s7788_s24 = smul.f32 %s7680_s23, %s7680_s23  ;;  %v18051_v9 = vstv %s7680_s23 }
 0x550   : > { %s15857_s25 = spop %15856  ;;  %v7791_v0 = vsub.f32 %v17785_v4, %v18051_v9  ;;  %v7792_v27 = vsub.f32 %v17782_v46, %v18051_v9  ;;  %v7793_v55 = vsub.f32 %v17801_v11, %v18051_v9  ;;  %v7794_v35 = vsub.f32 %v17796_v8, %v18051_v9 }
 0x551   : > { %s7787_s26 = smul.f32 0.00048828125, %s15857_s25  ;;  %v7795_v19 = vsub.f32 %v17816_v44, %v18051_v9  ;;  %v7796_v24 = vsub.f32 %v17810_v40, %v18051_v9  ;;  %v7797_v7 = vsub.f32 %v17832_v47, %v18051_v9  ;;  %v7798_v4 = vsub.f32 %v17826_v25, %v18051_v9 }
 0x552   : > { %v7799_v46 = vsub.f32 %v17848_v34, %v18051_v9  ;;  %v7800_v11 = vsub.f32 %v17842_v50, %v18051_v9  ;;  %v7801_v8 = vsub.f32 %v17864_v1, %v18051_v9  ;;  %v7802_v44 = vsub.f32 %v17858_v63, %v18051_v9 }
 0x553   : > { %s7789_s27 = ssub.f32 %s7787_s26, %s7788_s24  ;;  %v7803_v40 = vsub.f32 %v17880_v26, %v18051_v9  ;;  %v7804_v47 = vsub.f32 %v17874_v20, %v18051_v9  ;;  %v7805_v25 = vsub.f32 %v17896_v61, %v18051_v9  ;;  %v7806_v34 = vsub.f32 %v17890_v38, %v18051_v9  ;;  %s19288_s24 = scalar_lea.vmem %s19386_s9, %s16192_s15 }
 0x554   : > { %v7807_v50 = vsub.f32 %v17912_v3, %v18051_v9  ;;  %v7808_v1 = vsub.f32 %v17906_v23, %v18051_v9  ;;  %v7809_v63 = vsub.f32 %v17928_v31, %v18051_v9  ;;  %v7810_v26 = vsub.f32 %v17922_v49, %v18051_v9 }
 0x555   : > { %s7823_s28 = sadd.f32 1e-05, %s7789_s27  ;;  %v7811_v20 = vsub.f32 %v17944_v14, %v18051_v9  ;;  %v7812_v61 = vsub.f32 %v17938_v45, %v18051_v9  ;;  %v7813_v38 = vsub.f32 %v17960_v22, %v18051_v9  ;;  %v7814_v3 = vsub.f32 %v17954_v17, %v18051_v9 }
 0x556   : > { %v7815_v23 = vsub.f32 %v17976_v42, %v18051_v9  ;;  %v7816_v31 = vsub.f32 %v17970_v36, %v18051_v9  ;;  %v7817_v49 = vsub.f32 %v17992_v48, %v18051_v9  ;;  %v7818_v14 = vsub.f32 %v17986_v62, %v18051_v9 }
 0x557   : > { %v7824_v6 = vstv %s7823_s28  ;;  %v7819_v45 = vsub.f32 %v18008_v29, %v18051_v9  ;;  %v7820_v22 = vsub.f32 %v18002_v18, %v18051_v9  ;;  %v7821_v17 = vsub.f32 %v18022_v59, %v18051_v9 }
 0x558   : > { %15875 = vrsqrt.f32 %v7824_v6  ;;  %v7822_v42 = vsub.f32 %v18018_v32, %v18051_v9 }
 0x562   : > { %v15876_v30 = vpop.eup %15875 }
 0x563   : > { %15858 = vpush %v15876_v30 }
 0x594   : > { %s15859_s11 = spop %15858 }
 0x595   : > { %v7827_v36 = vstv %s15859_s11 }
 0x596   : > { %v7828_v60 = vmul.f32 %v7827_v36, %v7791_v0  ;;  %v7829_v5 = vmul.f32 %v7827_v36, %v7792_v27  ;;  %v7830_v48 = vmul.f32 %v7827_v36, %v7793_v55  ;;  %v7831_v37 = vmul.f32 %v7827_v36, %v7794_v35 }
 0x597   : > { %v7832_v58 = vmul.f32 %v7827_v36, %v7795_v19  ;;  %v7833_v62 = vmul.f32 %v7827_v36, %v7796_v24  ;;  %v7834_v10 = vmul.f32 %v7827_v36, %v7797_v7  ;;  %v7835_v21 = vmul.f32 %v7827_v36, %v7798_v4 }
 0x598   : > { %v7836_v29 = vmul.f32 %v7827_v36, %v7799_v46  ;;  %v7837_v2 = vmul.f32 %v7827_v36, %v7800_v11  ;;  %v7838_v13 = vmul.f32 %v7827_v36, %v7801_v8  ;;  %v7839_v56 = vmul.f32 %v7827_v36, %v7802_v44 }
 0x599   : > { %v7840_v18 = vmul.f32 %v7827_v36, %v7803_v40  ;;  %v7841_v39 = vmul.f32 %v7827_v36, %v7804_v47  ;;  %v7842_v33 = vmul.f32 %v7827_v36, %v7805_v25  ;;  %v7843_v59 = vmul.f32 %v7827_v36, %v7806_v34 }
 0x59a   : > { %v7844_v52 = vmul.f32 %v7827_v36, %v7807_v50  ;;  %v7845_v57 = vmul.f32 %v7827_v36, %v7808_v1  ;;  %v7846_v32 = vmul.f32 %v7827_v36, %v7809_v63  ;;  %v7847_v15 = vmul.f32 %v7827_v36, %v7810_v26 }
 0x59b   : > { %v7848_v53 = vmul.f32 %v7827_v36, %v7811_v20  ;;  %v7849_v43 = vmul.f32 %v7827_v36, %v7812_v61  ;;  %v7850_v16 = vmul.f32 %v7827_v36, %v7813_v38  ;;  %v7851_v12 = vmul.f32 %v7827_v36, %v7814_v3  ;;  %v12507_v3 = vld [vmem:[%s19382_s5] ss:$0 sm:$0xff] }
 0x59c   : > { %v7852_v54 = vmul.f32 %v7827_v36, %v7815_v23  ;;  %v7853_v51 = vmul.f32 %v7827_v36, %v7816_v31  ;;  %v7854_v6 = vmul.f32 %v7827_v36, %v7817_v49  ;;  %v7855_v30 = vmul.f32 %v7827_v36, %v7818_v14 }
 0x59d   : > { %v7856_v9 = vmul.f32 %v7827_v36, %v7819_v45  ;;  %v7857_v0 = vmul.f32 %v7827_v36, %v7820_v22  ;;  %v7858_v27 = vmul.f32 %v7827_v36, %v7821_v17  ;;  %v7859_v55 = vmul.f32 %v7827_v36, %v7822_v42 }
 0x59e   : > { %v7867_v35 = vmul.f32 %v12506_v41, %v7828_v60  ;;  %v7868_v19 = vmul.f32 %v12506_v41, %v7829_v5  ;;  %v7869_v24 = vmul.f32 %v12506_v41, %v7830_v48  ;;  %v7870_v7 = vmul.f32 %v12506_v41, %v7831_v37 }
 0x59f   : > { %v7871_v4 = vmul.f32 %v12506_v41, %v7832_v58  ;;  %v7872_v46 = vmul.f32 %v12506_v41, %v7833_v62  ;;  %v7873_v11 = vmul.f32 %v12506_v41, %v7834_v10  ;;  %v7874_v8 = vmul.f32 %v12506_v41, %v7835_v21 }
 0x5a0   : > { %v7875_v44 = vmul.f32 %v12506_v41, %v7836_v29  ;;  %v7876_v40 = vmul.f32 %v12506_v41, %v7837_v2  ;;  %v7877_v47 = vmul.f32 %v12506_v41, %v7838_v13  ;;  %v7878_v25 = vmul.f32 %v12506_v41, %v7839_v56 }
 0x5a1   : > { %v7879_v34 = vmul.f32 %v12506_v41, %v7840_v18  ;;  %v7880_v50 = vmul.f32 %v12506_v41, %v7841_v39  ;;  %v7881_v1 = vmul.f32 %v12506_v41, %v7842_v33  ;;  %v7882_v63 = vmul.f32 %v12506_v41, %v7843_v59 }
 0x5a2   : > { %v7883_v26 = vmul.f32 %v12506_v41, %v7844_v52  ;;  %v7884_v20 = vmul.f32 %v12506_v41, %v7845_v57  ;;  %v7885_v61 = vmul.f32 %v12506_v41, %v7846_v32  ;;  %v7886_v38 = vmul.f32 %v12506_v41, %v7847_v15 }
 0x5a3   : > { %v7887_v23 = vmul.f32 %v12506_v41, %v7848_v53  ;;  %v7888_v31 = vmul.f32 %v12506_v41, %v7849_v43  ;;  %v7889_v49 = vmul.f32 %v12506_v41, %v7850_v16  ;;  %v7890_v14 = vmul.f32 %v12506_v41, %v7851_v12 }
 0x5a4   : > { %v7891_v45 = vmul.f32 %v12506_v41, %v7852_v54  ;;  %v7892_v22 = vmul.f32 %v12506_v41, %v7853_v51  ;;  %v7893_v17 = vmul.f32 %v12506_v41, %v7854_v6  ;;  %v7894_v42 = vmul.f32 %v12506_v41, %v7855_v30 }
 0x5a5   : > { %v7895_v36 = vmul.f32 %v12506_v41, %v7856_v9  ;;  %v7896_v60 = vmul.f32 %v12506_v41, %v7857_v0  ;;  %v7897_v5 = vmul.f32 %v12506_v41, %v7858_v27  ;;  %v7898_v48 = vmul.f32 %v12506_v41, %v7859_v55 }
 0x5a6   : > { %v7906_v37 = vadd.f32 %v12507_v3, %v7867_v35  ;;  %v7907_v58 = vadd.f32 %v12507_v3, %v7868_v19  ;;  %v7908_v62 = vadd.f32 %v12507_v3, %v7869_v24  ;;  %v7909_v10 = vadd.f32 %v12507_v3, %v7870_v7 }
 0x5a7   : > { %v7910_v21 = vadd.f32 %v12507_v3, %v7871_v4  ;;  %v7911_v29 = vadd.f32 %v12507_v3, %v7872_v46  ;;  %v7912_v2 = vadd.f32 %v12507_v3, %v7873_v11  ;;  %v7913_v13 = vadd.f32 %v12507_v3, %v7874_v8 }
 0x5a8   : > { %v7914_v56 = vadd.f32 %v12507_v3, %v7875_v44  ;;  %v7915_v18 = vadd.f32 %v12507_v3, %v7876_v40  ;;  %v7916_v39 = vadd.f32 %v12507_v3, %v7877_v47  ;;  %v7917_v33 = vadd.f32 %v12507_v3, %v7878_v25 }
 0x5a9   : > { %v7918_v59 = vadd.f32 %v12507_v3, %v7879_v34  ;;  %v7919_v52 = vadd.f32 %v12507_v3, %v7880_v50  ;;  %v7920_v57 = vadd.f32 %v12507_v3, %v7881_v1  ;;  %v7921_v32 = vadd.f32 %v12507_v3, %v7882_v63 }
 0x5aa   : > { %v7922_v15 = vadd.f32 %v12507_v3, %v7883_v26  ;;  %v7923_v53 = vadd.f32 %v12507_v3, %v7884_v20  ;;  %v7924_v43 = vadd.f32 %v12507_v3, %v7885_v61  ;;  %v7925_v41 = vadd.f32 %v12507_v3, %v7886_v38 }
 0x5ab   : > { %v18123_v16 = vadd.f32 %v12507_v3, %v7887_v23  ;;  %v18125_v12 = vadd.f32 %v12507_v3, %v7888_v31  ;;  %v18127_v54 = vadd.f32 %v12507_v3, %v7889_v49  ;;  %v18129_v51 = vadd.f32 %v12507_v3, %v7890_v14 }
 0x5ac   : > { %v18131_v6 = vadd.f32 %v12507_v3, %v7891_v45  ;;  %v18133_v30 = vadd.f32 %v12507_v3, %v7892_v22  ;;  %v18135_v9 = vadd.f32 %v12507_v3, %v7893_v17  ;;  %v18137_v0 = vadd.f32 %v12507_v3, %v7894_v42 }
 0x5ad   : > { %v18139_v27 = vadd.f32 %v12507_v3, %v7895_v36  ;;  %v18141_v55 = vadd.f32 %v12507_v3, %v7896_v60  ;;  %v18143_v35 = vadd.f32 %v12507_v3, %v7897_v5  ;;  %v18145_v19 = vadd.f32 %v12507_v3, %v7898_v48 }
 0x5ae   : > { %v7938_v24 = vmax.f32 %v7906_v37, 0.0  ;;  %v7939_v7 = vmax.f32 %v7907_v58, 0.0  ;;  %v7940_v4 = vmax.f32 %v7908_v62, 0.0  ;;  %v7941_v46 = vmax.f32 %v7909_v10, 0.0 }
 0x5af   : > { %v7942_v11 = vmax.f32 %v7910_v21, 0.0  ;;  %v7943_v8 = vmax.f32 %v7911_v29, 0.0  ;;  %v7944_v44 = vmax.f32 %v7912_v2, 0.0  ;;  %v7945_v40 = vmax.f32 %v7913_v13, 0.0 }
 0x5b0   : > { %v7946_v47 = vmax.f32 %v7914_v56, 0.0  ;;  %v7947_v25 = vmax.f32 %v7915_v18, 0.0  ;;  %v7948_v34 = vmax.f32 %v7916_v39, 0.0  ;;  %v7949_v50 = vmax.f32 %v7917_v33, 0.0  ;;  %7971 = vst.msk [vmem:[#allocation4 + $0x19] sm:$0xff] %vm463_vm3, %v7938_v24  ;;  %7972 = vst.msk [vmem:[#allocation4 + $0x21] sm:$0xff] %vm463_vm3, %v7939_v7 }
 0x5b1   : > { %7973 = vst.msk [vmem:[#allocation4 + $0x31] sm:$0xff] %vm463_vm3, %v7940_v4  ;;  %7974 = vst.msk [vmem:[#allocation4 + $0x39] sm:$0xff] %vm463_vm3, %v7941_v46  ;;  %v7950_v1 = vmax.f32 %v7918_v59, 0.0  ;;  %v7951_v63 = vmax.f32 %v7919_v52, 0.0  ;;  %v7952_v26 = vmax.f32 %v7920_v57, 0.0  ;;  %v7953_v20 = vmax.f32 %v7921_v32, 0.0 }
 0x5b2   : > { %7975 = vst.msk [vmem:[#allocation4 + $0x49] sm:$0xff] %vm463_vm3, %v7942_v11  ;;  %7976 = vst.msk [vmem:[#allocation4 + $0x51] sm:$0xff] %vm463_vm3, %v7943_v8  ;;  %v7954_v61 = vmax.f32 %v7922_v15, 0.0  ;;  %v7955_v38 = vmax.f32 %v7923_v53, 0.0  ;;  %v7956_v3 = vmax.f32 %v7924_v43, 0.0  ;;  %v7957_v23 = vmax.f32 %v7925_v41, 0.0 }
 0x5b3   : > { %7977 = vst.msk [vmem:[#allocation4 + $0x61] sm:$0xff] %vm463_vm3, %v7944_v44  ;;  %7978 = vst.msk [vmem:[#allocation4 + $0x69] sm:$0xff] %vm463_vm3, %v7945_v40  ;;  %v7958_v31 = vmax.f32 %v18123_v16, 0.0  ;;  %v7959_v49 = vmax.f32 %v18125_v12, 0.0  ;;  %v7960_v14 = vmax.f32 %v18127_v54, 0.0  ;;  %v7961_v45 = vmax.f32 %v18129_v51, 0.0 }
 0x5b4   : > { %7979 = vst.msk [vmem:[#allocation4 + $0x79] sm:$0xff] %vm463_vm3, %v7946_v47  ;;  %7980 = vst.msk [vmem:[#allocation4 + $0x81] sm:$0xff] %vm463_vm3, %v7947_v25  ;;  %v7962_v22 = vmax.f32 %v18131_v6, 0.0  ;;  %v7963_v17 = vmax.f32 %v18133_v30, 0.0  ;;  %v7964_v42 = vmax.f32 %v18135_v9, 0.0  ;;  %v7965_v36 = vmax.f32 %v18137_v0, 0.0 }
 0x5b5   : > { %7981 = vst.msk [vmem:[#allocation4 + $0x91] sm:$0xff] %vm463_vm3, %v7948_v34  ;;  %7982 = vst.msk [vmem:[#allocation4 + $0x99] sm:$0xff] %vm463_vm3, %v7949_v50  ;;  %v7966_v60 = vmax.f32 %v18139_v27, 0.0  ;;  %v7967_v5 = vmax.f32 %v18141_v55, 0.0  ;;  %v7968_v48 = vmax.f32 %v18143_v35, 0.0  ;;  %v7969_v37 = vmax.f32 %v18145_v19, 0.0 }
 0x5b6   : > { %7983 = vst.msk [vmem:[#allocation4 + $0xa9] sm:$0xff] %vm463_vm3, %v7950_v1  ;;  %7984 = vst.msk [vmem:[#allocation4 + $0xb1] sm:$0xff] %vm463_vm3, %v7951_v63  ;;  %v8003_v35 = vld [vmem:[#allocation4] sm:$0xff]  ;;  %v8004_v24 = vld [vmem:[#allocation4 + $0x8] sm:$0xff] }
 0x5b7   : > { %7985 = vst.msk [vmem:[#allocation4 + $0xc1] sm:$0xff] %vm463_vm3, %v7952_v26  ;;  %7986 = vst.msk [vmem:[#allocation4 + $0xc9] sm:$0xff] %vm463_vm3, %v7953_v20  ;;  %v18191_v58 = vld [vmem:[#allocation4 + $0x19] sm:$0xff]  ;;  %v18193_v62 = vld [vmem:[#allocation4 + $0x21] sm:$0xff] }
 0x5b8   : > { %7987 = vst.msk [vmem:[#allocation4 + $0xd9] sm:$0xff] %vm463_vm3, %v7954_v61  ;;  %7988 = vst.msk [vmem:[#allocation4 + $0xe1] sm:$0xff] %vm463_vm3, %v7955_v38  ;;  %14607 = vmatprep.mubr.msk.f32.mxu1 %vm463_vm3, %v18191_v58  ;;  %v18199_v10 = vld [vmem:[#allocation4 + $0x31] sm:$0xff]  ;;  %v18203_v21 = vld [vmem:[#allocation4 + $0x39] sm:$0xff] }
 0x5b9   : > { %7989 = vst.msk [vmem:[#allocation4 + $0xf1] sm:$0xff] %vm463_vm3, %v7956_v3  ;;  %7990 = vst.msk [vmem:[#allocation4 + $0xf9] sm:$0xff] %vm463_vm3, %v7957_v23  ;;  %14608 = vmatmul.mubr.msk.f32.gmra.mrb[34].mxu1 %vm463_vm3, %v18193_v62  ;;  %v18207_v29 = vld [vmem:[#allocation4 + $0x49] sm:$0xff]  ;;  %v18211_v2 = vld [vmem:[#allocation4 + $0x51] sm:$0xff] }
 0x5ba   : > { %7991 = vst.msk [vmem:[#allocation4 + $0x109] sm:$0xff] %vm463_vm3, %v7958_v31  ;;  %7992 = vst.msk [vmem:[#allocation4 + $0x111] sm:$0xff] %vm463_vm3, %v7959_v49  ;;  %14610 = vmatprep.mubr.msk.f32.mxu1 %vm463_vm3, %v18199_v10  ;;  %v18215_v13 = vld [vmem:[#allocation4 + $0x61] sm:$0xff]  ;;  %v18219_v56 = vld [vmem:[#allocation4 + $0x69] sm:$0xff] }
 0x5bb   : > { %7993 = vst.msk [vmem:[#allocation4 + $0x121] sm:$0xff] %vm463_vm3, %v7960_v14  ;;  %7994 = vst.msk [vmem:[#allocation4 + $0x129] sm:$0xff] %vm463_vm3, %v7961_v45  ;;  %v18223_v18 = vld [vmem:[#allocation4 + $0x79] sm:$0xff]  ;;  %v18227_v39 = vld [vmem:[#allocation4 + $0x81] sm:$0xff] }
 0x5bc   : > { %7995 = vst.msk [vmem:[#allocation4 + $0x139] sm:$0xff] %vm463_vm3, %v7962_v22  ;;  %7996 = vst.msk [vmem:[#allocation4 + $0x141] sm:$0xff] %vm463_vm3, %v7963_v17  ;;  %v18231_v33 = vld [vmem:[#allocation4 + $0x91] sm:$0xff]  ;;  %v18235_v59 = vld [vmem:[#allocation4 + $0x99] sm:$0xff] }
 0x5bd   : > { %7997 = vst.msk [vmem:[#allocation4 + $0x151] sm:$0xff] %vm463_vm3, %v7964_v42  ;;  %7998 = vst.msk [vmem:[#allocation4 + $0x159] sm:$0xff] %vm463_vm3, %v7965_v36  ;;  %14611 = vmatmul.mubr.msk.f32.gmra.mrb[36].mxu1 %vm463_vm3, %v18203_v21  ;;  %v18239_v52 = vld [vmem:[#allocation4 + $0xa9] sm:$0xff]  ;;  %v18243_v57 = vld [vmem:[#allocation4 + $0xb1] sm:$0xff] }
 0x5be   : > { %7999 = vst.msk [vmem:[#allocation4 + $0x169] sm:$0xff] %vm463_vm3, %v7966_v60  ;;  %8000 = vst.msk [vmem:[#allocation4 + $0x171] sm:$0xff] %vm463_vm3, %v7967_v5  ;;  %14613 = vmatprep.mubr.msk.f32.mxu1 %vm463_vm3, %v18207_v29  ;;  %v18247_v32 = vld [vmem:[#allocation4 + $0xc1] sm:$0xff]  ;;  %v18251_v15 = vld [vmem:[#allocation4 + $0xc9] sm:$0xff] }
 0x5bf   : > { %8001 = vst.msk [vmem:[#allocation4 + $0x181] sm:$0xff] %vm463_vm3, %v7968_v48  ;;  %8002 = vst.msk [vmem:[#allocation4 + $0x189] sm:$0xff] %vm463_vm3, %v7969_v37  ;;  %v18255_v53 = vld [vmem:[#allocation4 + $0xd9] sm:$0xff]  ;;  %v18259_v43 = vld [vmem:[#allocation4 + $0xe1] sm:$0xff] }
 0x5c0   : > { %v18263_v41 = vld [vmem:[#allocation4 + $0xf1] sm:$0xff]  ;;  %v18267_v16 = vld [vmem:[#allocation4 + $0xf9] sm:$0xff]  ;;  %v18348_v47 = vld [vmem:[#allocation4 + $0x68] sm:$0xff] }
 0x5c1   : > { %14614 = vmatmul.mubr.msk.f32.gmra.mrb[38].mxu1 %vm463_vm3, %v18211_v2  ;;  %v18271_v12 = vld [vmem:[#allocation4 + $0x109] sm:$0xff]  ;;  %v18275_v54 = vld [vmem:[#allocation4 + $0x111] sm:$0xff]  ;;  %v18324_v46 = vld [vmem:[#allocation4 + $0x20] sm:$0xff] }
 0x5c2   : > { %14616 = vmatprep.mubr.msk.f32.mxu1 %vm463_vm3, %v18215_v13  ;;  %v18279_v51 = vld [vmem:[#allocation4 + $0x121] sm:$0xff]  ;;  %v18283_v6 = vld [vmem:[#allocation4 + $0x129] sm:$0xff]  ;;  %v18315_v7 = vld [vmem:[%s19383_s6 + $0x18] sm:$0xff] }
 0x5c3   : > { %19482 = vst [vmem:[#allocation10_spill] sm:$0xff] %v18283_v6  ;;  %v18287_v30 = vld [vmem:[#allocation4 + $0x139] sm:$0xff]  ;;  %v18291_v9 = vld [vmem:[#allocation4 + $0x141] sm:$0xff]  ;;  %v18328_v11 = vld [vmem:[#allocation4 + $0x30] sm:$0xff] }
 0x5c4   : > { %19483 = vst [vmem:[#allocation11_spill] sm:$0xff] %v18287_v30  ;;  %19484 = vst [vmem:[#allocation12_spill] sm:$0xff] %v18291_v9  ;;  %v18295_v0 = vld [vmem:[#allocation4 + $0x151] sm:$0xff]  ;;  %v18299_v27 = vld [vmem:[#allocation4 + $0x159] sm:$0xff] }
 0x5c5   : > { %14617 = vmatmul.mubr.msk.f32.gmra.mrb[40].mxu1 %vm463_vm3, %v18219_v56  ;;  %19485 = vst [vmem:[#allocation13_spill] sm:$0xff] %v18295_v0  ;;  %19486 = vst [vmem:[#allocation14_spill] sm:$0xff] %v18299_v27  ;;  %v18303_v55 = vld [vmem:[#allocation4 + $0x169] sm:$0xff]  ;;  %v18307_v19 = vld [vmem:[#allocation4 + $0x171] sm:$0xff] }
 0x5c6   : > { %14619 = vmatprep.mubr.msk.f32.mxu1 %vm463_vm3, %v18223_v18  ;;  %19487 = vst [vmem:[#allocation5_spill] sm:$0xff] %v18303_v55  ;;  %19488 = vst [vmem:[#allocation6_spill] sm:$0xff] %v18307_v19  ;;  %v18318_v4 = vld [vmem:[#allocation4 + $0x18] sm:$0xff]  ;;  %v18340_v44 = vld [vmem:[#allocation4 + $0x50] sm:$0xff] }
 0x5c7   : > { %v18332_v8 = vld [vmem:[#allocation4 + $0x38] sm:$0xff]  ;;  %v18344_v40 = vld [vmem:[#allocation4 + $0x60] sm:$0xff]  ;;  %v18360_v50 = vld [vmem:[#allocation4 + $0x90] sm:$0xff] }
 0x5c8   : > { %v18352_v25 = vld [vmem:[#allocation4 + $0x78] sm:$0xff]  ;;  %v18356_v34 = vld [vmem:[#allocation4 + $0x80] sm:$0xff]  ;;  %v18368_v63 = vld [vmem:[#allocation4 + $0xa8] sm:$0xff] }
 0x5c9   : > { %14620 = vmatmul.mubr.msk.f32.gmra.mrb[42].mxu1 %vm463_vm3, %v18227_v39  ;;  %v18364_v1 = vld [vmem:[#allocation4 + $0x98] sm:$0xff]  ;;  %v18372_v26 = vld [vmem:[#allocation4 + $0xb0] sm:$0xff]  ;;  %v18376_v20 = vld [vmem:[#allocation4 + $0xc0] sm:$0xff] }
 0x5ca   : > { %14622 = vmatprep.mubr.msk.f32.mxu1 %vm463_vm3, %v18231_v33  ;;  %v18380_v61 = vld [vmem:[#allocation4 + $0xc8] sm:$0xff]  ;;  %v18384_v38 = vld [vmem:[#allocation4 + $0xd8] sm:$0xff]  ;;  %v18388_v3 = vld [vmem:[#allocation4 + $0xe0] sm:$0xff] }
 0x5cb   : > { %v18392_v23 = vld [vmem:[#allocation4 + $0xf0] sm:$0xff]  ;;  %v18396_v31 = vld [vmem:[#allocation4 + $0xf8] sm:$0xff]  ;;  %v18400_v49 = vld [vmem:[#allocation4 + $0x108] sm:$0xff] }
 0x5cc   : > { %v18404_v14 = vld [vmem:[#allocation4 + $0x110] sm:$0xff]  ;;  %v18408_v45 = vld [vmem:[#allocation4 + $0x120] sm:$0xff]  ;;  %v18412_v22 = vld [vmem:[#allocation4 + $0x128] sm:$0xff] }
 0x5cd   : > { %14623 = vmatmul.mubr.msk.f32.gmra.mrb[44].mxu1 %vm463_vm3, %v18235_v59  ;;  %v18416_v17 = vld [vmem:[#allocation4 + $0x138] sm:$0xff]  ;;  %v18420_v42 = vld [vmem:[#allocation4 + $0x140] sm:$0xff]  ;;  %v18424_v36 = vld [vmem:[#allocation4 + $0x150] sm:$0xff] }
 0x5ce   : > { %14625 = vmatprep.mubr.msk.f32.mxu1 %vm463_vm3, %v18239_v52  ;;  %v18428_v60 = vld [vmem:[#allocation4 + $0x158] sm:$0xff]  ;;  %v18432_v5 = vld [vmem:[#allocation4 + $0x168] sm:$0xff]  ;;  %v18436_v37 = vld [vmem:[#allocation4 + $0x170] sm:$0xff] }
 0x5cf   : > { %v8712_v48 = vld [vmem:[#allocation4 + $0x2] sm:$0xff] }
 0x5d1   : > { %14626 = vmatmul.mubr.msk.f32.gmra.mrb[46].mxu1 %vm463_vm3, %v18243_v57 }
 0x5d2   : > { %14628 = vmatprep.mubr.msk.f32.mxu1 %vm463_vm3, %v18247_v32 }
 0x5d5   : > { %14629 = vmatmul.mubr.msk.f32.gmra.mrb[48].mxu1 %vm463_vm3, %v18251_v15 }
 0x5d6   : > { %14631 = vmatprep.mubr.msk.f32.mxu1 %vm463_vm3, %v18255_v53 }
 0x5d9   : > { %14632 = vmatmul.mubr.msk.f32.gmra.mrb[50].mxu1 %vm463_vm3, %v18259_v43 }
 0x5da   : > { %14634 = vmatprep.mubr.msk.f32.mxu1 %vm463_vm3, %v18263_v41 }
 0x5dd   : > { %14635 = vmatmul.mubr.msk.f32.gmra.mrb[52].mxu1 %vm463_vm3, %v18267_v16 }
 0x5de   : > { %14637 = vmatprep.mubr.msk.f32.mxu1 %vm463_vm3, %v18271_v12 }
 0x5e1   : > { %14638 = vmatmul.mubr.msk.f32.gmra.mrb[54].mxu1 %vm463_vm3, %v18275_v54 }
 0x5e2   : > { %14640 = vmatprep.mubr.msk.f32.mxu1 %vm463_vm3, %v18279_v51 }
 0x5e5   : > { %14641 = vmatmul.mubr.msk.f32.gmra.mrb[56].mxu1 %vm463_vm3, %v18283_v6 }
 0x5e6   : > { %14643 = vmatprep.mubr.msk.f32.mxu1 %vm463_vm3, %v18287_v30 }
 0x5e9   : > { %14644 = vmatmul.mubr.msk.f32.gmra.mrb[58].mxu1 %vm463_vm3, %v18291_v9 }
 0x5ea   : > { %14646 = vmatprep.mubr.msk.f32.mxu1 %vm463_vm3, %v18295_v0 }
 0x5ed   : > { %14647 = vmatmul.mubr.msk.f32.gmra.mrb[60].mxu1 %vm463_vm3, %v18299_v27 }
 0x5ee   : > { %14649 = vmatprep.mubr.msk.f32.mxu1 %vm463_vm3, %v18303_v55  ;;  %v18453_v55 = vld [vmem:[#allocation4 + $0x22] sm:$0xff] }
 0x5ef   : > { %19490 = vst [vmem:[#allocation8_spill] sm:$0xff] %v18453_v55 }
 0x5f1   : > { %14650 = vmatmul.mubr.msk.f32.gmra.mrb[62].mxu1 %vm463_vm3, %v18307_v19  ;;  %v18447_v19 = vld [vmem:[#allocation4 + $0x1a] sm:$0xff] }
 0x5f2   : > { %14654 = vmatprep.mubr.msk.f32.mxu1 %vm463_vm3, %v8003_v35  ;;  %v8713_v35 = vld [vmem:[#allocation4 + $0xa] sm:$0xff]  ;;  %19489 = vst [vmem:[#allocation7_spill] sm:$0xff] %v18447_v19 }
 0x5f5   : > { %14655 = vmatmul.mubr.msk.f32.vlgmr.msra.gmra.mrb[32].mxu1 %vm463_vm3, %v8004_v24  ;;  %v18444_v24 = vld [vmem:[%s19383_s6 + $0x20] sm:$0xff] }
 0x5f6   : > { %14703 = vmatpush3.msra.mxu1 %v18048_v28  ;;  %14657 = vmatprep.mubr.msk.f32.mxu1 %vm463_vm3, %v18318_v4  ;;  %v18336_v28 = vld [vmem:[#allocation4 + $0x48] sm:$0xff] }
 0x5f7   : > { %14752 = vmatprep.subr.mxu1 %v18315_v7 }
 0x5f9   : > { %14658 = vmatmul.mubr.msk.f32.gmra.mrb[34].mxu1 %vm463_vm3, %v18324_v46 }
 0x5fa   : > { %14660 = vmatprep.mubr.msk.f32.mxu1 %vm463_vm3, %v18328_v11 }
 0x5fd   : > { %14661 = vmatmul.mubr.msk.f32.gmra.mrb[36].mxu1 %vm463_vm3, %v18332_v8 }
 0x5fe   : > { %14663 = vmatprep.mubr.msk.f32.mxu1 %vm463_vm3, %v18336_v28 }
 0x601   : > { %14664 = vmatmul.mubr.msk.f32.gmra.mrb[38].mxu1 %vm463_vm3, %v18340_v44 }
 0x602   : > { %14666 = vmatprep.mubr.msk.f32.mxu1 %vm463_vm3, %v18344_v40 }
 0x605   : > { %14667 = vmatmul.mubr.msk.f32.gmra.mrb[40].mxu1 %vm463_vm3, %v18348_v47 }
 0x606   : > { %14669 = vmatprep.mubr.msk.f32.mxu1 %vm463_vm3, %v18352_v25 }
 0x609   : > { %14670 = vmatmul.mubr.msk.f32.gmra.mrb[42].mxu1 %vm463_vm3, %v18356_v34 }
 0x60a   : > { %14672 = vmatprep.mubr.msk.f32.mxu1 %vm463_vm3, %v18360_v50 }
 0x60d   : > { %14673 = vmatmul.mubr.msk.f32.gmra.mrb[44].mxu1 %vm463_vm3, %v18364_v1 }
 0x60e   : > { %14675 = vmatprep.mubr.msk.f32.mxu1 %vm463_vm3, %v18368_v63 }
 0x611   : > { %14676 = vmatmul.mubr.msk.f32.gmra.mrb[46].mxu1 %vm463_vm3, %v18372_v26 }
 0x612   : > { %14678 = vmatprep.mubr.msk.f32.mxu1 %vm463_vm3, %v18376_v20 }
 0x615   : > { %14679 = vmatmul.mubr.msk.f32.gmra.mrb[48].mxu1 %vm463_vm3, %v18380_v61 }
 0x616   : > { %14681 = vmatprep.mubr.msk.f32.mxu1 %vm463_vm3, %v18384_v38 }
 0x619   : > { %14682 = vmatmul.mubr.msk.f32.gmra.mrb[50].mxu1 %vm463_vm3, %v18388_v3 }
 0x61a   : > { %14684 = vmatprep.mubr.msk.f32.mxu1 %vm463_vm3, %v18392_v23 }
 0x61d   : > { %14685 = vmatmul.mubr.msk.f32.gmra.mrb[52].mxu1 %vm463_vm3, %v18396_v31 }
 0x61e   : > { %14687 = vmatprep.mubr.msk.f32.mxu1 %vm463_vm3, %v18400_v49 }
 0x621   : > { %14688 = vmatmul.mubr.msk.f32.gmra.mrb[54].mxu1 %vm463_vm3, %v18404_v14 }
 0x622   : > { %14690 = vmatprep.mubr.msk.f32.mxu1 %vm463_vm3, %v18408_v45 }
 0x625   : > { %14691 = vmatmul.mubr.msk.f32.gmra.mrb[56].mxu1 %vm463_vm3, %v18412_v22 }
 0x626   : > { %14693 = vmatprep.mubr.msk.f32.mxu1 %vm463_vm3, %v18416_v17 }
 0x629   : > { %14694 = vmatmul.mubr.msk.f32.gmra.mrb[58].mxu1 %vm463_vm3, %v18420_v42 }
 0x62a   : > { %14696 = vmatprep.mubr.msk.f32.mxu1 %vm463_vm3, %v18424_v36 }
 0x62d   : > { %14697 = vmatmul.mubr.msk.f32.gmra.mrb[60].mxu1 %vm463_vm3, %v18428_v60 }
 0x62e   : > { %14699 = vmatprep.mubr.msk.f32.mxu1 %vm463_vm3, %v18432_v5 }
 0x631   : > { %14700 = vmatmul.mubr.msk.f32.gmra.mrb[62].mxu1 %vm463_vm3, %v18436_v37 }
 0x632   : > { %14704 = vmatprep.mubr.msk.f32.mxu1 %vm463_vm3, %v8712_v48  ;;  %v18457_v48 = vld [vmem:[#allocation4 + $0x32] sm:$0xff] }
 0x633   : > { %19491 = vst [vmem:[#allocation9_spill] sm:$0xff] %v18457_v48 }
 0x635   : > { %14705 = vmatmul.mubr.msk.f32.vlgmr.msra.gmra.mrb[32].mxu1 %vm463_vm3, %v8713_v35  ;;  %v18461_v35 = vld [vmem:[#allocation4 + $0x3a] sm:$0xff] }
 0x636   : > { %14753 = vmatpush3.msra.mxu1 %v18315_v7  ;;  %14707 = vmatprep.mubr.msk.f32.mxu1 %vm463_vm3, %v18447_v19  ;;  %19492 = vst [vmem:[#allocation15_spill] sm:$0xff] %v18461_v35  ;;  %v18465_v7 = vld [vmem:[#allocation4 + $0x4a] sm:$0xff]  ;;  %v18469_v19 = vld [vmem:[#allocation4 + $0x52] sm:$0xff] }
 0x637   : > { %14802 = vmatprep.subr.mxu1 %v18444_v24  ;;  %19493 = vst [vmem:[#allocation16_spill] sm:$0xff] %v18465_v7  ;;  %19494 = vst [vmem:[#allocation17_spill] sm:$0xff] %v18469_v19 }
 0x639   : > { %14708 = vmatmul.mubr.msk.f32.gmra.mrb[34].mxu1 %vm463_vm3, %v18453_v55  ;;  %v18473_v55 = vld [vmem:[#allocation4 + $0x62] sm:$0xff] }
 0x63a   : > { %14710 = vmatprep.mubr.msk.f32.mxu1 %vm463_vm3, %v18457_v48  ;;  %19495 = vst [vmem:[#allocation18_spill] sm:$0xff] %v18473_v55  ;;  %v18477_v48 = vld [vmem:[#allocation4 + $0x6a] sm:$0xff] }
 0x63b   : > { %19496 = vst [vmem:[#allocation19_spill] sm:$0xff] %v18477_v48 }
 0x63d   : > { %14711 = vmatmul.mubr.msk.f32.gmra.mrb[36].mxu1 %vm463_vm3, %v18461_v35  ;;  %v18481_v35 = vld [vmem:[#allocation4 + $0x7a] sm:$0xff] }
 0x63e   : > { %14713 = vmatprep.mubr.msk.f32.mxu1 %vm463_vm3, %v18465_v7  ;;  %19497 = vst [vmem:[#allocation20_spill] sm:$0xff] %v18481_v35  ;;  %v18485_v7 = vld [vmem:[#allocation4 + $0x82] sm:$0xff] }
 0x63f   : > { %19498 = vst [vmem:[#allocation21_spill] sm:$0xff] %v18485_v7 }
 0x641   : > { %14714 = vmatmul.mubr.msk.f32.gmra.mrb[38].mxu1 %vm463_vm3, %v18469_v19  ;;  %v18489_v19 = vld [vmem:[#allocation4 + $0x92] sm:$0xff] }
 0x642   : > { %14716 = vmatprep.mubr.msk.f32.mxu1 %vm463_vm3, %v18473_v55  ;;  %19499 = vst [vmem:[#allocation22_spill] sm:$0xff] %v18489_v19  ;;  %v18493_v55 = vld [vmem:[#allocation4 + $0x9a] sm:$0xff] }
 0x643   : > { %19500 = vst [vmem:[#allocation23_spill] sm:$0xff] %v18493_v55 }
 0x645   : > { %14717 = vmatmul.mubr.msk.f32.gmra.mrb[40].mxu1 %vm463_vm3, %v18477_v48  ;;  %v18497_v48 = vld [vmem:[#allocation4 + $0xaa] sm:$0xff] }
 0x646   : > { %14719 = vmatprep.mubr.msk.f32.mxu1 %vm463_vm3, %v18481_v35  ;;  %19501 = vst [vmem:[#allocation24_spill] sm:$0xff] %v18497_v48  ;;  %v18501_v35 = vld [vmem:[#allocation4 + $0xb2] sm:$0xff] }
 0x647   : > { %19502 = vst [vmem:[#allocation25_spill] sm:$0xff] %v18501_v35 }
 0x649   : > { %14720 = vmatmul.mubr.msk.f32.gmra.mrb[42].mxu1 %vm463_vm3, %v18485_v7  ;;  %v18505_v7 = vld [vmem:[#allocation4 + $0xc2] sm:$0xff] }
 0x64a   : > { %14722 = vmatprep.mubr.msk.f32.mxu1 %vm463_vm3, %v18489_v19  ;;  %19503 = vst [vmem:[#allocation26_spill] sm:$0xff] %v18505_v7  ;;  %v18509_v19 = vld [vmem:[#allocation4 + $0xca] sm:$0xff] }
 0x64b   : > { %19504 = vst [vmem:[#allocation27_spill] sm:$0xff] %v18509_v19 }
 0x64d   : > { %14723 = vmatmul.mubr.msk.f32.gmra.mrb[44].mxu1 %vm463_vm3, %v18493_v55  ;;  %v18513_v55 = vld [vmem:[#allocation4 + $0xda] sm:$0xff] }
 0x64e   : > { %14725 = vmatprep.mubr.msk.f32.mxu1 %vm463_vm3, %v18497_v48  ;;  %19505 = vst [vmem:[#allocation28_spill] sm:$0xff] %v18513_v55  ;;  %v18517_v48 = vld [vmem:[#allocation4 + $0xe2] sm:$0xff] }
 0x64f   : > { %19506 = vst [vmem:[#allocation29_spill] sm:$0xff] %v18517_v48 }
 0x651   : > { %14726 = vmatmul.mubr.msk.f32.gmra.mrb[46].mxu1 %vm463_vm3, %v18501_v35  ;;  %v18521_v35 = vld [vmem:[#allocation4 + $0xf2] sm:$0xff] }
 0x652   : > { %14728 = vmatprep.mubr.msk.f32.mxu1 %vm463_vm3, %v18505_v7  ;;  %19507 = vst [vmem:[#allocation30_spill] sm:$0xff] %v18521_v35  ;;  %v18525_v7 = vld [vmem:[#allocation4 + $0xfa] sm:$0xff] }
 0x653   : > { %19508 = vst [vmem:[#allocation31_spill] sm:$0xff] %v18525_v7 }
 0x655   : > { %14729 = vmatmul.mubr.msk.f32.gmra.mrb[48].mxu1 %vm463_vm3, %v18509_v19  ;;  %v18529_v19 = vld [vmem:[#allocation4 + $0x10a] sm:$0xff] }
 0x656   : > { %14731 = vmatprep.mubr.msk.f32.mxu1 %vm463_vm3, %v18513_v55  ;;  %19509 = vst [vmem:[#allocation32_spill] sm:$0xff] %v18529_v19  ;;  %v18533_v55 = vld [vmem:[#allocation4 + $0x112] sm:$0xff] }
 0x657   : > { %19510 = vst [vmem:[#allocation33_spill] sm:$0xff] %v18533_v55 }
 0x659   : > { %14732 = vmatmul.mubr.msk.f32.gmra.mrb[50].mxu1 %vm463_vm3, %v18517_v48  ;;  %v18537_v48 = vld [vmem:[#allocation4 + $0x122] sm:$0xff] }
 0x65a   : > { %14734 = vmatprep.mubr.msk.f32.mxu1 %vm463_vm3, %v18521_v35  ;;  %19511 = vst [vmem:[#allocation34_spill] sm:$0xff] %v18537_v48  ;;  %v18541_v35 = vld [vmem:[#allocation4 + $0x12a] sm:$0xff] }
 0x65b   : > { %19512 = vst [vmem:[#allocation35_spill] sm:$0xff] %v18541_v35 }
 0x65d   : > { %14735 = vmatmul.mubr.msk.f32.gmra.mrb[52].mxu1 %vm463_vm3, %v18525_v7  ;;  %v18545_v7 = vld [vmem:[#allocation4 + $0x13a] sm:$0xff] }
 0x65e   : > { %14737 = vmatprep.mubr.msk.f32.mxu1 %vm463_vm3, %v18529_v19  ;;  %19513 = vst [vmem:[#allocation36_spill] sm:$0xff] %v18545_v7  ;;  %v18549_v19 = vld [vmem:[#allocation4 + $0x142] sm:$0xff] }
 0x661   : > { %14738 = vmatmul.mubr.msk.f32.gmra.mrb[54].mxu1 %vm463_vm3, %v18533_v55  ;;  %v18553_v55 = vld [vmem:[#allocation4 + $0x152] sm:$0xff] }
 0x662   : > { %14740 = vmatprep.mubr.msk.f32.mxu1 %vm463_vm3, %v18537_v48  ;;  %19514 = vst [vmem:[#allocation37_spill] sm:$0xff] %v18553_v55  ;;  %v18557_v48 = vld [vmem:[#allocation4 + $0x15a] sm:$0xff] }
 0x665   : > { %14741 = vmatmul.mubr.msk.f32.gmra.mrb[56].mxu1 %vm463_vm3, %v18541_v35  ;;  %v18561_v35 = vld [vmem:[#allocation4 + $0x16a] sm:$0xff] }
 0x666   : > { %14743 = vmatprep.mubr.msk.f32.mxu1 %vm463_vm3, %v18545_v7  ;;  %19515 = vst [vmem:[#allocation38_spill] sm:$0xff] %v18561_v35  ;;  %v18565_v7 = vld [vmem:[#allocation4 + $0x172] sm:$0xff] }
 0x669   : > { %14744 = vmatmul.mubr.msk.f32.gmra.mrb[58].mxu1 %vm463_vm3, %v18549_v19 }
 0x66a   : > { %14746 = vmatprep.mubr.msk.f32.mxu1 %vm463_vm3, %v18553_v55  ;;  %v12672_v55 = vld [vmem:[%s19383_s6 + $0x28] sm:$0xff] }
 0x66d   : > { %14747 = vmatmul.mubr.msk.f32.gmra.mrb[60].mxu1 %vm463_vm3, %v18557_v48 }
 0x66e   : > { %14749 = vmatprep.mubr.msk.f32.mxu1 %vm463_vm3, %v18561_v35 }
 0x671   : > { %14750 = vmatmul.mubr.msk.f32.gmra.mrb[62].mxu1 %vm463_vm3, %v18565_v7 }
 0x672   : > { %14754 = vmatprep.mubr.msk.f32.mxu1 %vm463_vm3, %v18318_v4  ;;  %v18633_v4 = vld [vmem:[#allocation4 + $0x180] sm:$0xff] }
 0x675   : > { %14755 = vmatmul.mubr.msk.f32.vlgmr.msra.gmra.mrb[32].mxu1 %vm463_vm3, %v18324_v46  ;;  %v18637_v46 = vld [vmem:[#allocation4 + $0x188] sm:$0xff] }
 0x676   : > { %14803 = vmatpush3.msra.mxu1 %v18444_v24  ;;  %14757 = vmatprep.mubr.msk.f32.mxu1 %vm463_vm3, %v18328_v11  ;;  %v12705_v24 = vld [vmem:[%s19383_s6 + $0x30] sm:$0xff] }
 0x677   : > { %14852 = vmatprep.subr.mxu1 %v12672_v55 }
 0x679   : > { %14758 = vmatmul.mubr.msk.f32.gmra.mrb[34].mxu1 %vm463_vm3, %v18332_v8 }
 0x67a   : > { %14760 = vmatprep.mubr.msk.f32.mxu1 %vm463_vm3, %v18336_v28 }
 0x67d   : > { %14761 = vmatmul.mubr.msk.f32.gmra.mrb[36].mxu1 %vm463_vm3, %v18340_v44 }
 0x67e   : > { %14763 = vmatprep.mubr.msk.f32.mxu1 %vm463_vm3, %v18344_v40 }
 0x681   : > { %14764 = vmatmul.mubr.msk.f32.gmra.mrb[38].mxu1 %vm463_vm3, %v18348_v47 }
 0x682   : > { %14766 = vmatprep.mubr.msk.f32.mxu1 %vm463_vm3, %v18352_v25 }
 0x685   : > { %14767 = vmatmul.mubr.msk.f32.gmra.mrb[40].mxu1 %vm463_vm3, %v18356_v34 }
 0x686   : > { %14769 = vmatprep.mubr.msk.f32.mxu1 %vm463_vm3, %v18360_v50 }
 0x689   : > { %14770 = vmatmul.mubr.msk.f32.gmra.mrb[42].mxu1 %vm463_vm3, %v18364_v1 }
 0x68a   : > { %14772 = vmatprep.mubr.msk.f32.mxu1 %vm463_vm3, %v18368_v63 }
 0x68d   : > { %14773 = vmatmul.mubr.msk.f32.gmra.mrb[44].mxu1 %vm463_vm3, %v18372_v26 }
 0x68e   : > { %14775 = vmatprep.mubr.msk.f32.mxu1 %vm463_vm3, %v18376_v20 }
 0x691   : > { %14776 = vmatmul.mubr.msk.f32.gmra.mrb[46].mxu1 %vm463_vm3, %v18380_v61 }
 0x692   : > { %14778 = vmatprep.mubr.msk.f32.mxu1 %vm463_vm3, %v18384_v38 }
 0x695   : > { %14779 = vmatmul.mubr.msk.f32.gmra.mrb[48].mxu1 %vm463_vm3, %v18388_v3 }
 0x696   : > { %14781 = vmatprep.mubr.msk.f32.mxu1 %vm463_vm3, %v18392_v23 }
 0x699   : > { %14782 = vmatmul.mubr.msk.f32.gmra.mrb[50].mxu1 %vm463_vm3, %v18396_v31 }
 0x69a   : > { %14784 = vmatprep.mubr.msk.f32.mxu1 %vm463_vm3, %v18400_v49 }
 0x69d   : > { %14785 = vmatmul.mubr.msk.f32.gmra.mrb[52].mxu1 %vm463_vm3, %v18404_v14 }
 0x69e   : > { %14787 = vmatprep.mubr.msk.f32.mxu1 %vm463_vm3, %v18408_v45 }
 0x6a1   : > { %14788 = vmatmul.mubr.msk.f32.gmra.mrb[54].mxu1 %vm463_vm3, %v18412_v22 }
 0x6a2   : > { %14790 = vmatprep.mubr.msk.f32.mxu1 %vm463_vm3, %v18416_v17 }
 0x6a5   : > { %14791 = vmatmul.mubr.msk.f32.gmra.mrb[56].mxu1 %vm463_vm3, %v18420_v42 }
 0x6a6   : > { %14793 = vmatprep.mubr.msk.f32.mxu1 %vm463_vm3, %v18424_v36 }
 0x6a9   : > { %14794 = vmatmul.mubr.msk.f32.gmra.mrb[58].mxu1 %vm463_vm3, %v18428_v60 }
 0x6aa   : > { %14796 = vmatprep.mubr.msk.f32.mxu1 %vm463_vm3, %v18432_v5 }
 0x6ad   : > { %14797 = vmatmul.mubr.msk.f32.gmra.mrb[60].mxu1 %vm463_vm3, %v18436_v37 }
 0x6ae   : > { %14799 = vmatprep.mubr.msk.f32.mxu1 %vm463_vm3, %v18633_v4 }
 0x6b1   : > { %14800 = vmatmul.mubr.msk.f32.gmra.mrb[62].mxu1 %vm463_vm3, %v18637_v46 }
 0x6b2   : > { %14804 = vmatprep.mubr.msk.f32.mxu1 %vm463_vm3, %v18191_v58  ;;  %v19516_v58 = vld [vmem:[#allocation5_spill] sm:$0xff] }
 0x6b5   : > { %14805 = vmatmul.mubr.msk.f32.vlgmr.msra.gmra.mrb[32].mxu1 %vm463_vm3, %v18193_v62  ;;  %v19517_v62 = vld [vmem:[#allocation6_spill] sm:$0xff] }
 0x6b6   : > { %14853 = vmatpush3.msra.mxu1 %v12672_v55  ;;  %14807 = vmatprep.mubr.msk.f32.mxu1 %vm463_vm3, %v18199_v10  ;;  %v18704_v55 = vld [vmem:[#allocation4 + $0x181] sm:$0xff] }
 0x6b7   : > { %14902 = vmatprep.subr.mxu1 %v12705_v24  ;;  %19518 = vst [vmem:[#allocation39_spill] sm:$0xff] %v18704_v55 }
 0x6b9   : > { %14808 = vmatmul.mubr.msk.f32.gmra.mrb[34].mxu1 %vm463_vm3, %v18203_v21 }
 0x6ba   : > { %14810 = vmatprep.mubr.msk.f32.mxu1 %vm463_vm3, %v18207_v29 }
 0x6bd   : > { %14811 = vmatmul.mubr.msk.f32.gmra.mrb[36].mxu1 %vm463_vm3, %v18211_v2 }
 0x6be   : > { %14813 = vmatprep.mubr.msk.f32.mxu1 %vm463_vm3, %v18215_v13 }
 0x6c1   : > { %14814 = vmatmul.mubr.msk.f32.gmra.mrb[38].mxu1 %vm463_vm3, %v18219_v56 }
 0x6c2   : > { %14816 = vmatprep.mubr.msk.f32.mxu1 %vm463_vm3, %v18223_v18 }
 0x6c5   : > { %14817 = vmatmul.mubr.msk.f32.gmra.mrb[40].mxu1 %vm463_vm3, %v18227_v39 }
 0x6c6   : > { %14819 = vmatprep.mubr.msk.f32.mxu1 %vm463_vm3, %v18231_v33 }
 0x6c9   : > { %14820 = vmatmul.mubr.msk.f32.gmra.mrb[42].mxu1 %vm463_vm3, %v18235_v59 }
 0x6ca   : > { %14822 = vmatprep.mubr.msk.f32.mxu1 %vm463_vm3, %v18239_v52 }
 0x6cd   : > { %14823 = vmatmul.mubr.msk.f32.gmra.mrb[44].mxu1 %vm463_vm3, %v18243_v57 }
 0x6ce   : > { %14825 = vmatprep.mubr.msk.f32.mxu1 %vm463_vm3, %v18247_v32 }
 0x6d1   : > { %14826 = vmatmul.mubr.msk.f32.gmra.mrb[46].mxu1 %vm463_vm3, %v18251_v15 }
 0x6d2   : > { %14828 = vmatprep.mubr.msk.f32.mxu1 %vm463_vm3, %v18255_v53 }
 0x6d5   : > { %14829 = vmatmul.mubr.msk.f32.gmra.mrb[48].mxu1 %vm463_vm3, %v18259_v43 }
 0x6d6   : > { %14831 = vmatprep.mubr.msk.f32.mxu1 %vm463_vm3, %v18263_v41 }
 0x6d9   : > { %14832 = vmatmul.mubr.msk.f32.gmra.mrb[50].mxu1 %vm463_vm3, %v18267_v16 }
 0x6da   : > { %14834 = vmatprep.mubr.msk.f32.mxu1 %vm463_vm3, %v18271_v12 }
 0x6dd   : > { %14835 = vmatmul.mubr.msk.f32.gmra.mrb[52].mxu1 %vm463_vm3, %v18275_v54 }
 0x6de   : > { %14837 = vmatprep.mubr.msk.f32.mxu1 %vm463_vm3, %v18279_v51 }
 0x6e1   : > { %14838 = vmatmul.mubr.msk.f32.gmra.mrb[54].mxu1 %vm463_vm3, %v18283_v6  ;;  %v19527_v6 = vld [vmem:[#allocation19_spill] sm:$0xff] }
 0x6e2   : > { %14840 = vmatprep.mubr.msk.f32.mxu1 %vm463_vm3, %v18287_v30  ;;  %v18708_v30 = vld [vmem:[#allocation4 + $0x189] sm:$0xff] }
 0x6e3   : > { %19519 = vst [vmem:[#allocation40_spill] sm:$0xff] %v18708_v30 }
 0x6e5   : > { %14841 = vmatmul.mubr.msk.f32.gmra.mrb[56].mxu1 %vm463_vm3, %v18291_v9  ;;  %v19524_v9 = vld [vmem:[#allocation16_spill] sm:$0xff] }
 0x6e6   : > { %14843 = vmatprep.mubr.msk.f32.mxu1 %vm463_vm3, %v18295_v0  ;;  %v19520_v0 = vld [vmem:[#allocation7_spill] sm:$0xff] }
 0x6e9   : > { %14844 = vmatmul.mubr.msk.f32.gmra.mrb[58].mxu1 %vm463_vm3, %v18299_v27  ;;  %v19521_v27 = vld [vmem:[#allocation8_spill] sm:$0xff] }
 0x6ea   : > { %14846 = vmatprep.mubr.msk.f32.mxu1 %vm463_vm3, %v19516_v58  ;;  %v12738_v58 = vld [vmem:[%s19383_s6 + $0x38] sm:$0xff] }
 0x6ed   : > { %14847 = vmatmul.mubr.msk.f32.gmra.mrb[60].mxu1 %vm463_vm3, %v19517_v62  ;;  %v19522_v62 = vld [vmem:[#allocation9_spill] sm:$0xff] }
 0x6ee   : > { %14849 = vmatprep.mubr.msk.f32.mxu1 %vm463_vm3, %v18704_v55  ;;  %v19523_v55 = vld [vmem:[#allocation15_spill] sm:$0xff] }
 0x6f1   : > { %14850 = vmatmul.mubr.msk.f32.gmra.mrb[62].mxu1 %vm463_vm3, %v18708_v30  ;;  %v19525_v30 = vld [vmem:[#allocation17_spill] sm:$0xff] }
 0x6f2   : > { %14854 = vmatprep.mubr.msk.f32.mxu1 %vm463_vm3, %v19520_v0  ;;  %v19526_v0 = vld [vmem:[#allocation18_spill] sm:$0xff] }
 0x6f5   : > { %14855 = vmatmul.mubr.msk.f32.vlgmr.msra.gmra.mrb[32].mxu1 %vm463_vm3, %v19521_v27  ;;  %v19528_v27 = vld [vmem:[#allocation20_spill] sm:$0xff] }
 0x6f6   : > { %14903 = vmatpush3.msra.mxu1 %v12705_v24  ;;  %14857 = vmatprep.mubr.msk.f32.mxu1 %vm463_vm3, %v19522_v62  ;;  %v19529_v24 = vld [vmem:[#allocation21_spill] sm:$0xff]  ;;  %v19530_v62 = vld [vmem:[#allocation22_spill] sm:$0xff] }
 0x6f7   : > { %14952 = vmatprep.subr.mxu1 %v12738_v58 }
 0x6f9   : > { %14858 = vmatmul.mubr.msk.f32.gmra.mrb[34].mxu1 %vm463_vm3, %v19523_v55  ;;  %v19531_v55 = vld [vmem:[#allocation23_spill] sm:$0xff] }
 0x6fa   : > { %14860 = vmatprep.mubr.msk.f32.mxu1 %vm463_vm3, %v19524_v9  ;;  %v19532_v9 = vld [vmem:[#allocation24_spill] sm:$0xff] }
 0x6fd   : > { %14861 = vmatmul.mubr.msk.f32.gmra.mrb[36].mxu1 %vm463_vm3, %v19525_v30  ;;  %v19533_v30 = vld [vmem:[#allocation25_spill] sm:$0xff] }
 0x6fe   : > { %14863 = vmatprep.mubr.msk.f32.mxu1 %vm463_vm3, %v19526_v0  ;;  %v19534_v0 = vld [vmem:[#allocation26_spill] sm:$0xff] }
 0x701   : > { %14864 = vmatmul.mubr.msk.f32.gmra.mrb[38].mxu1 %vm463_vm3, %v19527_v6  ;;  %v19535_v6 = vld [vmem:[#allocation27_spill] sm:$0xff] }
 0x702   : > { %14866 = vmatprep.mubr.msk.f32.mxu1 %vm463_vm3, %v19528_v27  ;;  %v19536_v27 = vld [vmem:[#allocation28_spill] sm:$0xff] }
 0x705   : > { %14867 = vmatmul.mubr.msk.f32.gmra.mrb[40].mxu1 %vm463_vm3, %v19529_v24  ;;  %v19537_v24 = vld [vmem:[#allocation29_spill] sm:$0xff] }
 0x706   : > { %14869 = vmatprep.mubr.msk.f32.mxu1 %vm463_vm3, %v19530_v62  ;;  %v19538_v62 = vld [vmem:[#allocation30_spill] sm:$0xff] }
 0x709   : > { %14870 = vmatmul.mubr.msk.f32.gmra.mrb[42].mxu1 %vm463_vm3, %v19531_v55  ;;  %v19539_v55 = vld [vmem:[#allocation31_spill] sm:$0xff] }
 0x70a   : > { %14872 = vmatprep.mubr.msk.f32.mxu1 %vm463_vm3, %v19532_v9  ;;  %v19540_v9 = vld [vmem:[#allocation32_spill] sm:$0xff] }
 0x70d   : > { %14873 = vmatmul.mubr.msk.f32.gmra.mrb[44].mxu1 %vm463_vm3, %v19533_v30  ;;  %v19541_v30 = vld [vmem:[#allocation33_spill] sm:$0xff] }
 0x70e   : > { %14875 = vmatprep.mubr.msk.f32.mxu1 %vm463_vm3, %v19534_v0  ;;  %v19542_v0 = vld [vmem:[#allocation34_spill] sm:$0xff] }
 0x711   : > { %14876 = vmatmul.mubr.msk.f32.gmra.mrb[46].mxu1 %vm463_vm3, %v19535_v6  ;;  %v19543_v6 = vld [vmem:[#allocation35_spill] sm:$0xff] }
 0x712   : > { %14878 = vmatprep.mubr.msk.f32.mxu1 %vm463_vm3, %v19536_v27  ;;  %v19544_v27 = vld [vmem:[#allocation36_spill] sm:$0xff] }
 0x715   : > { %14879 = vmatmul.mubr.msk.f32.gmra.mrb[48].mxu1 %vm463_vm3, %v19537_v24 }
 0x716   : > { %14881 = vmatprep.mubr.msk.f32.mxu1 %vm463_vm3, %v19538_v62  ;;  %v19545_v62 = vld [vmem:[#allocation37_spill] sm:$0xff] }
 0x719   : > { %14882 = vmatmul.mubr.msk.f32.gmra.mrb[50].mxu1 %vm463_vm3, %v19539_v55 }
 0x71a   : > { %14884 = vmatprep.mubr.msk.f32.mxu1 %vm463_vm3, %v19540_v9 }
 0x71d   : > { %14885 = vmatmul.mubr.msk.f32.gmra.mrb[52].mxu1 %vm463_vm3, %v19541_v30 }
 0x71e   : > { %14887 = vmatprep.mubr.msk.f32.mxu1 %vm463_vm3, %v19542_v0  ;;  %v18775_v0 = vld [vmem:[#allocation4 + $0x182] sm:$0xff] }
 0x721   : > { %14888 = vmatmul.mubr.msk.f32.gmra.mrb[54].mxu1 %vm463_vm3, %v19543_v6 }
 0x722   : > { %14890 = vmatprep.mubr.msk.f32.mxu1 %vm463_vm3, %v19544_v27  ;;  %v18779_v27 = vld [vmem:[#allocation4 + $0x18a] sm:$0xff] }
 0x725   : > { %14891 = vmatmul.mubr.msk.f32.gmra.mrb[56].mxu1 %vm463_vm3, %v18549_v19 }
 0x726   : > { %14893 = vmatprep.mubr.msk.f32.mxu1 %vm463_vm3, %v19545_v62 }
 0x729   : > { %14894 = vmatmul.mubr.msk.f32.gmra.mrb[58].mxu1 %vm463_vm3, %v18557_v48 }
 0x72a   : > { %14896 = vmatprep.mubr.msk.f32.mxu1 %vm463_vm3, %v18561_v35  ;;  %v12771_v35 = vld [vmem:[%s19383_s6 + $0x40] sm:$0xff] }
 0x72d   : > { %14897 = vmatmul.mubr.msk.f32.gmra.mrb[60].mxu1 %vm463_vm3, %v18565_v7 }
 0x72e   : > { %14899 = vmatprep.mubr.msk.f32.mxu1 %vm463_vm3, %v18775_v0 }
 0x731   : > { %14900 = vmatmul.mubr.msk.f32.gmra.mrb[62].mxu1 %vm463_vm3, %v18779_v27 }
 0x732   : > { %14904 = vmatprep.mubr.msk.f32.mxu1 %vm463_vm3, %v18328_v11  ;;  %v10291_v11 = vld [vmem:[#allocation4 + $0x198] sm:$0xff] }
 0x735   : > { %14905 = vmatmul.mubr.msk.f32.vlgmr.msra.gmra.mrb[32].mxu1 %vm463_vm3, %v18332_v8  ;;  %v10292_v8 = vld [vmem:[#allocation4 + $0x1a0] sm:$0xff] }
 0x736   : > { %14953 = vmatpush3.msra.mxu1 %v12738_v58  ;;  %14907 = vmatprep.mubr.msk.f32.mxu1 %vm463_vm3, %v18336_v28  ;;  %v19565_v28 = vld [vmem:[#allocation24_spill] sm:$0xff] }
 0x737   : > { %15002 = vmatprep.subr.mxu1 %v12771_v35 }
 0x739   : > { %14908 = vmatmul.mubr.msk.f32.gmra.mrb[34].mxu1 %vm463_vm3, %v18340_v44  ;;  %v19566_v44 = vld [vmem:[#allocation25_spill] sm:$0xff] }
 0x73a   : > { %14910 = vmatprep.mubr.msk.f32.mxu1 %vm463_vm3, %v18344_v40  ;;  %v19567_v40 = vld [vmem:[#allocation26_spill] sm:$0xff] }
 0x73d   : > { %14911 = vmatmul.mubr.msk.f32.gmra.mrb[36].mxu1 %vm463_vm3, %v18348_v47  ;;  %v19568_v47 = vld [vmem:[#allocation27_spill] sm:$0xff] }
 0x73e   : > { %14913 = vmatprep.mubr.msk.f32.mxu1 %vm463_vm3, %v18352_v25  ;;  %v19569_v25 = vld [vmem:[#allocation28_spill] sm:$0xff] }
 0x741   : > { %14914 = vmatmul.mubr.msk.f32.gmra.mrb[38].mxu1 %vm463_vm3, %v18356_v34  ;;  %v19570_v34 = vld [vmem:[#allocation30_spill] sm:$0xff] }
 0x742   : > { %14916 = vmatprep.mubr.msk.f32.mxu1 %vm463_vm3, %v18360_v50  ;;  %v19571_v50 = vld [vmem:[#allocation34_spill] sm:$0xff] }
 0x745   : > { %14917 = vmatmul.mubr.msk.f32.gmra.mrb[40].mxu1 %vm463_vm3, %v18364_v1  ;;  %v19572_v1 = vld [vmem:[#allocation36_spill] sm:$0xff] }
 0x746   : > { %14919 = vmatprep.mubr.msk.f32.mxu1 %vm463_vm3, %v18368_v63 }
 0x749   : > { %14920 = vmatmul.mubr.msk.f32.gmra.mrb[42].mxu1 %vm463_vm3, %v18372_v26 }
 0x74a   : > { %14922 = vmatprep.mubr.msk.f32.mxu1 %vm463_vm3, %v18376_v20 }
 0x74d   : > { %14923 = vmatmul.mubr.msk.f32.gmra.mrb[44].mxu1 %vm463_vm3, %v18380_v61 }
 0x74e   : > { %14925 = vmatprep.mubr.msk.f32.mxu1 %vm463_vm3, %v18384_v38 }
 0x751   : > { %14926 = vmatmul.mubr.msk.f32.gmra.mrb[46].mxu1 %vm463_vm3, %v18388_v3 }
 0x752   : > { %14928 = vmatprep.mubr.msk.f32.mxu1 %vm463_vm3, %v18392_v23 }
 0x755   : > { %14929 = vmatmul.mubr.msk.f32.gmra.mrb[48].mxu1 %vm463_vm3, %v18396_v31 }
 0x756   : > { %14931 = vmatprep.mubr.msk.f32.mxu1 %vm463_vm3, %v18400_v49 }
 0x759   : > { %14932 = vmatmul.mubr.msk.f32.gmra.mrb[50].mxu1 %vm463_vm3, %v18404_v14 }
 0x75a   : > { %14934 = vmatprep.mubr.msk.f32.mxu1 %vm463_vm3, %v18408_v45 }
 0x75d   : > { %14935 = vmatmul.mubr.msk.f32.gmra.mrb[52].mxu1 %vm463_vm3, %v18412_v22 }
 0x75e   : > { %14937 = vmatprep.mubr.msk.f32.mxu1 %vm463_vm3, %v18416_v17 }
 0x761   : > { %14938 = vmatmul.mubr.msk.f32.gmra.mrb[54].mxu1 %vm463_vm3, %v18420_v42 }
 0x762   : > { %14940 = vmatprep.mubr.msk.f32.mxu1 %vm463_vm3, %v18424_v36 }
 0x765   : > { %14941 = vmatmul.mubr.msk.f32.gmra.mrb[56].mxu1 %vm463_vm3, %v18428_v60 }
 0x766   : > { %14943 = vmatprep.mubr.msk.f32.mxu1 %vm463_vm3, %v18432_v5 }
 0x769   : > { %14944 = vmatmul.mubr.msk.f32.gmra.mrb[58].mxu1 %vm463_vm3, %v18436_v37 }
 0x76a   : > { %14946 = vmatprep.mubr.msk.f32.mxu1 %vm463_vm3, %v18633_v4 }
 0x76d   : > { %14947 = vmatmul.mubr.msk.f32.gmra.mrb[60].mxu1 %vm463_vm3, %v18637_v46 }
 0x76e   : > { %14949 = vmatprep.mubr.msk.f32.mxu1 %vm463_vm3, %v10291_v11 }
 0x771   : > { %14950 = vmatmul.mubr.msk.f32.gmra.mrb[62].mxu1 %vm463_vm3, %v10292_v8 }
 0x772   : > { %14954 = vmatprep.mubr.msk.f32.mxu1 %vm463_vm3, %v18199_v10  ;;  %v19546_v10 = vld [vmem:[#allocation10_spill] sm:$0xff] }
 0x775   : > { %14955 = vmatmul.mubr.msk.f32.vlgmr.msra.gmra.mrb[32].mxu1 %vm463_vm3, %v18203_v21  ;;  %v19547_v21 = vld [vmem:[#allocation11_spill] sm:$0xff] }
 0x776   : > { %15003 = vmatpush3.msra.mxu1 %v12771_v35  ;;  %14957 = vmatprep.mubr.msk.f32.mxu1 %vm463_vm3, %v18207_v29  ;;  %v19548_v29 = vld [vmem:[#allocation12_spill] sm:$0xff] }
 0x779   : > { %14958 = vmatmul.mubr.msk.f32.gmra.mrb[34].mxu1 %vm463_vm3, %v18211_v2  ;;  %v19549_v2 = vld [vmem:[#allocation13_spill] sm:$0xff] }
 0x77a   : > { %14960 = vmatprep.mubr.msk.f32.mxu1 %vm463_vm3, %v18215_v13  ;;  %v19550_v13 = vld [vmem:[#allocation14_spill] sm:$0xff] }
 0x77d   : > { %14961 = vmatmul.mubr.msk.f32.gmra.mrb[36].mxu1 %vm463_vm3, %v18219_v56  ;;  %v19551_v56 = vld [vmem:[#allocation5_spill] sm:$0xff] }
 0x77e   : > { %14963 = vmatprep.mubr.msk.f32.mxu1 %vm463_vm3, %v18223_v18  ;;  %v19552_v18 = vld [vmem:[#allocation6_spill] sm:$0xff] }
 0x781   : > { %14964 = vmatmul.mubr.msk.f32.gmra.mrb[38].mxu1 %vm463_vm3, %v18227_v39  ;;  %v19553_v39 = vld [vmem:[#allocation39_spill] sm:$0xff] }
 0x782   : > { %14966 = vmatprep.mubr.msk.f32.mxu1 %vm463_vm3, %v18231_v33  ;;  %v10678_v33 = vld [vmem:[#allocation4 + $0x199] sm:$0xff] }
 0x785   : > { %14967 = vmatmul.mubr.msk.f32.gmra.mrb[40].mxu1 %vm463_vm3, %v18235_v59  ;;  %v19554_v59 = vld [vmem:[#allocation40_spill] sm:$0xff] }
 0x786   : > { %14969 = vmatprep.mubr.msk.f32.mxu1 %vm463_vm3, %v18239_v52  ;;  %v10679_v52 = vld [vmem:[#allocation4 + $0x1a1] sm:$0xff] }
 0x789   : > { %14970 = vmatmul.mubr.msk.f32.gmra.mrb[42].mxu1 %vm463_vm3, %v18243_v57  ;;  %v19555_v57 = vld [vmem:[#allocation9_spill] sm:$0xff] }
 0x78a   : > { %14972 = vmatprep.mubr.msk.f32.mxu1 %vm463_vm3, %v18247_v32  ;;  %v19556_v32 = vld [vmem:[#allocation15_spill] sm:$0xff] }
 0x78d   : > { %14973 = vmatmul.mubr.msk.f32.gmra.mrb[44].mxu1 %vm463_vm3, %v18251_v15  ;;  %v19557_v15 = vld [vmem:[#allocation16_spill] sm:$0xff] }
 0x78e   : > { %14975 = vmatprep.mubr.msk.f32.mxu1 %vm463_vm3, %v18255_v53  ;;  %v19558_v53 = vld [vmem:[#allocation17_spill] sm:$0xff] }
 0x791   : > { %14976 = vmatmul.mubr.msk.f32.gmra.mrb[46].mxu1 %vm463_vm3, %v18259_v43  ;;  %v19559_v43 = vld [vmem:[#allocation18_spill] sm:$0xff] }
 0x792   : > { %14978 = vmatprep.mubr.msk.f32.mxu1 %vm463_vm3, %v18263_v41  ;;  %v19560_v41 = vld [vmem:[#allocation19_spill] sm:$0xff] }
 0x795   : > { %14979 = vmatmul.mubr.msk.f32.gmra.mrb[48].mxu1 %vm463_vm3, %v18267_v16  ;;  %v19561_v16 = vld [vmem:[#allocation20_spill] sm:$0xff] }
 0x796   : > { %14981 = vmatprep.mubr.msk.f32.mxu1 %vm463_vm3, %v18271_v12  ;;  %v19562_v12 = vld [vmem:[#allocation21_spill] sm:$0xff] }
 0x799   : > { %14982 = vmatmul.mubr.msk.f32.gmra.mrb[50].mxu1 %vm463_vm3, %v18275_v54  ;;  %v19563_v54 = vld [vmem:[#allocation22_spill] sm:$0xff] }
 0x79a   : > { %14984 = vmatprep.mubr.msk.f32.mxu1 %vm463_vm3, %v18279_v51  ;;  %v19564_v51 = vld [vmem:[#allocation23_spill] sm:$0xff] }
 0x79d   : > { %14985 = vmatmul.mubr.msk.f32.gmra.mrb[52].mxu1 %vm463_vm3, %v19546_v10 }
 0x79e   : > { %14987 = vmatprep.mubr.msk.f32.mxu1 %vm463_vm3, %v19547_v21 }
 0x7a1   : > { %14988 = vmatmul.mubr.msk.f32.gmra.mrb[54].mxu1 %vm463_vm3, %v19548_v29 }
 0x7a2   : > { %14990 = vmatprep.mubr.msk.f32.mxu1 %vm463_vm3, %v19549_v2 }
 0x7a5   : > { %14991 = vmatmul.mubr.msk.f32.gmra.mrb[56].mxu1 %vm463_vm3, %v19550_v13 }
 0x7a6   : > { %14993 = vmatprep.mubr.msk.f32.mxu1 %vm463_vm3, %v19551_v56 }
 0x7a9   : > { %14994 = vmatmul.mubr.msk.f32.gmra.mrb[58].mxu1 %vm463_vm3, %v19552_v18 }
 0x7aa   : > { %14996 = vmatprep.mubr.msk.f32.mxu1 %vm463_vm3, %v19553_v39 }
 0x7ad   : > { %14997 = vmatmul.mubr.msk.f32.gmra.mrb[60].mxu1 %vm463_vm3, %v19554_v59 }
 0x7ae   : > { %14999 = vmatprep.mubr.msk.f32.mxu1 %vm463_vm3, %v10678_v33 }
 0x7b1   : > { %15000 = vmatmul.mubr.msk.f32.gmra.mrb[62].mxu1 %vm463_vm3, %v10679_v52 }
 0x7b2   : > { %15004 = vmatprep.mubr.msk.f32.mxu1 %vm463_vm3, %v19555_v57 }
 0x7b5   : > { %15005 = vmatmul.mubr.msk.f32.vlgmr.msra.gmra.mrb[32].mxu1 %vm463_vm3, %v19556_v32 }
 0x7b6   : > { %15007 = vmatprep.mubr.msk.f32.mxu1 %vm463_vm3, %v19557_v15 }
 0x7b9   : > { %15008 = vmatmul.mubr.msk.f32.gmra.mrb[34].mxu1 %vm463_vm3, %v19558_v53 }
 0x7ba   : > { %15010 = vmatprep.mubr.msk.f32.mxu1 %vm463_vm3, %v19559_v43 }
 0x7bd   : > { %15011 = vmatmul.mubr.msk.f32.gmra.mrb[36].mxu1 %vm463_vm3, %v19560_v41 }
 0x7be   : > { %15013 = vmatprep.mubr.msk.f32.mxu1 %vm463_vm3, %v19561_v16 }
 0x7c1   : > { %15014 = vmatmul.mubr.msk.f32.gmra.mrb[38].mxu1 %vm463_vm3, %v19562_v12 }
 0x7c2   : > { %15016 = vmatprep.mubr.msk.f32.mxu1 %vm463_vm3, %v19563_v54 }
 0x7c5   : > { %15017 = vmatmul.mubr.msk.f32.gmra.mrb[40].mxu1 %vm463_vm3, %v19564_v51 }
 0x7c6   : > { %15019 = vmatprep.mubr.msk.f32.mxu1 %vm463_vm3, %v19565_v28 }
 0x7c9   : > { %15020 = vmatmul.mubr.msk.f32.gmra.mrb[42].mxu1 %vm463_vm3, %v19566_v44 }
 0x7ca   : > { %15022 = vmatprep.mubr.msk.f32.mxu1 %vm463_vm3, %v19567_v40 }
 0x7cd   : > { %15023 = vmatmul.mubr.msk.f32.gmra.mrb[44].mxu1 %vm463_vm3, %v19568_v47 }
 0x7ce   : > { %15025 = vmatprep.mubr.msk.f32.mxu1 %vm463_vm3, %v19569_v25 }
 0x7d1   : > { %15026 = vmatmul.mubr.msk.f32.gmra.mrb[46].mxu1 %vm463_vm3, %v19537_v24 }
 0x7d2   : > { %15028 = vmatprep.mubr.msk.f32.mxu1 %vm463_vm3, %v19570_v34 }
 0x7d5   : > { %15029 = vmatmul.mubr.msk.f32.gmra.mrb[48].mxu1 %vm463_vm3, %v19539_v55 }
 0x7d6   : > { %15031 = vmatprep.mubr.msk.f32.mxu1 %vm463_vm3, %v19540_v9  ;;  %v19573_v9 = vld [vmem:[#allocation38_spill] sm:$0xff] }
 0x7d9   : > { %15032 = vmatmul.mubr.msk.f32.gmra.mrb[50].mxu1 %vm463_vm3, %v19541_v30  ;;  %v11066_v30 = vld [vmem:[#allocation4 + $0x1a2] sm:$0xff] }
 0x7da   : > { %15034 = vmatprep.mubr.msk.f32.mxu1 %vm463_vm3, %v19571_v50 }
 0x7dd   : > { %15035 = vmatmul.mubr.msk.f32.gmra.mrb[52].mxu1 %vm463_vm3, %v19543_v6  ;;  %v11065_v6 = vld [vmem:[#allocation4 + $0x19a] sm:$0xff] }
 0x7de   : > { %15037 = vmatprep.mubr.msk.f32.mxu1 %vm463_vm3, %v19572_v1 }
 0x7e1   : > { %15038 = vmatmul.mubr.msk.f32.gmra.mrb[54].mxu1 %vm463_vm3, %v18549_v19 }
 0x7e2   : > { %15040 = vmatprep.mubr.msk.f32.mxu1 %vm463_vm3, %v19545_v62 }
 0x7e5   : > { %15041 = vmatmul.mubr.msk.f32.gmra.mrb[56].mxu1 %vm463_vm3, %v18557_v48 }
 0x7e6   : > { %15043 = vmatprep.mubr.msk.f32.mxu1 %vm463_vm3, %v19573_v9 }
 0x7e9   : > { %15044 = vmatmul.mubr.msk.f32.gmra.mrb[58].mxu1 %vm463_vm3, %v18565_v7 }
 0x7ea   : > { %15046 = vmatprep.mubr.msk.f32.mxu1 %vm463_vm3, %v18775_v0 }
 0x7ed   : > { %15047 = vmatmul.mubr.msk.f32.gmra.mrb[60].mxu1 %vm463_vm3, %v18779_v27 }
 0x7ee   : > { %15049 = vmatprep.mubr.msk.f32.mxu1 %vm463_vm3, %v11065_v6 }
 0x7f1   : > { %15050 = vmatmul.mubr.msk.f32.gmra.mrb[62].mxu1 %vm463_vm3, %v11066_v30 }
 0x888   : > { %v18972_v19 = vpop.f32.mrb[32].mxu1 }
 0x889   : > { %v11423_v63 = vsel %vm463_vm3, %v18972_v19, 0.0  ;;  %v11498_v26 = vmul.f32 %v18972_v19, %v18972_v19  ;;  %v18978_v20 = vpop.f32.mrb[33].mxu1 }
 0x88a   : > { %v11422_v61 = vsel %vm463_vm3, %v18978_v20, 0.0  ;;  %v11497_v38 = vmul.f32 %v18978_v20, %v18978_v20 }
 0x88b   : > { %v11530_v3 = vsel %vm463_vm3, %v11498_v26, 0.0  ;;  %v11424_v23 = vadd.f32 %v11423_v63, %v11422_v61 }
 0x88c   : > { %v11529_v31 = vsel %vm463_vm3, %v11497_v38, 0.0  ;;  %v18986_v49 = vpop.f32.mrb[34].mxu1 }
 0x88d   : > { %v11531_v14 = vadd.f32 %v11530_v3, %v11529_v31  ;;  %v18988_v45 = vpop.f32.mrb[35].mxu1  ;;  %v11500_v22 = vmul.f32 %v18986_v49, %v18986_v49  ;;  %v11427_v60 = vsel %vm463_vm3, %v18986_v49, 0.0 }
 0x88e   : > { %v11425_v17 = vsel %vm463_vm3, %v18988_v45, 0.0  ;;  %v11499_v42 = vmul.f32 %v18988_v45, %v18988_v45 }
 0x88f   : > { %v11426_v36 = vadd.f32 %v11425_v17, %v11424_v23  ;;  %v11534_v4 = vsel %vm463_vm3, %v11500_v22, 0.0 }
 0x890   : > { %v11532_v5 = vsel %vm463_vm3, %v11499_v42, 0.0  ;;  %v18999_v37 = vpop.f32.mrb[36].mxu1 }
 0x891   : > { %v11533_v48 = vadd.f32 %v11532_v5, %v11531_v14  ;;  %v19001_v35 = vpop.f32.mrb[37].mxu1  ;;  %v11428_v7 = vadd.f32 %v11427_v60, %v11426_v36  ;;  %v11502_v46 = vmul.f32 %v18999_v37, %v18999_v37  ;;  %v11431_v27 = vsel %vm463_vm3, %v18999_v37, 0.0 }
 0x892   : > { %v11429_v58 = vsel %vm463_vm3, %v19001_v35, 0.0  ;;  %v11501_v62 = vmul.f32 %v19001_v35, %v19001_v35 }
 0x893   : > { %v11430_v55 = vadd.f32 %v11429_v58, %v11428_v7  ;;  %v11535_v0 = vadd.f32 %v11534_v4, %v11533_v48  ;;  %v11538_v29 = vsel %vm463_vm3, %v11502_v46, 0.0 }
 0x894   : > { %v11536_v24 = vsel %vm463_vm3, %v11501_v62, 0.0  ;;  %v19013_v11 = vpop.f32.mrb[38].mxu1 }
 0x895   : > { %v11537_v8 = vadd.f32 %v11536_v24, %v11535_v0  ;;  %v19015_v10 = vpop.f32.mrb[39].mxu1  ;;  %v11432_v21 = vadd.f32 %v11431_v27, %v11430_v55  ;;  %v11504_v2 = vmul.f32 %v19013_v11, %v19013_v11  ;;  %v11435_v33 = vsel %vm463_vm3, %v19013_v11, 0.0 }
 0x896   : > { %v11433_v13 = vsel %vm463_vm3, %v19015_v10, 0.0  ;;  %v11503_v56 = vmul.f32 %v19015_v10, %v19015_v10 }
 0x897   : > { %v11434_v18 = vadd.f32 %v11433_v13, %v11432_v21  ;;  %v11539_v39 = vadd.f32 %v11538_v29, %v11537_v8  ;;  %v11542_v53 = vsel %vm463_vm3, %v11504_v2, 0.0 }
 0x898   : > { %v11540_v59 = vsel %vm463_vm3, %v11503_v56, 0.0  ;;  %v19027_v52 = vpop.f32.mrb[40].mxu1 }
 0x899   : > { %v11541_v57 = vadd.f32 %v11540_v59, %v11539_v39  ;;  %v19029_v32 = vpop.f32.mrb[41].mxu1  ;;  %v11436_v15 = vadd.f32 %v11435_v33, %v11434_v18  ;;  %v11506_v43 = vmul.f32 %v19027_v52, %v19027_v52  ;;  %v11439_v51 = vsel %vm463_vm3, %v19027_v52, 0.0 }
 0x89a   : > { %v11437_v41 = vsel %vm463_vm3, %v19029_v32, 0.0  ;;  %v11505_v16 = vmul.f32 %v19029_v32, %v19029_v32 }
 0x89b   : > { %v11438_v12 = vadd.f32 %v11437_v41, %v11436_v15  ;;  %v11543_v54 = vadd.f32 %v11542_v53, %v11541_v57  ;;  %v11546_v34 = vsel %vm463_vm3, %v11506_v43, 0.0 }
 0x89c   : > { %v11544_v28 = vsel %vm463_vm3, %v11505_v16, 0.0  ;;  %v19041_v44 = vpop.f32.mrb[42].mxu1 }
 0x89d   : > { %v11545_v40 = vadd.f32 %v11544_v28, %v11543_v54  ;;  %v19043_v47 = vpop.f32.mrb[43].mxu1  ;;  %v11440_v25 = vadd.f32 %v11439_v51, %v11438_v12  ;;  %v11508_v50 = vmul.f32 %v19041_v44, %v19041_v44  ;;  %v11443_v63 = vsel %vm463_vm3, %v19041_v44, 0.0 }
 0x89e   : > { %v11441_v1 = vsel %vm463_vm3, %v19043_v47, 0.0  ;;  %v11507_v9 = vmul.f32 %v19043_v47, %v19043_v47 }
 0x89f   : > { %v11442_v6 = vadd.f32 %v11441_v1, %v11440_v25  ;;  %v11547_v30 = vadd.f32 %v11546_v34, %v11545_v40  ;;  %v11550_v31 = vsel %vm463_vm3, %v11508_v50, 0.0 }
 0x8a0   : > { %v11548_v26 = vsel %vm463_vm3, %v11507_v9, 0.0  ;;  %v19055_v61 = vpop.f32.mrb[44].mxu1 }
 0x8a1   : > { %v11549_v38 = vadd.f32 %v11548_v26, %v11547_v30  ;;  %v19057_v3 = vpop.f32.mrb[45].mxu1  ;;  %v11444_v23 = vadd.f32 %v11443_v63, %v11442_v6  ;;  %v11510_v14 = vmul.f32 %v19055_v61, %v19055_v61  ;;  %v11447_v60 = vsel %vm463_vm3, %v19055_v61, 0.0 }
 0x8a2   : > { %v11445_v22 = vsel %vm463_vm3, %v19057_v3, 0.0  ;;  %v11509_v17 = vmul.f32 %v19057_v3, %v19057_v3 }
 0x8a3   : > { %v11446_v42 = vadd.f32 %v11445_v22, %v11444_v23  ;;  %v11551_v36 = vadd.f32 %v11550_v31, %v11549_v38  ;;  %v11554_v58 = vsel %vm463_vm3, %v11510_v14, 0.0 }
 0x8a4   : > { %v11552_v5 = vsel %vm463_vm3, %v11509_v17, 0.0  ;;  %v19069_v48 = vpop.f32.mrb[46].mxu1 }
 0x8a5   : > { %v11553_v7 = vadd.f32 %v11552_v5, %v11551_v36  ;;  %v19071_v4 = vpop.f32.mrb[47].mxu1  ;;  %v11448_v46 = vadd.f32 %v11447_v60, %v11446_v42  ;;  %v11512_v62 = vmul.f32 %v19069_v48, %v19069_v48  ;;  %v11451_v8 = vsel %vm463_vm3, %v19069_v48, 0.0 }
 0x8a6   : > { %v11449_v55 = vsel %vm463_vm3, %v19071_v4, 0.0  ;;  %v11511_v0 = vmul.f32 %v19071_v4, %v19071_v4 }
 0x8a7   : > { %v11450_v27 = vadd.f32 %v11449_v55, %v11448_v46  ;;  %v11555_v24 = vadd.f32 %v11554_v58, %v11553_v7  ;;  %v11558_v18 = vsel %vm463_vm3, %v11512_v62, 0.0 }
 0x8a8   : > { %v11556_v21 = vsel %vm463_vm3, %v11511_v0, 0.0  ;;  %v19083_v29 = vpop.f32.mrb[48].mxu1 }
 0x8a9   : > { %v11557_v2 = vadd.f32 %v11556_v21, %v11555_v24  ;;  %v19085_v13 = vpop.f32.mrb[49].mxu1  ;;  %v11452_v56 = vadd.f32 %v11451_v8, %v11450_v27  ;;  %v11514_v39 = vmul.f32 %v19083_v29, %v19083_v29  ;;  %v11455_v53 = vsel %vm463_vm3, %v19083_v29, 0.0 }
 0x8aa   : > { %v11453_v33 = vsel %vm463_vm3, %v19085_v13, 0.0  ;;  %v11513_v59 = vmul.f32 %v19085_v13, %v19085_v13 }
 0x8ab   : > { %v11454_v57 = vadd.f32 %v11453_v33, %v11452_v56  ;;  %v11559_v15 = vadd.f32 %v11558_v18, %v11557_v2  ;;  %v11562_v51 = vsel %vm463_vm3, %v11514_v39, 0.0 }
 0x8ac   : > { %v11560_v43 = vsel %vm463_vm3, %v11513_v59, 0.0  ;;  %v19097_v41 = vpop.f32.mrb[50].mxu1 }
 0x8ad   : > { %v11561_v16 = vadd.f32 %v11560_v43, %v11559_v15  ;;  %v19099_v12 = vpop.f32.mrb[51].mxu1  ;;  %v11456_v54 = vadd.f32 %v11455_v53, %v11454_v57  ;;  %v11516_v28 = vmul.f32 %v19097_v41, %v19097_v41  ;;  %v11459_v1 = vsel %vm463_vm3, %v19097_v41, 0.0 }
 0x8ae   : > { %v11457_v40 = vsel %vm463_vm3, %v19099_v12, 0.0  ;;  %v11515_v25 = vmul.f32 %v19099_v12, %v19099_v12 }
 0x8af   : > { %v11458_v34 = vadd.f32 %v11457_v40, %v11456_v54  ;;  %v11563_v50 = vadd.f32 %v11562_v51, %v11561_v16  ;;  %v11566_v38 = vsel %vm463_vm3, %v11516_v28, 0.0 }
 0x8b0   : > { %v11564_v9 = vsel %vm463_vm3, %v11515_v25, 0.0  ;;  %v19111_v6 = vpop.f32.mrb[52].mxu1 }
 0x8b1   : > { %v11565_v30 = vadd.f32 %v11564_v9, %v11563_v50  ;;  %v19113_v63 = vpop.f32.mrb[53].mxu1  ;;  %v11460_v26 = vadd.f32 %v11459_v1, %v11458_v34  ;;  %v11518_v23 = vmul.f32 %v19111_v6, %v19111_v6  ;;  %v11463_v42 = vsel %vm463_vm3, %v19111_v6, 0.0 }
 0x8b2   : > { %v11461_v31 = vsel %vm463_vm3, %v19113_v63, 0.0  ;;  %v11517_v14 = vmul.f32 %v19113_v63, %v19113_v63 }
 0x8b3   : > { %v11462_v22 = vadd.f32 %v11461_v31, %v11460_v26  ;;  %v11567_v17 = vadd.f32 %v11566_v38, %v11565_v30  ;;  %v11570_v58 = vsel %vm463_vm3, %v11518_v23, 0.0 }
 0x8b4   : > { %v11568_v36 = vsel %vm463_vm3, %v11517_v14, 0.0  ;;  %v19125_v60 = vpop.f32.mrb[54].mxu1 }
 0x8b5   : > { %v11569_v5 = vadd.f32 %v11568_v36, %v11567_v17  ;;  %v19127_v7 = vpop.f32.mrb[55].mxu1  ;;  %v11464_v46 = vadd.f32 %v11463_v42, %v11462_v22  ;;  %v11520_v62 = vmul.f32 %v19125_v60, %v19125_v60  ;;  %v11467_v8 = vsel %vm463_vm3, %v19125_v60, 0.0 }
 0x8b6   : > { %v11465_v55 = vsel %vm463_vm3, %v19127_v7, 0.0  ;;  %v11519_v0 = vmul.f32 %v19127_v7, %v19127_v7 }
 0x8b7   : > { %v11466_v27 = vadd.f32 %v11465_v55, %v11464_v46  ;;  %v11571_v24 = vadd.f32 %v11570_v58, %v11569_v5  ;;  %v11574_v33 = vsel %vm463_vm3, %v11520_v62, 0.0 }
 0x8b8   : > { %v11572_v21 = vsel %vm463_vm3, %v11519_v0, 0.0  ;;  %v19139_v2 = vpop.f32.mrb[56].mxu1 }
 0x8b9   : > { %v11573_v56 = vadd.f32 %v11572_v21, %v11571_v24  ;;  %v19141_v18 = vpop.f32.mrb[57].mxu1  ;;  %v11468_v39 = vadd.f32 %v11467_v8, %v11466_v27  ;;  %v11522_v59 = vmul.f32 %v19139_v2, %v19139_v2  ;;  %v11471_v16 = vsel %vm463_vm3, %v19139_v2, 0.0 }
 0x8ba   : > { %v11469_v57 = vsel %vm463_vm3, %v19141_v18, 0.0  ;;  %v11521_v15 = vmul.f32 %v19141_v18, %v19141_v18 }
 0x8bb   : > { %v11470_v53 = vadd.f32 %v11469_v57, %v11468_v39  ;;  %v11575_v43 = vadd.f32 %v11574_v33, %v11573_v56  ;;  %v11578_v34 = vsel %vm463_vm3, %v11522_v59, 0.0 }
 0x8bc   : > { %v11576_v54 = vsel %vm463_vm3, %v11521_v15, 0.0  ;;  %v19153_v51 = vpop.f32.mrb[58].mxu1 }
 0x8bd   : > { %v11577_v28 = vadd.f32 %v11576_v54, %v11575_v43  ;;  %v19155_v40 = vpop.f32.mrb[59].mxu1  ;;  %v11472_v25 = vadd.f32 %v11471_v16, %v11470_v53  ;;  %v11524_v50 = vmul.f32 %v19153_v51, %v19153_v51  ;;  %v11475_v38 = vsel %vm463_vm3, %v19153_v51, 0.0 }
 0x8be   : > { %v11473_v1 = vsel %vm463_vm3, %v19155_v40, 0.0  ;;  %v11523_v9 = vmul.f32 %v19155_v40, %v19155_v40 }
 0x8bf   : > { %v11474_v30 = vadd.f32 %v11473_v1, %v11472_v25  ;;  %v11579_v26 = vadd.f32 %v11578_v34, %v11577_v28  ;;  %v11582_v42 = vsel %vm463_vm3, %v11524_v50, 0.0 }
 0x8c0   : > { %v11580_v23 = vsel %vm463_vm3, %v11523_v9, 0.0  ;;  %v19167_v31 = vpop.f32.mrb[60].mxu1 }
 0x8c1   : > { %v11581_v14 = vadd.f32 %v11580_v23, %v11579_v26  ;;  %v19169_v22 = vpop.f32.mrb[61].mxu1  ;;  %v11476_v17 = vadd.f32 %v11475_v38, %v11474_v30  ;;  %v11526_v36 = vmul.f32 %v19167_v31, %v19167_v31  ;;  %v11479_v55 = vsel %vm463_vm3, %v19167_v31, 0.0 }
 0x8c2   : > { %v11477_v5 = vsel %vm463_vm3, %v19169_v22, 0.0  ;;  %v11525_v46 = vmul.f32 %v19169_v22, %v19169_v22 }
 0x8c3   : > { %v11478_v58 = vadd.f32 %v11477_v5, %v11476_v17  ;;  %v11583_v62 = vadd.f32 %v11582_v42, %v11581_v14  ;;  %v11586_v56 = vsel %vm463_vm3, %v11526_v36, 0.0 }
 0x8c4   : > { %v11584_v0 = vsel %vm463_vm3, %v11525_v46, 0.0  ;;  %v19181_v27 = vpop.f32.mrb[62].mxu1 }
 0x8c5   : > { %v11585_v24 = vadd.f32 %v11584_v0, %v11583_v62  ;;  %v19183_v8 = vpop.f32.mrb[63].mxu1  ;;  %v11480_v21 = vadd.f32 %v11479_v55, %v11478_v58  ;;  %v11528_v39 = vmul.f32 %v19181_v27, %v19181_v27  ;;  %v11483_v43 = vsel %vm463_vm3, %v19181_v27, 0.0 }
 0x8c6   : > { %v11481_v33 = vsel %vm463_vm3, %v19183_v8, 0.0  ;;  %v11527_v59 = vmul.f32 %v19183_v8, %v19183_v8 }
 0x8c7   : > { %v11482_v57 = vadd.f32 %v11481_v33, %v11480_v21  ;;  %v11587_v15 = vadd.f32 %v11586_v56, %v11585_v24  ;;  %v11590_v28 = vsel %vm463_vm3, %v11528_v39, 0.0 }
 0x8c8   : > { %v11588_v53 = vsel %vm463_vm3, %v11527_v59, 0.0 }
 0x8c9   : > { %v11484_v16 = vadd.f32 %v11483_v43, %v11482_v57  ;;  %v11589_v54 = vadd.f32 %v11588_v53, %v11587_v15 }
 0x8cb   : > { %11485 = vadd.xlane.f32.xlu1 %v11484_v16  ;;  %v11591_v25 = vadd.f32 %v11590_v28, %v11589_v54 }
 0x8cf   : > { %11592 = vadd.xlane.f32.xlu1 %v11591_v25 }
 0x958   : > { %v11486_v34 = vpop.xlane.xlu1 %11485 }
 0x959   : > { %v11487_v50 = vrot.slane %v11486_v34, 4 }
 0x95b   : > { %v11488_v1 = vadd.f32 %v11487_v50, %v11486_v34 }
 0x95c   : > { %v11593_v9 = vpop.xlane.xlu1 %11592 }
 0x95d   : > { %v11489_v30 = vrot.slane %v11488_v1, 2  ;;  %v11594_v26 = vrot.slane %v11593_v9, 4 }
 0x95f   : > { %v11595_v38 = vadd.f32 %v11594_v26, %v11593_v9  ;;  %v11490_v23 = vadd.f32 %v11489_v30, %v11488_v1 }
 0x961   : > { %v11596_v14 = vrot.slane %v11595_v38, 2  ;;  %v11491_v17 = vrot.slane %v11490_v23, 1 }
 0x963   : > { %v11597_v42 = vadd.f32 %v11596_v14, %v11595_v38  ;;  %v11492_v36 = vadd.f32 %v11491_v17, %v11490_v23 }
 0x965   : > { %15860 = vpush %v11492_v36  ;;  %v11598_v5 = vrot.slane %v11597_v42, 1 }
 0x967   : > { %v11599_v46 = vadd.f32 %v11598_v5, %v11597_v42  ;;  %v12804_v42 = vld [vmem:[%s19384_s7] ss:$0 sm:$0xff] }
 0x969   : > { %15862 = vpush %v11599_v46 }
 0x996   : > { %s15861_s29 = spop %15860 }
 0x997   : > { %s11496_s10 = smul.f32 0.00048828125, %s15861_s29 }
 0x999   : > { %v19196_v58 = vstv %s11496_s10  ;;  %s11604_s11 = smul.f32 %s11496_s10, %s11496_s10 }
 0x99a   : > { %s15863_s12 = spop %15862  ;;  %v11607_v62 = vsub.f32 %v18978_v20, %v19196_v58  ;;  %v11608_v55 = vsub.f32 %v18972_v19, %v19196_v58  ;;  %v11609_v0 = vsub.f32 %v18988_v45, %v19196_v58  ;;  %v11610_v24 = vsub.f32 %v18986_v49, %v19196_v58 }
 0x99b   : > { %s11603_s13 = smul.f32 0.00048828125, %s15863_s12  ;;  %v11611_v21 = vsub.f32 %v19001_v35, %v19196_v58  ;;  %v11612_v56 = vsub.f32 %v18999_v37, %v19196_v58  ;;  %v11613_v39 = vsub.f32 %v19015_v10, %v19196_v58  ;;  %v11614_v20 = vsub.f32 %v19013_v11, %v19196_v58 }
 0x99c   : > { %v11615_v19 = vsub.f32 %v19029_v32, %v19196_v58  ;;  %v11616_v45 = vsub.f32 %v19027_v52, %v19196_v58  ;;  %v11617_v49 = vsub.f32 %v19043_v47, %v19196_v58  ;;  %v11618_v35 = vsub.f32 %v19041_v44, %v19196_v58 }
 0x99d   : > { %s11605_s14 = ssub.f32 %s11603_s13, %s11604_s11  ;;  %v11619_v37 = vsub.f32 %v19057_v3, %v19196_v58  ;;  %v11620_v10 = vsub.f32 %v19055_v61, %v19196_v58  ;;  %v11621_v11 = vsub.f32 %v19071_v4, %v19196_v58  ;;  %v11622_v32 = vsub.f32 %v19069_v48, %v19196_v58 }
 0x99e   : > { %v11623_v52 = vsub.f32 %v19085_v13, %v19196_v58  ;;  %v11624_v47 = vsub.f32 %v19083_v29, %v19196_v58  ;;  %v11625_v44 = vsub.f32 %v19099_v12, %v19196_v58  ;;  %v11626_v3 = vsub.f32 %v19097_v41, %v19196_v58 }
 0x99f   : > { %s11639_s16 = sadd.f32 1e-05, %s11605_s14  ;;  %v11627_v61 = vsub.f32 %v19113_v63, %v19196_v58  ;;  %v11628_v4 = vsub.f32 %v19111_v6, %v19196_v58  ;;  %v11629_v48 = vsub.f32 %v19127_v7, %v19196_v58  ;;  %v11630_v13 = vsub.f32 %v19125_v60, %v19196_v58 }
 0x9a0   : > { %v11631_v29 = vsub.f32 %v19141_v18, %v19196_v58  ;;  %v11632_v12 = vsub.f32 %v19139_v2, %v19196_v58  ;;  %v11633_v41 = vsub.f32 %v19155_v40, %v19196_v58  ;;  %v11634_v63 = vsub.f32 %v19153_v51, %v19196_v58 }
 0x9a1   : > { %v11640_v33 = vstv %s11639_s16  ;;  %v11635_v6 = vsub.f32 %v19169_v22, %v19196_v58  ;;  %v11636_v7 = vsub.f32 %v19167_v31, %v19196_v58  ;;  %v11637_v60 = vsub.f32 %v19183_v8, %v19196_v58 }
 0x9a2   : > { %15877 = vrsqrt.f32 %v11640_v33  ;;  %v11638_v2 = vsub.f32 %v19181_v27, %v19196_v58  ;;  %v12805_v33 = vld [vmem:[%s19385_s8] ss:$0 sm:$0xff] }
 0x9ac   : > { %v15878_v18 = vpop.eup %15877 }
 0x9ad   : > { %15864 = vpush %v15878_v18 }
 0x9de   : > { %s15865_s17 = spop %15864 }
 0x9df   : > { %v11643_v40 = vstv %s15865_s17 }
 0x9e0   : > { %v11644_v59 = vmul.f32 %v11643_v40, %v11607_v62  ;;  %v11645_v51 = vmul.f32 %v11643_v40, %v11608_v55  ;;  %v11646_v57 = vmul.f32 %v11643_v40, %v11609_v0  ;;  %v11647_v15 = vmul.f32 %v11643_v40, %v11610_v24 }
 0x9e1   : > { %v11648_v53 = vmul.f32 %v11643_v40, %v11611_v21  ;;  %v11649_v22 = vmul.f32 %v11643_v40, %v11612_v56  ;;  %v11650_v43 = vmul.f32 %v11643_v40, %v11613_v39  ;;  %v11651_v16 = vmul.f32 %v11643_v40, %v11614_v20 }
 0x9e2   : > { %v11652_v31 = vmul.f32 %v11643_v40, %v11615_v19  ;;  %v11653_v54 = vmul.f32 %v11643_v40, %v11616_v45  ;;  %v11654_v28 = vmul.f32 %v11643_v40, %v11617_v49  ;;  %v11655_v8 = vmul.f32 %v11643_v40, %v11618_v35 }
 0x9e3   : > { %v11656_v25 = vmul.f32 %v11643_v40, %v11619_v37  ;;  %v11657_v34 = vmul.f32 %v11643_v40, %v11620_v10  ;;  %v11658_v50 = vmul.f32 %v11643_v40, %v11621_v11  ;;  %v11659_v27 = vmul.f32 %v11643_v40, %v11622_v32 }
 0x9e4   : > { %v11660_v1 = vmul.f32 %v11643_v40, %v11623_v52  ;;  %v11661_v9 = vmul.f32 %v11643_v40, %v11624_v47  ;;  %v11662_v30 = vmul.f32 %v11643_v40, %v11625_v44  ;;  %v11663_v26 = vmul.f32 %v11643_v40, %v11626_v3 }
 0x9e5   : > { %v11664_v38 = vmul.f32 %v11643_v40, %v11627_v61  ;;  %v11665_v23 = vmul.f32 %v11643_v40, %v11628_v4  ;;  %v11666_v14 = vmul.f32 %v11643_v40, %v11629_v48  ;;  %v11667_v17 = vmul.f32 %v11643_v40, %v11630_v13 }
 0x9e6   : > { %v11668_v36 = vmul.f32 %v11643_v40, %v11631_v29  ;;  %v11669_v5 = vmul.f32 %v11643_v40, %v11632_v12  ;;  %v11670_v46 = vmul.f32 %v11643_v40, %v11633_v41  ;;  %v11671_v58 = vmul.f32 %v11643_v40, %v11634_v63 }
 0x9e7   : > { %v11672_v62 = vmul.f32 %v11643_v40, %v11635_v6  ;;  %v11673_v55 = vmul.f32 %v11643_v40, %v11636_v7  ;;  %v11674_v0 = vmul.f32 %v11643_v40, %v11637_v60  ;;  %v11675_v24 = vmul.f32 %v11643_v40, %v11638_v2 }
 0x9e8   : > { %v11683_v21 = vmul.f32 %v12804_v42, %v11644_v59  ;;  %v11684_v56 = vmul.f32 %v12804_v42, %v11645_v51  ;;  %v11685_v39 = vmul.f32 %v12804_v42, %v11646_v57  ;;  %v11686_v20 = vmul.f32 %v12804_v42, %v11647_v15 }
 0x9e9   : > { %v11687_v19 = vmul.f32 %v12804_v42, %v11648_v53  ;;  %v11688_v45 = vmul.f32 %v12804_v42, %v11649_v22  ;;  %v11689_v49 = vmul.f32 %v12804_v42, %v11650_v43  ;;  %v11690_v35 = vmul.f32 %v12804_v42, %v11651_v16 }
 0x9ea   : > { %v11691_v37 = vmul.f32 %v12804_v42, %v11652_v31  ;;  %v11692_v10 = vmul.f32 %v12804_v42, %v11653_v54  ;;  %v11693_v11 = vmul.f32 %v12804_v42, %v11654_v28  ;;  %v11694_v32 = vmul.f32 %v12804_v42, %v11655_v8 }
 0x9eb   : > { %v11695_v52 = vmul.f32 %v12804_v42, %v11656_v25  ;;  %v11696_v47 = vmul.f32 %v12804_v42, %v11657_v34  ;;  %v11697_v44 = vmul.f32 %v12804_v42, %v11658_v50  ;;  %v11698_v3 = vmul.f32 %v12804_v42, %v11659_v27 }
 0x9ec   : > { %v11699_v61 = vmul.f32 %v12804_v42, %v11660_v1  ;;  %v11700_v4 = vmul.f32 %v12804_v42, %v11661_v9  ;;  %v11701_v48 = vmul.f32 %v12804_v42, %v11662_v30  ;;  %v11702_v13 = vmul.f32 %v12804_v42, %v11663_v26 }
 0x9ed   : > { %v11703_v29 = vmul.f32 %v12804_v42, %v11664_v38  ;;  %v11704_v12 = vmul.f32 %v12804_v42, %v11665_v23  ;;  %v11705_v41 = vmul.f32 %v12804_v42, %v11666_v14  ;;  %v11706_v63 = vmul.f32 %v12804_v42, %v11667_v17 }
 0x9ee   : > { %v11707_v6 = vmul.f32 %v12804_v42, %v11668_v36  ;;  %v11708_v7 = vmul.f32 %v12804_v42, %v11669_v5  ;;  %v11709_v60 = vmul.f32 %v12804_v42, %v11670_v46  ;;  %v11710_v2 = vmul.f32 %v12804_v42, %v11671_v58 }
 0x9ef   : > { %v11711_v18 = vmul.f32 %v12804_v42, %v11672_v62  ;;  %v11712_v40 = vmul.f32 %v12804_v42, %v11673_v55  ;;  %v11713_v59 = vmul.f32 %v12804_v42, %v11674_v0  ;;  %v11714_v51 = vmul.f32 %v12804_v42, %v11675_v24 }
 0x9f0   : > { %v11722_v57 = vadd.f32 %v12805_v33, %v11683_v21  ;;  %v11723_v15 = vadd.f32 %v12805_v33, %v11684_v56  ;;  %v11724_v53 = vadd.f32 %v12805_v33, %v11685_v39  ;;  %v11725_v22 = vadd.f32 %v12805_v33, %v11686_v20 }
 0x9f1   : > { %v11726_v43 = vadd.f32 %v12805_v33, %v11687_v19  ;;  %v11727_v16 = vadd.f32 %v12805_v33, %v11688_v45  ;;  %v11728_v31 = vadd.f32 %v12805_v33, %v11689_v49  ;;  %v11729_v54 = vadd.f32 %v12805_v33, %v11690_v35 }
 0x9f2   : > { %v11730_v28 = vadd.f32 %v12805_v33, %v11691_v37  ;;  %v11731_v8 = vadd.f32 %v12805_v33, %v11692_v10  ;;  %v11732_v25 = vadd.f32 %v12805_v33, %v11693_v11  ;;  %v11733_v34 = vadd.f32 %v12805_v33, %v11694_v32 }
 0x9f3   : > { %v11734_v50 = vadd.f32 %v12805_v33, %v11695_v52  ;;  %v11735_v27 = vadd.f32 %v12805_v33, %v11696_v47  ;;  %v11736_v1 = vadd.f32 %v12805_v33, %v11697_v44  ;;  %v11737_v9 = vadd.f32 %v12805_v33, %v11698_v3 }
 0x9f4   : > { %v11738_v30 = vadd.f32 %v12805_v33, %v11699_v61  ;;  %v11739_v26 = vadd.f32 %v12805_v33, %v11700_v4  ;;  %v11740_v38 = vadd.f32 %v12805_v33, %v11701_v48  ;;  %v11741_v23 = vadd.f32 %v12805_v33, %v11702_v13 }
 0x9f5   : > { %v19268_v14 = vadd.f32 %v12805_v33, %v11703_v29  ;;  %v19270_v17 = vadd.f32 %v12805_v33, %v11704_v12  ;;  %v19272_v42 = vadd.f32 %v12805_v33, %v11705_v41  ;;  %v19274_v36 = vadd.f32 %v12805_v33, %v11706_v63 }
 0x9f6   : > { %v19276_v5 = vadd.f32 %v12805_v33, %v11707_v6  ;;  %v19278_v46 = vadd.f32 %v12805_v33, %v11708_v7  ;;  %v19280_v58 = vadd.f32 %v12805_v33, %v11709_v60  ;;  %v19282_v62 = vadd.f32 %v12805_v33, %v11710_v2 }
 0x9f7   : > { %v19290_v55 = vadd.f32 %v12805_v33, %v11711_v18  ;;  %v19292_v0 = vadd.f32 %v12805_v33, %v11712_v40  ;;  %v19294_v24 = vadd.f32 %v12805_v33, %v11713_v59  ;;  %v19296_v21 = vadd.f32 %v12805_v33, %v11714_v51 }
 0x9f8   : > { %v11754_v56 = vmax.f32 %v11722_v57, 0.0  ;;  %v11755_v39 = vmax.f32 %v11723_v15, 0.0  ;;  %v11756_v20 = vmax.f32 %v11724_v53, 0.0  ;;  %v11757_v19 = vmax.f32 %v11725_v22, 0.0 }
 0x9f9   : > { %v11758_v45 = vmax.f32 %v11726_v43, 0.0  ;;  %v11759_v49 = vmax.f32 %v11727_v16, 0.0  ;;  %v11760_v35 = vmax.f32 %v11728_v31, 0.0  ;;  %v11761_v37 = vmax.f32 %v11729_v54, 0.0 }
 0x9fa   : > { %v11762_v10 = vmax.f32 %v11730_v28, 0.0  ;;  %v11763_v11 = vmax.f32 %v11731_v8, 0.0  ;;  %v11764_v32 = vmax.f32 %v11732_v25, 0.0  ;;  %v11765_v52 = vmax.f32 %v11733_v34, 0.0  ;;  %11786 = vst.msk [vmem:[%s19288_s24] sm:$0xff] %vm463_vm3, %v11754_v56  ;;  %11787 = vst.msk [vmem:[%s19288_s24 + $0x8] sm:$0xff] %vm463_vm3, %v11755_v39 }
 0x9fb   : > { %11788 = vst.msk [vmem:[%s19288_s24 + $0x10] sm:$0xff] %vm463_vm3, %v11756_v20  ;;  %11789 = vst.msk [vmem:[%s19288_s24 + $0x18] sm:$0xff] %vm463_vm3, %v11757_v19  ;;  %v11766_v47 = vmax.f32 %v11734_v50, 0.0  ;;  %v11767_v44 = vmax.f32 %v11735_v27, 0.0  ;;  %v11768_v3 = vmax.f32 %v11736_v1, 0.0  ;;  %v11769_v61 = vmax.f32 %v11737_v9, 0.0 }
 0x9fc   : > { %11790 = vst.msk [vmem:[%s19288_s24 + $0x20] sm:$0xff] %vm463_vm3, %v11758_v45  ;;  %11791 = vst.msk [vmem:[%s19288_s24 + $0x28] sm:$0xff] %vm463_vm3, %v11759_v49  ;;  %v11770_v4 = vmax.f32 %v11738_v30, 0.0  ;;  %v11771_v48 = vmax.f32 %v11739_v26, 0.0  ;;  %v11772_v13 = vmax.f32 %v11740_v38, 0.0  ;;  %v11773_v29 = vmax.f32 %v11741_v23, 0.0 }
 0x9fd   : > { %11792 = vst.msk [vmem:[%s19288_s24 + $0x30] sm:$0xff] %vm463_vm3, %v11760_v35  ;;  %11793 = vst.msk [vmem:[%s19288_s24 + $0x38] sm:$0xff] %vm463_vm3, %v11761_v37  ;;  %v11774_v12 = vmax.f32 %v19268_v14, 0.0  ;;  %v11775_v41 = vmax.f32 %v19270_v17, 0.0  ;;  %v11776_v63 = vmax.f32 %v19272_v42, 0.0  ;;  %v11777_v33 = vmax.f32 %v19274_v36, 0.0 }
 0x9fe   : > { %11794 = vst.msk [vmem:[%s19288_s24 + $0x40] sm:$0xff] %vm463_vm3, %v11762_v10  ;;  %11795 = vst.msk [vmem:[%s19288_s24 + $0x48] sm:$0xff] %vm463_vm3, %v11763_v11  ;;  %v11778_v6 = vmax.f32 %v19276_v5, 0.0  ;;  %v11779_v7 = vmax.f32 %v19278_v46, 0.0  ;;  %v11780_v60 = vmax.f32 %v19280_v58, 0.0  ;;  %v11781_v2 = vmax.f32 %v19282_v62, 0.0 }
 0x9ff   : > { %11796 = vst.msk [vmem:[%s19288_s24 + $0x50] sm:$0xff] %vm463_vm3, %v11764_v32  ;;  %11797 = vst.msk [vmem:[%s19288_s24 + $0x58] sm:$0xff] %vm463_vm3, %v11765_v52  ;;  %v11782_v18 = vmax.f32 %v19290_v55, 0.0  ;;  %v11783_v40 = vmax.f32 %v19292_v0, 0.0  ;;  %v11784_v59 = vmax.f32 %v19294_v24, 0.0  ;;  %v11785_v51 = vmax.f32 %v19296_v21, 0.0 }
 0xa00   : > { %11798 = vst.msk [vmem:[%s19288_s24 + $0x60] sm:$0xff] %vm463_vm3, %v11766_v47  ;;  %11799 = vst.msk [vmem:[%s19288_s24 + $0x68] sm:$0xff] %vm463_vm3, %v11767_v44 }
 0xa01   : > { %11800 = vst.msk [vmem:[%s19288_s24 + $0x70] sm:$0xff] %vm463_vm3, %v11768_v3  ;;  %11801 = vst.msk [vmem:[%s19288_s24 + $0x78] sm:$0xff] %vm463_vm3, %v11769_v61 }
 0xa02   : > { %11802 = vst.msk [vmem:[%s19288_s24 + $0x80] sm:$0xff] %vm463_vm3, %v11770_v4  ;;  %11803 = vst.msk [vmem:[%s19288_s24 + $0x88] sm:$0xff] %vm463_vm3, %v11771_v48 }
 0xa03   : > { %11804 = vst.msk [vmem:[%s19288_s24 + $0x90] sm:$0xff] %vm463_vm3, %v11772_v13  ;;  %11805 = vst.msk [vmem:[%s19288_s24 + $0x98] sm:$0xff] %vm463_vm3, %v11773_v29 }
 0xa04   : > { %11806 = vst.msk [vmem:[%s19288_s24 + $0xa0] sm:$0xff] %vm463_vm3, %v11774_v12  ;;  %11807 = vst.msk [vmem:[%s19288_s24 + $0xa8] sm:$0xff] %vm463_vm3, %v11775_v41 }
 0xa05   : > { %11808 = vst.msk [vmem:[%s19288_s24 + $0xb0] sm:$0xff] %vm463_vm3, %v11776_v63  ;;  %11809 = vst.msk [vmem:[%s19288_s24 + $0xb8] sm:$0xff] %vm463_vm3, %v11777_v33 }
 0xa06   : > { %11810 = vst.msk [vmem:[%s19288_s24 + $0xc0] sm:$0xff] %vm463_vm3, %v11778_v6  ;;  %11811 = vst.msk [vmem:[%s19288_s24 + $0xc8] sm:$0xff] %vm463_vm3, %v11779_v7 }
 0xa07   : > { %11812 = vst.msk [vmem:[%s19288_s24 + $0xd0] sm:$0xff] %vm463_vm3, %v11780_v60  ;;  %11813 = vst.msk [vmem:[%s19288_s24 + $0xd8] sm:$0xff] %vm463_vm3, %v11781_v2 }
 0xa08   : > { %11814 = vst.msk [vmem:[%s19288_s24 + $0xe0] sm:$0xff] %vm463_vm3, %v11782_v18  ;;  %11815 = vst.msk [vmem:[%s19288_s24 + $0xe8] sm:$0xff] %vm463_vm3, %v11783_v40 }
 0xa09   : > { %11816 = vst.msk [vmem:[%s19288_s24 + $0xf0] sm:$0xff] %vm463_vm3, %v11784_v59  ;;  %11817 = vst.msk [vmem:[%s19288_s24 + $0xf8] sm:$0xff] %vm463_vm3, %v11785_v51 }
 0xa0a PF: > { %s19_s30 = sadd.s32 1, %s15895_s30  }
 0xa0b   : > { %p16_p4 = scmp.ge.s32.totalorder %s19_s30, 4  }
 0xa0d   :  { %18 = sbr.rel (!%p16_p4) target bundleno = 1 (0x1), region = 119 }

</bundles_post_ra>
